<compile_context>
chip_gen: v7x
topology: tpu7x:2x2x1
jax: 0.10.0
libtpu: 0.0.40
codegen_flags: <defaults>
</compile_context>

<pallas_src>
import functools

import jax
import jax.numpy as jnp
from jax.experimental import pallas as pl
from jax.experimental.pallas import tpu as pltpu

_MIB = 1 << 20


def _device_kind():
    try:
        return jax.devices()[0].device_kind.lower()
    except Exception:  # pragma: no cover - defensive only
        return ""


def _round_up(x, m):
    return ((x + m - 1) // m) * m


# ----------------------------------------------------------------------------
# Shared epilogue: store y (oh, ow, ct), optionally emitting the
# reflection-padded plane for the next layer (pad fusion).
# ----------------------------------------------------------------------------
def _store_output(o_ref, y, emit_pad):
    y = y.astype(o_ref.dtype)
    if not emit_pad:
        o_ref[0] = y
        return
    oh, ow = y.shape[0], y.shape[1]
    # Reflection-pad the rows as a value op (concat along the major axis only).
    yv = jnp.concatenate([y[1:2], y, y[oh - 2:oh - 1]], axis=0)   # (oh+2, ow, ct)
    o_ref[0, :, 1:ow + 1, :] = yv                                  # centre cols
    o_ref[0, :, 0:1, :] = yv[:, 1:2, :]                            # left mirror
    o_ref[0, :, ow + 1:ow + 2, :] = yv[:, ow - 2:ow - 1, :]        # right mirror


# ----------------------------------------------------------------------------
# Generic 3x3 conv (+bias, +ReLU, +fused pool, +fused pad) kernel
# ----------------------------------------------------------------------------
def _conv3x3_kernel(x_ref, w_ref, b_ref, o_ref, slab_ref, *scratch,
                    ho, wo, relu, fuse_pool, emit_pad):
    """x_ref: (1, ho+2, wo+2, cin) bf16 reflection-padded plane.
       w_ref: (3, 3*cin, ct)       bf16 (K order: dj*cin + c).
       b_ref: (1, ct)              f32.
       slab_ref: (ho*wo, 3*cin)    bf16 VMEM im2row staging (one di at a time).
       o_ref: (1, OH, OW, ct)      bf16."""
    cin = x_ref.shape[-1]
    ct = o_ref.shape[-1]

    acc = None
    # 3 K-concatenated taps instead of 9 shifted matmuls.
    for di in range(3):
        for dj in range(3):
            win = x_ref[0, di:di + ho, dj:dj + wo, :].reshape(ho * wo, cin)
            slab_ref[:, dj * cin:(dj + 1) * cin] = win
        part = jnp.dot(slab_ref[...], w_ref[di],
                       preferred_element_type=jnp.float32)
        acc = part if acc is None else acc + part

    acc = acc + b_ref[...]
    if relu:
        acc = jnp.maximum(acc, 0.0)
    y = acc.reshape(ho, wo, ct)

    if fuse_pool:
        (hpool_ref,) = scratch
        h2, w2 = ho // 2, wo // 2
        # h-direction max: pure value op (leading-dim split only).
        yr = y.reshape(h2, 2, wo, ct)
        hpool_ref[...] = jnp.maximum(yr[:, 0], yr[:, 1])
        # w-direction max: stride-2 sublane reads from the small scratch.
        y = jnp.maximum(hpool_ref[:, pl.ds(0, w2, 2), :],
                        hpool_ref[:, pl.ds(1, w2, 2), :])

    _store_output(o_ref, y, emit_pad)


# ----------------------------------------------------------------------------
# First (folded 1x1 + 3x3, Cin=3) conv as one MXU matmul over im2col patches
# ----------------------------------------------------------------------------
def _im2col_conv_kernel(p_ref, w_ref, b_ref, o_ref, *, ho, wo, relu, emit_pad):
    """p_ref: (1, ho*wo, K) bf16, w_ref: (K, ct) bf16, b_ref: (1, ct) f32."""
    acc = jnp.dot(p_ref[0], w_ref[...], preferred_element_type=jnp.float32)
    acc = acc + b_ref[...]
    if relu:
        acc = jnp.maximum(acc, 0.0)
    _store_output(o_ref, acc.reshape(ho, wo, acc.shape[-1]), emit_pad)


# ----------------------------------------------------------------------------
# Wrappers
# ----------------------------------------------------------------------------
def _conv_vmem_bytes(hp, wp, cin, ct, fuse_pool, emit_pad):
    ho, wo = hp - 2, wp - 2
    oh = (ho // 2 if fuse_pool else ho) + (2 if emit_pad else 0)
    ow = (wo // 2 if fuse_pool else wo) + (2 if emit_pad else 0)
    cin_p = _round_up(cin, 128)
    ct_p = _round_up(ct, 128)
    inb = 2 * hp * wp * cin_p * 2                      # double-buffered input
    wb = 2 * 3 * 3 * cin * ct_p * 2                    # double-buffered weight
    outb = 2 * oh * ow * ct_p * 2                      # double-buffered output
    slab = ho * wo * _round_up(3 * cin, 128) * 2       # im2row scratch
    pool = (ho // 2) * wo * ct_p * 4 if fuse_pool else 0
    accb = ho * wo * ct_p * 4                          # f32 accumulator
    return inb + wb + outb + slab + pool + accb + 2 * ct_p * 4


def _vmem_limit(est):
    return int(min(96 * _MIB, max(32 * _MIB, 1.4 * est)))


def _pick_ct(cout, hp, wp, cin, fuse_pool, emit_pad):
    if cout <= 128:
        return cout
    ct = 128
    if cout % 256 == 0:
        kind = _device_kind()
        is_v5e = ("v5e" in kind) or ("v5 lite" in kind) or ("v5litepod" in kind)
        if not is_v5e and _conv_vmem_bytes(hp, wp, cin, 256, fuse_pool,
                                           emit_pad) <= 40 * _MIB:
            ct = 256
    return ct


def conv3x3_block(xp, w, b, *, relu, fuse_pool, emit_pad, ct):
    """xp: padded NHWC bf16 (N, Hp, Wp, Cin); w: (3, 3*Cin, Cout) bf16;
       b: (1, Cout) f32."""
    N, Hp, Wp, Cin = xp.shape
    Ho, Wo = Hp - 2, Wp - 2
    Cout = w.shape[-1]
    oh = Ho // 2 if fuse_pool else Ho
    ow = Wo // 2 if fuse_pool else Wo
    OH = oh + (2 if emit_pad else 0)
    OW = ow + (2 if emit_pad else 0)

    scratch = [pltpu.VMEM((Ho * Wo, 3 * Cin), jnp.bfloat16)]
    if fuse_pool:
        scratch.append(pltpu.VMEM((Ho // 2, Wo, ct), jnp.float32))

    est = _conv_vmem_bytes(Hp, Wp, Cin, ct, fuse_pool, emit_pad)
    flops = 2 * N * Ho * Wo * Cout * Cin * 9
    # Input block is invariant along the co axis -> fetched once per n only.
    bytes_accessed = (xp.size * 2 + w.size * 2 * N + b.size * 4 * N
                      + N * OH * OW * Cout * 2)

    return pl.pallas_call(
        functools.partial(_conv3x3_kernel, ho=Ho, wo=Wo, relu=relu,
                          fuse_pool=fuse_pool, emit_pad=emit_pad),
        out_shape=jax.ShapeDtypeStruct((N, OH, OW, Cout), jnp.bfloat16),
        grid=(N, Cout // ct),
        in_specs=[
            pl.BlockSpec((1, Hp, Wp, Cin), lambda n, co: (n, 0, 0, 0)),
            pl.BlockSpec((3, 3 * Cin, ct), lambda n, co: (0, 0, co)),
            pl.BlockSpec((1, ct), lambda n, co: (0, co)),
        ],
        out_specs=pl.BlockSpec((1, OH, OW, ct), lambda n, co: (n, 0, 0, co)),
        scratch_shapes=scratch,
        compiler_params=pltpu.CompilerParams(
            dimension_semantics=("parallel", "parallel"),
            vmem_limit_bytes=_vmem_limit(est)),
        cost_estimate=pl.CostEstimate(flops=flops, transcendentals=0,
                                      bytes_accessed=bytes_accessed),
    )(xp, w, b)


def first_conv_block(patches, w, b, *, ho, wo, relu, emit_pad, ct):
    """patches: (N, Ho*Wo, K) bf16 im2col; w: (K, Cout) bf16; b: (1, Cout) f32."""
    N, P, K = patches.shape
    Cout = w.shape[-1]
    OH = ho + (2 if emit_pad else 0)
    OW = wo + (2 if emit_pad else 0)
    ct_p = _round_up(ct, 128)
    est = (2 * P * _round_up(K, 128) * 2 + 2 * _round_up(K, 8) * ct_p * 2
           + 2 * OH * OW * ct_p * 2 + P * ct_p * 4)
    flops = 2 * N * P * Cout * K
    bytes_accessed = (patches.size * 2 + w.size * 2 * N + b.size * 4 * N
                      + N * OH * OW * Cout * 2)

    return pl.pallas_call(
        functools.partial(_im2col_conv_kernel, ho=ho, wo=wo, relu=relu,
                          emit_pad=emit_pad),
        out_shape=jax.ShapeDtypeStruct((N, OH, OW, Cout), jnp.bfloat16),
        grid=(N, Cout // ct),
        in_specs=[
            pl.BlockSpec((1, P, K), lambda n, co: (n, 0, 0)),
            pl.BlockSpec((K, ct), lambda n, co: (0, co)),
            pl.BlockSpec((1, ct), lambda n, co: (0, co)),
        ],
        out_specs=pl.BlockSpec((1, OH, OW, ct), lambda n, co: (n, 0, 0, co)),
        compiler_params=pltpu.CompilerParams(
            dimension_semantics=("parallel", "parallel"),
            vmem_limit_bytes=_vmem_limit(est)),
        cost_estimate=pl.CostEstimate(flops=flops, transcendentals=0,
                                      bytes_accessed=bytes_accessed),
    )(patches, w, b)


def _xla_maxpool_ceil_nhwc(x):
    """MaxPool2d(2,2, ceil_mode=True), NHWC, plain XLA (odd-dims fallback)."""
    N, H, W, C = x.shape
    Hp, Wp = H + H % 2, W + W % 2
    if (Hp, Wp) != (H, W):
        x = jnp.pad(x, ((0, 0), (0, Hp - H), (0, Wp - W), (0, 0)),
                    constant_values=-jnp.inf)
    x = x.reshape(N, Hp // 2, 2, Wp // 2, 2, C)
    return x.max(axis=(2, 4))


# ----------------------------------------------------------------------------
# Encoder (VGG prefix, depth 1..4)
# ----------------------------------------------------------------------------
FULL_LAYERS = [
    ("conv", 3, 3, 1), ("pad",), ("conv", 3, 64, 3), ("relu",),
    ("pad",), ("conv", 64, 64, 3), ("relu",), ("pool",),
    ("pad",), ("conv", 64, 128, 3), ("relu",),
    ("pad",), ("conv", 128, 128, 3), ("relu",), ("pool",),
    ("pad",), ("conv", 128, 256, 3), ("relu",),
    ("pad",), ("conv", 256, 256, 3), ("relu",),
    ("pad",), ("conv", 256, 256, 3), ("relu",),
    ("pad",), ("conv", 256, 256, 3), ("relu",), ("pool",),
    ("pad",), ("conv", 256, 512, 3), ("relu",),
]
DEPTH_SLICE = {1: 4, 2: 11, 3: 18, 4: 31}


class Encoder:
    def __init__(self, depth, key):
        self.depth = depth
        self.layers = FULL_LAYERS[:DEPTH_SLICE[depth]]
        self.raw_params = []
        for layer in self.layers:
            if layer[0] == "conv":
                _, cin, cout, k = layer
                key, k1, k2 = jax.random.split(key, 3)
                w = jax.random.normal(k1, (cout, cin, k, k), jnp.float32)
                w = w / jnp.sqrt(float(cin * k * k))
                b = jax.random.normal(k2, (cout,), jnp.float32) * 0.01
                self.raw_params.append((w, b))
            else:
                self.raw_params.append(None)
        self._build_blocks()
        self._forward_jit = jax.jit(self._forward)

    def _build_blocks(self):
        """Fold the 1x1 conv into the first 3x3 conv, record fused ReLU/pool
        flags, and pre-reshape weights for the kernels."""
        metas, params = [], []
        pending = None  # (A, b1) of the preceding 1x1 conv, awaiting folding
        i, n = 0, len(self.layers)
        while i < n:
            if self.layers[i][0] != "conv":
                i += 1
                continue
            w, b = self.raw_params[i]
            k = self.layers[i][3]
            if k == 1:
                pending = (w[:, :, 0, 0], b)              # (Co,Ci), (Co,)
                i += 1
                continue
            if pending is not None:
                A, b1 = pending
                b = b + jnp.einsum("ochw,c->o", w, b1)
                w = jnp.einsum("ochw,ci->oihw", w, A)
                pending = None
            has_relu = i + 1 < n and self.layers[i + 1][0] == "relu"
            j = i + (2 if has_relu else 1)
            has_pool = j < n and self.layers[j][0] == "pool"
            if has_pool:
                j += 1
            cin = int(w.shape[1])
            cout = int(w.shape[0])
            w_hwio = jnp.transpose(w, (2, 3, 1, 0))       # (3,3,Cin,Cout)
            if cin <= 4:
                kind = "first"
                wk = jnp.asarray(w_hwio.reshape(9 * cin, cout), jnp.bfloat16)
            else:
                kind = "conv"
                wk = jnp.asarray(w_hwio.reshape(3, 3 * cin, cout), jnp.bfloat16)
            metas.append(dict(kind=kind, relu=has_relu, pool=has_pool, cin=cin))
            params.append((wk, jnp.asarray(b, jnp.float32).reshape(1, -1)))
            i = j
        self.block_meta = metas
        self.block_params = params

    def _forward(self, params, x):
        # NCHW f32 -> NHWC bf16 once; back to NCHW f32 once at the end.
        x = jnp.transpose(x.astype(jnp.float32), (0, 2, 3, 1)).astype(jnp.bfloat16)
        padded = False
        nblk = len(self.block_meta)
        for idx, (meta, (w, b)) in enumerate(zip(self.block_meta, params)):
            is_last = idx == nblk - 1
            if meta["kind"] == "first":
                N, H, W, cin = x.shape
                xp = jnp.pad(x, ((0, 0), (1, 1), (1, 1), (0, 0)), mode="reflect")
                cols = [xp[:, di:di + H, dj:dj + W, :]
                        for di in range(3) for dj in range(3)]
                patches = jnp.concatenate(cols, axis=-1).reshape(N, H * W, 9 * cin)
                emit_pad = (not is_last) and (not meta["pool"])
                cout = w.shape[-1]
                ct = cout if cout < 128 else 128
                x = first_conv_block(patches, w, b, ho=H, wo=W,
                                     relu=meta["relu"], emit_pad=emit_pad, ct=ct)
                if meta["pool"]:
                    x = _xla_maxpool_ceil_nhwc(x)
                padded = emit_pad
            else:
                if not padded:
                    x = jnp.pad(x, ((0, 0), (1, 1), (1, 1), (0, 0)),
                                mode="reflect")
                N, Hp, Wp, Cin = x.shape
                Ho, Wo = Hp - 2, Wp - 2
                fuse_pool = meta["pool"] and Ho % 2 == 0 and Wo % 2 == 0
                emit_pad = (not is_last) and ((not meta["pool"]) or fuse_pool)
                cout = w.shape[-1]
                ct = _pick_ct(cout, Hp, Wp, Cin, fuse_pool, emit_pad)
                x = conv3x3_block(x, w, b, relu=meta["relu"],
                                  fuse_pool=fuse_pool, emit_pad=emit_pad, ct=ct)
                if meta["pool"] and not fuse_pool:
                    x = _xla_maxpool_ceil_nhwc(x)
                padded = emit_pad
        return jnp.transpose(x, (0, 3, 1, 2)).astype(jnp.float32)

    def __call__(self, x):
        return self._forward_jit(self.block_params, x)

    # Pure-JAX f32 reference that mirrors the original nn.Sequential exactly.
    def reference(self, x):
        def ref_conv(x, w, b):
            out = jax.lax.conv_general_dilated(
                x, w, window_strides=(1, 1), padding="VALID",
                dimension_numbers=("NCHW", "OIHW", "NCHW"))
            return out + b.reshape(1, -1, 1, 1)

        def ref_pool(x):
            N, C, H, W = x.shape
            Hp, Wp = H + H % 2, W + W % 2
            if (Hp, Wp) != (H, W):
                x = jnp.pad(x, ((0, 0), (0, 0), (0, Hp - H), (0, Wp - W)),
                            constant_values=-jnp.inf)
            return x.reshape(N, C, Hp // 2, 2, Wp // 2, 2).max(axis=(3, 5))

        for i, layer in enumerate(self.layers):
            tag = layer[0]
            if tag == "conv":
                w, b = self.raw_params[i]
                x = ref_conv(x, w, b)
            elif tag == "pad":
                x = jnp.pad(x, ((0, 0), (0, 0), (1, 1), (1, 1)), mode="reflect")
            elif tag == "relu":
                x = jnp.maximum(x, 0.0)
            elif tag == "pool":
                x = ref_pool(x)
        return x


if __name__ == "__main__":
    key = jax.random.PRNGKey(0)
    k_params, k_x = jax.random.split(key)

    depth = 2  # Encoder(depth=2): vgg_normalised_conv5_1[:11]
    enc = Encoder(depth, k_params)

    x = jax.random.normal(k_x, (2, 3, 16, 16), jnp.float32)

    out = jax.block_until_ready(enc(x))
    ref = jax.block_until_ready(enc.reference(x))

    assert out.shape == (2, 128, 8, 8), out.shape
    max_err = float(jnp.max(jnp.abs(out - ref)))
    # bf16 operands (f32 accumulation) => slightly looser tolerance than f32.
    assert jnp.allclose(out, ref, rtol=5e-2, atol=5e-2), max_err

    print("KERNEL_OK")
</pallas_src>

<mosaic_0001>
module attributes {stable_mosaic.version = 11 : i64} {
  func.func @_im2col_conv_kernel(%arg0: i32, %arg1: i32, %arg2: memref<1x256x27xbf16, #tpu.memory_space<vmem>>, %arg3: memref<27x64xbf16, #tpu.memory_space<vmem>>, %arg4: memref<1x64xf32, #tpu.memory_space<vmem>>, %arg5: memref<1x18x18x64xbf16, #tpu.memory_space<vmem>>) attributes {dimension_semantics = [#tpu.dimension_semantics<parallel>, #tpu.dimension_semantics<parallel>], iteration_bounds = array<i64: 2, 1>, scalar_prefetch = 0 : i64, scratch_operands = 0 : i64, tpu.core_type = #tpu.core_type<tc>, window_params = [{transform_indices = @transform_0, window_bounds = array<i64: 1, 256, 27>}, {transform_indices = @transform_1, window_bounds = array<i64: 27, 64>}, {transform_indices = @transform_2, window_bounds = array<i64: 1, 64>}, {transform_indices = @transform_3, window_bounds = array<i64: 1, 18, 18, 64>}]} {
    %c0 = arith.constant 0 : index
    %c0_0 = arith.constant 0 : index
    %c0_1 = arith.constant 0 : index
    %0 = vector.load %arg2[%c0, %c0_0, %c0_1] : memref<1x256x27xbf16, #tpu.memory_space<vmem>>, vector<1x256x27xbf16>
    %1 = vector.shape_cast %0 : vector<1x256x27xbf16> to vector<256x27xbf16>
    %c0_2 = arith.constant 0 : index
    %c0_3 = arith.constant 0 : index
    %2 = vector.load %arg3[%c0_2, %c0_3] : memref<27x64xbf16, #tpu.memory_space<vmem>>, vector<27x64xbf16>
    %cst = arith.constant dense<0.000000e+00> : vector<256x64xf32>
    %3 = tpu.matmul %1, %2, %cst {dimension_numbers = #tpu.dot_dimension_numbers<[1], [0], [0], [1], [0, 0, 1, 1], [], []>} : vector<256x27xbf16>, vector<27x64xbf16>, vector<256x64xf32> -> vector<256x64xf32>
    %c0_4 = arith.constant 0 : index
    %c0_5 = arith.constant 0 : index
    %4 = vector.load %arg4[%c0_4, %c0_5] : memref<1x64xf32, #tpu.memory_space<vmem>>, vector<1x64xf32>
    %5 = vector.broadcast %4 : vector<1x64xf32> to vector<256x64xf32>
    %6 = arith.addf %3, %5 : vector<256x64xf32>
    %cst_6 = arith.constant 0.000000e+00 : f32
    %7 = vector.broadcast %cst_6 : f32 to vector<256x64xf32>
    %8 = arith.maximumf %6, %7 : vector<256x64xf32>
    %9 = vector.shape_cast %8 : vector<256x64xf32> to vector<16x16x64xf32>
    %10 = arith.truncf %9 : vector<16x16x64xf32> to vector<16x16x64xbf16>
    %11 = vector.extract_strided_slice %10 {offsets = [1, 0, 0], sizes = [1, 16, 64], strides = [1, 1, 1]} : vector<16x16x64xbf16> to vector<1x16x64xbf16>
    %12 = vector.extract_strided_slice %10 {offsets = [14, 0, 0], sizes = [1, 16, 64], strides = [1, 1, 1]} : vector<16x16x64xbf16> to vector<1x16x64xbf16>
    %13 = tpu.concatenate %11, %10, %12 in 0 : vector<1x16x64xbf16>, vector<16x16x64xbf16>, vector<1x16x64xbf16> -> vector<18x16x64xbf16>
    %c0_7 = arith.constant 0 : index
    %c0_8 = arith.constant 0 : index
    %c1 = arith.constant 1 : index
    %c0_9 = arith.constant 0 : index
    %14 = vector.load %arg5[%c0_7, %c0_8, %c1, %c0_9] : memref<1x18x18x64xbf16, #tpu.memory_space<vmem>>, vector<1x18x16x64xbf16>
    %15 = vector.shape_cast %14 : vector<1x18x16x64xbf16> to vector<18x16x64xbf16>
    %16 = vector.shape_cast %13 : vector<18x16x64xbf16> to vector<1x18x16x64xbf16>
    tpu.vector_store %arg5[%c0_7, %c0_8, %c1, %c0_9], %16 {strides = array<i32>} : memref<1x18x18x64xbf16, #tpu.memory_space<vmem>>, vector<1x18x16x64xbf16>,
    %17 = vector.extract_strided_slice %13 {offsets = [0, 1, 0], sizes = [18, 1, 64], strides = [1, 1, 1]} : vector<18x16x64xbf16> to vector<18x1x64xbf16>
    %c0_10 = arith.constant 0 : index
    %c0_11 = arith.constant 0 : index
    %c0_12 = arith.constant 0 : index
    %c0_13 = arith.constant 0 : index
    %18 = vector.load %arg5[%c0_10, %c0_11, %c0_12, %c0_13] : memref<1x18x18x64xbf16, #tpu.memory_space<vmem>>, vector<1x18x1x64xbf16>
    %19 = vector.shape_cast %18 : vector<1x18x1x64xbf16> to vector<18x1x64xbf16>
    %20 = vector.shape_cast %17 : vector<18x1x64xbf16> to vector<1x18x1x64xbf16>
    tpu.vector_store %arg5[%c0_10, %c0_11, %c0_12, %c0_13], %20 {strides = array<i32>} : memref<1x18x18x64xbf16, #tpu.memory_space<vmem>>, vector<1x18x1x64xbf16>,
    %21 = vector.extract_strided_slice %13 {offsets = [0, 14, 0], sizes = [18, 1, 64], strides = [1, 1, 1]} : vector<18x16x64xbf16> to vector<18x1x64xbf16>
    %c0_14 = arith.constant 0 : index
    %c0_15 = arith.constant 0 : index
    %c17 = arith.constant 17 : index
    %c0_16 = arith.constant 0 : index
    %22 = vector.load %arg5[%c0_14, %c0_15, %c17, %c0_16] : memref<1x18x18x64xbf16, #tpu.memory_space<vmem>>, vector<1x18x1x64xbf16>
    %23 = vector.shape_cast %22 : vector<1x18x1x64xbf16> to vector<18x1x64xbf16>
    %24 = vector.shape_cast %21 : vector<18x1x64xbf16> to vector<1x18x1x64xbf16>
    tpu.vector_store %arg5[%c0_14, %c0_15, %c17, %c0_16], %24 {strides = array<i32>} : memref<1x18x18x64xbf16, #tpu.memory_space<vmem>>, vector<1x18x1x64xbf16>,
    return
  }
  func.func @transform_0(%arg0: i32, %arg1: i32) -> (i32, i32, i32) {
    %c0_i32 = arith.constant 0 : i32
    %c0_i32_0 = arith.constant 0 : i32
    %c0_i32_1 = arith.constant 0 : i32
    return %arg0, %c0_i32, %c0_i32_0 : i32, i32, i32
  }
  func.func @transform_1(%arg0: i32, %arg1: i32) -> (i32, i32) {
    %c0_i32 = arith.constant 0 : i32
    %c0_i32_0 = arith.constant 0 : i32
    return %c0_i32, %arg1 : i32, i32
  }
  func.func @transform_2(%arg0: i32, %arg1: i32) -> (i32, i32) {
    %c0_i32 = arith.constant 0 : i32
    %c0_i32_0 = arith.constant 0 : i32
    return %c0_i32, %arg1 : i32, i32
  }
  func.func @transform_3(%arg0: i32, %arg1: i32) -> (i32, i32, i32, i32) {
    %c0_i32 = arith.constant 0 : i32
    %c0_i32_0 = arith.constant 0 : i32
    %c0_i32_1 = arith.constant 0 : i32
    return %arg0, %c0_i32, %c0_i32_0, %arg1 : i32, i32, i32, i32
  }
}

module attributes {stable_mosaic.version = 11 : i64} {
  func.func @_conv3x3_kernel(%arg0: i32, %arg1: i32, %arg2: memref<1x18x18x64xbf16, #tpu.memory_space<vmem>>, %arg3: memref<3x192x64xbf16, #tpu.memory_space<vmem>>, %arg4: memref<1x64xf32, #tpu.memory_space<vmem>>, %arg5: memref<1x10x10x64xbf16, #tpu.memory_space<vmem>>, %arg6: memref<256x192xbf16, #tpu.memory_space<vmem>>, %arg7: memref<8x16x64xf32, #tpu.memory_space<vmem>>) attributes {dimension_semantics = [#tpu.dimension_semantics<parallel>, #tpu.dimension_semantics<parallel>], iteration_bounds = array<i64: 2, 1>, scalar_prefetch = 0 : i64, scratch_operands = 2 : i64, tpu.core_type = #tpu.core_type<tc>, window_params = [{transform_indices = @transform_0, window_bounds = array<i64: 1, 18, 18, 64>}, {transform_indices = @transform_1, window_bounds = array<i64: 3, 192, 64>}, {transform_indices = @transform_2, window_bounds = array<i64: 1, 64>}, {transform_indices = @transform_3, window_bounds = array<i64: 1, 10, 10, 64>}]} {
    %c0 = arith.constant 0 : index
    %c0_0 = arith.constant 0 : index
    %c0_1 = arith.constant 0 : index
    %c0_2 = arith.constant 0 : index
    %0 = vector.load %arg2[%c0, %c0_0, %c0_1, %c0_2] : memref<1x18x18x64xbf16, #tpu.memory_space<vmem>>, vector<1x16x16x64xbf16>
    %1 = vector.shape_cast %0 : vector<1x16x16x64xbf16> to vector<16x16x64xbf16>
    %2 = vector.shape_cast %1 : vector<16x16x64xbf16> to vector<256x64xbf16>
    %c0_3 = arith.constant 0 : index
    %c0_4 = arith.constant 0 : index
    %3 = vector.load %arg6[%c0_3, %c0_4] : memref<256x192xbf16, #tpu.memory_space<vmem>>, vector<256x64xbf16>
    tpu.vector_store %arg6[%c0_3, %c0_4], %2 {strides = array<i32>} : memref<256x192xbf16, #tpu.memory_space<vmem>>, vector<256x64xbf16>,
    %c0_5 = arith.constant 0 : index
    %c0_6 = arith.constant 0 : index
    %c1 = arith.constant 1 : index
    %c0_7 = arith.constant 0 : index
    %4 = vector.load %arg2[%c0_5, %c0_6, %c1, %c0_7] : memref<1x18x18x64xbf16, #tpu.memory_space<vmem>>, vector<1x16x16x64xbf16>
    %5 = vector.shape_cast %4 : vector<1x16x16x64xbf16> to vector<16x16x64xbf16>
    %6 = vector.shape_cast %5 : vector<16x16x64xbf16> to vector<256x64xbf16>
    %c0_8 = arith.constant 0 : index
    %c64 = arith.constant 64 : index
    %7 = vector.load %arg6[%c0_8, %c64] : memref<256x192xbf16, #tpu.memory_space<vmem>>, vector<256x64xbf16>
    tpu.vector_store %arg6[%c0_8, %c64], %6 {strides = array<i32>} : memref<256x192xbf16, #tpu.memory_space<vmem>>, vector<256x64xbf16>,
    %c0_9 = arith.constant 0 : index
    %c0_10 = arith.constant 0 : index
    %c2 = arith.constant 2 : index
    %c0_11 = arith.constant 0 : index
    %8 = vector.load %arg2[%c0_9, %c0_10, %c2, %c0_11] : memref<1x18x18x64xbf16, #tpu.memory_space<vmem>>, vector<1x16x16x64xbf16>
    %9 = vector.shape_cast %8 : vector<1x16x16x64xbf16> to vector<16x16x64xbf16>
    %10 = vector.shape_cast %9 : vector<16x16x64xbf16> to vector<256x64xbf16>
    %c0_12 = arith.constant 0 : index
    %c128 = arith.constant 128 : index
    %11 = vector.load %arg6[%c0_12, %c128] : memref<256x192xbf16, #tpu.memory_space<vmem>>, vector<256x64xbf16>
    tpu.vector_store %arg6[%c0_12, %c128], %10 {strides = array<i32>} : memref<256x192xbf16, #tpu.memory_space<vmem>>, vector<256x64xbf16>,
    %c0_13 = arith.constant 0 : index
    %c0_14 = arith.constant 0 : index
    %12 = vector.load %arg6[%c0_13, %c0_14] : memref<256x192xbf16, #tpu.memory_space<vmem>>, vector<256x192xbf16>
    %c0_15 = arith.constant 0 : index
    %c0_16 = arith.constant 0 : index
    %c0_17 = arith.constant 0 : index
    %13 = vector.load %arg3[%c0_15, %c0_16, %c0_17] : memref<3x192x64xbf16, #tpu.memory_space<vmem>>, vector<1x192x64xbf16>
    %14 = vector.shape_cast %13 : vector<1x192x64xbf16> to vector<192x64xbf16>
    %cst = arith.constant dense<0.000000e+00> : vector<256x64xf32>
    %15 = tpu.matmul %12, %14, %cst {dimension_numbers = #tpu.dot_dimension_numbers<[1], [0], [0], [1], [0, 0, 1, 1], [], []>} : vector<256x192xbf16>, vector<192x64xbf16>, vector<256x64xf32> -> vector<256x64xf32>
    %c0_18 = arith.constant 0 : index
    %c1_19 = arith.constant 1 : index
    %c0_20 = arith.constant 0 : index
    %c0_21 = arith.constant 0 : index
    %16 = vector.load %arg2[%c0_18, %c1_19, %c0_20, %c0_21] : memref<1x18x18x64xbf16, #tpu.memory_space<vmem>>, vector<1x16x16x64xbf16>
    %17 = vector.shape_cast %16 : vector<1x16x16x64xbf16> to vector<16x16x64xbf16>
    %18 = vector.shape_cast %17 : vector<16x16x64xbf16> to vector<256x64xbf16>
    %c0_22 = arith.constant 0 : index
    %c0_23 = arith.constant 0 : index
    %19 = vector.load %arg6[%c0_22, %c0_23] : memref<256x192xbf16, #tpu.memory_space<vmem>>, vector<256x64xbf16>
    tpu.vector_store %arg6[%c0_22, %c0_23], %18 {strides = array<i32>} : memref<256x192xbf16, #tpu.memory_space<vmem>>, vector<256x64xbf16>,
    %c0_24 = arith.constant 0 : index
    %c1_25 = arith.constant 1 : index
    %c1_26 = arith.constant 1 : index
    %c0_27 = arith.constant 0 : index
    %20 = vector.load %arg2[%c0_24, %c1_25, %c1_26, %c0_27] : memref<1x18x18x64xbf16, #tpu.memory_space<vmem>>, vector<1x16x16x64xbf16>
    %21 = vector.shape_cast %20 : vector<1x16x16x64xbf16> to vector<16x16x64xbf16>
    %22 = vector.shape_cast %21 : vector<16x16x64xbf16> to vector<256x64xbf16>
    %c0_28 = arith.constant 0 : index
    %c64_29 = arith.constant 64 : index
    %23 = vector.load %arg6[%c0_28, %c64_29] : memref<256x192xbf16, #tpu.memory_space<vmem>>, vector<256x64xbf16>
    tpu.vector_store %arg6[%c0_28, %c64_29], %22 {strides = array<i32>} : memref<256x192xbf16, #tpu.memory_space<vmem>>, vector<256x64xbf16>,
    %c0_30 = arith.constant 0 : index
    %c1_31 = arith.constant 1 : index
    %c2_32 = arith.constant 2 : index
    %c0_33 = arith.constant 0 : index
    %24 = vector.load %arg2[%c0_30, %c1_31, %c2_32, %c0_33] : memref<1x18x18x64xbf16, #tpu.memory_space<vmem>>, vector<1x16x16x64xbf16>
    %25 = vector.shape_cast %24 : vector<1x16x16x64xbf16> to vector<16x16x64xbf16>
    %26 = vector.shape_cast %25 : vector<16x16x64xbf16> to vector<256x64xbf16>
    %c0_34 = arith.constant 0 : index
    %c128_35 = arith.constant 128 : index
    %27 = vector.load %arg6[%c0_34, %c128_35] : memref<256x192xbf16, #tpu.memory_space<vmem>>, vector<256x64xbf16>
    tpu.vector_store %arg6[%c0_34, %c128_35], %26 {strides = array<i32>} : memref<256x192xbf16, #tpu.memory_space<vmem>>, vector<256x64xbf16>,
    %c0_36 = arith.constant 0 : index
    %c0_37 = arith.constant 0 : index
    %28 = vector.load %arg6[%c0_36, %c0_37] : memref<256x192xbf16, #tpu.memory_space<vmem>>, vector<256x192xbf16>
    %c1_38 = arith.constant 1 : index
    %c0_39 = arith.constant 0 : index
    %c0_40 = arith.constant 0 : index
    %29 = vector.load %arg3[%c1_38, %c0_39, %c0_40] : memref<3x192x64xbf16, #tpu.memory_space<vmem>>, vector<1x192x64xbf16>
    %30 = vector.shape_cast %29 : vector<1x192x64xbf16> to vector<192x64xbf16>
    %cst_41 = arith.constant dense<0.000000e+00> : vector<256x64xf32>
    %31 = tpu.matmul %28, %30, %cst_41 {dimension_numbers = #tpu.dot_dimension_numbers<[1], [0], [0], [1], [0, 0, 1, 1], [], []>} : vector<256x192xbf16>, vector<192x64xbf16>, vector<256x64xf32> -> vector<256x64xf32>
    %32 = arith.addf %15, %31 : vector<256x64xf32>
    %c0_42 = arith.constant 0 : index
    %c2_43 = arith.constant 2 : index
    %c0_44 = arith.constant 0 : index
    %c0_45 = arith.constant 0 : index
    %33 = vector.load %arg2[%c0_42, %c2_43, %c0_44, %c0_45] : memref<1x18x18x64xbf16, #tpu.memory_space<vmem>>, vector<1x16x16x64xbf16>
    %34 = vector.shape_cast %33 : vector<1x16x16x64xbf16> to vector<16x16x64xbf16>
    %35 = vector.shape_cast %34 : vector<16x16x64xbf16> to vector<256x64xbf16>
    %c0_46 = arith.constant 0 : index
    %c0_47 = arith.constant 0 : index
    %36 = vector.load %arg6[%c0_46, %c0_47] : memref<256x192xbf16, #tpu.memory_space<vmem>>, vector<256x64xbf16>
    tpu.vector_store %arg6[%c0_46, %c0_47], %35 {strides = array<i32>} : memref<256x192xbf16, #tpu.memory_space<vmem>>, vector<256x64xbf16>,
    %c0_48 = arith.constant 0 : index
    %c2_49 = arith.constant 2 : index
    %c1_50 = arith.constant 1 : index
    %c0_51 = arith.constant 0 : index
    %37 = vector.load %arg2[%c0_48, %c2_49, %c1_50, %c0_51] : memref<1x18x18x64xbf16, #tpu.memory_space<vmem>>, vector<1x16x16x64xbf16>
    %38 = vector.shape_cast %37 : vector<1x16x16x64xbf16> to vector<16x16x64xbf16>
    %39 = vector.shape_cast %38 : vector<16x16x64xbf16> to vector<256x64xbf16>
    %c0_52 = arith.constant 0 : index
    %c64_53 = arith.constant 64 : index
    %40 = vector.load %arg6[%c0_52, %c64_53] : memref<256x192xbf16, #tpu.memory_space<vmem>>, vector<256x64xbf16>
    tpu.vector_store %arg6[%c0_52, %c64_53], %39 {strides = array<i32>} : memref<256x192xbf16, #tpu.memory_space<vmem>>, vector<256x64xbf16>,
    %c0_54 = arith.constant 0 : index
    %c2_55 = arith.constant 2 : index
    %c2_56 = arith.constant 2 : index
    %c0_57 = arith.constant 0 : index
    %41 = vector.load %arg2[%c0_54, %c2_55, %c2_56, %c0_57] : memref<1x18x18x64xbf16, #tpu.memory_space<vmem>>, vector<1x16x16x64xbf16>
    %42 = vector.shape_cast %41 : vector<1x16x16x64xbf16> to vector<16x16x64xbf16>
    %43 = vector.shape_cast %42 : vector<16x16x64xbf16> to vector<256x64xbf16>
    %c0_58 = arith.constant 0 : index
    %c128_59 = arith.constant 128 : index
    %44 = vector.load %arg6[%c0_58, %c128_59] : memref<256x192xbf16, #tpu.memory_space<vmem>>, vector<256x64xbf16>
    tpu.vector_store %arg6[%c0_58, %c128_59], %43 {strides = array<i32>} : memref<256x192xbf16, #tpu.memory_space<vmem>>, vector<256x64xbf16>,
    %c0_60 = arith.constant 0 : index
    %c0_61 = arith.constant 0 : index
    %45 = vector.load %arg6[%c0_60, %c0_61] : memref<256x192xbf16, #tpu.memory_space<vmem>>, vector<256x192xbf16>
    %c2_62 = arith.constant 2 : index
    %c0_63 = arith.constant 0 : index
    %c0_64 = arith.constant 0 : index
    %46 = vector.load %arg3[%c2_62, %c0_63, %c0_64] : memref<3x192x64xbf16, #tpu.memory_space<vmem>>, vector<1x192x64xbf16>
    %47 = vector.shape_cast %46 : vector<1x192x64xbf16> to vector<192x64xbf16>
    %cst_65 = arith.constant dense<0.000000e+00> : vector<256x64xf32>
    %48 = tpu.matmul %45, %47, %cst_65 {dimension_numbers = #tpu.dot_dimension_numbers<[1], [0], [0], [1], [0, 0, 1, 1], [], []>} : vector<256x192xbf16>, vector<192x64xbf16>, vector<256x64xf32> -> vector<256x64xf32>
    %49 = arith.addf %32, %48 : vector<256x64xf32>
    %c0_66 = arith.constant 0 : index
    %c0_67 = arith.constant 0 : index
    %50 = vector.load %arg4[%c0_66, %c0_67] : memref<1x64xf32, #tpu.memory_space<vmem>>, vector<1x64xf32>
    %51 = vector.broadcast %50 : vector<1x64xf32> to vector<256x64xf32>
    %52 = arith.addf %49, %51 : vector<256x64xf32>
    %cst_68 = arith.constant 0.000000e+00 : f32
    %53 = vector.broadcast %cst_68 : f32 to vector<256x64xf32>
    %54 = arith.maximumf %52, %53 : vector<256x64xf32>
    %55 = vector.shape_cast %54 : vector<256x64xf32> to vector<16x16x64xf32>
    %56 = vector.shape_cast %55 : vector<16x16x64xf32> to vector<8x2x16x64xf32>
    %57 = vector.extract_strided_slice %56 {offsets = [0, 0, 0, 0], sizes = [8, 1, 16, 64], strides = [1, 1, 1, 1]} : vector<8x2x16x64xf32> to vector<8x1x16x64xf32>
    %58 = vector.shape_cast %57 : vector<8x1x16x64xf32> to vector<8x16x64xf32>
    %59 = vector.extract_strided_slice %56 {offsets = [0, 1, 0, 0], sizes = [8, 1, 16, 64], strides = [1, 1, 1, 1]} : vector<8x2x16x64xf32> to vector<8x1x16x64xf32>
    %60 = vector.shape_cast %59 : vector<8x1x16x64xf32> to vector<8x16x64xf32>
    %61 = arith.maximumf %58, %60 : vector<8x16x64xf32>
    %c0_69 = arith.constant 0 : index
    %c0_70 = arith.constant 0 : index
    %c0_71 = arith.constant 0 : index
    %62 = vector.load %arg7[%c0_69, %c0_70, %c0_71] : memref<8x16x64xf32, #tpu.memory_space<vmem>>, vector<8x16x64xf32>
    tpu.vector_store %arg7[%c0_69, %c0_70, %c0_71], %61 {strides = array<i32>} : memref<8x16x64xf32, #tpu.memory_space<vmem>>, vector<8x16x64xf32>,
    %c0_72 = arith.constant 0 : index
    %c0_73 = arith.constant 0 : index
    %c0_74 = arith.constant 0 : index
    %63 = tpu.strided_load %arg7[%c0_72, %c0_73, %c0_74] {strides = array<i32: 1, 2, 1>} : memref<8x16x64xf32, #tpu.memory_space<vmem>>, vector<8x8x64xf32>
    %c0_75 = arith.constant 0 : index
    %c1_76 = arith.constant 1 : index
    %c0_77 = arith.constant 0 : index
    %64 = tpu.strided_load %arg7[%c0_75, %c1_76, %c0_77] {strides = array<i32: 1, 2, 1>} : memref<8x16x64xf32, #tpu.memory_space<vmem>>, vector<8x8x64xf32>
    %65 = arith.maximumf %63, %64 : vector<8x8x64xf32>
    %66 = arith.truncf %65 : vector<8x8x64xf32> to vector<8x8x64xbf16>
    %67 = vector.extract_strided_slice %66 {offsets = [1, 0, 0], sizes = [1, 8, 64], strides = [1, 1, 1]} : vector<8x8x64xbf16> to vector<1x8x64xbf16>
    %68 = vector.extract_strided_slice %66 {offsets = [6, 0, 0], sizes = [1, 8, 64], strides = [1, 1, 1]} : vector<8x8x64xbf16> to vector<1x8x64xbf16>
    %69 = tpu.concatenate %67, %66, %68 in 0 : vector<1x8x64xbf16>, vector<8x8x64xbf16>, vector<1x8x64xbf16> -> vector<10x8x64xbf16>
    %c0_78 = arith.constant 0 : index
    %c0_79 = arith.constant 0 : index
    %c1_80 = arith.constant 1 : index
    %c0_81 = arith.constant 0 : index
    %70 = vector.load %arg5[%c0_78, %c0_79, %c1_80, %c0_81] : memref<1x10x10x64xbf16, #tpu.memory_space<vmem>>, vector<1x10x8x64xbf16>
    %71 = vector.shape_cast %70 : vector<1x10x8x64xbf16> to vector<10x8x64xbf16>
    %72 = vector.shape_cast %69 : vector<10x8x64xbf16> to vector<1x10x8x64xbf16>
    tpu.vector_store %arg5[%c0_78, %c0_79, %c1_80, %c0_81], %72 {strides = array<i32>} : memref<1x10x10x64xbf16, #tpu.memory_space<vmem>>, vector<1x10x8x64xbf16>,
    %73 = vector.extract_strided_slice %69 {offsets = [0, 1, 0], sizes = [10, 1, 64], strides = [1, 1, 1]} : vector<10x8x64xbf16> to vector<10x1x64xbf16>
    %c0_82 = arith.constant 0 : index
    %c0_83 = arith.constant 0 : index
    %c0_84 = arith.constant 0 : index
    %c0_85 = arith.constant 0 : index
    %74 = vector.load %arg5[%c0_82, %c0_83, %c0_84, %c0_85] : memref<1x10x10x64xbf16, #tpu.memory_space<vmem>>, vector<1x10x1x64xbf16>
    %75 = vector.shape_cast %74 : vector<1x10x1x64xbf16> to vector<10x1x64xbf16>
    %76 = vector.shape_cast %73 : vector<10x1x64xbf16> to vector<1x10x1x64xbf16>
    tpu.vector_store %arg5[%c0_82, %c0_83, %c0_84, %c0_85], %76 {strides = array<i32>} : memref<1x10x10x64xbf16, #tpu.memory_space<vmem>>, vector<1x10x1x64xbf16>,
    %77 = vector.extract_strided_slice %69 {offsets = [0, 6, 0], sizes = [10, 1, 64], strides = [1, 1, 1]} : vector<10x8x64xbf16> to vector<10x1x64xbf16>
    %c0_86 = arith.constant 0 : index
    %c0_87 = arith.constant 0 : index
    %c9 = arith.constant 9 : index
    %c0_88 = arith.constant 0 : index
    %78 = vector.load %arg5[%c0_86, %c0_87, %c9, %c0_88] : memref<1x10x10x64xbf16, #tpu.memory_space<vmem>>, vector<1x10x1x64xbf16>
    %79 = vector.shape_cast %78 : vector<1x10x1x64xbf16> to vector<10x1x64xbf16>
    %80 = vector.shape_cast %77 : vector<10x1x64xbf16> to vector<1x10x1x64xbf16>
    tpu.vector_store %arg5[%c0_86, %c0_87, %c9, %c0_88], %80 {strides = array<i32>} : memref<1x10x10x64xbf16, #tpu.memory_space<vmem>>, vector<1x10x1x64xbf16>,
    return
  }
  func.func @transform_0(%arg0: i32, %arg1: i32) -> (i32, i32, i32, i32) {
    %c0_i32 = arith.constant 0 : i32
    %c0_i32_0 = arith.constant 0 : i32
    %c0_i32_1 = arith.constant 0 : i32
    %c0_i32_2 = arith.constant 0 : i32
    return %arg0, %c0_i32, %c0_i32_0, %c0_i32_1 : i32, i32, i32, i32
  }
  func.func @transform_1(%arg0: i32, %arg1: i32) -> (i32, i32, i32) {
    %c0_i32 = arith.constant 0 : i32
    %c0_i32_0 = arith.constant 0 : i32
    %c0_i32_1 = arith.constant 0 : i32
    return %c0_i32, %c0_i32_0, %arg1 : i32, i32, i32
  }
  func.func @transform_2(%arg0: i32, %arg1: i32) -> (i32, i32) {
    %c0_i32 = arith.constant 0 : i32
    %c0_i32_0 = arith.constant 0 : i32
    return %c0_i32, %arg1 : i32, i32
  }
  func.func @transform_3(%arg0: i32, %arg1: i32) -> (i32, i32, i32, i32) {
    %c0_i32 = arith.constant 0 : i32
    %c0_i32_0 = arith.constant 0 : i32
    %c0_i32_1 = arith.constant 0 : i32
    return %arg0, %c0_i32, %c0_i32_0, %arg1 : i32, i32, i32, i32
  }
}

module attributes {stable_mosaic.version = 11 : i64} {
  func.func @_conv3x3_kernel(%arg0: i32, %arg1: i32, %arg2: memref<1x10x10x64xbf16, #tpu.memory_space<vmem>>, %arg3: memref<3x192x128xbf16, #tpu.memory_space<vmem>>, %arg4: memref<1x128xf32, #tpu.memory_space<vmem>>, %arg5: memref<1x8x8x128xbf16, #tpu.memory_space<vmem>>, %arg6: memref<64x192xbf16, #tpu.memory_space<vmem>>) attributes {dimension_semantics = [#tpu.dimension_semantics<parallel>, #tpu.dimension_semantics<parallel>], iteration_bounds = array<i64: 2, 1>, scalar_prefetch = 0 : i64, scratch_operands = 1 : i64, tpu.core_type = #tpu.core_type<tc>, window_params = [{transform_indices = @transform_0, window_bounds = array<i64: 1, 10, 10, 64>}, {transform_indices = @transform_1, window_bounds = array<i64: 3, 192, 128>}, {transform_indices = @transform_2, window_bounds = array<i64: 1, 128>}, {transform_indices = @transform_3, window_bounds = array<i64: 1, 8, 8, 128>}]} {
    %c0 = arith.constant 0 : index
    %c0_0 = arith.constant 0 : index
    %c0_1 = arith.constant 0 : index
    %c0_2 = arith.constant 0 : index
    %0 = vector.load %arg2[%c0, %c0_0, %c0_1, %c0_2] : memref<1x10x10x64xbf16, #tpu.memory_space<vmem>>, vector<1x8x8x64xbf16>
    %1 = vector.shape_cast %0 : vector<1x8x8x64xbf16> to vector<8x8x64xbf16>
    %2 = vector.shape_cast %1 : vector<8x8x64xbf16> to vector<64x64xbf16>
    %c0_3 = arith.constant 0 : index
    %c0_4 = arith.constant 0 : index
    %3 = vector.load %arg6[%c0_3, %c0_4] : memref<64x192xbf16, #tpu.memory_space<vmem>>, vector<64x64xbf16>
    tpu.vector_store %arg6[%c0_3, %c0_4], %2 {strides = array<i32>} : memref<64x192xbf16, #tpu.memory_space<vmem>>, vector<64x64xbf16>,
    %c0_5 = arith.constant 0 : index
    %c0_6 = arith.constant 0 : index
    %c1 = arith.constant 1 : index
    %c0_7 = arith.constant 0 : index
    %4 = vector.load %arg2[%c0_5, %c0_6, %c1, %c0_7] : memref<1x10x10x64xbf16, #tpu.memory_space<vmem>>, vector<1x8x8x64xbf16>
    %5 = vector.shape_cast %4 : vector<1x8x8x64xbf16> to vector<8x8x64xbf16>
    %6 = vector.shape_cast %5 : vector<8x8x64xbf16> to vector<64x64xbf16>
    %c0_8 = arith.constant 0 : index
    %c64 = arith.constant 64 : index
    %7 = vector.load %arg6[%c0_8, %c64] : memref<64x192xbf16, #tpu.memory_space<vmem>>, vector<64x64xbf16>
    tpu.vector_store %arg6[%c0_8, %c64], %6 {strides = array<i32>} : memref<64x192xbf16, #tpu.memory_space<vmem>>, vector<64x64xbf16>,
    %c0_9 = arith.constant 0 : index
    %c0_10 = arith.constant 0 : index
    %c2 = arith.constant 2 : index
    %c0_11 = arith.constant 0 : index
    %8 = vector.load %arg2[%c0_9, %c0_10, %c2, %c0_11] : memref<1x10x10x64xbf16, #tpu.memory_space<vmem>>, vector<1x8x8x64xbf16>
    %9 = vector.shape_cast %8 : vector<1x8x8x64xbf16> to vector<8x8x64xbf16>
    %10 = vector.shape_cast %9 : vector<8x8x64xbf16> to vector<64x64xbf16>
    %c0_12 = arith.constant 0 : index
    %c128 = arith.constant 128 : index
    %11 = vector.load %arg6[%c0_12, %c128] : memref<64x192xbf16, #tpu.memory_space<vmem>>, vector<64x64xbf16>
    tpu.vector_store %arg6[%c0_12, %c128], %10 {strides = array<i32>} : memref<64x192xbf16, #tpu.memory_space<vmem>>, vector<64x64xbf16>,
    %c0_13 = arith.constant 0 : index
    %c0_14 = arith.constant 0 : index
    %12 = vector.load %arg6[%c0_13, %c0_14] : memref<64x192xbf16, #tpu.memory_space<vmem>>, vector<64x192xbf16>
    %c0_15 = arith.constant 0 : index
    %c0_16 = arith.constant 0 : index
    %c0_17 = arith.constant 0 : index
    %13 = vector.load %arg3[%c0_15, %c0_16, %c0_17] : memref<3x192x128xbf16, #tpu.memory_space<vmem>>, vector<1x192x128xbf16>
    %14 = vector.shape_cast %13 : vector<1x192x128xbf16> to vector<192x128xbf16>
    %cst = arith.constant dense<0.000000e+00> : vector<64x128xf32>
    %15 = tpu.matmul %12, %14, %cst {dimension_numbers = #tpu.dot_dimension_numbers<[1], [0], [0], [1], [0, 0, 1, 1], [], []>} : vector<64x192xbf16>, vector<192x128xbf16>, vector<64x128xf32> -> vector<64x128xf32>
    %c0_18 = arith.constant 0 : index
    %c1_19 = arith.constant 1 : index
    %c0_20 = arith.constant 0 : index
    %c0_21 = arith.constant 0 : index
    %16 = vector.load %arg2[%c0_18, %c1_19, %c0_20, %c0_21] : memref<1x10x10x64xbf16, #tpu.memory_space<vmem>>, vector<1x8x8x64xbf16>
    %17 = vector.shape_cast %16 : vector<1x8x8x64xbf16> to vector<8x8x64xbf16>
    %18 = vector.shape_cast %17 : vector<8x8x64xbf16> to vector<64x64xbf16>
    %c0_22 = arith.constant 0 : index
    %c0_23 = arith.constant 0 : index
    %19 = vector.load %arg6[%c0_22, %c0_23] : memref<64x192xbf16, #tpu.memory_space<vmem>>, vector<64x64xbf16>
    tpu.vector_store %arg6[%c0_22, %c0_23], %18 {strides = array<i32>} : memref<64x192xbf16, #tpu.memory_space<vmem>>, vector<64x64xbf16>,
    %c0_24 = arith.constant 0 : index
    %c1_25 = arith.constant 1 : index
    %c1_26 = arith.constant 1 : index
    %c0_27 = arith.constant 0 : index
    %20 = vector.load %arg2[%c0_24, %c1_25, %c1_26, %c0_27] : memref<1x10x10x64xbf16, #tpu.memory_space<vmem>>, vector<1x8x8x64xbf16>
    %21 = vector.shape_cast %20 : vector<1x8x8x64xbf16> to vector<8x8x64xbf16>
    %22 = vector.shape_cast %21 : vector<8x8x64xbf16> to vector<64x64xbf16>
    %c0_28 = arith.constant 0 : index
    %c64_29 = arith.constant 64 : index
    %23 = vector.load %arg6[%c0_28, %c64_29] : memref<64x192xbf16, #tpu.memory_space<vmem>>, vector<64x64xbf16>
    tpu.vector_store %arg6[%c0_28, %c64_29], %22 {strides = array<i32>} : memref<64x192xbf16, #tpu.memory_space<vmem>>, vector<64x64xbf16>,
    %c0_30 = arith.constant 0 : index
    %c1_31 = arith.constant 1 : index
    %c2_32 = arith.constant 2 : index
    %c0_33 = arith.constant 0 : index
    %24 = vector.load %arg2[%c0_30, %c1_31, %c2_32, %c0_33] : memref<1x10x10x64xbf16, #tpu.memory_space<vmem>>, vector<1x8x8x64xbf16>
    %25 = vector.shape_cast %24 : vector<1x8x8x64xbf16> to vector<8x8x64xbf16>
    %26 = vector.shape_cast %25 : vector<8x8x64xbf16> to vector<64x64xbf16>
    %c0_34 = arith.constant 0 : index
    %c128_35 = arith.constant 128 : index
    %27 = vector.load %arg6[%c0_34, %c128_35] : memref<64x192xbf16, #tpu.memory_space<vmem>>, vector<64x64xbf16>
    tpu.vector_store %arg6[%c0_34, %c128_35], %26 {strides = array<i32>} : memref<64x192xbf16, #tpu.memory_space<vmem>>, vector<64x64xbf16>,
    %c0_36 = arith.constant 0 : index
    %c0_37 = arith.constant 0 : index
    %28 = vector.load %arg6[%c0_36, %c0_37] : memref<64x192xbf16, #tpu.memory_space<vmem>>, vector<64x192xbf16>
    %c1_38 = arith.constant 1 : index
    %c0_39 = arith.constant 0 : index
    %c0_40 = arith.constant 0 : index
    %29 = vector.load %arg3[%c1_38, %c0_39, %c0_40] : memref<3x192x128xbf16, #tpu.memory_space<vmem>>, vector<1x192x128xbf16>
    %30 = vector.shape_cast %29 : vector<1x192x128xbf16> to vector<192x128xbf16>
    %cst_41 = arith.constant dense<0.000000e+00> : vector<64x128xf32>
    %31 = tpu.matmul %28, %30, %cst_41 {dimension_numbers = #tpu.dot_dimension_numbers<[1], [0], [0], [1], [0, 0, 1, 1], [], []>} : vector<64x192xbf16>, vector<192x128xbf16>, vector<64x128xf32> -> vector<64x128xf32>
    %32 = arith.addf %15, %31 : vector<64x128xf32>
    %c0_42 = arith.constant 0 : index
    %c2_43 = arith.constant 2 : index
    %c0_44 = arith.constant 0 : index
    %c0_45 = arith.constant 0 : index
    %33 = vector.load %arg2[%c0_42, %c2_43, %c0_44, %c0_45] : memref<1x10x10x64xbf16, #tpu.memory_space<vmem>>, vector<1x8x8x64xbf16>
    %34 = vector.shape_cast %33 : vector<1x8x8x64xbf16> to vector<8x8x64xbf16>
    %35 = vector.shape_cast %34 : vector<8x8x64xbf16> to vector<64x64xbf16>
    %c0_46 = arith.constant 0 : index
    %c0_47 = arith.constant 0 : index
    %36 = vector.load %arg6[%c0_46, %c0_47] : memref<64x192xbf16, #tpu.memory_space<vmem>>, vector<64x64xbf16>
    tpu.vector_store %arg6[%c0_46, %c0_47], %35 {strides = array<i32>} : memref<64x192xbf16, #tpu.memory_space<vmem>>, vector<64x64xbf16>,
    %c0_48 = arith.constant 0 : index
    %c2_49 = arith.constant 2 : index
    %c1_50 = arith.constant 1 : index
    %c0_51 = arith.constant 0 : index
    %37 = vector.load %arg2[%c0_48, %c2_49, %c1_50, %c0_51] : memref<1x10x10x64xbf16, #tpu.memory_space<vmem>>, vector<1x8x8x64xbf16>
    %38 = vector.shape_cast %37 : vector<1x8x8x64xbf16> to vector<8x8x64xbf16>
    %39 = vector.shape_cast %38 : vector<8x8x64xbf16> to vector<64x64xbf16>
    %c0_52 = arith.constant 0 : index
    %c64_53 = arith.constant 64 : index
    %40 = vector.load %arg6[%c0_52, %c64_53] : memref<64x192xbf16, #tpu.memory_space<vmem>>, vector<64x64xbf16>
    tpu.vector_store %arg6[%c0_52, %c64_53], %39 {strides = array<i32>} : memref<64x192xbf16, #tpu.memory_space<vmem>>, vector<64x64xbf16>,
    %c0_54 = arith.constant 0 : index
    %c2_55 = arith.constant 2 : index
    %c2_56 = arith.constant 2 : index
    %c0_57 = arith.constant 0 : index
    %41 = vector.load %arg2[%c0_54, %c2_55, %c2_56, %c0_57] : memref<1x10x10x64xbf16, #tpu.memory_space<vmem>>, vector<1x8x8x64xbf16>
    %42 = vector.shape_cast %41 : vector<1x8x8x64xbf16> to vector<8x8x64xbf16>
    %43 = vector.shape_cast %42 : vector<8x8x64xbf16> to vector<64x64xbf16>
    %c0_58 = arith.constant 0 : index
    %c128_59 = arith.constant 128 : index
    %44 = vector.load %arg6[%c0_58, %c128_59] : memref<64x192xbf16, #tpu.memory_space<vmem>>, vector<64x64xbf16>
    tpu.vector_store %arg6[%c0_58, %c128_59], %43 {strides = array<i32>} : memref<64x192xbf16, #tpu.memory_space<vmem>>, vector<64x64xbf16>,
    %c0_60 = arith.constant 0 : index
    %c0_61 = arith.constant 0 : index
    %45 = vector.load %arg6[%c0_60, %c0_61] : memref<64x192xbf16, #tpu.memory_space<vmem>>, vector<64x192xbf16>
    %c2_62 = arith.constant 2 : index
    %c0_63 = arith.constant 0 : index
    %c0_64 = arith.constant 0 : index
    %46 = vector.load %arg3[%c2_62, %c0_63, %c0_64] : memref<3x192x128xbf16, #tpu.memory_space<vmem>>, vector<1x192x128xbf16>
    %47 = vector.shape_cast %46 : vector<1x192x128xbf16> to vector<192x128xbf16>
    %cst_65 = arith.constant dense<0.000000e+00> : vector<64x128xf32>
    %48 = tpu.matmul %45, %47, %cst_65 {dimension_numbers = #tpu.dot_dimension_numbers<[1], [0], [0], [1], [0, 0, 1, 1], [], []>} : vector<64x192xbf16>, vector<192x128xbf16>, vector<64x128xf32> -> vector<64x128xf32>
    %49 = arith.addf %32, %48 : vector<64x128xf32>
    %c0_66 = arith.constant 0 : index
    %c0_67 = arith.constant 0 : index
    %50 = vector.load %arg4[%c0_66, %c0_67] : memref<1x128xf32, #tpu.memory_space<vmem>>, vector<1x128xf32>
    %51 = vector.broadcast %50 : vector<1x128xf32> to vector<64x128xf32>
    %52 = arith.addf %49, %51 : vector<64x128xf32>
    %cst_68 = arith.constant 0.000000e+00 : f32
    %53 = vector.broadcast %cst_68 : f32 to vector<64x128xf32>
    %54 = arith.maximumf %52, %53 : vector<64x128xf32>
    %55 = vector.shape_cast %54 : vector<64x128xf32> to vector<8x8x128xf32>
    %56 = arith.truncf %55 : vector<8x8x128xf32> to vector<8x8x128xbf16>
    %c0_69 = arith.constant 0 : index
    %c0_70 = arith.constant 0 : index
    %c0_71 = arith.constant 0 : index
    %c0_72 = arith.constant 0 : index
    %57 = vector.load %arg5[%c0_69, %c0_70, %c0_71, %c0_72] : memref<1x8x8x128xbf16, #tpu.memory_space<vmem>>, vector<1x8x8x128xbf16>
    %58 = vector.shape_cast %57 : vector<1x8x8x128xbf16> to vector<8x8x128xbf16>
    %59 = vector.shape_cast %56 : vector<8x8x128xbf16> to vector<1x8x8x128xbf16>
    tpu.vector_store %arg5[%c0_69, %c0_70, %c0_71, %c0_72], %59 {strides = array<i32>} : memref<1x8x8x128xbf16, #tpu.memory_space<vmem>>, vector<1x8x8x128xbf16>,
    return
  }
  func.func @transform_0(%arg0: i32, %arg1: i32) -> (i32, i32, i32, i32) {
    %c0_i32 = arith.constant 0 : i32
    %c0_i32_0 = arith.constant 0 : i32
    %c0_i32_1 = arith.constant 0 : i32
    %c0_i32_2 = arith.constant 0 : i32
    return %arg0, %c0_i32, %c0_i32_0, %c0_i32_1 : i32, i32, i32, i32
  }
  func.func @transform_1(%arg0: i32, %arg1: i32) -> (i32, i32, i32) {
    %c0_i32 = arith.constant 0 : i32
    %c0_i32_0 = arith.constant 0 : i32
    %c0_i32_1 = arith.constant 0 : i32
    return %c0_i32, %c0_i32_0, %arg1 : i32, i32, i32
  }
  func.func @transform_2(%arg0: i32, %arg1: i32) -> (i32, i32) {
    %c0_i32 = arith.constant 0 : i32
    %c0_i32_0 = arith.constant 0 : i32
    return %c0_i32, %arg1 : i32, i32
  }
  func.func @transform_3(%arg0: i32, %arg1: i32) -> (i32, i32, i32, i32) {
    %c0_i32 = arith.constant 0 : i32
    %c0_i32_0 = arith.constant 0 : i32
    %c0_i32_1 = arith.constant 0 : i32
    return %arg0, %c0_i32, %c0_i32_0, %arg1 : i32, i32, i32, i32
  }
}

</mosaic_0001>

<bundles_post_ra>
// kernel: _forward.3
= control target key start
LH: loop header
LB: loop body
LE: loop exit
PB: predicated region body
PF: predicated region fallthrough
CT: control target
= control target key end

     0   :  { %s1754_s12 = smov 0   ;;  %s1756_s13 = smov 0   ;;  %s2567_s0 = inlined_call_operand.vmem [shape: bf16[2,256,27], index: 0, kind: input, shape index: {}]   ;;  %s2568_s1 = inlined_call_operand.vmem [shape: bf16[27,64], index: 1, kind: input, shape index: {}]   ;;  %s2569_s2 = inlined_call_operand.vmem [shape: f32[1,64], index: 2, kind: input, shape index: {}]   ;;  %s2570_s3 = inlined_call_operand.vmem [shape: bf16[2,18,18,64], index: 3, kind: output, shape index: {}]  }
   0x1   :  { %s1758_s14 = smov 0  }
   0x2 LB: > { %s25_s15 = sadd.s32 1, %s1727_s13  ;;  %p1473_p0 = scmp.ge.s32.totalorder %s1731_s14, 1  ;;  %s1731_s14 = sphi %s1758_s14, %s13_s14   ;;  %s1727_s13 = sphi %s1756_s13, %s2580_s13   ;;  %s1723_s12 = sphi %s1754_s12, %s2579_s12  }
   0x3   : > { %p27_p1 = scmp.ge.s32.totalorder %s25_s15, 2  ;;  %p168_p2 = scmp.lt.s32.totalorder %s1731_s14, 3 }
   0x5   : > { %s2582_s15 = smov (%p27_p1, %s25_s15), 0  ;;  %p169_p3 = pnand %p1473_p0, %p168_p2 }
   0x6   : > { %v1691_v0 = vld [vmem:[%s2568_s1] sm:$0xff] (!%p169_p3)   ;;  %vm406_vm0 = vcmask (!%p169_p3), 1044480   ;;  %v1692_v1 = vld [vmem:[%s2568_s1 + $0x8] sm:$0x3f] (!%p169_p3)   ;;  %vm407_vm1 = vcmask (!%p169_p3), 1045504   ;;  %p202_p4 = scmp.lt.s32.totalorder (!%p169_p3), %s1723_s12, 1 }
   0x7   : > { %172 = sbr.rel (%p169_p3) target bundleno = 343 (0x157), region = 32  ;;  %1625 = vmatprep.subr.bf16.mxu0 (!%p169_p3), %v1691_v0  ;;  %1661 = vmatprep.subr.bf16.mxu1 (!%p169_p3), %v1691_v0  ;;  %v1733_v2 = vmov (!%p169_p3), 65535   ;;  %vm357_vm2 = vcmask (!%p169_p3), 220160   ;;  %v1821_v22 = vld [vmem:[%s2569_s2] ss:$0 sm:$0xff] (!%p169_p3)  ;;  %vm1025_vm3 = vcmask (!%p169_p3), 519168  }
   0x8   : > { %1626 = vmatpush3.bf16.msra.mxu0 (!%p169_p3), %v1691_v0  ;;  %1663 = vmatpush3.bf16.msra.mxu1 (!%p169_p3), %v1691_v0  ;;  %v408_v3 = vsel (!%p169_p3), %vm406_vm0, 4294967295, %v1733_v2  ;;  %vm702_vm4 = vsmask.f32 (!%p169_p3), 256  ;;  %vm1026_vm5 = vsmask.f32 (!%p169_p3), 7938  ;;  %vm1033_vm6 = vcmask (!%p169_p3), 516096  }
   0x9   : > { %v409_v4 = vsel (!%p169_p3), %vm407_vm1, %v408_v3, 0  ;;  %vm703_vm7 = vsmask.f32 (!%p169_p3), 4368  ;;  %vm1865_vm8 = vmand (!%p169_p3), %vm1025_vm3, %vm1026_vm5 }
   0xa   : > { %v411_v5 = vand.u32 (!%p169_p3), %v1692_v1, %v409_v4  ;;  %vm1905_vm9 = vmand (!%p169_p3), %vm1033_vm6, %vm702_vm4 }
   0xb   : > { %vm1922_vm10 = vmor (!%p169_p3), %vm702_vm4, %vm703_vm7 }
   0xc   : > { %1627 = vmatprep.subr.bf16.mxu0 (!%p169_p3), %v411_v5  ;;  %1662 = vmatprep.subr.bf16.mxu1 (!%p169_p3), %v411_v5  ;;  %vm2018_vm11 = vmand (!%p169_p3), %vm1033_vm6, %vm1026_vm5 }
   0xd   : > { %1628 = vmatpush3.bf16.msra.mxu0 (!%p169_p3), %v411_v5  ;;  %1664 = vmatpush3.bf16.msra.mxu1 (!%p169_p3), %v411_v5 }
   0xe   : > { %s2584_s12 = smov (!%p202_p4, %s1723_s12), 1 }
   0xf   : > { %s1574_s20 = sshll.u32 %s2584_s12, 7  ;;  %s1665_s26 = smul.u32 216, %s2584_s12 }
  0x10   : > { %s1784_s23 = scalar_lea.vmem %s2567_s0, %s1574_s20 }
  0x11   : > { %v1693_v6 = vld [vmem:[%s1784_s23] sm:$0xff]   ;;  %v1695_v8 = vld [vmem:[%s1784_s23 + $0x8] sm:$0xff]   ;;  %v1697_v10 = vld [vmem:[%s1784_s23 + $0x10] sm:$0xff]   ;;  %s1835_s29 = scalar_lea.vmem %s2570_s3, %s1665_s26 }
  0x12   : > { %v1694_v7 = vld [vmem:[%s1784_s23 + $0x40] sm:$0xff]   ;;  %1629 = vmatprep.mubr.msk.bf16.mxu0 %vm357_vm2, %v1693_v6  ;;  %v1696_v9 = vld [vmem:[%s1784_s23 + $0x48] sm:$0xff]   ;;  %v1698_v11 = vld [vmem:[%s1784_s23 + $0x50] sm:$0xff]  }
  0x13   : > { %1645 = vmatprep.mubr.msk.bf16.mxu1 %vm357_vm2, %v1694_v7  ;;  %1630 = vmatmul.mubr.msk.bf16.vlgmr.msra.gmra.mrb[0].mxu0 %vm357_vm2, %v1695_v8  ;;  %v1699_v12 = vld [vmem:[%s1784_s23 + $0x18] sm:$0xff]   ;;  %v1701_v14 = vld [vmem:[%s1784_s23 + $0x20] sm:$0xff]   ;;  %v1703_v16 = vld [vmem:[%s1784_s23 + $0x28] sm:$0xff]  }
  0x14   : > { %1646 = vmatmul.mubr.msk.bf16.vlgmr.msra.gmra.mrb[0].mxu1 %vm357_vm2, %v1696_v9  ;;  %1633 = vmatprep.mubr.msk.bf16.mxu0 %vm357_vm2, %v1697_v10  ;;  %v1700_v13 = vld [vmem:[%s1784_s23 + $0x58] sm:$0xff]   ;;  %v1702_v15 = vld [vmem:[%s1784_s23 + $0x60] sm:$0xff]   ;;  %v1704_v17 = vld [vmem:[%s1784_s23 + $0x68] sm:$0xff]  }
  0x15   : > { %1649 = vmatprep.mubr.msk.bf16.mxu1 %vm357_vm2, %v1698_v11  ;;  %v1705_v18 = vld [vmem:[%s1784_s23 + $0x30] sm:$0xff]   ;;  %v1707_v20 = vld [vmem:[%s1784_s23 + $0x38] sm:$0xff]   ;;  %v1028_v52 = vld [vmem:[%s1835_s29] sm:$0xf] }
  0x16   : > { %v1706_v19 = vld [vmem:[%s1784_s23 + $0x70] sm:$0xff]   ;;  %v1708_v21 = vld [vmem:[%s1784_s23 + $0x78] sm:$0xff]   ;;  %v1038_v62 = vld [vmem:[%s1835_s29 + $0xc] sm:$0xf] }
  0x17   : > { %v1045_v53 = vld [vmem:[%s1835_s29 + $0x18] sm:$0xf] }
  0x18   : > { %v1101_v60 = vld [vmem:[%s1835_s29 + $0x78] sm:$0xf] }
  0x1b   : > { %1634 = vmatmul.mubr.msk.bf16.gmra.mrb[4].mxu0 %vm357_vm2, %v1699_v12 }
  0x1c   : > { %1650 = vmatmul.mubr.msk.bf16.gmra.mrb[4].mxu1 %vm357_vm2, %v1700_v13  ;;  %1637 = vmatprep.mubr.msk.bf16.mxu0 %vm357_vm2, %v1701_v14 }
  0x1d   : > { %1653 = vmatprep.mubr.msk.bf16.mxu1 %vm357_vm2, %v1702_v15 }
  0x23   : > { %1638 = vmatmul.mubr.msk.bf16.gmra.mrb[8].mxu0 %vm357_vm2, %v1703_v16 }
  0x24   : > { %1654 = vmatmul.mubr.msk.bf16.gmra.mrb[8].mxu1 %vm357_vm2, %v1704_v17  ;;  %1641 = vmatprep.mubr.msk.bf16.mxu0 %vm357_vm2, %v1705_v18 }
  0x25   : > { %1657 = vmatprep.mubr.msk.bf16.mxu1 %vm357_vm2, %v1706_v19  ;;  %v1094_v19 = vld [vmem:[%s1835_s29 + $0x6c] sm:$0xf] }
  0x2b   : > { %1642 = vmatmul.mubr.msk.bf16.gmra.mrb[12].mxu0 %vm357_vm2, %v1707_v20 }
  0x2c   : > { %1658 = vmatmul.mubr.msk.bf16.gmra.mrb[12].mxu1 %vm357_vm2, %v1708_v21 }
  0xe6   : > { %v1631_v23 = vpop.f32.mrb[0].mxu0 }
  0xe7   : > { %v456_v24 = vadd.f32 %v1631_v23, %v1821_v22  ;;  %v1647_v25 = vpop.f32.mrb[0].mxu1  ;;  %v447_v26 = vpop.f32.mrb[1].mxu0 }
  0xe8   : > { %v520_v27 = vadd.f32 %v1647_v25, %v1821_v22  ;;  %v448_v28 = vadd.f32 %v1821_v22, %v447_v26  ;;  %v511_v29 = vpop.f32.mrb[1].mxu1  ;;  %v1632_v30 = vpop.f32.mrb[2].mxu0 }
  0xe9   : > { %v576_v31 = vmax.f32 %v456_v24, 0.0  ;;  %v512_v32 = vadd.f32 %v1821_v22, %v511_v29  ;;  %v459_v33 = vadd.f32 %v1632_v30, %v1821_v22  ;;  %v1648_v34 = vpop.f32.mrb[2].mxu1  ;;  %v450_v35 = vpop.f32.mrb[3].mxu0 }
  0xea   : > { %v592_v36 = vmax.f32 %v520_v27, 0.0  ;;  %v574_v37 = vmax.f32 %v448_v28, 0.0  ;;  %v1830_v38 = vadd.f32 %v1648_v34, %v1821_v22  ;;  %v514_v39 = vpop.f32.mrb[3].mxu1  ;;  %v451_v45 = vadd.f32 %v1821_v22, %v450_v35  ;;  %v1049_v34 = vld [vmem:[%s1835_s29 + $0x20] sm:$0x1] }
  0xeb   : > { %v1575_v40 = vpack.c.bf16 %v576_v31, %v576_v31  ;;  %v590_v41 = vmax.f32 %v512_v32, 0.0  ;;  %v577_v42 = vmax.f32 %v459_v33, 0.0  ;;  %v1843_v46 = vadd.f32 %v1821_v22, %v514_v39  ;;  %v1035_v33 = vld [vmem:[%s1835_s29 + $0x8] sm:$0x1] }
  0xec   : > { %v1837_v43 = vpack.c.bf16 %v592_v36, %v592_v36  ;;  %v1839_v44 = vpack.c.bf16 %v574_v37, %v574_v37  ;;  %v593_v50 = vmax.f32 %v1830_v38, 0.0  ;;  %v575_v12 = vmax.f32 %v451_v45, 0.0 }
  0xed   : > { %v706_v47 = vshrl.u32 %v1575_v40, 16  ;;  %v1845_v48 = vpack.c.bf16 %v590_v41, %v590_v41  ;;  %v1576_v49 = vpack.c.bf16 %v577_v42, %v577_v42  ;;  %v709_v51 = vshll.u32 %v1575_v40, 16 }
  0xee   : > { %v859_v54 = vshrl.u32 %v1837_v43, 16  ;;  %v862_v55 = vshll.u32 %v1837_v43, 16  ;;  %v723_v56 = vshrl.u32 %v1839_v44, 16  ;;  %v1635_v57 = vpop.f32.mrb[4].mxu0  ;;  %v726_v61 = vshll.u32 %v1839_v44, 16 }
  0xef   : > { %v708_v58 = vrot.slane %v706_v47, 7  ;;  %v1853_v59 = vrot.slane %v706_v47, 4  ;;  %v842_v63 = vshrl.u32 %v1845_v48, 16  ;;  %v1859_v0 = vpop.f32.mrb[4].mxu1  ;;  %v1861_v1 = vpop.f32.mrb[5].mxu0  ;;  %v714_v5 = vshrl.u32 %v1576_v49, 16 }
  0xf0   : > { %v1871_v3 = vrot.slane %v859_v54, 7  ;;  %v1875_v4 = vrot.slane %v723_v56, 7  ;;  %v717_v6 = vshll.u32 %v1576_v49, 16  ;;  %v1877_v7 = vpop.f32.mrb[5].mxu1  ;;  %v1879_v8 = vpop.f32.mrb[6].mxu0  ;;  %v845_v11 = vshll.u32 %v1845_v48, 16 }
  0xf1   : > { %v711_v9 = vor.u32 %v709_v51, %v708_v58  ;;  %v1883_v10 = vrot.slane %v842_v63, 7  ;;  %v1886_v13 = vpop.f32.mrb[6].mxu1  ;;  %v1888_v14 = vpop.f32.mrb[7].mxu0  ;;  %v712_v15 = vrot.slane %v708_v58, 4  ;;  %v1158_v16 = vrot.slane %v1853_v59, 4 }
  0xf2   : > { %v864_v17 = vor.u32 %v862_v55, %v1871_v3  ;;  %v728_v18 = vor.u32 %v726_v61, %v1875_v4  ;;  %v1894_v20 = vpop.f32.mrb[7].mxu1  ;;  %v865_v24 = vrot.slane %v1871_v3, 4  ;;  %v716_v29 = vrot.slane %v714_v5, 7 }
  0xf3   : > { %v1029_v21 = vsel %vm1865_vm8, %v711_v9, %v1028_v52  ;;  %v1046_v23 = vsel %vm1865_vm8, %v711_v9, %v1045_v53  ;;  %v847_v25 = vor.u32 %v845_v11, %v1883_v10  ;;  %v1914_v30 = vrot.slane %v717_v6, 7 }
  0xf4   : > { %1030 = vst [vmem:[%s1835_s29] sm:$0xf] %v1029_v21  ;;  %1047 = vst [vmem:[%s1835_s29 + $0x18] sm:$0xf] %v1046_v23  ;;  %v1102_v27 = vsel %vm1865_vm8, %v864_v17, %v1101_v60  ;;  %v1039_v28 = vsel %vm1865_vm8, %v728_v18, %v1038_v62  ;;  %v1594_v35 = vpack.c.bf16 %v593_v50, %v593_v50  ;;  %v591_v37 = vmax.f32 %v1843_v46, 0.0 }
  0xf5   : > { %1103 = vst [vmem:[%s1835_s29 + $0x78] sm:$0xf] %v1102_v27  ;;  %1040 = vst [vmem:[%s1835_s29 + $0xc] sm:$0xf] %v1039_v28  ;;  %v1095_v31 = vsel %vm1865_vm8, %v847_v25, %v1094_v19  ;;  %v1928_v36 = vpack.c.bf16 %v575_v12, %v575_v12  ;;  %v729_v38 = vrot.slane %v1875_v4, 4  ;;  %v719_v39 = vor.u32 %v717_v6, %v716_v29 }
  0xf6   : > { %1096 = vst [vmem:[%s1835_s29 + $0x6c] sm:$0xf] %v1095_v31  ;;  %v721_v40 = vrot.slane %v716_v29, 4  ;;  %v1934_v41 = vadd.f32 %v1635_v57, %v1821_v22  ;;  %v1936_v42 = vpop.f32.mrb[8].mxu0  ;;  %v848_v45 = vrot.slane %v1883_v10, 4  ;;  %v867_v47 = vshrl.u32 %v1594_v35, 16 }
  0xf7   : > { %v870_v49 = vshll.u32 %v1594_v35, 16  ;;  %v731_v46 = vshrl.u32 %v1928_v36, 16  ;;  %v1940_v50 = vpop.f32.mrb[8].mxu1  ;;  %v1942_v51 = vpop.f32.mrb[9].mxu0  ;;  %v720_v52 = vsel %vm1922_vm10, %v712_v15, %v719_v39  ;;  %v1105_v57 = vld [vmem:[%s1835_s29 + $0x80] sm:$0x1]  ;;  %v1951_v58 = vpack.c.bf16 %v591_v37, %v591_v37 }
  0xf8   : > { %v1036_v53 = vsel %vm1905_vm9, %v721_v40, %v1035_v33  ;;  %v1050_v55 = vsel %vm1905_vm9, %v721_v40, %v1049_v34  ;;  %v1953_v60 = vpop.f32.mrb[9].mxu1  ;;  %v1955_v61 = vpop.f32.mrb[10].mxu0  ;;  %1032 = vst.msk [vmem:[%s1835_s29 + $0x4] sm:$0xf] %vm1025_vm3, %v720_v52  ;;  %1048 = vst.msk [vmem:[%s1835_s29 + $0x1c] sm:$0xf] %vm1025_vm3, %v720_v52  ;;  %v536_v19 = vadd.f32 %v1859_v0, %v1821_v22 }
  0xf9   : > { %1037 = vst [vmem:[%s1835_s29 + $0x8] sm:$0x1] %v1036_v53  ;;  %1051 = vst [vmem:[%s1835_s29 + $0x20] sm:$0x1] %v1050_v55  ;;  %v1260_v62 = vrot.slane %v1914_v30, 4  ;;  %v869_v4 = vrot.slane %v867_v47, 7 }
  0xfa   : > { %v733_v5 = vrot.slane %v731_v46, 7  ;;  %v734_v6 = vshll.u32 %v1928_v36, 16  ;;  %v1965_v9 = vpop.f32.mrb[10].mxu1  ;;  %v1967_v11 = vpop.f32.mrb[11].mxu0  ;;  %v1969_v12 = vrot.slane %v870_v49, 11  ;;  %v850_v17 = vshrl.u32 %v1951_v58, 16 }
  0xfb   : > { %v1042_v15 = vld [vmem:[%s1835_s29 + $0x14] sm:$0x1]  ;;  %v580_v18 = vmax.f32 %v1934_v41, 0.0  ;;  %v1976_v21 = vpop.f32.mrb[11].mxu1  ;;  %v1205_v23 = vld [vmem:[%s1835_s29] sm:$0x1]  ;;  %v872_v27 = vor.u32 %v870_v49, %v869_v4  ;;  %v464_v46 = vadd.f32 %v1821_v22, %v1861_v1  ;;  %v475_v1 = vadd.f32 %v1879_v8, %v1821_v22 }
  0xfc   : > { %v1211_v25 = vld [vmem:[%s1835_s29 + $0x18] sm:$0x1]  ;;  %v874_v28 = vrot.slane %v869_v4, 4  ;;  %v736_v29 = vor.u32 %v734_v6, %v733_v5  ;;  %v738_v30 = vrot.slane %v733_v5, 4  ;;  %v1206_v31 = vsel %vm1905_vm9, %v1158_v16, %v1205_v23  ;;  %v1208_v34 = vld [vmem:[%s1835_s29 + $0xc] sm:$0x1] }
  0xfd   : > { %v1212_v0 = vsel %vm1905_vm9, %v1158_v16, %v1211_v25  ;;  %v1235_v33 = vld [vmem:[%s1835_s29 + $0x78] sm:$0x1]  ;;  %v852_v35 = vrot.slane %v850_v17, 7  ;;  %v853_v37 = vshll.u32 %v1951_v58, 16  ;;  %1207 = vst [vmem:[%s1835_s29] sm:$0x1] %v1206_v31  ;;  %v1209_v59 = vsel %vm1905_vm9, %v723_v56, %v1208_v34 }
  0xfe   : > { %1213 = vst [vmem:[%s1835_s29 + $0x18] sm:$0x1] %v1212_v0  ;;  %v1236_v39 = vsel %vm1905_vm9, %v859_v54, %v1235_v33  ;;  %v1232_v16 = vld [vmem:[%s1835_s29 + $0x6c] sm:$0x1]  ;;  %v873_v40 = vsel %vm1922_vm10, %v865_v24, %v872_v27  ;;  %v1106_v43 = vsel %vm1905_vm9, %v874_v28, %v1105_v57  ;;  %1210 = vst [vmem:[%s1835_s29 + $0xc] sm:$0x1] %v1209_v59 }
  0xff   : > { %1237 = vst [vmem:[%s1835_s29 + $0x78] sm:$0x1] %v1236_v39  ;;  %v1233_v44 = vsel %vm1905_vm9, %v842_v63, %v1232_v16  ;;  %1104 = vst.msk [vmem:[%s1835_s29 + $0x7c] sm:$0xf] %vm1025_vm3, %v873_v40  ;;  %v737_v56 = vsel %vm1922_vm10, %v729_v38, %v736_v29  ;;  %v1043_v48 = vsel %vm1905_vm9, %v738_v30, %v1042_v15  ;;  %v1098_v24 = vld [vmem:[%s1835_s29 + $0x74] sm:$0x1] }
 0x100   : > { %1107 = vst [vmem:[%s1835_s29 + $0x80] sm:$0x1] %v1106_v43  ;;  %v855_v3 = vor.u32 %v853_v37, %v852_v35  ;;  %v2030_v63 = vpop.f32.mrb[12].mxu0  ;;  %1234 = vst [vmem:[%s1835_s29 + $0x6c] sm:$0x1] %v1233_v44  ;;  %v857_v41 = vrot.slane %v852_v35, 4  ;;  %v2036_v47 = vpack.c.bf16 %v580_v18, %v580_v18  ;;  %v528_v58 = vadd.f32 %v1821_v22, %v1877_v7 }
 0x101   : > { %1041 = vst.msk [vmem:[%s1835_s29 + $0x10] sm:$0xf] %vm1025_vm3, %v737_v56  ;;  %1044 = vst [vmem:[%s1835_s29 + $0x14] sm:$0x1] %v1043_v48  ;;  %v596_v49 = vmax.f32 %v536_v19, 0.0  ;;  %v2040_v38 = vpop.f32.mrb[12].mxu1  ;;  %v539_v4 = vadd.f32 %v1886_v13, %v1821_v22 }
 0x102   : > { %v2042_v52 = vpop.f32.mrb[13].mxu0  ;;  %v1308_v53 = vld [vmem:[%s1835_s29 + $0x8] sm:$0x1]  ;;  %v1314_v55 = vld [vmem:[%s1835_s29 + $0x20] sm:$0x1]  ;;  %v856_v57 = vsel %vm1922_vm10, %v848_v45, %v855_v3  ;;  %v2056_v5 = vpop.f32.mrb[13].mxu1  ;;  %v1099_v7 = vsel %vm1905_vm9, %v857_v41, %v1098_v24 }
 0x103   : > { %v2058_v15 = vpop.f32.mrb[14].mxu0  ;;  %v1309_v10 = vsel %vm2018_vm11, %v1260_v62, %v1308_v53  ;;  %v1315_v45 = vsel %vm2018_vm11, %v1260_v62, %v1314_v55  ;;  %1097 = vst.msk [vmem:[%s1835_s29 + $0x70] sm:$0xf] %vm1025_vm3, %v856_v57  ;;  %v757_v8 = vshrl.u32 %v2036_v47, 16  ;;  %v2069_v17 = vpop.f32.mrb[14].mxu1  ;;  %v1558_v18 = vrot.slane %v734_v6, 11 }
 0x104   : > { %v2071_v13 = vpop.f32.mrb[15].mxu0  ;;  %1310 = vst [vmem:[%s1835_s29 + $0x8] sm:$0x1] %v1309_v10  ;;  %1316 = vst [vmem:[%s1835_s29 + $0x20] sm:$0x1] %v1315_v45  ;;  %v2078_v62 = vpack.c.bf16 %v596_v49, %v596_v49  ;;  %v578_v19 = vmax.f32 %v464_v46, 0.0 }
 0x105   : > { %1100 = vst [vmem:[%s1835_s29 + $0x74] sm:$0x1] %v1099_v7  ;;  %v594_v23 = vmax.f32 %v528_v58, 0.0  ;;  %v2080_v25 = vpop.f32.mrb[15].mxu1  ;;  %v2084_v27 = vrot.slane %v757_v8, 7  ;;  %v760_v28 = vshll.u32 %v2036_v47, 16 }
 0x106   : > { %v581_v29 = vmax.f32 %v475_v1, 0.0  ;;  %v597_v30 = vmax.f32 %v539_v4, 0.0  ;;  %v1565_v36 = vrot.slane %v853_v37, 11  ;;  %v1059_v31 = vld [vmem:[%s1835_s29 + $0x30] sm:$0xf]  ;;  %v893_v6 = vshrl.u32 %v2078_v62, 16 }
 0x107   : > { %v2089_v0 = vpack.c.bf16 %v578_v19, %v578_v19  ;;  %v2091_v33 = vpack.c.bf16 %v594_v23, %v594_v23  ;;  %v1338_v34 = vld [vmem:[%s1835_s29 + $0x80] sm:$0x1]  ;;  %v762_v35 = vor.u32 %v760_v28, %v2084_v27  ;;  %v467_v37 = vadd.f32 %v1821_v22, %v1888_v14  ;;  %v1052_v53 = vld [vmem:[%s1835_s29 + $0x24] sm:$0xf] }
 0x108   : > { %v2095_v39 = vpack.c.bf16 %v581_v29, %v581_v29  ;;  %v2097_v59 = vpack.c.bf16 %v597_v30, %v597_v30  ;;  %v1339_v16 = vsel %vm2018_vm11, %v1969_v12, %v1338_v34  ;;  %v1311_v40 = vld [vmem:[%s1835_s29 + $0x14] sm:$0x1]  ;;  %v895_v43 = vrot.slane %v893_v6, 7  ;;  %v1115_v12 = vld [vmem:[%s1835_s29 + $0x90] sm:$0xf] }
 0x109   : > { %v896_v44 = vshll.u32 %v2078_v62, 16  ;;  %v740_v56 = vshrl.u32 %v2089_v0, 16  ;;  %1340 = vst [vmem:[%s1835_s29 + $0x80] sm:$0x1] %v1339_v16  ;;  %v1312_v48 = vsel %vm2018_vm11, %v1558_v18, %v1311_v40  ;;  %v763_v14 = vrot.slane %v2084_v27, 4 }
 0x10a   : > { %v1060_v3 = vsel %vm1865_vm8, %v762_v35, %v1059_v31  ;;  %v876_v24 = vshrl.u32 %v2091_v33, 16  ;;  %1313 = vst [vmem:[%s1835_s29 + $0x14] sm:$0x1] %v1312_v48  ;;  %v743_v46 = vshll.u32 %v2089_v0, 16  ;;  %v765_v55 = vshrl.u32 %v2095_v39, 16 }
 0x10b   : > { %1061 = vst [vmem:[%s1835_s29 + $0x30] sm:$0xf] %v1060_v3  ;;  %v898_v41 = vor.u32 %v896_v44, %v895_v43  ;;  %v2121_v49 = vrot.slane %v740_v56, 7  ;;  %v899_v58 = vrot.slane %v895_v43, 4  ;;  %v879_v4 = vshll.u32 %v2091_v33, 16 }
 0x10c   : > { %v1335_v57 = vld [vmem:[%s1835_s29 + $0x74] sm:$0x1]  ;;  %v2129_v1 = vrot.slane %v876_v24, 7  ;;  %v901_v10 = vshrl.u32 %v2097_v59, 16  ;;  %v1108_v19 = vld [vmem:[%s1835_s29 + $0x84] sm:$0xf] }
 0x10d   : > { %v1336_v45 = vsel %vm2018_vm11, %v1565_v36, %v1335_v57  ;;  %v1116_v7 = vsel %vm1865_vm8, %v898_v41, %v1115_v12  ;;  %v745_v18 = vor.u32 %v743_v46, %v2121_v49  ;;  %v768_v23 = vshll.u32 %v2095_v39, 16  ;;  %v1063_v34 = vld [vmem:[%s1835_s29 + $0x38] sm:$0x1] }
 0x10e   : > { %1337 = vst [vmem:[%s1835_s29 + $0x74] sm:$0x1] %v1336_v45  ;;  %1117 = vst [vmem:[%s1835_s29 + $0x90] sm:$0xf] %v1116_v7  ;;  %v746_v27 = vrot.slane %v2121_v49, 4  ;;  %v881_v28 = vor.u32 %v879_v4, %v2129_v1  ;;  %v767_v29 = vrot.slane %v765_v55, 7 }
 0x10f   : > { %v904_v30 = vshll.u32 %v2097_v59, 16  ;;  %v1053_v36 = vsel %vm1865_vm8, %v745_v18, %v1052_v53  ;;  %v882_v31 = vrot.slane %v2129_v1, 4  ;;  %v903_v35 = vrot.slane %v901_v10, 7  ;;  %v1119_v44 = vld [vmem:[%s1835_s29 + $0x98] sm:$0x1] }
 0x110   : > { %v579_v39 = vmax.f32 %v467_v37, 0.0  ;;  %1054 = vst [vmem:[%s1835_s29 + $0x24] sm:$0xf] %v1053_v36  ;;  %v1109_v16 = vsel %vm1865_vm8, %v881_v28, %v1108_v19  ;;  %v770_v40 = vor.u32 %v768_v23, %v767_v29  ;;  %v772_v43 = vrot.slane %v767_v29, 4 }
 0x111   : > { %v531_v59 = vadd.f32 %v1821_v22, %v1894_v20  ;;  %1110 = vst [vmem:[%s1835_s29 + $0x84] sm:$0xf] %v1109_v16  ;;  %v906_v48 = vor.u32 %v904_v30, %v903_v35  ;;  %v908_v3 = vrot.slane %v903_v35, 4  ;;  %v488_v37 = vadd.f32 %v1936_v42, %v1821_v22 }
 0x112   : > { %v2156_v12 = vpack.c.bf16 %v579_v39, %v579_v39  ;;  %v1217_v41 = vld [vmem:[%s1835_s29 + $0x30] sm:$0x1]  ;;  %v771_v49 = vsel %vm1922_vm10, %v763_v14, %v770_v40  ;;  %v1064_v46 = vsel %vm1905_vm9, %v772_v43, %v1063_v34  ;;  %v552_v53 = vadd.f32 %v1940_v50, %v1821_v22 }
 0x113   : > { %v595_v20 = vmax.f32 %v531_v59, 0.0  ;;  %v1218_v55 = vsel %vm1905_vm9, %v757_v8, %v1217_v41  ;;  %1062 = vst.msk [vmem:[%s1835_s29 + $0x34] sm:$0xf] %vm1025_vm3, %v771_v49  ;;  %1065 = vst [vmem:[%s1835_s29 + $0x38] sm:$0x1] %v1064_v46  ;;  %v907_v42 = vsel %vm1922_vm10, %v899_v58, %v906_v48  ;;  %v1120_v14 = vsel %vm1905_vm9, %v908_v3, %v1119_v44 }
 0x114   : > { %v748_v57 = vshrl.u32 %v2156_v12, 16  ;;  %1219 = vst [vmem:[%s1835_s29 + $0x30] sm:$0x1] %v1218_v55  ;;  %v1560_v4 = vrot.slane %v768_v23, 11  ;;  %1118 = vst.msk [vmem:[%s1835_s29 + $0x94] sm:$0xf] %vm1025_vm3, %v907_v42  ;;  %v480_v18 = vadd.f32 %v1821_v22, %v1942_v51  ;;  %v544_v29 = vadd.f32 %v1821_v22, %v1953_v60 }
 0x115   : > { %1121 = vst [vmem:[%s1835_s29 + $0x98] sm:$0x1] %v1120_v14  ;;  %v2183_v50 = vpack.c.bf16 %v595_v20, %v595_v20  ;;  %v584_v47 = vmax.f32 %v488_v37, 0.0  ;;  %v600_v8 = vmax.f32 %v552_v53, 0.0  ;;  %v1241_v10 = vld [vmem:[%s1835_s29 + $0x90] sm:$0x1] }
 0x116   : > { %v1568_v45 = vrot.slane %v904_v30, 11  ;;  %v750_v58 = vrot.slane %v748_v57, 7  ;;  %v751_v7 = vshll.u32 %v2156_v12, 16  ;;  %v1242_v19 = vsel %vm1905_vm9, %v893_v6, %v1241_v10  ;;  %v1056_v23 = vld [vmem:[%s1835_s29 + $0x2c] sm:$0x1] }
 0x117   : > { %v884_v28 = vshrl.u32 %v2183_v50, 16  ;;  %v491_v30 = vadd.f32 %v1955_v61, %v1821_v22  ;;  %1243 = vst [vmem:[%s1835_s29 + $0x90] sm:$0x1] %v1242_v19  ;;  %v1214_v36 = vld [vmem:[%s1835_s29 + $0x24] sm:$0x1]  ;;  %v2201_v34 = vpack.c.bf16 %v584_v47, %v584_v47  ;;  %v2203_v6 = vpack.c.bf16 %v600_v8, %v600_v8 }
 0x118   : > { %v753_v51 = vor.u32 %v751_v7, %v750_v58  ;;  %v755_v62 = vrot.slane %v750_v58, 4  ;;  %v1215_v60 = vsel %vm1905_vm9, %v740_v56, %v1214_v36  ;;  %v1238_v35 = vld [vmem:[%s1835_s29 + $0x84] sm:$0x1]  ;;  %v887_v39 = vshll.u32 %v2183_v50, 16  ;;  %v1112_v56 = vld [vmem:[%s1835_s29 + $0x8c] sm:$0x1] }
 0x119   : > { %v886_v61 = vrot.slane %v884_v28, 7  ;;  %v582_v16 = vmax.f32 %v480_v18, 0.0  ;;  %1216 = vst [vmem:[%s1835_s29 + $0x24] sm:$0x1] %v1215_v60  ;;  %v1239_v40 = vsel %vm1905_vm9, %v876_v24, %v1238_v35  ;;  %v791_v44 = vshrl.u32 %v2201_v34, 16 }
 0x11a   : > { %v754_v43 = vsel %vm1922_vm10, %v746_v27, %v753_v51  ;;  %v1057_v0 = vsel %vm1905_vm9, %v755_v62, %v1056_v23  ;;  %1240 = vst [vmem:[%s1835_s29 + $0x84] sm:$0x1] %v1239_v40  ;;  %v1320_v59 = vld [vmem:[%s1835_s29 + $0x38] sm:$0x1]  ;;  %v794_v24 = vshll.u32 %v2201_v34, 16  ;;  %v927_v27 = vshrl.u32 %v2203_v6, 16 }
 0x11b   : > { %1055 = vst.msk [vmem:[%s1835_s29 + $0x28] sm:$0xf] %vm1025_vm3, %v754_v43  ;;  %1058 = vst [vmem:[%s1835_s29 + $0x2c] sm:$0x1] %v1057_v0  ;;  %v889_v33 = vor.u32 %v887_v39, %v886_v61  ;;  %v891_v48 = vrot.slane %v886_v61, 4  ;;  %v1321_v3 = vsel %vm2018_vm11, %v1560_v4, %v1320_v59  ;;  %v2234_v37 = vrot.slane %v791_v44, 7 }
 0x11c   : > { %v1344_v12 = vld [vmem:[%s1835_s29 + $0x98] sm:$0x1]  ;;  %v930_v41 = vshll.u32 %v2203_v6, 16  ;;  %v2237_v49 = vpack.c.bf16 %v582_v16, %v582_v16  ;;  %1322 = vst [vmem:[%s1835_s29 + $0x38] sm:$0x1] %v1321_v3  ;;  %v2251_v42 = vrot.slane %v927_v27, 7  ;;  %v555_v58 = vadd.f32 %v1965_v9, %v1821_v22 }
 0x11d   : > { %v1345_v46 = vsel %vm2018_vm11, %v1568_v45, %v1344_v12  ;;  %v890_v20 = vsel %vm1922_vm10, %v882_v31, %v889_v33  ;;  %v1113_v53 = vsel %vm1905_vm9, %v891_v48, %v1112_v56  ;;  %v1073_v55 = vld [vmem:[%s1835_s29 + $0x48] sm:$0xf]  ;;  %v1559_v14 = vrot.slane %v751_v7, 11  ;;  %v1066_v23 = vld [vmem:[%s1835_s29 + $0x3c] sm:$0xf] }
 0x11e   : > { %1346 = vst [vmem:[%s1835_s29 + $0x98] sm:$0x1] %v1345_v46  ;;  %1111 = vst.msk [vmem:[%s1835_s29 + $0x88] sm:$0xf] %vm1025_vm3, %v890_v20  ;;  %v796_v1 = vor.u32 %v794_v24, %v2234_v37  ;;  %v1129_v57 = vld [vmem:[%s1835_s29 + $0xa8] sm:$0xf]  ;;  %v932_v4 = vor.u32 %v930_v41, %v2251_v42  ;;  %v483_v7 = vadd.f32 %v1821_v22, %v1967_v11 }
 0x11f   : > { %1114 = vst [vmem:[%s1835_s29 + $0x8c] sm:$0x1] %v1113_v53  ;;  %v774_v31 = vshrl.u32 %v2237_v49, 16  ;;  %v777_v50 = vshll.u32 %v2237_v49, 16  ;;  %v598_v47 = vmax.f32 %v544_v29, 0.0  ;;  %v585_v8 = vmax.f32 %v491_v30, 0.0 }
 0x120   : > { %v1074_v10 = vsel %vm1865_vm8, %v796_v1, %v1073_v55  ;;  %v1567_v18 = vrot.slane %v887_v39, 11  ;;  %v1130_v19 = vsel %vm1865_vm8, %v932_v4, %v1129_v57  ;;  %v601_v36 = vmax.f32 %v555_v58, 0.0  ;;  %v1122_v40 = vld [vmem:[%s1835_s29 + $0x9c] sm:$0xf]  ;;  %v1077_v12 = vld [vmem:[%s1835_s29 + $0x50] sm:$0x1] }
 0x121   : > { %v2266_v45 = vrot.slane %v774_v31, 7  ;;  %1075 = vst [vmem:[%s1835_s29 + $0x48] sm:$0xf] %v1074_v10  ;;  %v2276_v28 = vpack.c.bf16 %v598_v47, %v598_v47  ;;  %v1586_v29 = vpack.c.bf16 %v585_v8, %v585_v8  ;;  %1131 = vst [vmem:[%s1835_s29 + $0xa8] sm:$0xf] %v1130_v19  ;;  %v583_v51 = vmax.f32 %v483_v7, 0.0 }
 0x122   : > { %v1317_v30 = vld [vmem:[%s1835_s29 + $0x2c] sm:$0x1]  ;;  %v547_v11 = vadd.f32 %v1821_v22, %v1976_v21  ;;  %v797_v60 = vrot.slane %v2234_v37, 4  ;;  %v933_v39 = vrot.slane %v2251_v42, 4  ;;  %v2292_v43 = vpack.c.bf16 %v601_v36, %v601_v36  ;;  %v1070_v19 = vld [vmem:[%s1835_s29 + $0x44] sm:$0x1] }
 0x123   : > { %v779_v9 = vor.u32 %v777_v50, %v2266_v45  ;;  %v1318_v62 = vsel %vm2018_vm11, %v1559_v14, %v1317_v30  ;;  %v910_v35 = vshrl.u32 %v2276_v28, 16  ;;  %v799_v61 = vshrl.u32 %v1586_v29, 16 }
 0x124   : > { %1319 = vst [vmem:[%s1835_s29 + $0x2c] sm:$0x1] %v1318_v62  ;;  %v2294_v21 = vpack.c.bf16 %v583_v51, %v583_v51  ;;  %v913_v59 = vshll.u32 %v2276_v28, 16  ;;  %v802_v48 = vshll.u32 %v1586_v29, 16  ;;  %v780_v3 = vrot.slane %v2266_v45, 4 }
 0x125   : > { %v1067_v16 = vsel %vm1865_vm8, %v779_v9, %v1066_v23  ;;  %v2300_v56 = vrot.slane %v910_v35, 7  ;;  %v801_v33 = vrot.slane %v799_v61, 7  ;;  %v935_v37 = vshrl.u32 %v2292_v43, 16  ;;  %v1133_v45 = vld [vmem:[%s1835_s29 + $0xb0] sm:$0x1] }
 0x126   : > { %v1341_v0 = vld [vmem:[%s1835_s29 + $0x8c] sm:$0x1]  ;;  %1068 = vst [vmem:[%s1835_s29 + $0x3c] sm:$0xf] %v1067_v16  ;;  %v599_v41 = vmax.f32 %v547_v11, 0.0  ;;  %v504_v55 = vadd.f32 %v2030_v63, %v1821_v22  ;;  %v938_v1 = vshll.u32 %v2292_v43, 16  ;;  %v568_v6 = vadd.f32 %v2040_v38, %v1821_v22 }
 0x127   : > { %v1342_v24 = vsel %vm2018_vm11, %v1567_v18, %v1341_v0  ;;  %v915_v46 = vor.u32 %v913_v59, %v2300_v56  ;;  %v804_v20 = vor.u32 %v802_v48, %v801_v33  ;;  %v806_v53 = vrot.slane %v801_v33, 4 }
 0x128   : > { %1343 = vst [vmem:[%s1835_s29 + $0x8c] sm:$0x1] %v1342_v24  ;;  %v1223_v42 = vld [vmem:[%s1835_s29 + $0x48] sm:$0x1]  ;;  %v937_v14 = vrot.slane %v935_v37, 7  ;;  %v782_v57 = vshrl.u32 %v2294_v21, 16  ;;  %v2339_v23 = vpack.c.bf16 %v599_v41, %v599_v41 }
 0x129   : > { %v785_v4 = vshll.u32 %v2294_v21, 16  ;;  %v1224_v50 = vsel %vm1905_vm9, %v791_v44, %v1223_v42  ;;  %v1247_v47 = vld [vmem:[%s1835_s29 + $0xa8] sm:$0x1]  ;;  %v1123_v63 = vsel %vm1865_vm8, %v915_v46, %v1122_v40  ;;  %v805_v8 = vsel %vm1922_vm10, %v797_v60, %v804_v20 }
 0x12a   : > { %v1078_v10 = vsel %vm1905_vm9, %v806_v53, %v1077_v12  ;;  %1225 = vst [vmem:[%s1835_s29 + $0x48] sm:$0x1] %v1224_v50  ;;  %v1248_v34 = vsel %vm1905_vm9, %v927_v27, %v1247_v47  ;;  %1124 = vst [vmem:[%s1835_s29 + $0x9c] sm:$0xf] %v1123_v63  ;;  %v940_v44 = vor.u32 %v938_v1, %v937_v14  ;;  %v942_v58 = vrot.slane %v937_v14, 4 }
 0x12b   : > { %1076 = vst.msk [vmem:[%s1835_s29 + $0x4c] sm:$0xf] %vm1025_vm3, %v805_v8  ;;  %1079 = vst [vmem:[%s1835_s29 + $0x50] sm:$0x1] %v1078_v10  ;;  %v784_v7 = vrot.slane %v782_v57, 7  ;;  %v1562_v18 = vrot.slane %v802_v48, 11  ;;  %v507_v48 = vadd.f32 %v2058_v15, %v1821_v22  ;;  %v571_v46 = vadd.f32 %v2069_v17, %v1821_v22 }
 0x12c   : > { %1249 = vst [vmem:[%s1835_s29 + $0xa8] sm:$0x1] %v1248_v34  ;;  %v588_v29 = vmax.f32 %v504_v55, 0.0  ;;  %v941_v30 = vsel %vm1922_vm10, %v933_v39, %v940_v44  ;;  %v1134_v9 = vsel %vm1905_vm9, %v942_v58, %v1133_v45  ;;  %v916_v38 = vrot.slane %v2300_v56, 4  ;;  %v1126_v56 = vld [vmem:[%s1835_s29 + $0xa4] sm:$0x1] }
 0x12d   : > { %v1220_v27 = vld [vmem:[%s1835_s29 + $0x3c] sm:$0x1]  ;;  %v787_v36 = vor.u32 %v785_v4, %v784_v7  ;;  %v789_v51 = vrot.slane %v784_v7, 4  ;;  %1132 = vst.msk [vmem:[%s1835_s29 + $0xac] sm:$0xf] %vm1025_vm3, %v941_v30  ;;  %v918_v62 = vshrl.u32 %v2339_v23, 16  ;;  %v496_v39 = vadd.f32 %v1821_v22, %v2042_v52 }
 0x12e   : > { %v1221_v11 = vsel %vm1905_vm9, %v774_v31, %v1220_v27  ;;  %1135 = vst [vmem:[%s1835_s29 + $0xb0] sm:$0x1] %v1134_v9  ;;  %v2359_v60 = vpack.c.bf16 %v588_v29, %v588_v29  ;;  %v604_v31 = vmax.f32 %v568_v6, 0.0  ;;  %v921_v40 = vshll.u32 %v2339_v23, 16  ;;  %v1087_v53 = vld [vmem:[%s1835_s29 + $0x60] sm:$0xf] }
 0x12f   : > { %1222 = vst [vmem:[%s1835_s29 + $0x3c] sm:$0x1] %v1221_v11  ;;  %v788_v61 = vsel %vm1922_vm10, %v780_v3, %v787_v36  ;;  %v1071_v49 = vsel %vm1905_vm9, %v789_v51, %v1070_v19  ;;  %v920_v16 = vrot.slane %v918_v62, 7  ;;  %v586_v33 = vmax.f32 %v496_v39, 0.0  ;;  %v1143_v45 = vld [vmem:[%s1835_s29 + $0xc0] sm:$0xf] }
 0x130   : > { %1069 = vst.msk [vmem:[%s1835_s29 + $0x40] sm:$0xf] %vm1025_vm3, %v788_v61  ;;  %1072 = vst [vmem:[%s1835_s29 + $0x44] sm:$0x1] %v1071_v49  ;;  %v825_v43 = vshrl.u32 %v2359_v60, 16  ;;  %v828_v0 = vshll.u32 %v2359_v60, 16  ;;  %v2375_v59 = vpack.c.bf16 %v604_v31, %v604_v31  ;;  %v560_v52 = vadd.f32 %v1821_v22, %v2056_v5 }
 0x131   : > { %v1244_v24 = vld [vmem:[%s1835_s29 + $0x9c] sm:$0x1]  ;;  %v923_v12 = vor.u32 %v921_v40, %v920_v16  ;;  %v925_v37 = vrot.slane %v920_v16, 4  ;;  %v1570_v20 = vrot.slane %v938_v1, 11  ;;  %v2413_v57 = vpack.c.bf16 %v586_v33, %v586_v33  ;;  %v1080_v30 = vld [vmem:[%s1835_s29 + $0x54] sm:$0xf] }
 0x132   : > { %v1326_v3 = vld [vmem:[%s1835_s29 + $0x50] sm:$0x1]  ;;  %v2385_v41 = vrot.slane %v825_v43, 7  ;;  %v1245_v5 = vsel %vm1905_vm9, %v910_v35, %v1244_v24  ;;  %v961_v55 = vshrl.u32 %v2375_v59, 16  ;;  %v964_v35 = vshll.u32 %v2375_v59, 16 }
 0x133   : > { %v1327_v15 = vsel %vm2018_vm11, %v1562_v18, %v1326_v3  ;;  %1246 = vst [vmem:[%s1835_s29 + $0x9c] sm:$0x1] %v1245_v5  ;;  %v924_v42 = vsel %vm1922_vm10, %v916_v38, %v923_v12  ;;  %v1127_v17 = vsel %vm1905_vm9, %v925_v37, %v1126_v56  ;;  %v602_v50 = vmax.f32 %v560_v52, 0.0  ;;  %v1136_v11 = vld [vmem:[%s1835_s29 + $0xb4] sm:$0xf] }
 0x134   : > { %1328 = vst [vmem:[%s1835_s29 + $0x50] sm:$0x1] %v1327_v15  ;;  %v830_v28 = vor.u32 %v828_v0, %v2385_v41  ;;  %1125 = vst.msk [vmem:[%s1835_s29 + $0xa0] sm:$0xf] %vm1025_vm3, %v924_v42  ;;  %v2411_v1 = vrot.slane %v961_v55, 7  ;;  %v589_v47 = vmax.f32 %v507_v48, 0.0  ;;  %v499_v18 = vadd.f32 %v1821_v22, %v2071_v13 }
 0x135   : > { %v1350_v14 = vld [vmem:[%s1835_s29 + $0xb0] sm:$0x1]  ;;  %1128 = vst [vmem:[%s1835_s29 + $0xa4] sm:$0x1] %v1127_v17  ;;  %v1561_v8 = vrot.slane %v785_v4, 11  ;;  %v605_v34 = vmax.f32 %v571_v46, 0.0  ;;  %v1603_v4 = vpack.c.bf16 %v602_v50, %v602_v50  ;;  %v563_v61 = vadd.f32 %v1821_v22, %v2080_v25 }
 0x136   : > { %v1351_v63 = vsel %vm2018_vm11, %v1570_v20, %v1350_v14  ;;  %v1088_v10 = vsel %vm1865_vm8, %v830_v28, %v1087_v53  ;;  %v966_v58 = vor.u32 %v964_v35, %v2411_v1  ;;  %v808_v7 = vshrl.u32 %v2413_v57, 16  ;;  %v1150_v33 = vld [vmem:[%s1835_s29 + $0xcc] sm:$0xf]  ;;  %v1091_v52 = vld [vmem:[%s1835_s29 + $0x68] sm:$0x1] }
 0x137   : > { %1352 = vst [vmem:[%s1835_s29 + $0xb0] sm:$0x1] %v1351_v63  ;;  %v1323_v44 = vld [vmem:[%s1835_s29 + $0x44] sm:$0x1]  ;;  %1089 = vst [vmem:[%s1835_s29 + $0x60] sm:$0xf] %v1088_v10  ;;  %v2431_v19 = vpack.c.bf16 %v589_v47, %v589_v47  ;;  %v2433_v23 = vpack.c.bf16 %v605_v34, %v605_v34 }
 0x138   : > { %v1324_v21 = vsel %vm2018_vm11, %v1561_v8, %v1323_v44  ;;  %v1144_v29 = vsel %vm1865_vm8, %v966_v58, %v1143_v45  ;;  %v2440_v6 = vrot.slane %v808_v7, 7  ;;  %v811_v27 = vshll.u32 %v2413_v57, 16  ;;  %v1147_v46 = vld [vmem:[%s1835_s29 + $0xc8] sm:$0x1]  ;;  %v1084_v59 = vld [vmem:[%s1835_s29 + $0x5c] sm:$0x1] }
 0x139   : > { %1325 = vst [vmem:[%s1835_s29 + $0x44] sm:$0x1] %v1324_v21  ;;  %v1569_v13 = vrot.slane %v921_v40, 11  ;;  %1145 = vst [vmem:[%s1835_s29 + $0xc0] sm:$0xf] %v1144_v29  ;;  %v944_v9 = vshrl.u32 %v1603_v4, 16 }
 0x13a   : > { %v833_v36 = vshrl.u32 %v2431_v19, 16  ;;  %v813_v51 = vor.u32 %v811_v27, %v2440_v6  ;;  %v969_v38 = vshrl.u32 %v2433_v23, 16  ;;  %v587_v62 = vmax.f32 %v499_v18, 0.0  ;;  %v1140_v21 = vld [vmem:[%s1835_s29 + $0xbc] sm:$0x1] }
 0x13b   : > { %v2452_v31 = vrot.slane %v944_v9, 7  ;;  %v947_v39 = vshll.u32 %v1603_v4, 16  ;;  %v836_v40 = vshll.u32 %v2431_v19, 16  ;;  %v972_v22 = vshll.u32 %v2433_v23, 16  ;;  %v1154_v27 = vld [vmem:[%s1835_s29 + $0xd4] sm:$0x1] }
 0x13c   : > { %v1347_v49 = vld [vmem:[%s1835_s29 + $0xa4] sm:$0x1]  ;;  %v835_v16 = vrot.slane %v833_v36, 7  ;;  %v1081_v56 = vsel %vm1865_vm8, %v813_v51, %v1080_v30  ;;  %v971_v48 = vrot.slane %v969_v38, 7  ;;  %v831_v25 = vrot.slane %v2385_v41, 4 }
 0x13d   : > { %v1348_v0 = vsel %vm2018_vm11, %v1569_v13, %v1347_v49  ;;  %v967_v3 = vrot.slane %v2411_v1, 4  ;;  %1082 = vst [vmem:[%s1835_s29 + $0x54] sm:$0xf] %v1081_v56  ;;  %v949_v12 = vor.u32 %v947_v39, %v2452_v31  ;;  %v1588_v17 = vpack.c.bf16 %v587_v62, %v587_v62 }
 0x13e   : > { %1349 = vst [vmem:[%s1835_s29 + $0xa4] sm:$0x1] %v1348_v0  ;;  %v1229_v24 = vld [vmem:[%s1835_s29 + $0x60] sm:$0x1]  ;;  %v838_v37 = vor.u32 %v836_v40, %v835_v16  ;;  %v840_v15 = vrot.slane %v835_v16, 4  ;;  %v974_v20 = vor.u32 %v972_v22, %v971_v48  ;;  %v976_v41 = vrot.slane %v971_v48, 4 }
 0x13f   : > { %v1230_v5 = vsel %vm1905_vm9, %v825_v43, %v1229_v24  ;;  %v1137_v53 = vsel %vm1865_vm8, %v949_v12, %v1136_v11  ;;  %v1151_v42 = vsel %vm1865_vm8, %v949_v12, %v1150_v33  ;;  %v603_v14 = vmax.f32 %v563_v61, 0.0 }
 0x140   : > { %1231 = vst [vmem:[%s1835_s29 + $0x60] sm:$0x1] %v1230_v5  ;;  %v839_v60 = vsel %vm1922_vm10, %v831_v25, %v838_v37  ;;  %v1253_v28 = vld [vmem:[%s1835_s29 + $0xc0] sm:$0x1]  ;;  %1138 = vst [vmem:[%s1835_s29 + $0xb4] sm:$0xf] %v1137_v53  ;;  %v1092_v43 = vsel %vm1905_vm9, %v840_v15, %v1091_v52  ;;  %v975_v35 = vsel %vm1922_vm10, %v967_v3, %v974_v20 }
 0x141   : > { %1152 = vst [vmem:[%s1835_s29 + $0xcc] sm:$0xf] %v1151_v42  ;;  %1090 = vst.msk [vmem:[%s1835_s29 + $0x64] sm:$0xf] %vm1025_vm3, %v839_v60  ;;  %v1148_v2 = vsel %vm1905_vm9, %v976_v41, %v1147_v46  ;;  %v1254_v1 = vsel %vm1905_vm9, %v961_v55, %v1253_v28  ;;  %v816_v50 = vshrl.u32 %v1588_v17, 16  ;;  %v1185_v47 = vrot.slane %v944_v9, 4 }
 0x142   : > { %1093 = vst [vmem:[%s1835_s29 + $0x68] sm:$0x1] %v1092_v43  ;;  %1146 = vst.msk [vmem:[%s1835_s29 + $0xc4] sm:$0xf] %vm1025_vm3, %v975_v35  ;;  %v1604_v63 = vpack.c.bf16 %v603_v14, %v603_v14  ;;  %v819_v10 = vshll.u32 %v1588_v17, 16  ;;  %v814_v55 = vrot.slane %v2440_v6, 4 }
 0x143   : > { %1149 = vst [vmem:[%s1835_s29 + $0xc8] sm:$0x1] %v1148_v2  ;;  %1255 = vst [vmem:[%s1835_s29 + $0xc0] sm:$0x1] %v1254_v1  ;;  %v818_v8 = vrot.slane %v816_v50, 7  ;;  %v1186_v4 = vrot.slane %v1185_v47, 4 }
 0x144   : > { %v1226_v45 = vld [vmem:[%s1835_s29 + $0x54] sm:$0x1]  ;;  %v952_v34 = vshrl.u32 %v1604_v63, 16  ;;  %v1564_v19 = vrot.slane %v836_v40, 11  ;;  %v955_v29 = vshll.u32 %v1604_v63, 16  ;;  %v950_v57 = vrot.slane %v2452_v31, 4 }
 0x145   : > { %v1227_v44 = vsel %vm1905_vm9, %v808_v7, %v1226_v45  ;;  %v821_v58 = vor.u32 %v819_v10, %v818_v8  ;;  %v823_v18 = vrot.slane %v818_v8, 4  ;;  %v1571_v7 = vrot.slane %v972_v22, 11 }
 0x146   : > { %1228 = vst [vmem:[%s1835_s29 + $0x54] sm:$0x1] %v1227_v44  ;;  %v954_v23 = vrot.slane %v952_v34, 7  ;;  %v1287_v0 = vrot.slane %v955_v29, 7  ;;  %v1563_v56 = vrot.slane %v819_v10, 11 }
 0x147   : > { %v1250_v6 = vld [vmem:[%s1835_s29 + $0xb4] sm:$0x1]  ;;  %v822_v30 = vsel %vm1922_vm10, %v814_v55, %v821_v58  ;;  %v1085_v9 = vsel %vm1905_vm9, %v823_v18, %v1084_v59 }
 0x148   : > { %v1256_v13 = vld [vmem:[%s1835_s29 + $0xcc] sm:$0x1]  ;;  %v1251_v36 = vsel %vm1905_vm9, %v1186_v4, %v1250_v6  ;;  %1083 = vst.msk [vmem:[%s1835_s29 + $0x58] sm:$0xf] %vm1025_vm3, %v822_v30  ;;  %1086 = vst [vmem:[%s1835_s29 + $0x5c] sm:$0x1] %v1085_v9  ;;  %v957_v62 = vor.u32 %v955_v29, %v954_v23 }
 0x149   : > { %v1257_v51 = vsel %vm1905_vm9, %v1186_v4, %v1256_v13  ;;  %v1332_v11 = vld [vmem:[%s1835_s29 + $0x68] sm:$0x1]  ;;  %v959_v61 = vrot.slane %v954_v23, 4  ;;  %1252 = vst [vmem:[%s1835_s29 + $0xb4] sm:$0x1] %v1251_v36  ;;  %v1288_v52 = vrot.slane %v1287_v0, 4 }
 0x14a   : > { %v1356_v38 = vld [vmem:[%s1835_s29 + $0xc8] sm:$0x1]  ;;  %1258 = vst [vmem:[%s1835_s29 + $0xcc] sm:$0x1] %v1257_v51  ;;  %v1333_v49 = vsel %vm2018_vm11, %v1564_v19, %v1332_v11  ;;  %v958_v39 = vsel %vm1922_vm10, %v950_v57, %v957_v62 }
 0x14b   : > { %v1357_v31 = vsel %vm2018_vm11, %v1571_v7, %v1356_v38  ;;  %1334 = vst [vmem:[%s1835_s29 + $0x68] sm:$0x1] %v1333_v49  ;;  %v1141_v16 = vsel %vm1905_vm9, %v959_v61, %v1140_v21  ;;  %v1155_v40 = vsel %vm1905_vm9, %v959_v61, %v1154_v27  ;;  %1139 = vst.msk [vmem:[%s1835_s29 + $0xb8] sm:$0xf] %vm1025_vm3, %v958_v39 }
 0x14c   : > { %1358 = vst [vmem:[%s1835_s29 + $0xc8] sm:$0x1] %v1357_v31  ;;  %1142 = vst [vmem:[%s1835_s29 + $0xbc] sm:$0x1] %v1141_v16 }
 0x14d   : > { %1153 = vst.msk [vmem:[%s1835_s29 + $0xd0] sm:$0xf] %vm1025_vm3, %v958_v39  ;;  %1156 = vst [vmem:[%s1835_s29 + $0xd4] sm:$0x1] %v1155_v40 }
 0x14f   : > { %v1329_v33 = vld [vmem:[%s1835_s29 + $0x5c] sm:$0x1] }
 0x150   : > { %v1330_v32 = vsel %vm2018_vm11, %v1563_v56, %v1329_v33 }
 0x151   : > { %1331 = vst [vmem:[%s1835_s29 + $0x5c] sm:$0x1] %v1330_v32 }
 0x153   : > { %v1353_v48 = vld [vmem:[%s1835_s29 + $0xbc] sm:$0x1] }
 0x154   : > { %v1359_v22 = vld [vmem:[%s1835_s29 + $0xd4] sm:$0x1]  ;;  %v1354_v26 = vsel %vm2018_vm11, %v1288_v52, %v1353_v48 }
 0x155   : > { %v1360_v25 = vsel %vm2018_vm11, %v1288_v52, %v1359_v22  ;;  %1355 = vst [vmem:[%s1835_s29 + $0xbc] sm:$0x1] %v1354_v26 }
 0x156   : > { %1361 = vst [vmem:[%s1835_s29 + $0xd4] sm:$0x1] %v1360_v25 }
 0x157 PF: > { %s13_s14 = sadd.s32 1, %s1731_s14   ;;  %s2579_s12 = smov %s1727_s13 }
 0x158   : > { %p10_p5 = scmp.ge.s32.totalorder %s13_s14, 4   ;;  %s2580_s13 = smov %s2582_s15 }
 0x15a   :  { %12 = sbr.rel (!%p10_p5) target bundleno = 2 (0x2), region = 68 }

// kernel: _forward.5
= control target key start
LH: loop header
LB: loop body
LE: loop exit
PB: predicated region body
PF: predicated region fallthrough
CT: control target
= control target key end

     0   :  { %s2176_s12 = smov 0   ;;  %s2178_s13 = smov 0   ;;  %s2689_s0 = inlined_call_operand.vmem [shape: bf16[2,10,10,64], index: 0, kind: input, shape index: {}]   ;;  %s2690_s1 = inlined_call_operand.vmem [shape: bf16[3,192,128], index: 1, kind: input, shape index: {}]   ;;  %s2691_s2 = inlined_call_operand.vmem [shape: f32[1,128], index: 2, kind: input, shape index: {}]   ;;  %s2692_s3 = inlined_call_operand.vmem [shape: bf16[2,8,8,128], index: 3, kind: output, shape index: {}]  }
   0x1   :  { %s2180_s14 = smov 0  }
   0x2 LB: > { %s25_s15 = sadd.s32 1, %s2148_s13  ;;  %p1764_p0 = scmp.ge.s32.totalorder %s2152_s14, 1  ;;  %s2152_s14 = sphi %s2180_s14, %s13_s14   ;;  %s2148_s13 = sphi %s2178_s13, %s2698_s13   ;;  %s2144_s12 = sphi %s2176_s12, %s2697_s12  }
   0x3   : > { %p27_p1 = scmp.ge.s32.totalorder %s25_s15, 2  ;;  %p168_p2 = scmp.lt.s32.totalorder %s2152_s14, 3 }
   0x5   : > { %s2700_s15 = smov (%p27_p1, %s25_s15), 0  ;;  %p169_p3 = pnand %p1764_p0, %p168_p2 }
   0x6   : > { %p202_p4 = scmp.lt.s32.totalorder (!%p169_p3), %s2144_s12, 1  ;;  %vm276_vm0 = vsmask.f32 (!%p169_p3), 3328  ;;  %v2154_v0 = vmov (!%p169_p3), 0   ;;  %v2082_v1 = vld [vmem:[%s2690_s1] sm:$0xff] (!%p169_p3)   ;;  %v2083_v2 = vld [vmem:[%s2690_s1 + $0x8] sm:$0xff] (!%p169_p3)  }
   0x7   : > { %172 = sbr.rel (%p169_p3) target bundleno = 442 (0x1ba), region = 32  ;;  %1082 = vmatprep.subr.bf16.mxu1 (!%p169_p3), %v2154_v0  ;;  %933 = vmatprep.subr.bf16.mxu0 (!%p169_p3), %v2154_v0  ;;  %vm277_vm1 = vsmask.f32 (!%p169_p3), 7440  ;;  %v2085_v3 = vld [vmem:[%s2690_s1 + $0x60] sm:$0xff] (!%p169_p3)   ;;  %v2084_v4 = vld [vmem:[%s2690_s1 + $0x10] sm:$0xff] (!%p169_p3)   ;;  %v2086_v22 = vld [vmem:[%s2690_s1 + $0x18] sm:$0xff] (!%p169_p3)  }
   0x8   : > { %1083 = vmatpush1.bf16.msra.mxu1 (!%p169_p3), %v2082_v1  ;;  %934 = vmatpush1.bf16.msra.mxu0 (!%p169_p3), %v2085_v3  ;;  %v2087_v33 = vld [vmem:[%s2690_s1 + $0x68] sm:$0xff] (!%p169_p3)   ;;  %vm2236_vm2 = vmor (!%p169_p3), %vm276_vm0, %vm277_vm1  ;;  %v2089_v49 = vld [vmem:[%s2690_s1 + $0x70] sm:$0xff] (!%p169_p3)   ;;  %s2155_s17 = smov (!%p169_p3), 64   ;;  %vm452_vm3 = vcmask (!%p169_p3), 1042432   ;;  %vm255_vm4 = vcmask (!%p169_p3), 523264   ;;  %vm453_vm5 = vcmask (!%p169_p3), 1046532  }
   0x9   : > { %1084 = vmatprep.subr.bf16.mxu1 (!%p169_p3), %v2154_v0  ;;  %935 = vmatprep.subr.bf16.mxu0 (!%p169_p3), %v2154_v0  ;;  %v2088_v55 = vld [vmem:[%s2690_s1 + $0x20] sm:$0xff] (!%p169_p3)   ;;  %v2091_v3 = vld [vmem:[%s2690_s1 + $0x78] sm:$0xff] (!%p169_p3)   ;;  %vm2418_vm6 = vmor (!%p169_p3), %vm452_vm3, %vm453_vm5  ;;  %vm415_vm7 = vcmask (!%p169_p3), 1048064  }
   0xc   : > { %1085 = vmatpush1.bf16.msra.mxu1 (!%p169_p3), %v2083_v2  ;;  %936 = vmatpush1.bf16.msra.mxu0 (!%p169_p3), %v2087_v33 }
   0xd   : > { %1086 = vmatprep.subr.bf16.mxu1 (!%p169_p3), %v2154_v0  ;;  %937 = vmatprep.subr.bf16.mxu0 (!%p169_p3), %v2154_v0 }
   0xe   : > { %s2702_s12 = smov (!%p202_p4, %s2144_s12), 1 }
   0xf   : > { %s2055_s18 = smul.u32 80, %s2702_s12  ;;  %s2007_s28 = sshll.u32 %s2702_s12, 5 }
  0x10   : > { %1087 = vmatpush1.bf16.msra.mxu1 %v2084_v4  ;;  %938 = vmatpush1.bf16.msra.mxu0 %v2089_v49  ;;  %s2672_s4 = scalar_lea.vmem %s2692_s3, %s2007_s28 }
  0x11   : > { %s2212_s25 = scalar_lea.vmem %s2689_s0, %s2055_s18  ;;  %1088 = vmatprep.subr.bf16.mxu1 %v2154_v0  ;;  %939 = vmatprep.subr.bf16.mxu0 %v2154_v0 }
  0x12   : > { %v260_v5 = vld [vmem:[%s2212_s25] sm:$0xf]  ;;  %v261_v6 = vld [vmem:[%s2212_s25 + $0x4] sm:$0x1]  ;;  %v262_v7 = vld [vmem:[%s2212_s25 + $0x8] sm:$0xf] }
  0x13   : > { %v263_v8 = vld [vmem:[%s2212_s25 + $0xc] sm:$0x1]  ;;  %v280_v9 = vshrl.u32 %v260_v5, 16  ;;  %v283_v10 = vshll.u32 %v260_v5, 16  ;;  %v289_v11 = vshll.u32 %v261_v6, 16  ;;  %v294_v12 = vshrl.u32 %v262_v7, 16 }
  0x14   : > { %v297_v13 = vshll.u32 %v262_v7, 16  ;;  %v303_v14 = vshll.u32 %v263_v8, 16  ;;  %v1800_v15 = vld [vmem:[%s2212_s25 + $0x8] sm:$0xf]  ;;  %v1801_v16 = vld [vmem:[%s2212_s25 + $0xc] sm:$0x1]  ;;  %1089 = vmatpush1.bf16.msra.mxu1 %v2086_v22  ;;  %940 = vmatpush1.bf16.msra.mxu0 %v2091_v3 }
  0x15   : > { %v282_v17 = vrot.slane %v280_v9, 4  ;;  %v285_v18 = vrot.slane %v283_v10, 5  ;;  %v291_v19 = vrot.slane %v289_v11, 5  ;;  %v296_v20 = vrot.slane %v294_v12, 4  ;;  %v1802_v21 = vld [vmem:[%s2212_s25 + $0x10] sm:$0xf]  ;;  %1090 = vmatprep.subr.bf16.mxu1 %v2154_v0  ;;  %941 = vmatprep.subr.bf16.mxu0 %v2154_v0 }
  0x16   : > { %v299_v23 = vrot.slane %v297_v13, 5  ;;  %v305_v24 = vrot.slane %v303_v14, 5  ;;  %v1803_v25 = vld [vmem:[%s2212_s25 + $0x14] sm:$0x1]  ;;  %v593_v26 = vshrl.u32 %v1800_v15, 16  ;;  %v596_v27 = vshll.u32 %v1800_v15, 16 }
  0x17   : > { %v286_v28 = vor.u32 %v285_v18, %v282_v17  ;;  %v602_v29 = vshll.u32 %v1801_v16, 16  ;;  %v607_v30 = vshrl.u32 %v1802_v21, 16  ;;  %v610_v31 = vshll.u32 %v1802_v21, 16  ;;  %v264_v32 = vld [vmem:[%s2212_s25 + $0x10] sm:$0xf]  ;;  %v2090_v9 = vld [vmem:[%s2690_s1 + $0x28] sm:$0xff]  }
  0x18   : > { %v300_v35 = vor.u32 %v299_v23, %v296_v20  ;;  %v595_v36 = vrot.slane %v593_v26, 4  ;;  %v598_v37 = vrot.slane %v596_v27, 5  ;;  %v616_v38 = vshll.u32 %v1803_v25, 16  ;;  %v265_v39 = vld [vmem:[%s2212_s25 + $0x14] sm:$0x1]  ;;  %1091 = vmatpush1.bf16.msra.mxu1 %v2088_v55  ;;  %v2093_v25 = vld [vmem:[%s2690_s1 + $0x80] sm:$0xff]  }
  0x19   : > { %v287_v40 = vrot.slane %v286_v28, 4  ;;  %v604_v41 = vrot.slane %v602_v29, 5  ;;  %v609_v42 = vrot.slane %v607_v30, 4  ;;  %v612_v43 = vrot.slane %v610_v31, 5  ;;  %v266_v44 = vld [vmem:[%s2212_s25 + $0x18] sm:$0xf]  ;;  %1092 = vmatprep.subr.bf16.mxu1 %v2154_v0  ;;  %942 = vmatpush1.bf16.msra.mxu0 %v2093_v25 }
  0x1a   : > { %v301_v45 = vrot.slane %v300_v35, 4  ;;  %v599_v46 = vor.u32 %v598_v37, %v595_v36  ;;  %v618_v47 = vrot.slane %v616_v38, 5  ;;  %v308_v48 = vshrl.u32 %v264_v32, 16  ;;  %v267_v52 = vld [vmem:[%s2212_s25 + $0x1c] sm:$0x1]  ;;  %v2092_v36 = vld [vmem:[%s2690_s1 + $0x30] sm:$0xff]   ;;  %943 = vmatprep.subr.bf16.mxu0 %v2154_v0 }
  0x1b   : > { %v292_v50 = vsel %vm2236_vm2, %v287_v40, %v291_v19  ;;  %v613_v51 = vor.u32 %v612_v43, %v609_v42  ;;  %v311_v53 = vshll.u32 %v264_v32, 16  ;;  %v317_v54 = vshll.u32 %v265_v39, 16  ;;  %v268_v60 = vld [vmem:[%s2212_s25 + $0x20] sm:$0xf]  ;;  %v269_v2 = vld [vmem:[%s2212_s25 + $0x24] sm:$0x1] }
  0x1c   : > { %v306_v56 = vsel %vm2236_vm2, %v301_v45, %v305_v24  ;;  %v600_v57 = vrot.slane %v599_v46, 4  ;;  %v310_v58 = vrot.slane %v308_v48, 4  ;;  %v322_v59 = vshrl.u32 %v266_v44, 16  ;;  %v270_v8 = vld [vmem:[%s2212_s25 + $0x28] sm:$0xf]  ;;  %1093 = vmatpush1.bf16.msra.mxu1 %v2090_v9 }
  0x1d   : > { %v1772_v61 = vcombine.low %v292_v50, %v306_v56  ;;  %v614_v62 = vrot.slane %v613_v51, 4  ;;  %v313_v63 = vrot.slane %v311_v53, 5  ;;  %v2257_v1 = vrot.slane %v317_v54, 5  ;;  %v271_v12 = vld [vmem:[%s2212_s25 + $0x2c] sm:$0x1]  ;;  %1094 = vmatprep.subr.bf16.mxu1 %v2154_v0 }
  0x1e   : > { %v605_v4 = vsel %vm2236_vm2, %v600_v57, %v604_v41  ;;  %v324_v5 = vrot.slane %v322_v59, 4  ;;  %v325_v6 = vshll.u32 %v266_v44, 16  ;;  %v331_v7 = vshll.u32 %v267_v52, 16  ;;  %v1804_v15 = vld [vmem:[%s2212_s25 + $0x18] sm:$0xf] }
  0x1f   : > { %403 = vrot.lane.b32.xlu0 %v1772_v61, %s2155_s17  ;;  %v619_v10 = vsel %vm2236_vm2, %v614_v62, %v618_v47  ;;  %v314_v11 = vor.u32 %v313_v63, %v310_v58  ;;  %v336_v13 = vshrl.u32 %v268_v60, 16  ;;  %v339_v14 = vshll.u32 %v268_v60, 16  ;;  %v1805_v20 = vld [vmem:[%s2212_s25 + $0x1c] sm:$0x1]  ;;  %v1806_v30 = vld [vmem:[%s2212_s25 + $0x20] sm:$0xf] }
  0x20   : > { %v1816_v16 = vcombine.low %v605_v4, %v619_v10  ;;  %v327_v17 = vrot.slane %v325_v6, 5  ;;  %v333_v18 = vrot.slane %v331_v7, 5  ;;  %v345_v19 = vshll.u32 %v269_v2, 16  ;;  %v1807_v40 = vld [vmem:[%s2212_s25 + $0x24] sm:$0x1]  ;;  %1095 = vmatpush1.bf16.msra.mxu1 %v2092_v36  ;;  %v2094_v57 = vld [vmem:[%s2690_s1 + $0x38] sm:$0xff]  }
  0x21   : > { %v315_v21 = vrot.slane %v314_v11, 4  ;;  %v338_v22 = vrot.slane %v336_v13, 4  ;;  %v341_v23 = vrot.slane %v339_v14, 5  ;;  %v350_v24 = vshrl.u32 %v270_v8, 16  ;;  %v272_v46 = vld [vmem:[%s2212_s25 + $0x30] sm:$0xf]  ;;  %1096 = vmatprep.subr.bf16.mxu1 %v2154_v0 }
  0x22   : > { %v328_v26 = vor.u32 %v327_v17, %v324_v5  ;;  %v347_v27 = vrot.slane %v345_v19, 5  ;;  %v353_v28 = vshll.u32 %v270_v8, 16  ;;  %v359_v29 = vshll.u32 %v271_v12, 16  ;;  %v273_v51 = vld [vmem:[%s2212_s25 + $0x34] sm:$0x1]  ;;  %v2095_v62 = vld [vmem:[%s2690_s1 + $0x88] sm:$0xff]  }
  0x23   : > { %716 = vrot.lane.b32.xlu0 %v1816_v16, %s2155_s17  ;;  %v320_v31 = vsel %vm2236_vm2, %v315_v21, %v2257_v1  ;;  %v342_v32 = vor.u32 %v341_v23, %v338_v22  ;;  %v352_v33 = vrot.slane %v350_v24, 4  ;;  %v621_v35 = vshrl.u32 %v1804_v15, 16  ;;  %v274_v52 = vld [vmem:[%s2212_s25 + $0x38] sm:$0xf]  ;;  %v275_v63 = vld [vmem:[%s2212_s25 + $0x3c] sm:$0x1]  ;;  %944 = vmatpush1.bf16.msra.mxu0 %v2095_v62 }
  0x24   : > { %v329_v37 = vrot.slane %v328_v26, 4  ;;  %v355_v38 = vrot.slane %v353_v28, 5  ;;  %v361_v39 = vrot.slane %v359_v29, 5  ;;  %v624_v41 = vshll.u32 %v1804_v15, 16  ;;  %v1808_v9 = vld [vmem:[%s2212_s25 + $0x28] sm:$0xf]  ;;  %1097 = vmatpush1.bf16.msra.mxu1 %v2094_v57  ;;  %945 = vmatprep.subr.bf16.mxu0 %v2154_v0 }
  0x25   : > { %v343_v42 = vrot.slane %v342_v32, 4  ;;  %v623_v43 = vrot.slane %v621_v35, 4  ;;  %v630_v44 = vshll.u32 %v1805_v20, 16  ;;  %v635_v45 = vshrl.u32 %v1806_v30, 16  ;;  %v1809_v10 = vld [vmem:[%s2212_s25 + $0x2c] sm:$0x1]  ;;  %1098 = vmatprep.subr.bf16.mxu1 %v2154_v0 }
  0x26   : > { %v334_v47 = vsel %vm2236_vm2, %v329_v37, %v333_v18  ;;  %v356_v48 = vor.u32 %v355_v38, %v352_v33  ;;  %v626_v49 = vrot.slane %v624_v41, 5  ;;  %v638_v50 = vshll.u32 %v1806_v30, 16  ;;  %v1810_v15 = vld [vmem:[%s2212_s25 + $0x30] sm:$0xf]  ;;  %v2096_v16 = vld [vmem:[%s2690_s1 + $0x40] sm:$0xff]   ;;  %v2099_v32 = vld [vmem:[%s2690_s1 + $0x98] sm:$0xff]  }
  0x27   : > { %v1773_v53 = vcombine.low %v320_v31, %v334_v47  ;;  %v348_v54 = vsel %vm2236_vm2, %v343_v42, %v347_v27  ;;  %v632_v55 = vrot.slane %v630_v44, 5  ;;  %v637_v56 = vrot.slane %v635_v45, 4  ;;  %v2097_v21 = vld [vmem:[%s2690_s1 + $0x90] sm:$0xff]   ;;  %v1812_v31 = vld [vmem:[%s2212_s25 + $0x38] sm:$0xf] }
  0x28   : > { %v357_v58 = vrot.slane %v356_v48, 4  ;;  %v627_v59 = vor.u32 %v626_v49, %v623_v43  ;;  %v640_v60 = vrot.slane %v638_v50, 5  ;;  %v644_v61 = vshll.u32 %v1807_v40, 16  ;;  %v1811_v24 = vld [vmem:[%s2212_s25 + $0x34] sm:$0x1]  ;;  %946 = vmatpush1.bf16.msra.mxu0 %v2097_v21  ;;  %1099 = vmatpush1.bf16.msra.mxu1 %v2096_v16 }
  0x29   : > { %405 = vrot.lane.b32.xlu1 %v1773_v53, %s2155_s17  ;;  %v364_v1 = vshrl.u32 %v272_v46, 16  ;;  %v367_v2 = vshll.u32 %v272_v46, 16  ;;  %v373_v3 = vshll.u32 %v273_v51, 16  ;;  %v378_v4 = vshrl.u32 %v274_v52, 16  ;;  %v1813_v38 = vld [vmem:[%s2212_s25 + $0x3c] sm:$0x1]  ;;  %947 = vmatprep.subr.bf16.mxu0 %v2154_v0 }
  0x2a   : > { %v362_v5 = vsel %vm2236_vm2, %v357_v58, %v361_v39  ;;  %v628_v6 = vrot.slane %v627_v59, 4  ;;  %v641_v7 = vor.u32 %v640_v60, %v637_v56  ;;  %v646_v8 = vrot.slane %v644_v61, 5  ;;  %v2098_v39 = vld [vmem:[%s2690_s1 + $0x48] sm:$0xff]   ;;  %v1814_v44 = vld [vmem:[%s2212_s25 + $0x40] sm:$0xf]  ;;  %1100 = vmatprep.subr.bf16.mxu1 %v2154_v0  ;;  %v2101_v60 = vld [vmem:[%s2690_s1 + $0x50] sm:$0xff]  }
  0x2b   : > { %v1774_v11 = vcombine.low %v348_v54, %v362_v5  ;;  %v366_v12 = vrot.slane %v364_v1, 4  ;;  %v369_v13 = vrot.slane %v367_v2, 5  ;;  %v2312_v14 = vrot.slane %v373_v3, 5  ;;  %v1815_v48 = vld [vmem:[%s2212_s25 + $0x44] sm:$0x1] }
  0x2c   : > { %v633_v17 = vsel %vm2236_vm2, %v628_v6, %v632_v55  ;;  %v642_v18 = vrot.slane %v641_v7, 4  ;;  %v380_v19 = vrot.slane %v378_v4, 4  ;;  %v381_v20 = vshll.u32 %v274_v52, 16  ;;  %v1924_v54 = vld [vmem:[%s2212_s25 + $0x30] sm:$0xf]  ;;  %948 = vmatpush1.bf16.msra.mxu0 %v2099_v32  ;;  %v2102_v55 = vld [vmem:[%s2690_s1 + $0xa0] sm:$0xff]   ;;  %1101 = vmatpush1.bf16.msra.mxu1 %v2098_v39 }
  0x2d   : > { %407 = vrot.lane.b32.xlu1 %v1774_v11, %s2155_s17  ;;  %v370_v22 = vor.u32 %v369_v13, %v366_v12  ;;  %v387_v23 = vshll.u32 %v275_v63, 16  ;;  %v649_v25 = vshrl.u32 %v1808_v9, 16  ;;  %v652_v26 = vshll.u32 %v1808_v9, 16  ;;  %949 = vmatprep.subr.bf16.mxu0 %v2154_v0  ;;  %v1925_v2 = vld [vmem:[%s2212_s25 + $0x34] sm:$0x1] }
  0x2e   : > { %v647_v27 = vsel %vm2236_vm2, %v642_v18, %v646_v8  ;;  %v383_v28 = vrot.slane %v381_v20, 5  ;;  %v658_v29 = vshll.u32 %v1809_v10, 16  ;;  %v663_v30 = vshrl.u32 %v1810_v15, 16  ;;  %1102 = vmatprep.subr.bf16.mxu1 %v2154_v0  ;;  %v1926_v7 = vld [vmem:[%s2212_s25 + $0x38] sm:$0xf] }
  0x2f   : > { %v1817_v33 = vcombine.low %v633_v17, %v647_v27  ;;  %v371_v35 = vrot.slane %v370_v22, 4  ;;  %v389_v36 = vrot.slane %v387_v23, 5  ;;  %v651_v37 = vrot.slane %v649_v25, 4  ;;  %v1927_v11 = vld [vmem:[%s2212_s25 + $0x3c] sm:$0x1] }
  0x30   : > { %v384_v40 = vor.u32 %v383_v28, %v380_v19  ;;  %v654_v41 = vrot.slane %v652_v26, 5  ;;  %v2338_v42 = vrot.slane %v658_v29, 5  ;;  %v665_v43 = vrot.slane %v663_v30, 4  ;;  %v1928_v13 = vld [vmem:[%s2212_s25 + $0x40] sm:$0xf]  ;;  %950 = vmatpush1.bf16.msra.mxu0 %v2102_v55  ;;  %1103 = vmatpush1.bf16.msra.mxu1 %v2101_v60 }
  0x31   : > { %718 = vrot.lane.b32.xlu0 %v1817_v33, %s2155_s17  ;;  %v376_v45 = vsel %vm2236_vm2, %v371_v35, %v2312_v14  ;;  %v666_v46 = vshll.u32 %v1810_v15, 16  ;;  %v672_v47 = vshll.u32 %v1811_v24, 16  ;;  %v677_v49 = vshrl.u32 %v1812_v31, 16  ;;  %v2103_v14 = vld [vmem:[%s2690_s1 + $0x58] sm:$0xff]   ;;  %v2104_v15 = vld [vmem:[%s2690_s1 + $0xa8] sm:$0xff]   ;;  %1104 = vmatprep.subr.bf16.mxu1 %v2154_v0 }
  0x32   : > { %v385_v50 = vrot.slane %v384_v40, 4  ;;  %v655_v51 = vor.u32 %v654_v41, %v651_v37  ;;  %v680_v52 = vshll.u32 %v1812_v31, 16  ;;  %v686_v53 = vshll.u32 %v1813_v38, 16  ;;  %v1929_v20 = vld [vmem:[%s2212_s25 + $0x44] sm:$0x1]  ;;  %951 = vmatprep.subr.bf16.mxu0 %v2154_v0  ;;  %v2107_v41 = vld [vmem:[%s2690_s1 + $0xb0] sm:$0xff]  }
  0x33   : > { %v668_v56 = vrot.slane %v666_v46, 5  ;;  %v674_v57 = vrot.slane %v672_v47, 5  ;;  %v679_v58 = vrot.slane %v677_v49, 4  ;;  %v691_v59 = vshrl.u32 %v1814_v44, 16  ;;  %v1930_v21 = vld [vmem:[%s2212_s25 + $0x48] sm:$0xf] }
  0x34   : > { %v390_v61 = vsel %vm2236_vm2, %v385_v50, %v389_v36  ;;  %v656_v62 = vrot.slane %v655_v51, 4  ;;  %v682_v63 = vrot.slane %v680_v52, 5  ;;  %v688_v1 = vrot.slane %v686_v53, 5  ;;  %v1931_v35 = vld [vmem:[%s2212_s25 + $0x4c] sm:$0x1]  ;;  %952 = vmatpush1.bf16.msra.mxu0 %v2104_v15  ;;  %1105 = vmatpush1.bf16.msra.mxu1 %v2103_v14 }
  0x35   : > { %v1775_v3 = vcombine.low %v376_v45, %v390_v61  ;;  %v669_v4 = vor.u32 %v668_v56, %v665_v43  ;;  %v693_v5 = vrot.slane %v691_v59, 4  ;;  %v694_v6 = vshll.u32 %v1814_v44, 16  ;;  %v1916_v40 = vld [vmem:[%s2212_s25 + $0x10] sm:$0xf]  ;;  %953 = vmatprep.subr.bf16.mxu0 %v2154_v0  ;;  %v1917_v46 = vld [vmem:[%s2212_s25 + $0x14] sm:$0x1]  ;;  %2031 = vmatprep.subr.bf16.mxu1 %v2154_v0 }
  0x36   : > { %v661_v8 = vsel %vm2236_vm2, %v656_v62, %v2338_v42  ;;  %v683_v9 = vor.u32 %v682_v63, %v679_v58  ;;  %v700_v10 = vshll.u32 %v1815_v48, 16  ;;  %v1257_v12 = vshrl.u32 %v1924_v54, 16  ;;  %v1918_v47 = vld [vmem:[%s2212_s25 + $0x18] sm:$0xf]  ;;  %v1919_v60 = vld [vmem:[%s2212_s25 + $0x1c] sm:$0x1] }
  0x37   : > { %409 = vrot.lane.b32.xlu1 %v1775_v3, %s2155_s17  ;;  %v670_v16 = vrot.slane %v669_v4, 4  ;;  %v696_v17 = vrot.slane %v694_v6, 5  ;;  %v1260_v18 = vshll.u32 %v1924_v54, 16  ;;  %v1266_v19 = vshll.u32 %v1925_v2, 16  ;;  %v2110_v61 = vld [vmem:[%s2690_s1 + $0xb8] sm:$0xff]  }
  0x38   : > { %v684_v22 = vrot.slane %v683_v9, 4  ;;  %v702_v23 = vrot.slane %v700_v10, 5  ;;  %v1259_v24 = vrot.slane %v1257_v12, 4  ;;  %v1271_v25 = vshrl.u32 %v1926_v7, 16  ;;  %954 = vmatpush1.bf16.msra.mxu0 %v2107_v41  ;;  %v1920_v3 = vld [vmem:[%s2212_s25 + $0x20] sm:$0xf] }
  0x39   : > { %v675_v26 = vsel %vm2236_vm2, %v670_v16, %v674_v57  ;;  %v697_v27 = vor.u32 %v696_v17, %v693_v5  ;;  %v1262_v28 = vrot.slane %v1260_v18, 5  ;;  %v1268_v29 = vrot.slane %v1266_v19, 5  ;;  %955 = vmatprep.subr.bf16.mxu0 %v2154_v0  ;;  %v1922_v9 = vld [vmem:[%s2212_s25 + $0x28] sm:$0xf]  ;;  %v2108_v34 = vld [vmem:[%s2212_s25 + $0x10] ss:$8 sps:$4 sm:$0xff]  }
  0x3a   : > { %v1818_v30 = vcombine.low %v661_v8, %v675_v26  ;;  %v689_v31 = vsel %vm2236_vm2, %v684_v22, %v688_v1  ;;  %v1273_v32 = vrot.slane %v1271_v25, 4  ;;  %v1274_v33 = vshll.u32 %v1926_v7, 16  ;;  %v1921_v8 = vld [vmem:[%s2212_s25 + $0x24] sm:$0x1]  ;;  %257 = vst.msk [vmem:[#allocation2 + $0x10] sm:$0xff] %vm255_vm4, %v2108_v34 }
  0x3b   : > { %v698_v36 = vrot.slane %v697_v27, 4  ;;  %v1263_v37 = vor.u32 %v1262_v28, %v1259_v24  ;;  %v1280_v38 = vshll.u32 %v1927_v11, 16  ;;  %v1285_v39 = vshrl.u32 %v1928_v13, 16 }
  0x3c   : > { %720 = vrot.lane.b32.xlu0 %v1818_v30, %s2155_s17  ;;  %v1276_v42 = vrot.slane %v1274_v33, 5  ;;  %v1288_v43 = vshll.u32 %v1928_v13, 16  ;;  %v1294_v44 = vshll.u32 %v1929_v20, 16  ;;  %v1299_v45 = vshrl.u32 %v1930_v21, 16  ;;  %956 = vmatpush1.bf16.msra.mxu0 %v2110_v61 }
  0x3d   : > { %v703_v48 = vsel %vm2236_vm2, %v698_v36, %v702_v23  ;;  %v1264_v49 = vrot.slane %v1263_v37, 4  ;;  %v1282_v50 = vrot.slane %v1280_v38, 5  ;;  %v1287_v51 = vrot.slane %v1285_v39, 4  ;;  %1541 = vmatprep.subr.bf16.mxu0 %v2154_v0 }
  0x3e   : > { %v1819_v52 = vcombine.low %v689_v31, %v703_v48  ;;  %v1277_v53 = vor.u32 %v1276_v42, %v1273_v32  ;;  %v1290_v54 = vrot.slane %v1288_v43, 5  ;;  %v1296_v55 = vrot.slane %v1294_v44, 5  ;;  %v2100_v44 = vld [vmem:[%s2212_s25] ss:$8 sps:$4 sm:$0xff]  }
  0x3f   : > { %v1269_v56 = vsel %vm2236_vm2, %v1264_v49, %v1268_v29  ;;  %v1301_v57 = vrot.slane %v1299_v45, 4  ;;  %v1302_v58 = vshll.u32 %v1930_v21, 16  ;;  %v1308_v59 = vshll.u32 %v1931_v35, 16  ;;  %v1923_v21 = vld [vmem:[%s2212_s25 + $0x2c] sm:$0x1]  ;;  %256 = vst.msk [vmem:[#allocation2] sm:$0xff] %vm255_vm4, %v2100_v44 }
  0x40   : > { %722 = vrot.lane.b32.xlu1 %v1819_v52, %s2155_s17  ;;  %v1278_v62 = vrot.slane %v1277_v53, 4  ;;  %v1291_v63 = vor.u32 %v1290_v54, %v1287_v51  ;;  %v1201_v1 = vshrl.u32 %v1916_v40, 16  ;;  %v1204_v2 = vshll.u32 %v1916_v40, 16  ;;  %v420_v53 = vld [vmem:[%s2212_s25] sm:$0xe] }
  0x41   : > { %v1304_v4 = vrot.slane %v1302_v58, 5  ;;  %v1310_v5 = vrot.slane %v1308_v59, 5  ;;  %v1210_v6 = vshll.u32 %v1917_v46, 16  ;;  %v1215_v7 = vshrl.u32 %v1918_v47, 16  ;;  %v421_v54 = vld [vmem:[%s2212_s25 + $0x4] sm:$0x1] }
  0x42   : > { %v1283_v10 = vsel %vm2236_vm2, %v1278_v62, %v1282_v50  ;;  %v1292_v11 = vrot.slane %v1291_v63, 4  ;;  %v1203_v12 = vrot.slane %v1201_v1, 4  ;;  %v1206_v13 = vrot.slane %v1204_v2, 5  ;;  %v1820_v62 = vld [vmem:[%s2212_s25 + $0x8] sm:$0xe] }
  0x43   : > { %v1934_v14 = vcombine.low %v1269_v56, %v1283_v10  ;;  %v1305_v15 = vor.u32 %v1304_v4, %v1301_v57  ;;  %v1212_v16 = vrot.slane %v1210_v6, 5  ;;  %v1217_v17 = vrot.slane %v1215_v7, 4  ;;  %v423_v57 = vld [vmem:[%s2212_s25 + $0xc] sm:$0x1]  ;;  %v1823_v4 = vld [vmem:[%s2212_s25 + $0x14] sm:$0x1] }
  0x44   : > { %v1207_v18 = vor.u32 %v1206_v13, %v1203_v12  ;;  %v1218_v19 = vshll.u32 %v1918_v47, 16  ;;  %v1224_v20 = vshll.u32 %v1919_v60, 16  ;;  %v1297_v22 = vsel %vm2236_vm2, %v1292_v11, %v1296_v55  ;;  %v422_v55 = vld [vmem:[%s2212_s25 + $0x8] sm:$0xe]  ;;  %v1821_v63 = vld [vmem:[%s2212_s25 + $0xc] sm:$0x1] }
  0x45   : > { %1328 = vrot.lane.b32.xlu1 %v1934_v14, %s2155_s17  ;;  %v1306_v23 = vrot.slane %v1305_v15, 4  ;;  %v1229_v24 = vshrl.u32 %v1920_v3, 16  ;;  %v1232_v25 = vshll.u32 %v1920_v3, 16  ;;  %v1238_v28 = vshll.u32 %v1921_v8, 16  ;;  %v1822_v3 = vld [vmem:[%s2212_s25 + $0x10] sm:$0xe] }
  0x46   : > { %v1208_v26 = vrot.slane %v1207_v18, 4  ;;  %v1220_v27 = vrot.slane %v1218_v19, 5  ;;  %v1243_v29 = vshrl.u32 %v1922_v9, 16  ;;  %v1226_v36 = vrot.slane %v1224_v20, 5  ;;  %v1936_v14 = vld [vmem:[%s2212_s25 + $0x10] sm:$0xe] }
  0x47   : > { %v1311_v30 = vsel %vm2236_vm2, %v1306_v23, %v1310_v5  ;;  %v1231_v31 = vrot.slane %v1229_v24, 4  ;;  %v1234_v32 = vrot.slane %v1232_v25, 5  ;;  %v1246_v39 = vshll.u32 %v1922_v9, 16  ;;  %v1937_v15 = vld [vmem:[%s2212_s25 + $0x14] sm:$0x1] }
  0x48   : > { %v1935_v33 = vcombine.low %v1297_v22, %v1311_v30  ;;  %v1221_v35 = vor.u32 %v1220_v27, %v1217_v17  ;;  %v1245_v37 = vrot.slane %v1243_v29, 4  ;;  %v1252_v40 = vshll.u32 %v1923_v21, 16  ;;  %v1939_v17 = vld [vmem:[%s2212_s25 + $0x1c] sm:$0x1]  ;;  %v2112_v23 = vld [vmem:[%s2212_s25 + $0x20] ss:$8 sps:$4 sm:$0xff]  }
  0x49   : > { %v1235_v38 = vor.u32 %v1234_v32, %v1231_v31  ;;  %v1213_v41 = vsel %vm2236_vm2, %v1208_v26, %v1212_v16  ;;  %v1240_v43 = vrot.slane %v1238_v28, 5  ;;  %v1248_v46 = vrot.slane %v1246_v39, 5  ;;  %v1938_v16 = vld [vmem:[%s2212_s25 + $0x18] sm:$0xe]  ;;  %258 = vst.msk [vmem:[#allocation2 + $0x20] sm:$0xff] %vm255_vm4, %v2112_v23 }
  0x4a   : > { %1330 = vrot.lane.b32.xlu1 %v1935_v33, %s2155_s17  ;;  %v1222_v42 = vrot.slane %v1221_v35, 4  ;;  %v1254_v47 = vrot.slane %v1252_v40, 5  ;;  %v1776_v58 = vrot.slane %v420_v53, 9  ;;  %v457_v59 = vrot.slane %v421_v54, 5  ;;  %v2116_v27 = vld [vmem:[%s2212_s25 + $0x30] ss:$8 sps:$4 sm:$0xff]  }
  0x4b   : > { %v1236_v45 = vrot.slane %v1235_v38, 4  ;;  %v1249_v51 = vor.u32 %v1248_v46, %v1245_v37  ;;  %v1777_v60 = vrot.slane %v422_v55, 9  ;;  %v461_v61 = vrot.slane %v423_v57, 5  ;;  %v424_v28 = vld [vmem:[%s2212_s25 + $0x10] sm:$0xe]  ;;  %259 = vst.msk [vmem:[#allocation2 + $0x30] sm:$0xff] %vm255_vm4, %v2116_v27 }
  0x4c   : > { %v1227_v49 = vsel %vm2236_vm2, %v1222_v42, %v1226_v36  ;;  %v458_v2 = vsel %vm2418_vm6, %v1776_v58, %v457_v59  ;;  %v1836_v5 = vrot.slane %v1820_v62, 9  ;;  %v766_v6 = vrot.slane %v1821_v63, 5  ;;  %v425_v29 = vld [vmem:[%s2212_s25 + $0x14] sm:$0x1]  ;;  %v426_v30 = vld [vmem:[%s2212_s25 + $0x18] sm:$0xe] }
  0x4d   : > { %v1932_v50 = vcombine.low %v1213_v41, %v1227_v49  ;;  %v1241_v52 = vsel %vm2236_vm2, %v1236_v45, %v1240_v43  ;;  %v1250_v56 = vrot.slane %v1249_v51, 4  ;;  %v462_v8 = vsel %vm2418_vm6, %v1777_v60, %v461_v61  ;;  %v427_v31 = vld [vmem:[%s2212_s25 + $0x1c] sm:$0x1]  ;;  %v1824_v37 = vld [vmem:[%s2212_s25 + $0x18] sm:$0xe] }
  0x4e   : > { %v1837_v9 = vrot.slane %v1822_v3, 9  ;;  %v770_v10 = vrot.slane %v1823_v4, 5  ;;  %v1784_v11 = vcombine.low %v458_v2, %v462_v8  ;;  %v767_v12 = vsel %vm2418_vm6, %v1836_v5, %v766_v6  ;;  %v1825_v39 = vld [vmem:[%s2212_s25 + $0x1c] sm:$0x1]  ;;  %v1826_v40 = vld [vmem:[%s2212_s25 + $0x20] sm:$0xe] }
  0x4f   : > { %1324 = vrot.lane.b32.xlu0 %v1932_v50, %s2155_s17  ;;  %v1255_v1 = vsel %vm2236_vm2, %v1250_v56, %v1254_v47  ;;  %v1952_v18 = vrot.slane %v1936_v14, 9  ;;  %v1374_v19 = vrot.slane %v1937_v15, 5  ;;  %v1953_v21 = vrot.slane %v1938_v16, 9  ;;  %v1827_v41 = vld [vmem:[%s2212_s25 + $0x24] sm:$0x1] }
  0x50   : > { %v1933_v7 = vcombine.low %v1241_v52, %v1255_v1  ;;  %503 = vst.msk [vmem:[#allocation2 + $0x8] sm:$0xff] %vm255_vm4, %v1784_v11  ;;  %v771_v13 = vsel %vm2418_vm6, %v1837_v9, %v770_v10  ;;  %v1378_v22 = vrot.slane %v1939_v17, 5  ;;  %v1778_v32 = vrot.slane %v424_v28, 9  ;;  %v1940_v50 = vld [vmem:[%s2212_s25 + $0x20] sm:$0xe] }
  0x51   : > { %v1844_v20 = vcombine.low %v767_v12, %v771_v13  ;;  %v1375_v25 = vsel %vm2418_vm6, %v1952_v18, %v1374_v19  ;;  %v465_v33 = vrot.slane %v425_v29, 5  ;;  %v1779_v35 = vrot.slane %v426_v30, 9  ;;  %v1941_v52 = vld [vmem:[%s2212_s25 + $0x24] sm:$0x1]  ;;  %v1942_v53 = vld [vmem:[%s2212_s25 + $0x28] sm:$0xe] }
  0x52   : > { %v1379_v26 = vsel %vm2418_vm6, %v1953_v21, %v1378_v22  ;;  %v469_v36 = vrot.slane %v427_v31, 5  ;;  %v1838_v44 = vrot.slane %v1824_v37, 9  ;;  %v774_v45 = vrot.slane %v1825_v39, 5  ;;  %v1943_v54 = vld [vmem:[%s2212_s25 + $0x2c] sm:$0x1] }
  0x53   : > { %1326 = vrot.lane.b32.xlu0 %v1933_v7, %s2155_s17  ;;  %v1960_v38 = vcombine.low %v1375_v25, %v1379_v26  ;;  %v466_v42 = vsel %vm2418_vm6, %v1778_v32, %v465_v33  ;;  %v1839_v47 = vrot.slane %v1826_v40, 9  ;;  %v778_v49 = vrot.slane %v1827_v41, 5  ;;  %v428_v61 = vld [vmem:[%s2212_s25 + $0x20] sm:$0xe]  ;;  %v429_v62 = vld [vmem:[%s2212_s25 + $0x24] sm:$0x1] }
  0x54   : > { %v470_v43 = vsel %vm2418_vm6, %v1779_v35, %v469_v36  ;;  %v1954_v55 = vrot.slane %v1940_v50, 9  ;;  %v1382_v56 = vrot.slane %v1941_v52, 5  ;;  %v775_v57 = vsel %vm2418_vm6, %v1838_v44, %v774_v45  ;;  %v430_v63 = vld [vmem:[%s2212_s25 + $0x28] sm:$0xe]  ;;  %v431_v1 = vld [vmem:[%s2212_s25 + $0x2c] sm:$0x1] }
  0x55   : > { %v1785_v46 = vcombine.low %v466_v42, %v470_v43  ;;  %v779_v58 = vsel %vm2418_vm6, %v1839_v47, %v778_v49  ;;  %v1955_v59 = vrot.slane %v1942_v53, 9  ;;  %v1386_v60 = vrot.slane %v1943_v54, 5  ;;  %v1828_v7 = vld [vmem:[%s2212_s25 + $0x28] sm:$0xe]  ;;  %v1829_v8 = vld [vmem:[%s2212_s25 + $0x2c] sm:$0x1] }
  0x56   : > { %v1780_v2 = vrot.slane %v428_v61, 9  ;;  %v473_v3 = vrot.slane %v429_v62, 5  ;;  %v1845_v4 = vcombine.low %v775_v57, %v779_v58  ;;  %v1781_v5 = vrot.slane %v430_v63, 9  ;;  %v1830_v10 = vld [vmem:[%s2212_s25 + $0x30] sm:$0xe] }
  0x57   : > { %v508_v24 = vld [vmem:[#allocation2 + $0x8] sm:$0xff]  ;;  %504 = vst.msk [vmem:[#allocation2 + $0x18] sm:$0xff] %vm255_vm4, %v1785_v46  ;;  %v477_v6 = vrot.slane %v431_v1, 5  ;;  %v1831_v11 = vld [vmem:[%s2212_s25 + $0x34] sm:$0x1]  ;;  %v1840_v34 = vrot.slane %v1828_v7, 9  ;;  %v1383_v21 = vsel %vm2418_vm6, %v1954_v55, %v1382_v56  ;;  %v1387_v22 = vsel %vm2418_vm6, %v1955_v59, %v1386_v60 }
  0x58   : > { %812 = vst.msk [vmem:[#allocation2 + $0x8] sm:$0xff] %vm255_vm4, %v1844_v20  ;;  %1900 = vmatprep.mubr.msk.bf16.mxu1 %vm255_vm4, %v508_v24  ;;  %v474_v9 = vsel %vm2418_vm6, %v1780_v2, %v473_v3  ;;  %v782_v12 = vrot.slane %v1829_v8, 5  ;;  %v1841_v14 = vrot.slane %v1830_v10, 9  ;;  %v786_v15 = vrot.slane %v1831_v11, 5  ;;  %v1944_v18 = vld [vmem:[%s2212_s25 + $0x30] sm:$0xe] }
  0x59   : > { %v478_v13 = vsel %vm2418_vm6, %v1781_v5, %v477_v6  ;;  %v1945_v19 = vld [vmem:[%s2212_s25 + $0x34] sm:$0x1]  ;;  %v1946_v20 = vld [vmem:[%s2212_s25 + $0x38] sm:$0xe]  ;;  %v1947_v23 = vld [vmem:[%s2212_s25 + $0x3c] sm:$0x1]  ;;  %v1961_v31 = vcombine.low %v1383_v21, %v1387_v22 }
  0x5a   : > { %v1786_v17 = vcombine.low %v474_v9, %v478_v13  ;;  %v1956_v24 = vrot.slane %v1944_v18, 9  ;;  %v783_v25 = vsel %vm2418_vm6, %v1840_v34, %v782_v12  ;;  %v787_v26 = vsel %vm2418_vm6, %v1841_v14, %v786_v15  ;;  %v432_v29 = vld [vmem:[%s2212_s25 + $0x30] sm:$0xe]  ;;  %v433_v30 = vld [vmem:[%s2212_s25 + $0x34] sm:$0x1]  ;;  %v2106_v13 = vld [vmem:[%s2690_s1 + $0xc0] sm:$0xff]  }
  0x5b   : > { %v1390_v27 = vrot.slane %v1945_v19, 5  ;;  %v1957_v28 = vrot.slane %v1946_v20, 9  ;;  %v434_v32 = vld [vmem:[%s2212_s25 + $0x38] sm:$0xe]  ;;  %v435_v33 = vld [vmem:[%s2212_s25 + $0x3c] sm:$0x1]  ;;  %v1846_v37 = vcombine.low %v783_v25, %v787_v26 }
  0x5c   : > { %505 = vst.msk [vmem:[#allocation2 + $0x28] sm:$0xff] %vm255_vm4, %v1786_v17  ;;  %v1782_v35 = vrot.slane %v432_v29, 9  ;;  %v481_v36 = vrot.slane %v433_v30, 5  ;;  %v485_v39 = vrot.slane %v435_v33, 5  ;;  %v1832_v40 = vld [vmem:[%s2212_s25 + $0x38] sm:$0xe] }
  0x5d   : > { %v1833_v41 = vld [vmem:[%s2212_s25 + $0x3c] sm:$0x1]  ;;  %v1394_v42 = vrot.slane %v1947_v23, 5  ;;  %v1834_v44 = vld [vmem:[%s2212_s25 + $0x40] sm:$0xe]  ;;  %v1842_v46 = vrot.slane %v1832_v40, 9  ;;  %v1391_v57 = vsel %vm2418_vm6, %v1956_v24, %v1390_v27 }
  0x5e   : > { %v2499_v16 = vld [vmem:[#allocation2 + $0x18] sm:$0xff]  ;;  %v482_v43 = vsel %vm2418_vm6, %v1782_v35, %v481_v36  ;;  %v1835_v45 = vld [vmem:[%s2212_s25 + $0x44] sm:$0x1]  ;;  %v790_v50 = vrot.slane %v1833_v41, 5  ;;  %v1948_v55 = vld [vmem:[%s2212_s25 + $0x40] sm:$0xe] }
  0x5f   : > { %v817_v51 = vld [vmem:[#allocation2 + $0x8] sm:$0xff]  ;;  %813 = vst.msk [vmem:[#allocation2 + $0x18] sm:$0xff] %vm255_vm4, %v1845_v4  ;;  %v794_v52 = vrot.slane %v1835_v45, 5  ;;  %v1949_v56 = vld [vmem:[%s2212_s25 + $0x44] sm:$0x1]  ;;  %v1395_v58 = vsel %vm2418_vm6, %v1957_v28, %v1394_v42  ;;  %v1958_v2 = vrot.slane %v1948_v55, 9 }
  0x60   : > { %1884 = vmatprep.mubr.msk.bf16.mxu0 %vm255_vm4, %v817_v51  ;;  %1420 = vst.msk [vmem:[#allocation2 + $0x8] sm:$0xff] %vm255_vm4, %v1960_v38  ;;  %v1783_v38 = vrot.slane %v434_v32, 9  ;;  %v1843_v51 = vrot.slane %v1834_v44, 9  ;;  %v1950_v59 = vld [vmem:[%s2212_s25 + $0x48] sm:$0xe]  ;;  %v791_v60 = vsel %vm2418_vm6, %v1842_v46, %v790_v50  ;;  %v1962_v63 = vcombine.low %v1391_v57, %v1395_v58  ;;  %v2111_v18 = vld [vmem:[%s2690_s1 + $0xd0] sm:$0xff]  }
  0x61   : > { %v1951_v62 = vld [vmem:[%s2212_s25 + $0x4c] sm:$0x1]  ;;  %v1398_v3 = vrot.slane %v1949_v56, 5  ;;  %v1959_v4 = vrot.slane %v1950_v59, 9  ;;  %v2105_v12 = vld [vmem:[%s2212_s25 + $0x8] ss:$8 sps:$4 sm:$0xff]  }
  0x62   : > { %v486_v49 = vsel %vm2418_vm6, %v1783_v38, %v485_v39  ;;  %v795_v61 = vsel %vm2418_vm6, %v1843_v51, %v794_v52  ;;  %v1402_v5 = vrot.slane %v1951_v62, 5  ;;  %v2109_v17 = vld [vmem:[%s2690_s1 + $0xc8] sm:$0xff]   ;;  %v2128_v20 = vld [vmem:[%s2212_s25 + $0x10] ss:$8 sps:$4 sm:$0xff]   ;;  %v2115_v26 = vld [vmem:[%s2690_s1 + $0xe0] sm:$0xff]  }
  0x63   : > { %v2530_v53 = vld [vmem:[#allocation2 + $0x28] sm:$0xff]  ;;  %v1787_v54 = vcombine.low %v482_v43, %v486_v49  ;;  %v1847_v1 = vcombine.low %v791_v60, %v795_v61  ;;  %v1399_v8 = vsel %vm2418_vm6, %v1958_v2, %v1398_v3  ;;  %v2113_v21 = vld [vmem:[%s2212_s25 + $0x18] ss:$8 sps:$4 sm:$0xff]   ;;  %v2119_v35 = vld [vmem:[%s2690_s1 + $0xf0] sm:$0xff]  }
  0x64   : > { %814 = vst.msk [vmem:[#allocation2 + $0x28] sm:$0xff] %vm255_vm4, %v1846_v37  ;;  %v1403_v9 = vsel %vm2418_vm6, %v1959_v4, %v1402_v5  ;;  %v2114_v24 = vld [vmem:[%s2690_s1 + $0xd8] sm:$0xff]   ;;  %v2117_v25 = vld [vmem:[%s2212_s25 + $0x28] ss:$8 sps:$4 sm:$0xff]   ;;  %v2122_v41 = vld [vmem:[%s2690_s1 + $0x100] sm:$0xff]  }
  0x65   : > { %506 = vst.msk [vmem:[#allocation2 + $0x38] sm:$0xff] %vm255_vm4, %v1787_v54  ;;  %v1963_v10 = vcombine.low %v1399_v8, %v1403_v9  ;;  %v2129_v29 = vld [vmem:[%s2212_s25 + $0x20] ss:$8 sps:$4 sm:$0xff]   ;;  %v2121_v38 = vld [vmem:[%s2690_s1 + $0xf8] sm:$0xff]   ;;  %v2125_v50 = vld [vmem:[%s2690_s1 + $0x110] sm:$0xff]  }
  0x66   : > { %v2525_v47 = vld [vmem:[#allocation2 + $0x18] sm:$0xff]  ;;  %v2118_v30 = vld [vmem:[%s2690_s1 + $0xe8] sm:$0xff]  }
  0x67   : > { %1421 = vst.msk [vmem:[#allocation2 + $0x18] sm:$0xff] %vm255_vm4, %v1961_v31  ;;  %v2120_v33 = vld [vmem:[%s2212_s25 + $0x38] ss:$8 sps:$4 sm:$0xff]   ;;  %v2123_v46 = vld [vmem:[%s2690_s1 + $0x108] sm:$0xff]  }
  0x68   : > { %v2124_v39 = vld [vmem:[%s2212_s25 + $0x30] ss:$8 sps:$4 sm:$0xff]   ;;  %v2127_v43 = vld [vmem:[%s2212_s25 + $0x40] ss:$8 sps:$4 sm:$0xff]  }
  0x69   : > { %v1425_v49 = vld [vmem:[#allocation2 + $0x8] sm:$0xff]  ;;  %v2126_v52 = vld [vmem:[%s2690_s1 + $0x118] sm:$0xff]  }
  0x6b   : > { %v2546_v6 = vld [vmem:[#allocation2 + $0x28] sm:$0xff] }
  0x6c   : > { %1422 = vst.msk [vmem:[#allocation2 + $0x28] sm:$0xff] %vm255_vm4, %v1962_v63  ;;  %v2549_v7 = vld [vmem:[#allocation2 + $0x38] sm:$0xff] }
  0x6d   : > { %815 = vst.msk [vmem:[#allocation2 + $0x38] sm:$0xff] %vm255_vm4, %v1847_v1 }
  0x6e   : > { %v1427_v58 = vld [vmem:[#allocation2 + $0x18] sm:$0xff] }
  0x73   : > { %v1429_v44 = vld [vmem:[#allocation2 + $0x28] sm:$0xff] }
  0x74   : > { %v2556_v11 = vld [vmem:[#allocation2 + $0x38] sm:$0xff] }
  0x75   : > { %1423 = vst.msk [vmem:[#allocation2 + $0x38] sm:$0xff] %vm255_vm4, %v1963_v10 }
  0x7c   : > { %v1431_v55 = vld [vmem:[#allocation2 + $0x38] sm:$0xff] }
  0x91   : > { %v404_v34 = vpop.permute.xlu0 %403 }
  0x92   : > { %416 = vst.msk [vmem:[#allocation2] sm:$0xff] %vm415_vm7, %v404_v34 }
  0x95   : > { %v717_v14 = vpop.permute.xlu0 %716 }
  0x99   : > { %v507_v15 = vld [vmem:[#allocation2] sm:$0xff] }
  0x9a   : > { %572 = vst.msk [vmem:[#allocation2] sm:$0xff] %vm255_vm4, %v2105_v12  ;;  %1115 = vmatmul.mubr.bf16.vlgmr.msra.gmra.mrb[0].mxu1 %v507_v15 }
  0x9b   : > { %728 = vst.msk [vmem:[#allocation2] sm:$0xff] %vm415_vm7, %v717_v14  ;;  %2043 = vmatpush1.bf16.msra.mxu1 %v2106_v13  ;;  %v406_v48 = vpop.permute.xlu1 %405  ;;  %1901 = vmatprep.mubr.msk.bf16.mxu1 %vm255_vm4, %v2499_v16 }
  0x9c   : > { %417 = vst.msk [vmem:[#allocation2 + $0x10] sm:$0xff] %vm415_vm7, %v406_v48  ;;  %2032 = vmatprep.subr.bf16.mxu1 %v2154_v0 }
  0x9f   : > { %2044 = vmatpush1.bf16.msra.mxu1 %v2109_v17  ;;  %v408_v19 = vpop.permute.xlu1 %407 }
  0xa0   : > { %2033 = vmatprep.subr.bf16.mxu1 %v2154_v0  ;;  %418 = vst.msk [vmem:[#allocation2 + $0x20] sm:$0xff] %vm415_vm7, %v408_v19 }
  0xa2   : > { %v816_v22 = vld [vmem:[#allocation2] sm:$0xff] }
  0xa3   : > { %2045 = vmatpush1.bf16.msra.mxu1 %v2111_v18  ;;  %966 = vmatmul.mubr.bf16.vlgmr.msra.gmra.mrb[0].mxu0 %v816_v22  ;;  %v719_v16 = vpop.permute.xlu0 %718  ;;  %v509_v23 = vld [vmem:[#allocation2 + $0x10] sm:$0xff]  ;;  %1180 = vst.msk [vmem:[#allocation2] sm:$0xff] %vm255_vm4, %v2128_v20 }
  0xa4   : > { %1542 = vmatpush1.bf16.msra.mxu0 %v2106_v13  ;;  %2034 = vmatprep.subr.bf16.mxu1 %v2154_v0  ;;  %573 = vst.msk [vmem:[#allocation2 + $0x10] sm:$0xff] %vm255_vm4, %v2113_v21 }
  0xa5   : > { %729 = vst.msk [vmem:[#allocation2 + $0x10] sm:$0xff] %vm415_vm7, %v719_v16  ;;  %1543 = vmatprep.subr.bf16.mxu0 %v2154_v0  ;;  %1885 = vmatprep.mubr.msk.bf16.mxu0 %vm255_vm4, %v2525_v47 }
  0xa6   : > { %1123 = vmatmul.mubr.bf16.gmra.mrb[4].mxu1 %v509_v23 }
  0xa7   : > { %2046 = vmatpush1.bf16.msra.mxu1 %v2114_v24  ;;  %v511_v27 = vld [vmem:[#allocation2 + $0x20] sm:$0xff]  ;;  %1902 = vmatprep.mubr.msk.bf16.mxu1 %vm255_vm4, %v2530_v53 }
  0xa8   : > { %1544 = vmatpush1.bf16.msra.mxu0 %v2109_v17  ;;  %2035 = vmatprep.subr.bf16.mxu1 %v2154_v0  ;;  %574 = vst.msk [vmem:[#allocation2 + $0x20] sm:$0xff] %vm255_vm4, %v2117_v25 }
  0xa9   : > { %1545 = vmatprep.subr.bf16.mxu0 %v2154_v0  ;;  %v410_v28 = vpop.permute.xlu1 %409 }
  0xaa   : > { %419 = vst.msk [vmem:[#allocation2 + $0x30] sm:$0xff] %vm415_vm7, %v410_v28 }
  0xab   : > { %2047 = vmatpush1.bf16.msra.mxu1 %v2115_v26 }
  0xac   : > { %1546 = vmatpush1.bf16.msra.mxu0 %v2111_v18  ;;  %2036 = vmatprep.subr.bf16.mxu1 %v2154_v0  ;;  %v818_v31 = vld [vmem:[#allocation2 + $0x10] sm:$0xff] }
  0xad   : > { %1547 = vmatprep.subr.bf16.mxu0 %v2154_v0  ;;  %974 = vmatmul.mubr.bf16.gmra.mrb[4].mxu0 %v818_v31  ;;  %1181 = vst.msk [vmem:[#allocation2 + $0x10] sm:$0xff] %vm255_vm4, %v2129_v29 }
  0xae   : > { %v721_v32 = vpop.permute.xlu0 %720  ;;  %1886 = vmatprep.mubr.msk.bf16.mxu0 %vm255_vm4, %v2546_v6  ;;  %1131 = vmatmul.mubr.bf16.gmra.mrb[8].mxu1 %v511_v27 }
  0xaf   : > { %730 = vst.msk [vmem:[#allocation2 + $0x20] sm:$0xff] %vm415_vm7, %v721_v32  ;;  %2048 = vmatpush1.bf16.msra.mxu1 %v2118_v30  ;;  %1903 = vmatprep.mubr.msk.bf16.mxu1 %vm255_vm4, %v2549_v7 }
  0xb0   : > { %1548 = vmatpush1.bf16.msra.mxu0 %v2114_v24  ;;  %2037 = vmatprep.subr.bf16.mxu1 %v2154_v0 }
  0xb1   : > { %1549 = vmatprep.subr.bf16.mxu0 %v2154_v0  ;;  %v513_v36 = vld [vmem:[#allocation2 + $0x30] sm:$0xff] }
  0xb2   : > { %v723_v37 = vpop.permute.xlu1 %722  ;;  %575 = vst.msk [vmem:[#allocation2 + $0x30] sm:$0xff] %vm255_vm4, %v2120_v33 }
  0xb3   : > { %2049 = vmatpush1.bf16.msra.mxu1 %v2119_v35  ;;  %731 = vst.msk [vmem:[#allocation2 + $0x30] sm:$0xff] %vm415_vm7, %v723_v37 }
  0xb4   : > { %1550 = vmatpush1.bf16.msra.mxu0 %v2115_v26  ;;  %2038 = vmatprep.subr.bf16.mxu1 %v2154_v0 }
  0xb5   : > { %1551 = vmatprep.subr.bf16.mxu0 %v2154_v0 }
  0xb6   : > { %v820_v40 = vld [vmem:[#allocation2 + $0x20] sm:$0xff]  ;;  %1139 = vmatmul.mubr.bf16.gmra.mrb[12].mxu1 %v513_v36 }
  0xb7   : > { %2050 = vmatpush1.bf16.msra.mxu1 %v2121_v38  ;;  %982 = vmatmul.mubr.bf16.gmra.mrb[8].mxu0 %v820_v40  ;;  %v1329_v42 = vpop.permute.xlu1 %1328  ;;  %1182 = vst.msk [vmem:[#allocation2 + $0x20] sm:$0xff] %vm255_vm4, %v2124_v39  ;;  %v2004_v36 = vld [vmem:[%s2691_s2] ss:$0 sm:$0xff] }
  0xb8   : > { %1552 = vmatpush1.bf16.msra.mxu0 %v2118_v30  ;;  %2039 = vmatprep.subr.bf16.mxu1 %v2154_v0  ;;  %1338 = vst.msk [vmem:[#allocation2 + $0x20] sm:$0xff] %vm415_vm7, %v1329_v42 }
  0xb9   : > { %1553 = vmatprep.subr.bf16.mxu0 %v2154_v0  ;;  %1887 = vmatprep.mubr.msk.bf16.mxu0 %vm255_vm4, %v2556_v11 }
  0xba   : > { %v822_v45 = vld [vmem:[#allocation2 + $0x30] sm:$0xff]  ;;  %2002 = vmatprep.mubr.msk.bf16.mxu1 %vm255_vm4, %v1429_v44 }
  0xbb   : > { %2051 = vmatpush1.bf16.msra.mxu1 %v2122_v41  ;;  %1183 = vst.msk [vmem:[#allocation2 + $0x30] sm:$0xff] %vm255_vm4, %v2127_v43 }
  0xbc   : > { %1554 = vmatpush1.bf16.msra.mxu0 %v2119_v35  ;;  %2040 = vmatprep.subr.bf16.mxu1 %v2154_v0  ;;  %v1331_v47 = vpop.permute.xlu1 %1330 }
  0xbd   : > { %1555 = vmatprep.subr.bf16.mxu0 %v2154_v0  ;;  %1339 = vst.msk [vmem:[#allocation2 + $0x30] sm:$0xff] %vm415_vm7, %v1331_v47 }
  0xbf   : > { %2052 = vmatpush1.bf16.msra.mxu1 %v2123_v46  ;;  %990 = vmatmul.mubr.bf16.gmra.mrb[12].mxu0 %v822_v45  ;;  %v1428_v54 = vld [vmem:[#allocation2 + $0x20] sm:$0xff] }
  0xc0   : > { %1556 = vmatpush1.bf16.msra.mxu0 %v2121_v38  ;;  %2041 = vmatprep.subr.bf16.mxu1 %v2154_v0 }
  0xc1   : > { %1557 = vmatprep.subr.bf16.mxu0 %v2154_v0  ;;  %v1325_v51 = vpop.permute.xlu0 %1324  ;;  %2000 = vmatprep.mubr.msk.bf16.mxu0 %vm255_vm4, %v1425_v49 }
  0xc2   : > { %1336 = vst.msk [vmem:[#allocation2] sm:$0xff] %vm415_vm7, %v1325_v51 }
  0xc3   : > { %2053 = vmatpush1.bf16.msra.mxu1 %v2125_v50 }
  0xc4   : > { %1558 = vmatpush1.bf16.msra.mxu0 %v2122_v41  ;;  %2042 = vmatprep.subr.bf16.mxu1 %v2154_v0  ;;  %v1430_v56 = vld [vmem:[#allocation2 + $0x30] sm:$0xff] }
  0xc5   : > { %1559 = vmatprep.subr.bf16.mxu0 %v2154_v0  ;;  %v1327_v53 = vpop.permute.xlu0 %1326 }
  0xc6   : > { %1337 = vst.msk [vmem:[#allocation2 + $0x10] sm:$0xff] %vm415_vm7, %v1327_v53 }
  0xc7   : > { %2054 = vmatpush1.bf16.msra.mxu1 %v2126_v52 }
  0xc8   : > { %1560 = vmatpush1.bf16.msra.mxu0 %v2123_v46 }
  0xc9   : > { %1561 = vmatprep.subr.bf16.mxu0 %v2154_v0  ;;  %v1424_v57 = vld [vmem:[#allocation2] sm:$0xff] }
  0xca   : > { %1590 = vmatmul.mubr.bf16.vlgmr.msra.gmra.mrb[16].mxu1 %v1428_v54 }
  0xcb   : > { %2003 = vmatprep.mubr.msk.bf16.mxu1 %vm255_vm4, %v1431_v55 }
  0xcc   : > { %1562 = vmatpush1.bf16.msra.mxu0 %v2125_v50 }
  0xcd   : > { %1563 = vmatprep.subr.bf16.mxu0 %v2154_v0  ;;  %v1426_v59 = vld [vmem:[#allocation2 + $0x10] sm:$0xff] }
  0xd0   : > { %1564 = vmatpush1.bf16.msra.mxu0 %v2126_v52 }
  0xd2   : > { %1598 = vmatmul.mubr.bf16.gmra.mrb[20].mxu1 %v1430_v56 }
  0xd3   : > { %1574 = vmatmul.mubr.bf16.vlgmr.msra.gmra.mrb[16].mxu0 %v1424_v57 }
  0xd4   : > { %2001 = vmatprep.mubr.msk.bf16.mxu0 %vm255_vm4, %v1427_v58 }
  0xdb   : > { %1582 = vmatmul.mubr.bf16.gmra.mrb[20].mxu0 %v1426_v59 }
 0x16d   : > { %v1116_v60 = vpop.f32.mrb[0].mxu1 }
 0x16e   : > { %v1118_v61 = vpop.f32.mrb[1].mxu1 }
 0x16f   : > { %v1119_v62 = vpop.f32.mrb[2].mxu1 }
 0x170   : > { %v1121_v63 = vpop.f32.mrb[3].mxu1 }
 0x176   : > { %v967_v1 = vpop.f32.mrb[0].mxu0 }
 0x177   : > { %v1117_v2 = vadd.f32 %v1116_v60, %v967_v1  ;;  %v969_v3 = vpop.f32.mrb[1].mxu0 }
 0x178   : > { %v970_v4 = vpop.f32.mrb[2].mxu0 }
 0x179   : > { %v1120_v5 = vadd.f32 %v1119_v62, %v970_v4  ;;  %v972_v0 = vpop.f32.mrb[3].mxu0  ;;  %v1124_v6 = vpop.f32.mrb[4].mxu1 }
 0x17a   : > { %v1126_v7 = vpop.f32.mrb[5].mxu1 }
 0x17b   : > { %v1127_v8 = vpop.f32.mrb[6].mxu1 }
 0x17c   : > { %v1129_v9 = vpop.f32.mrb[7].mxu1 }
 0x180   : > { %v975_v10 = vpop.f32.mrb[4].mxu0 }
 0x181   : > { %v2661_v11 = vadd.f32 %v1124_v6, %v975_v10  ;;  %v977_v34 = vpop.f32.mrb[5].mxu0  ;;  %v1132_v12 = vpop.f32.mrb[8].mxu1 }
 0x182   : > { %v978_v13 = vpop.f32.mrb[6].mxu0  ;;  %v1134_v14 = vpop.f32.mrb[9].mxu1 }
 0x183   : > { %v2663_v15 = vadd.f32 %v1127_v8, %v978_v13  ;;  %v980_v48 = vpop.f32.mrb[7].mxu0  ;;  %v1135_v17 = vpop.f32.mrb[10].mxu1 }
 0x184   : > { %v1137_v18 = vpop.f32.mrb[11].mxu1 }
 0x189   : > { %v1140_v19 = vpop.f32.mrb[12].mxu1 }
 0x18a   : > { %v983_v20 = vpop.f32.mrb[8].mxu0  ;;  %v1142_v21 = vpop.f32.mrb[13].mxu1 }
 0x18b   : > { %v1133_v22 = vadd.f32 %v1132_v12, %v983_v20  ;;  %v985_v16 = vpop.f32.mrb[9].mxu0  ;;  %v1143_v23 = vpop.f32.mrb[14].mxu1 }
 0x18c   : > { %v986_v24 = vpop.f32.mrb[10].mxu0  ;;  %v1145_v25 = vpop.f32.mrb[15].mxu1 }
 0x18d   : > { %v1136_v26 = vadd.f32 %v1135_v17, %v986_v24  ;;  %v988_v27 = vpop.f32.mrb[11].mxu0 }
 0x192   : > { %v991_v28 = vpop.f32.mrb[12].mxu0 }
 0x193   : > { %v1141_v29 = vadd.f32 %v1140_v19, %v991_v28  ;;  %v993_v30 = vpop.f32.mrb[13].mxu0 }
 0x194   : > { %v994_v31 = vpop.f32.mrb[14].mxu0 }
 0x195   : > { %v1144_v32 = vadd.f32 %v1143_v23, %v994_v31  ;;  %v996_v33 = vpop.f32.mrb[15].mxu0 }
 0x19d   : > { %v1591_v35 = vpop.f32.mrb[16].mxu1 }
 0x19e   : > { %v1610_v37 = vadd.f32 %v1591_v35, %v1133_v22  ;;  %v1593_v38 = vpop.f32.mrb[17].mxu1 }
 0x19f   : > { %v1594_v39 = vpop.f32.mrb[18].mxu1 }
 0x1a0   : > { %v1625_v40 = vadd.f32 %v2004_v36, %v1610_v37  ;;  %v1611_v41 = vadd.f32 %v1594_v39, %v1136_v26  ;;  %v1596_v42 = vpop.f32.mrb[19].mxu1 }
 0x1a2   : > { %v1626_v43 = vadd.f32 %v2004_v36, %v1611_v41  ;;  %v1633_v44 = vmax.f32 %v1625_v40, 0.0 }
 0x1a4   : > { %v1634_v45 = vmax.f32 %v1626_v43, 0.0 }
 0x1a5   : > { %v1599_v46 = vpop.f32.mrb[20].mxu1 }
 0x1a6   : > { %v2021_v47 = vpack.c.bf16 %v1634_v45, %v1633_v44  ;;  %v1612_v49 = vadd.f32 %v1599_v46, %v1141_v29  ;;  %v1575_v50 = vpop.f32.mrb[16].mxu0  ;;  %v1601_v51 = vpop.f32.mrb[21].mxu1 }
 0x1a7   : > { %v1606_v52 = vadd.f32 %v1575_v50, %v1117_v2  ;;  %v1577_v53 = vpop.f32.mrb[17].mxu0  ;;  %v1602_v54 = vpop.f32.mrb[22].mxu1 }
 0x1a8   : > { %2029 = vst [vmem:[%s2672_s4 + $0x10] sm:$0xff] %v2021_v47   ;;  %v1627_v55 = vadd.f32 %v2004_v36, %v1612_v49  ;;  %v1613_v56 = vadd.f32 %v1602_v54, %v1144_v32  ;;  %v1578_v57 = vpop.f32.mrb[18].mxu0  ;;  %v1604_v58 = vpop.f32.mrb[23].mxu1 }
 0x1a9   : > { %v1621_v59 = vadd.f32 %v2004_v36, %v1606_v52  ;;  %v1607_v60 = vadd.f32 %v1578_v57, %v1120_v5  ;;  %v1580_v61 = vpop.f32.mrb[19].mxu0 }
 0x1aa   : > { %v1628_v62 = vadd.f32 %v2004_v36, %v1613_v56  ;;  %v1635_v1 = vmax.f32 %v1627_v55, 0.0 }
 0x1ab   : > { %v1622_v63 = vadd.f32 %v2004_v36, %v1607_v60  ;;  %v1629_v4 = vmax.f32 %v1621_v59, 0.0 }
 0x1ac   : > { %v1636_v3 = vmax.f32 %v1628_v62, 0.0 }
 0x1ad   : > { %v1630_v0 = vmax.f32 %v1622_v63, 0.0 }
 0x1ae   : > { %v2026_v2 = vpack.c.bf16 %v1636_v3, %v1635_v1  ;;  %v1583_v6 = vpop.f32.mrb[20].mxu0 }
 0x1af   : > { %v2011_v7 = vpack.c.bf16 %v1630_v0, %v1629_v4  ;;  %v1608_v8 = vadd.f32 %v1583_v6, %v2661_v11  ;;  %v1585_v9 = vpop.f32.mrb[21].mxu0 }
 0x1b0   : > { %2030 = vst [vmem:[%s2672_s4 + $0x18] sm:$0xff] %v2026_v2   ;;  %v1586_v10 = vpop.f32.mrb[22].mxu0 }
 0x1b1   : > { %2012 = vst [vmem:[%s2672_s4] sm:$0xff] %v2011_v7   ;;  %v1623_v34 = vadd.f32 %v2004_v36, %v1608_v8  ;;  %v1609_v5 = vadd.f32 %v1586_v10, %v2663_v15  ;;  %v1588_v12 = vpop.f32.mrb[23].mxu0 }
 0x1b3   : > { %v1624_v13 = vadd.f32 %v2004_v36, %v1609_v5  ;;  %v1631_v14 = vmax.f32 %v1623_v34, 0.0 }
 0x1b5   : > { %v1632_v48 = vmax.f32 %v1624_v13, 0.0 }
 0x1b7   : > { %v2016_v17 = vpack.c.bf16 %v1632_v48, %v1631_v14 }
 0x1b9   : > { %2028 = vst [vmem:[%s2672_s4 + $0x8] sm:$0xff] %v2016_v17  }
 0x1ba PF: > { %s13_s14 = sadd.s32 1, %s2152_s14   ;;  %s2697_s12 = smov %s2148_s13 }
 0x1bb   : > { %p10_p5 = scmp.ge.s32.totalorder %s13_s14, 4   ;;  %s2698_s13 = smov %s2700_s15 }
 0x1bd   :  { %12 = sbr.rel (!%p10_p5) target bundleno = 2 (0x2), region = 72 }

// kernel: _forward.4
= control target key start
LH: loop header
LB: loop body
LE: loop exit
PB: predicated region body
PF: predicated region fallthrough
CT: control target
= control target key end

     0   :  { %s5542_s12 = smov 0   ;;  %s5544_s13 = smov 0   ;;  %s7618_s0 = inlined_call_operand.vmem [shape: bf16[2,18,18,64], index: 0, kind: input, shape index: {}]   ;;  %s7619_s1 = inlined_call_operand.vmem [shape: bf16[3,192,64], index: 1, kind: input, shape index: {}]   ;;  %s7620_s2 = inlined_call_operand.vmem [shape: f32[1,64], index: 2, kind: input, shape index: {}]   ;;  %s7621_s3 = inlined_call_operand.vmem [shape: bf16[2,10,10,64], index: 3, kind: output, shape index: {}]  }
   0x1   :  { %s5546_s14 = smov 0  }
   0x2 LB: > { %s25_s15 = sadd.s32 1, %s5514_s13  ;;  %p4746_p0 = scmp.ge.s32.totalorder %s5518_s14, 1  ;;  %s5518_s14 = sphi %s5546_s14, %s13_s14   ;;  %s5514_s13 = sphi %s5544_s13, %s7637_s13   ;;  %s5510_s12 = sphi %s5542_s12, %s7636_s12  }
   0x3   : > { %p27_p1 = scmp.ge.s32.totalorder %s25_s15, 2  ;;  %p168_p2 = scmp.lt.s32.totalorder %s5518_s14, 3 }
   0x5   : > { %s7639_s15 = smov (%p27_p1, %s25_s15), 0  ;;  %p169_p3 = pnand %p4746_p0, %p168_p2 }
   0x7   : > { %172 = sbr.rel (%p169_p3) target bundleno = 724 (0x2d4), region = 32 }
   0xe   : > { %p202_p4 = scmp.lt.s32.totalorder %s5510_s12, 1  ;;  %vm416_vm0 = vsmask.f32 3328  ;;  %vm417_vm1 = vsmask.f32 7440  ;;  %s5520_s20 = smov 64  }
   0xf   : > { %vm5578_vm2 = vmor %vm416_vm0, %vm417_vm1  ;;  %vm351_vm3 = vcmask 523264   ;;  %vm899_vm4 = vcmask 1048064   ;;  %vm1012_vm5 = vcmask 1042432   ;;  %vm1013_vm6 = vcmask 1046532  }
  0x10   : > { %s7641_s12 = smov (!%p202_p4, %s5510_s12), 1  ;;  %vm6044_vm7 = vmor %vm1012_vm5, %vm1013_vm6  ;;  %vm4460_vm8 = vcmask 519168   ;;  %vm4461_vm9 = vsmask.f32 7938  ;;  %vm4466_vm10 = vcmask 516096  }
  0x11   : > { %s5384_s16 = smul.u32 216, %s7641_s12  ;;  %vm4467_vm11 = vsmask.f32 256  ;;  %vm7363_vm12 = vmand %vm4460_vm8, %vm4461_vm9 }
  0x12   : > { %s5385_s30 = smul.u32 80, %s7641_s12  ;;  %vm7370_vm13 = vmand %vm4466_vm10, %vm4467_vm11 }
  0x13   : > { %s5566_s19 = scalar_lea.vmem %s7618_s0, %s5384_s16  ;;  %vm7388_vm14 = vmand %vm4466_vm10, %vm4461_vm9 }
  0x14   : > { %v392_v0 = vld [vmem:[%s5566_s19 + $0x60] sm:$0xf]  ;;  %v393_v1 = vld [vmem:[%s5566_s19 + $0x64] sm:$0xf]  ;;  %v394_v2 = vld [vmem:[%s5566_s19 + $0x68] sm:$0x1]  ;;  %s7356_s5 = scalar_lea.vmem %s7621_s3, %s5385_s30 }
  0x15   : > { %v612_v3 = vshrl.u32 %v392_v0, 16  ;;  %v615_v4 = vshll.u32 %v392_v0, 16  ;;  %v621_v5 = vshll.u32 %v393_v1, 16  ;;  %v625_v6 = vshrl.u32 %v393_v1, 16  ;;  %v368_v7 = vld [vmem:[%s5566_s19] sm:$0xf] }
  0x16   : > { %v631_v8 = vshll.u32 %v394_v2, 16  ;;  %v369_v9 = vld [vmem:[%s5566_s19 + $0x4] sm:$0xf]  ;;  %v370_v10 = vld [vmem:[%s5566_s19 + $0x8] sm:$0x1]  ;;  %v420_v11 = vshrl.u32 %v368_v7, 16 }
  0x17   : > { %v614_v12 = vrot.slane %v612_v3, 4  ;;  %v617_v13 = vrot.slane %v615_v4, 5  ;;  %v623_v14 = vrot.slane %v621_v5, 5  ;;  %v627_v15 = vrot.slane %v625_v6, 4  ;;  %v395_v16 = vld [vmem:[%s5566_s19 + $0x6c] sm:$0xf] }
  0x18   : > { %v633_v17 = vrot.slane %v631_v8, 5  ;;  %v422_v18 = vrot.slane %v420_v11, 4  ;;  %v423_v19 = vshll.u32 %v368_v7, 16  ;;  %v429_v20 = vshll.u32 %v369_v9, 16  ;;  %v396_v25 = vld [vmem:[%s5566_s19 + $0x70] sm:$0xf] }
  0x19   : > { %v618_v21 = vor.u32 %v617_v13, %v614_v12  ;;  %v628_v22 = vor.u32 %v627_v15, %v623_v14  ;;  %v433_v23 = vshrl.u32 %v369_v9, 16  ;;  %v439_v24 = vshll.u32 %v370_v10, 16  ;;  %v397_v35 = vld [vmem:[%s5566_s19 + $0x74] sm:$0x1]  ;;  %v4885_v40 = vld [vmem:[%s5566_s19 + $0x6c] sm:$0xf] }
  0x1a   : > { %v425_v27 = vrot.slane %v423_v19, 5  ;;  %v431_v28 = vrot.slane %v429_v20, 5  ;;  %v636_v29 = vshrl.u32 %v395_v16, 16  ;;  %v639_v30 = vshll.u32 %v395_v16, 16  ;;  %v4886_v45 = vld [vmem:[%s5566_s19 + $0x70] sm:$0xf] }
  0x1b   : > { %v619_v31 = vrot.slane %v618_v21, 4  ;;  %v629_v32 = vrot.slane %v628_v22, 4  ;;  %v435_v33 = vrot.slane %v433_v23, 4  ;;  %v441_v34 = vrot.slane %v439_v24, 5  ;;  %v4887_v53 = vld [vmem:[%s5566_s19 + $0x74] sm:$0x1] }
  0x1c   : > { %v426_v36 = vor.u32 %v425_v27, %v422_v18  ;;  %v638_v37 = vrot.slane %v636_v29, 4  ;;  %v641_v38 = vrot.slane %v639_v30, 5  ;;  %v645_v39 = vshll.u32 %v396_v25, 16  ;;  %v371_v59 = vld [vmem:[%s5566_s19 + $0xc] sm:$0xf] }
  0x1d   : > { %v624_v41 = vsel %vm5578_vm2, %v619_v31, %v623_v14  ;;  %v634_v42 = vsel %vm5578_vm2, %v629_v32, %v633_v17  ;;  %v436_v43 = vor.u32 %v435_v33, %v431_v28  ;;  %v649_v44 = vshrl.u32 %v396_v25, 16  ;;  %v372_v0 = vld [vmem:[%s5566_s19 + $0x10] sm:$0xf]  ;;  %v373_v8 = vld [vmem:[%s5566_s19 + $0x14] sm:$0x1] }
  0x1e   : > { %v4773_v46 = vcombine.low %v624_v41, %v634_v42  ;;  %v427_v47 = vrot.slane %v426_v36, 4  ;;  %v642_v48 = vor.u32 %v641_v38, %v638_v37  ;;  %v647_v49 = vrot.slane %v645_v39, 5  ;;  %v4861_v14 = vld [vmem:[%s5566_s19 + $0xc] sm:$0xf]  ;;  %v4862_v19 = vld [vmem:[%s5566_s19 + $0x10] sm:$0xf] }
  0x1f   : > { %v437_v50 = vrot.slane %v436_v43, 4  ;;  %v651_v51 = vrot.slane %v649_v44, 4  ;;  %v655_v52 = vshll.u32 %v397_v35, 16  ;;  %v1649_v54 = vshrl.u32 %v4885_v40, 16  ;;  %v4863_v31 = vld [vmem:[%s5566_s19 + $0x14] sm:$0x1] }
  0x20   : > { %867 = vrot.lane.b32.xlu0 %v4773_v46, %s5520_s20  ;;  %v432_v55 = vsel %vm5578_vm2, %v427_v47, %v431_v28  ;;  %v643_v56 = vrot.slane %v642_v48, 4  ;;  %v1652_v57 = vshll.u32 %v4885_v40, 16  ;;  %v1658_v58 = vshll.u32 %v4886_v45, 16  ;;  %v399_v46 = vld [vmem:[%s5566_s19 + $0x7c] sm:$0xf] }
  0x21   : > { %v442_v60 = vsel %vm5578_vm2, %v437_v50, %v441_v34  ;;  %v652_v61 = vor.u32 %v651_v51, %v647_v49  ;;  %v657_v62 = vrot.slane %v655_v52, 5  ;;  %v1651_v63 = vrot.slane %v1649_v54, 4  ;;  %v398_v34 = vld [vmem:[%s5566_s19 + $0x78] sm:$0xf]  ;;  %v400_v52 = vld [vmem:[%s5566_s19 + $0x80] sm:$0x1] }
  0x22   : > { %v4765_v1 = vcombine.low %v432_v55, %v442_v60  ;;  %v648_v2 = vsel %vm5578_vm2, %v643_v56, %v647_v49  ;;  %v1654_v3 = vrot.slane %v1652_v57, 5  ;;  %v1660_v4 = vrot.slane %v1658_v58, 5 }
  0x23   : > { %v653_v5 = vrot.slane %v652_v61, 4  ;;  %v1662_v6 = vshrl.u32 %v4886_v45, 16  ;;  %v1668_v7 = vshll.u32 %v4887_v53, 16  ;;  %v444_v9 = vshrl.u32 %v371_v59, 16  ;;  %v4888_v53 = vld [vmem:[%s5566_s19 + $0x78] sm:$0xf] }
  0x24   : > { %851 = vrot.lane.b32.xlu0 %v4765_v1, %s5520_s20  ;;  %v1655_v10 = vor.u32 %v1654_v3, %v1651_v63  ;;  %v447_v11 = vshll.u32 %v371_v59, 16  ;;  %v453_v12 = vshll.u32 %v372_v0, 16  ;;  %v457_v13 = vshrl.u32 %v372_v0, 16  ;;  %v4889_v1 = vld [vmem:[%s5566_s19 + $0x7c] sm:$0xf] }
  0x25   : > { %v658_v15 = vsel %vm5578_vm2, %v653_v5, %v657_v62  ;;  %v1664_v16 = vrot.slane %v1662_v6, 4  ;;  %v1670_v17 = vrot.slane %v1668_v7, 5  ;;  %v446_v18 = vrot.slane %v444_v9, 4  ;;  %v4890_v6 = vld [vmem:[%s5566_s19 + $0x80] sm:$0x1] }
  0x26   : > { %v4774_v20 = vcombine.low %v648_v2, %v658_v15  ;;  %v1656_v21 = vrot.slane %v1655_v10, 4  ;;  %v449_v22 = vrot.slane %v447_v11, 5  ;;  %v455_v23 = vrot.slane %v453_v12, 5  ;;  %v374_v12 = vld [vmem:[%s5566_s19 + $0x18] sm:$0xf] }
  0x27   : > { %v1665_v24 = vor.u32 %v1664_v16, %v1660_v4  ;;  %v459_v25 = vrot.slane %v457_v13, 4  ;;  %v463_v27 = vshll.u32 %v373_v8, 16  ;;  %v1457_v28 = vshrl.u32 %v4861_v14, 16 }
  0x28   : > { %869 = vrot.lane.b32.xlu1 %v4774_v20, %s5520_s20  ;;  %v1661_v29 = vsel %vm5578_vm2, %v1656_v21, %v1660_v4  ;;  %v450_v30 = vor.u32 %v449_v22, %v446_v18  ;;  %v1460_v32 = vshll.u32 %v4861_v14, 16  ;;  %v1466_v33 = vshll.u32 %v4862_v19, 16  ;;  %v375_v21 = vld [vmem:[%s5566_s19 + $0x1c] sm:$0xf] }
  0x29   : > { %v1666_v35 = vrot.slane %v1665_v24, 4  ;;  %v460_v36 = vor.u32 %v459_v25, %v455_v23  ;;  %v465_v37 = vrot.slane %v463_v27, 5  ;;  %v1459_v38 = vrot.slane %v1457_v28, 4  ;;  %v376_v25 = vld [vmem:[%s5566_s19 + $0x20] sm:$0x1] }
  0x2a   : > { %v451_v39 = vrot.slane %v450_v30, 4  ;;  %v1462_v40 = vrot.slane %v1460_v32, 5  ;;  %v1468_v41 = vrot.slane %v1466_v33, 5  ;;  %v1470_v42 = vshrl.u32 %v4862_v19, 16 }
  0x2b   : > { %v1671_v43 = vsel %vm5578_vm2, %v1666_v35, %v1670_v17  ;;  %v461_v44 = vrot.slane %v460_v36, 4  ;;  %v1476_v45 = vshll.u32 %v4863_v31, 16  ;;  %v660_v47 = vshrl.u32 %v398_v34, 16  ;;  %v4864_v36 = vld [vmem:[%s5566_s19 + $0x18] sm:$0xf] }
  0x2c   : > { %v4917_v48 = vcombine.low %v1661_v29, %v1671_v43  ;;  %v456_v49 = vsel %vm5578_vm2, %v451_v39, %v455_v23  ;;  %v1463_v50 = vor.u32 %v1462_v40, %v1459_v38  ;;  %v1472_v51 = vrot.slane %v1470_v42, 4 }
  0x2d   : > { %v466_v54 = vsel %vm5578_vm2, %v461_v44, %v465_v37  ;;  %v1478_v55 = vrot.slane %v1476_v45, 5  ;;  %v662_v56 = vrot.slane %v660_v47, 4  ;;  %v663_v57 = vshll.u32 %v398_v34, 16 }
  0x2e   : > { %1904 = vrot.lane.b32.xlu1 %v4917_v48, %s5520_s20  ;;  %v4766_v58 = vcombine.low %v456_v49, %v466_v54  ;;  %v1464_v59 = vrot.slane %v1463_v50, 4  ;;  %v1473_v60 = vor.u32 %v1472_v51, %v1468_v41  ;;  %v669_v61 = vshll.u32 %v399_v46, 16  ;;  %v4866_v49 = vld [vmem:[%s5566_s19 + $0x20] sm:$0x1] }
  0x2f   : > { %v665_v62 = vrot.slane %v663_v57, 5  ;;  %v673_v63 = vshrl.u32 %v399_v46, 16  ;;  %v679_v0 = vshll.u32 %v400_v52, 16  ;;  %v1673_v2 = vshrl.u32 %v4888_v53, 16 }
  0x30   : > { %853 = vrot.lane.b32.xlu0 %v4766_v58, %s5520_s20  ;;  %v1469_v3 = vsel %vm5578_vm2, %v1464_v59, %v1468_v41  ;;  %v1474_v4 = vrot.slane %v1473_v60, 4  ;;  %v671_v5 = vrot.slane %v669_v61, 5  ;;  %v1676_v7 = vshll.u32 %v4888_v53, 16  ;;  %v4865_v41 = vld [vmem:[%s5566_s19 + $0x1c] sm:$0xf] }
  0x31   : > { %v666_v8 = vor.u32 %v665_v62, %v662_v56  ;;  %v675_v9 = vrot.slane %v673_v63, 4  ;;  %v681_v10 = vrot.slane %v679_v0, 5  ;;  %v1675_v11 = vrot.slane %v1673_v2, 4  ;;  %v402_v60 = vld [vmem:[%s5566_s19 + $0x88] sm:$0xf] }
  0x32   : > { %v1479_v13 = vsel %vm5578_vm2, %v1474_v4, %v1478_v55  ;;  %v1678_v14 = vrot.slane %v1676_v7, 5  ;;  %v1682_v15 = vshll.u32 %v4889_v1, 16  ;;  %v1686_v16 = vshrl.u32 %v4889_v1, 16  ;;  %v401_v55 = vld [vmem:[%s5566_s19 + $0x84] sm:$0xf] }
  0x33   : > { %v4909_v17 = vcombine.low %v1469_v3, %v1479_v13  ;;  %v667_v18 = vrot.slane %v666_v8, 4  ;;  %v676_v19 = vor.u32 %v675_v9, %v671_v5  ;;  %v1692_v20 = vshll.u32 %v4890_v6, 16  ;;  %v403_v8 = vld [vmem:[%s5566_s19 + $0x8c] sm:$0x1] }
  0x34   : > { %v1679_v22 = vor.u32 %v1678_v14, %v1675_v11  ;;  %v1684_v23 = vrot.slane %v1682_v15, 5  ;;  %v1688_v24 = vrot.slane %v1686_v16, 4  ;;  %v468_v27 = vshrl.u32 %v374_v12, 16  ;;  %v4892_v15 = vld [vmem:[%s5566_s19 + $0x88] sm:$0xf] }
  0x35   : > { %1888 = vrot.lane.b32.xlu1 %v4909_v17, %s5520_s20  ;;  %v672_v28 = vsel %vm5578_vm2, %v667_v18, %v671_v5  ;;  %v677_v29 = vrot.slane %v676_v19, 4  ;;  %v1694_v30 = vrot.slane %v1692_v20, 5  ;;  %v471_v31 = vshll.u32 %v374_v12, 16 }
  0x36   : > { %v1680_v32 = vrot.slane %v1679_v22, 4  ;;  %v1689_v33 = vor.u32 %v1688_v24, %v1684_v23  ;;  %v470_v34 = vrot.slane %v468_v27, 4  ;;  %v477_v35 = vshll.u32 %v375_v21, 16  ;;  %v4893_v27 = vld [vmem:[%s5566_s19 + $0x8c] sm:$0x1] }
  0x37   : > { %v682_v37 = vsel %vm5578_vm2, %v677_v29, %v681_v10  ;;  %v473_v38 = vrot.slane %v471_v31, 5  ;;  %v481_v39 = vshrl.u32 %v375_v21, 16  ;;  %v487_v40 = vshll.u32 %v376_v25, 16  ;;  %v4891_v10 = vld [vmem:[%s5566_s19 + $0x84] sm:$0xf] }
  0x38   : > { %v4775_v42 = vcombine.low %v672_v28, %v682_v37  ;;  %v1685_v43 = vsel %vm5578_vm2, %v1680_v32, %v1684_v23  ;;  %v1690_v44 = vrot.slane %v1689_v33, 4  ;;  %v479_v45 = vrot.slane %v477_v35, 5  ;;  %v378_v35 = vld [vmem:[%s5566_s19 + $0x28] sm:$0xf] }
  0x39   : > { %v474_v46 = vor.u32 %v473_v38, %v470_v34  ;;  %v483_v47 = vrot.slane %v481_v39, 4  ;;  %v489_v48 = vrot.slane %v487_v40, 5  ;;  %v1481_v50 = vshrl.u32 %v4864_v36, 16 }
  0x3a   : > { %871 = vrot.lane.b32.xlu0 %v4775_v42, %s5520_s20  ;;  %v1695_v51 = vsel %vm5578_vm2, %v1690_v44, %v1694_v30  ;;  %v1484_v52 = vshll.u32 %v4864_v36, 16  ;;  %v1490_v53 = vshll.u32 %v4865_v41, 16  ;;  %v1494_v54 = vshrl.u32 %v4865_v41, 16  ;;  %v377_v30 = vld [vmem:[%s5566_s19 + $0x24] sm:$0xf] }
  0x3b   : > { %v4918_v56 = vcombine.low %v1685_v43, %v1695_v51  ;;  %v475_v57 = vrot.slane %v474_v46, 4  ;;  %v484_v58 = vor.u32 %v483_v47, %v479_v45  ;;  %v1483_v59 = vrot.slane %v1481_v50, 4  ;;  %v379_v43 = vld [vmem:[%s5566_s19 + $0x2c] sm:$0x1] }
  0x3c   : > { %v1486_v61 = vrot.slane %v1484_v52, 5  ;;  %v1492_v62 = vrot.slane %v1490_v53, 5  ;;  %v1496_v63 = vrot.slane %v1494_v54, 4  ;;  %v1500_v0 = vshll.u32 %v4866_v49, 16  ;;  %v4867_v49 = vld [vmem:[%s5566_s19 + $0x24] sm:$0xf] }
  0x3d   : > { %1906 = vrot.lane.b32.xlu1 %v4918_v56, %s5520_s20  ;;  %v480_v1 = vsel %vm5578_vm2, %v475_v57, %v479_v45  ;;  %v485_v2 = vrot.slane %v484_v58, 4  ;;  %v684_v3 = vshrl.u32 %v401_v55, 16  ;;  %v687_v4 = vshll.u32 %v401_v55, 16  ;;  %v4868_v58 = vld [vmem:[%s5566_s19 + $0x28] sm:$0xf] }
  0x3e   : > { %v1487_v5 = vor.u32 %v1486_v61, %v1483_v59  ;;  %v1497_v6 = vor.u32 %v1496_v63, %v1492_v62  ;;  %v1502_v7 = vrot.slane %v1500_v0, 5  ;;  %v693_v9 = vshll.u32 %v402_v60, 16 }
  0x3f   : > { %v490_v11 = vsel %vm5578_vm2, %v485_v2, %v489_v48  ;;  %v686_v12 = vrot.slane %v684_v3, 4  ;;  %v689_v13 = vrot.slane %v687_v4, 5  ;;  %v697_v14 = vshrl.u32 %v402_v60, 16  ;;  %v4869_v2 = vld [vmem:[%s5566_s19 + $0x2c] sm:$0x1] }
  0x40   : > { %v4767_v16 = vcombine.low %v480_v1, %v490_v11  ;;  %v1488_v17 = vrot.slane %v1487_v5, 4  ;;  %v1498_v18 = vrot.slane %v1497_v6, 4  ;;  %v695_v19 = vrot.slane %v693_v9, 5 }
  0x41   : > { %v690_v20 = vor.u32 %v689_v13, %v686_v12  ;;  %v699_v21 = vrot.slane %v697_v14, 4  ;;  %v703_v22 = vshll.u32 %v403_v8, 16  ;;  %v1697_v23 = vshrl.u32 %v4891_v10, 16  ;;  %v404_v8 = vld [vmem:[%s5566_s19 + $0x90] sm:$0xf] }
  0x42   : > { %855 = vrot.lane.b32.xlu0 %v4767_v16, %s5520_s20  ;;  %v1493_v24 = vsel %vm5578_vm2, %v1488_v17, %v1492_v62  ;;  %v1503_v25 = vsel %vm5578_vm2, %v1498_v18, %v1502_v7  ;;  %v1700_v28 = vshll.u32 %v4891_v10, 16  ;;  %v1706_v29 = vshll.u32 %v4892_v15, 16  ;;  %v405_v13 = vld [vmem:[%s5566_s19 + $0x94] sm:$0xf] }
  0x43   : > { %v4910_v31 = vcombine.low %v1493_v24, %v1503_v25  ;;  %v691_v32 = vrot.slane %v690_v20, 4  ;;  %v700_v33 = vor.u32 %v699_v21, %v695_v19  ;;  %v705_v34 = vrot.slane %v703_v22, 5  ;;  %v406_v21 = vld [vmem:[%s5566_s19 + $0x98] sm:$0x1] }
  0x44   : > { %v1699_v36 = vrot.slane %v1697_v23, 4  ;;  %v1702_v37 = vrot.slane %v1700_v28, 5  ;;  %v1708_v38 = vrot.slane %v1706_v29, 5  ;;  %v1710_v39 = vshrl.u32 %v4892_v15, 16  ;;  %v4894_v28 = vld [vmem:[%s5566_s19 + $0x90] sm:$0xf] }
  0x45   : > { %1890 = vrot.lane.b32.xlu1 %v4910_v31, %s5520_s20  ;;  %v696_v40 = vsel %vm5578_vm2, %v691_v32, %v695_v19  ;;  %v701_v41 = vrot.slane %v700_v33, 4  ;;  %v1716_v42 = vshll.u32 %v4893_v27, 16  ;;  %v492_v44 = vshrl.u32 %v377_v30, 16  ;;  %v4895_v33 = vld [vmem:[%s5566_s19 + $0x94] sm:$0xf] }
  0x46   : > { %v1703_v45 = vor.u32 %v1702_v37, %v1699_v36  ;;  %v1712_v46 = vrot.slane %v1710_v39, 4  ;;  %v495_v47 = vshll.u32 %v377_v30, 16  ;;  %v501_v48 = vshll.u32 %v378_v35, 16 }
  0x47   : > { %v706_v50 = vsel %vm5578_vm2, %v701_v41, %v705_v34  ;;  %v1718_v51 = vrot.slane %v1716_v42, 5  ;;  %v494_v52 = vrot.slane %v492_v44, 4  ;;  %v505_v53 = vshrl.u32 %v378_v35, 16 }
  0x48   : > { %v4776_v54 = vcombine.low %v696_v40, %v706_v50  ;;  %v1704_v55 = vrot.slane %v1703_v45, 4  ;;  %v1713_v56 = vor.u32 %v1712_v46, %v1708_v38  ;;  %v497_v57 = vrot.slane %v495_v47, 5  ;;  %v4896_v40 = vld [vmem:[%s5566_s19 + $0x98] sm:$0x1]  ;;  %v380_v47 = vld [vmem:[%s5566_s19 + $0x30] sm:$0xf] }
  0x49   : > { %v503_v59 = vrot.slane %v501_v48, 5  ;;  %v507_v60 = vrot.slane %v505_v53, 4  ;;  %v511_v61 = vshll.u32 %v379_v43, 16  ;;  %v1505_v62 = vshrl.u32 %v4867_v49, 16 }
  0x4a   : > { %873 = vrot.lane.b32.xlu0 %v4776_v54, %s5520_s20  ;;  %v1709_v63 = vsel %vm5578_vm2, %v1704_v55, %v1708_v38  ;;  %v1714_v0 = vrot.slane %v1713_v56, 4  ;;  %v498_v1 = vor.u32 %v497_v57, %v494_v52  ;;  %v1508_v3 = vshll.u32 %v4867_v49, 16  ;;  %v381_v52 = vld [vmem:[%s5566_s19 + $0x34] sm:$0xf] }
  0x4b   : > { %v508_v4 = vor.u32 %v507_v60, %v503_v59  ;;  %v513_v5 = vrot.slane %v511_v61, 5  ;;  %v1507_v6 = vrot.slane %v1505_v62, 4  ;;  %v1514_v7 = vshll.u32 %v4868_v58, 16 }
  0x4c   : > { %v1719_v9 = vsel %vm5578_vm2, %v1714_v0, %v1718_v51  ;;  %v499_v10 = vrot.slane %v498_v1, 4  ;;  %v1510_v11 = vrot.slane %v1508_v3, 5  ;;  %v1518_v12 = vshrl.u32 %v4868_v58, 16 }
  0x4d   : > { %v4919_v14 = vcombine.low %v1709_v63, %v1719_v9  ;;  %v509_v15 = vrot.slane %v508_v4, 4  ;;  %v1516_v16 = vrot.slane %v1514_v7, 5  ;;  %v1524_v17 = vshll.u32 %v4869_v2, 16  ;;  %v382_v63 = vld [vmem:[%s5566_s19 + $0x38] sm:$0x1] }
  0x4e   : > { %v504_v18 = vsel %vm5578_vm2, %v499_v10, %v503_v59  ;;  %v1511_v19 = vor.u32 %v1510_v11, %v1507_v6  ;;  %v1520_v20 = vrot.slane %v1518_v12, 4  ;;  %v708_v22 = vshrl.u32 %v404_v8, 16  ;;  %v4870_v6 = vld [vmem:[%s5566_s19 + $0x30] sm:$0xf]  ;;  %v4871_v11 = vld [vmem:[%s5566_s19 + $0x34] sm:$0xf] }
  0x4f   : > { %1908 = vrot.lane.b32.xlu1 %v4919_v14, %s5520_s20  ;;  %v514_v23 = vsel %vm5578_vm2, %v509_v15, %v513_v5  ;;  %v1526_v24 = vrot.slane %v1524_v17, 5  ;;  %v711_v25 = vshll.u32 %v404_v8, 16  ;;  %v717_v27 = vshll.u32 %v405_v13, 16 }
  0x50   : > { %v4768_v29 = vcombine.low %v504_v18, %v514_v23  ;;  %v1512_v30 = vrot.slane %v1511_v19, 4  ;;  %v1521_v31 = vor.u32 %v1520_v20, %v1516_v16  ;;  %v710_v32 = vrot.slane %v708_v22, 4  ;;  %v4872_v18 = vld [vmem:[%s5566_s19 + $0x38] sm:$0x1] }
  0x51   : > { %v713_v34 = vrot.slane %v711_v25, 5  ;;  %v719_v35 = vrot.slane %v717_v27, 5  ;;  %v721_v36 = vshrl.u32 %v405_v13, 16  ;;  %v727_v37 = vshll.u32 %v406_v21, 16  ;;  %v407_v25 = vld [vmem:[%s5566_s19 + $0x9c] sm:$0xf] }
  0x52   : > { %857 = vrot.lane.b32.xlu0 %v4768_v29, %s5520_s20  ;;  %v1517_v38 = vsel %vm5578_vm2, %v1512_v30, %v1516_v16  ;;  %v1522_v39 = vrot.slane %v1521_v31, 4  ;;  %v1721_v41 = vshrl.u32 %v4894_v28, 16  ;;  %v1724_v42 = vshll.u32 %v4894_v28, 16  ;;  %v408_v31 = vld [vmem:[%s5566_s19 + $0xa0] sm:$0xf] }
  0x53   : > { %v714_v43 = vor.u32 %v713_v34, %v710_v32  ;;  %v723_v44 = vrot.slane %v721_v36, 4  ;;  %v729_v45 = vrot.slane %v727_v37, 5  ;;  %v1730_v46 = vshll.u32 %v4895_v33, 16 }
  0x54   : > { %v1527_v48 = vsel %vm5578_vm2, %v1522_v39, %v1526_v24  ;;  %v1723_v49 = vrot.slane %v1721_v41, 4  ;;  %v1726_v50 = vrot.slane %v1724_v42, 5  ;;  %v1734_v51 = vshrl.u32 %v4895_v33, 16 }
  0x55   : > { %v4911_v53 = vcombine.low %v1517_v38, %v1527_v48  ;;  %v715_v54 = vrot.slane %v714_v43, 4  ;;  %v724_v55 = vor.u32 %v723_v44, %v719_v35  ;;  %v1732_v56 = vrot.slane %v1730_v46, 5  ;;  %v409_v43 = vld [vmem:[%s5566_s19 + $0xa4] sm:$0x1] }
  0x56   : > { %v1727_v57 = vor.u32 %v1726_v50, %v1723_v49  ;;  %v1736_v58 = vrot.slane %v1734_v51, 4  ;;  %v1740_v59 = vshll.u32 %v4896_v40, 16  ;;  %v516_v60 = vshrl.u32 %v380_v47, 16  ;;  %v4898_v50 = vld [vmem:[%s5566_s19 + $0xa0] sm:$0xf] }
  0x57   : > { %1892 = vrot.lane.b32.xlu1 %v4911_v53, %s5520_s20  ;;  %v720_v61 = vsel %vm5578_vm2, %v715_v54, %v719_v35  ;;  %v725_v62 = vrot.slane %v724_v55, 4  ;;  %v519_v0 = vshll.u32 %v380_v47, 16  ;;  %v525_v1 = vshll.u32 %v381_v52, 16 }
  0x58   : > { %v1728_v2 = vrot.slane %v1727_v57, 4  ;;  %v1737_v3 = vor.u32 %v1736_v58, %v1732_v56  ;;  %v1742_v4 = vrot.slane %v1740_v59, 5  ;;  %v518_v5 = vrot.slane %v516_v60, 4 }
  0x59   : > { %v730_v7 = vsel %vm5578_vm2, %v725_v62, %v729_v45  ;;  %v521_v8 = vrot.slane %v519_v0, 5  ;;  %v527_v9 = vrot.slane %v525_v1, 5  ;;  %v529_v10 = vshrl.u32 %v381_v52, 16  ;;  %v4897_v45 = vld [vmem:[%s5566_s19 + $0x9c] sm:$0xf] }
  0x5a   : > { %v4777_v12 = vcombine.low %v720_v61, %v730_v7  ;;  %v1733_v13 = vsel %vm5578_vm2, %v1728_v2, %v1732_v56  ;;  %v1738_v14 = vrot.slane %v1737_v3, 4  ;;  %v535_v15 = vshll.u32 %v382_v63, 16  ;;  %v4899_v61 = vld [vmem:[%s5566_s19 + $0xa4] sm:$0x1]  ;;  %v383_v0 = vld [vmem:[%s5566_s19 + $0x3c] sm:$0xf] }
  0x5b   : > { %v522_v16 = vor.u32 %v521_v8, %v518_v5  ;;  %v531_v17 = vrot.slane %v529_v10, 4  ;;  %v1529_v19 = vshrl.u32 %v4870_v6, 16  ;;  %v1532_v20 = vshll.u32 %v4870_v6, 16  ;;  %v384_v5 = vld [vmem:[%s5566_s19 + $0x40] sm:$0xf] }
  0x5c   : > { %875 = vrot.lane.b32.xlu0 %v4777_v12, %s5520_s20  ;;  %v1743_v21 = vsel %vm5578_vm2, %v1738_v14, %v1742_v4  ;;  %v537_v22 = vrot.slane %v535_v15, 5  ;;  %v1538_v23 = vshll.u32 %v4871_v11, 16  ;;  %v1542_v24 = vshrl.u32 %v4871_v11, 16  ;;  %v385_v10 = vld [vmem:[%s5566_s19 + $0x44] sm:$0x1] }
  0x5d   : > { %v4920_v27 = vcombine.low %v1733_v13, %v1743_v21  ;;  %v523_v28 = vrot.slane %v522_v16, 4  ;;  %v532_v29 = vor.u32 %v531_v17, %v527_v9  ;;  %v1531_v30 = vrot.slane %v1529_v19, 4  ;;  %v4873_v15 = vld [vmem:[%s5566_s19 + $0x3c] sm:$0xf] }
  0x5e   : > { %v1534_v32 = vrot.slane %v1532_v20, 5  ;;  %v1540_v33 = vrot.slane %v1538_v23, 5  ;;  %v1544_v34 = vrot.slane %v1542_v24, 4  ;;  %v1548_v35 = vshll.u32 %v4872_v18, 16  ;;  %v4874_v20 = vld [vmem:[%s5566_s19 + $0x40] sm:$0xf] }
  0x5f   : > { %1910 = vrot.lane.b32.xlu1 %v4920_v27, %s5520_s20  ;;  %v528_v36 = vsel %vm5578_vm2, %v523_v28, %v527_v9  ;;  %v533_v37 = vrot.slane %v532_v29, 4  ;;  %v732_v38 = vshrl.u32 %v407_v25, 16  ;;  %v735_v39 = vshll.u32 %v407_v25, 16 }
  0x60   : > { %v1535_v40 = vor.u32 %v1534_v32, %v1531_v30  ;;  %v1545_v41 = vor.u32 %v1544_v34, %v1540_v33  ;;  %v1550_v42 = vrot.slane %v1548_v35, 5  ;;  %v741_v44 = vshll.u32 %v408_v31, 16 }
  0x61   : > { %v538_v46 = vsel %vm5578_vm2, %v533_v37, %v537_v22  ;;  %v734_v47 = vrot.slane %v732_v38, 4  ;;  %v737_v48 = vrot.slane %v735_v39, 5  ;;  %v745_v49 = vshrl.u32 %v408_v31, 16  ;;  %v4875_v37 = vld [vmem:[%s5566_s19 + $0x44] sm:$0x1] }
  0x62   : > { %v4769_v51 = vcombine.low %v528_v36, %v538_v46  ;;  %v1536_v52 = vrot.slane %v1535_v40, 4  ;;  %v1546_v53 = vrot.slane %v1545_v41, 4  ;;  %v743_v54 = vrot.slane %v741_v44, 5  ;;  %v410_v39 = vld [vmem:[%s5566_s19 + $0xa8] sm:$0xf] }
  0x63   : > { %v738_v55 = vor.u32 %v737_v48, %v734_v47  ;;  %v747_v56 = vrot.slane %v745_v49, 4  ;;  %v751_v57 = vshll.u32 %v409_v43, 16  ;;  %v1745_v58 = vshrl.u32 %v4897_v45, 16  ;;  %v411_v44 = vld [vmem:[%s5566_s19 + $0xac] sm:$0xf] }
  0x64   : > { %859 = vrot.lane.b32.xlu0 %v4769_v51, %s5520_s20  ;;  %v1541_v59 = vsel %vm5578_vm2, %v1536_v52, %v1540_v33  ;;  %v1551_v60 = vsel %vm5578_vm2, %v1546_v53, %v1550_v42  ;;  %v1748_v62 = vshll.u32 %v4897_v45, 16  ;;  %v1754_v63 = vshll.u32 %v4898_v50, 16  ;;  %v412_v49 = vld [vmem:[%s5566_s19 + $0xb0] sm:$0x1] }
  0x65   : > { %v4912_v1 = vcombine.low %v1541_v59, %v1551_v60  ;;  %v739_v2 = vrot.slane %v738_v55, 4  ;;  %v748_v3 = vor.u32 %v747_v56, %v743_v54  ;;  %v753_v4 = vrot.slane %v751_v57, 5  ;;  %v4901_v59 = vld [vmem:[%s5566_s19 + $0xac] sm:$0xf] }
  0x66   : > { %v1747_v6 = vrot.slane %v1745_v58, 4  ;;  %v1750_v7 = vrot.slane %v1748_v62, 5  ;;  %v1756_v8 = vrot.slane %v1754_v63, 5  ;;  %v1758_v9 = vshrl.u32 %v4898_v50, 16 }
  0x67   : > { %1894 = vrot.lane.b32.xlu1 %v4912_v1, %s5520_s20  ;;  %v744_v11 = vsel %vm5578_vm2, %v739_v2, %v743_v54  ;;  %v749_v12 = vrot.slane %v748_v3, 4  ;;  %v1764_v13 = vshll.u32 %v4899_v61, 16  ;;  %v540_v14 = vshrl.u32 %v383_v0, 16  ;;  %v4900_v54 = vld [vmem:[%s5566_s19 + $0xa8] sm:$0xf] }
  0x68   : > { %v1751_v16 = vor.u32 %v1750_v7, %v1747_v6  ;;  %v1760_v17 = vrot.slane %v1758_v9, 4  ;;  %v543_v18 = vshll.u32 %v383_v0, 16  ;;  %v549_v19 = vshll.u32 %v384_v5, 16  ;;  %v386_v9 = vld [vmem:[%s5566_s19 + $0x48] sm:$0xf] }
  0x69   : > { %v754_v21 = vsel %vm5578_vm2, %v749_v12, %v753_v4  ;;  %v1766_v22 = vrot.slane %v1764_v13, 5  ;;  %v542_v23 = vrot.slane %v540_v14, 4  ;;  %v553_v24 = vshrl.u32 %v384_v5, 16 }
  0x6a   : > { %v4778_v25 = vcombine.low %v744_v11, %v754_v21  ;;  %v1752_v27 = vrot.slane %v1751_v16, 4  ;;  %v1761_v28 = vor.u32 %v1760_v17, %v1756_v8  ;;  %v545_v29 = vrot.slane %v543_v18, 5 }
  0x6b   : > { %v551_v30 = vrot.slane %v549_v19, 5  ;;  %v555_v31 = vrot.slane %v553_v24, 4  ;;  %v559_v32 = vshll.u32 %v385_v10, 16  ;;  %v1553_v33 = vshrl.u32 %v4873_v15, 16 }
  0x6c   : > { %877 = vrot.lane.b32.xlu0 %v4778_v25, %s5520_s20  ;;  %v1757_v34 = vsel %vm5578_vm2, %v1752_v27, %v1756_v8  ;;  %v1762_v35 = vrot.slane %v1761_v28, 4  ;;  %v546_v36 = vor.u32 %v545_v29, %v542_v23  ;;  %v1556_v38 = vshll.u32 %v4873_v15, 16  ;;  %v4902_v8 = vld [vmem:[%s5566_s19 + $0xb0] sm:$0x1] }
  0x6d   : > { %v556_v40 = vor.u32 %v555_v31, %v551_v30  ;;  %v561_v41 = vrot.slane %v559_v32, 5  ;;  %v1555_v42 = vrot.slane %v1553_v33, 4  ;;  %v1562_v43 = vshll.u32 %v4874_v20, 16  ;;  %v388_v28 = vld [vmem:[%s5566_s19 + $0x50] sm:$0x1] }
  0x6e   : > { %v1767_v45 = vsel %vm5578_vm2, %v1762_v35, %v1766_v22  ;;  %v547_v46 = vrot.slane %v546_v36, 4  ;;  %v1558_v47 = vrot.slane %v1556_v38, 5  ;;  %v1566_v48 = vshrl.u32 %v4874_v20, 16  ;;  %v387_v22 = vld [vmem:[%s5566_s19 + $0x4c] sm:$0xf] }
  0x6f   : > { %v4921_v50 = vcombine.low %v1757_v34, %v1767_v45  ;;  %v557_v51 = vrot.slane %v556_v40, 4  ;;  %v1564_v52 = vrot.slane %v1562_v43, 5  ;;  %v1572_v53 = vshll.u32 %v4875_v37, 16  ;;  %v4876_v33 = vld [vmem:[%s5566_s19 + $0x48] sm:$0xf] }
  0x70   : > { %v552_v55 = vsel %vm5578_vm2, %v547_v46, %v551_v30  ;;  %v1559_v56 = vor.u32 %v1558_v47, %v1555_v42  ;;  %v1568_v57 = vrot.slane %v1566_v48, 4  ;;  %v756_v58 = vshrl.u32 %v410_v39, 16  ;;  %v4877_v38 = vld [vmem:[%s5566_s19 + $0x4c] sm:$0xf]  ;;  %v4878_v47 = vld [vmem:[%s5566_s19 + $0x50] sm:$0x1] }
  0x71   : > { %1912 = vrot.lane.b32.xlu1 %v4921_v50, %s5520_s20  ;;  %v562_v60 = vsel %vm5578_vm2, %v557_v51, %v561_v41  ;;  %v1574_v61 = vrot.slane %v1572_v53, 5  ;;  %v759_v62 = vshll.u32 %v410_v39, 16  ;;  %v765_v63 = vshll.u32 %v411_v44, 16 }
  0x72   : > { %v4770_v0 = vcombine.low %v552_v55, %v562_v60  ;;  %v1560_v1 = vrot.slane %v1559_v56, 4  ;;  %v1569_v2 = vor.u32 %v1568_v57, %v1564_v52  ;;  %v758_v3 = vrot.slane %v756_v58, 4 }
  0x73   : > { %v761_v4 = vrot.slane %v759_v62, 5  ;;  %v767_v5 = vrot.slane %v765_v63, 5  ;;  %v769_v6 = vshrl.u32 %v411_v44, 16  ;;  %v775_v7 = vshll.u32 %v412_v49, 16 }
  0x74   : > { %861 = vrot.lane.b32.xlu0 %v4770_v0, %s5520_s20  ;;  %v1565_v10 = vsel %vm5578_vm2, %v1560_v1, %v1564_v52  ;;  %v1570_v11 = vrot.slane %v1569_v2, 4  ;;  %v1769_v12 = vshrl.u32 %v4900_v54, 16  ;;  %v1772_v13 = vshll.u32 %v4900_v54, 16  ;;  %v413_v52 = vld [vmem:[%s5566_s19 + $0xb4] sm:$0xf] }
  0x75   : > { %v762_v14 = vor.u32 %v761_v4, %v758_v3  ;;  %v771_v15 = vrot.slane %v769_v6, 4  ;;  %v777_v16 = vrot.slane %v775_v7, 5  ;;  %v1778_v17 = vshll.u32 %v4901_v59, 16  ;;  %v414_v1 = vld [vmem:[%s5566_s19 + $0xb8] sm:$0xf] }
  0x76   : > { %v1575_v18 = vsel %vm5578_vm2, %v1570_v11, %v1574_v61  ;;  %v1771_v19 = vrot.slane %v1769_v12, 4  ;;  %v1774_v20 = vrot.slane %v1772_v13, 5  ;;  %v1782_v21 = vshrl.u32 %v4901_v59, 16  ;;  %v415_v13 = vld [vmem:[%s5566_s19 + $0xbc] sm:$0x1] }
  0x77   : > { %v4913_v23 = vcombine.low %v1565_v10, %v1575_v18  ;;  %v763_v24 = vrot.slane %v762_v14, 4  ;;  %v772_v25 = vor.u32 %v771_v15, %v767_v5  ;;  %v1780_v27 = vrot.slane %v1778_v17, 5  ;;  %v4903_v15 = vld [vmem:[%s5566_s19 + $0xb4] sm:$0xf] }
  0x78   : > { %v1775_v29 = vor.u32 %v1774_v20, %v1771_v19  ;;  %v1784_v30 = vrot.slane %v1782_v21, 4  ;;  %v1788_v31 = vshll.u32 %v4902_v8, 16  ;;  %v564_v32 = vshrl.u32 %v386_v9, 16  ;;  %v4904_v20 = vld [vmem:[%s5566_s19 + $0xb8] sm:$0xf] }
  0x79   : > { %1896 = vrot.lane.b32.xlu1 %v4913_v23, %s5520_s20  ;;  %v768_v34 = vsel %vm5578_vm2, %v763_v24, %v767_v5  ;;  %v773_v35 = vrot.slane %v772_v25, 4  ;;  %v567_v36 = vshll.u32 %v386_v9, 16  ;;  %v573_v37 = vshll.u32 %v387_v22, 16  ;;  %v4905_v25 = vld [vmem:[%s5566_s19 + $0xbc] sm:$0x1] }
  0x7a   : > { %v1776_v39 = vrot.slane %v1775_v29, 4  ;;  %v1785_v40 = vor.u32 %v1784_v30, %v1780_v27  ;;  %v1790_v41 = vrot.slane %v1788_v31, 5  ;;  %v566_v42 = vrot.slane %v564_v32, 4  ;;  %v389_v31 = vld [vmem:[%s5566_s19 + $0x54] sm:$0xf] }
  0x7b   : > { %v778_v43 = vsel %vm5578_vm2, %v773_v35, %v777_v16  ;;  %v569_v44 = vrot.slane %v567_v36, 5  ;;  %v575_v45 = vrot.slane %v573_v37, 5  ;;  %v577_v46 = vshrl.u32 %v387_v22, 16 }
  0x7c   : > { %v4779_v48 = vcombine.low %v768_v34, %v778_v43  ;;  %v1781_v49 = vsel %vm5578_vm2, %v1776_v39, %v1780_v27  ;;  %v1786_v50 = vrot.slane %v1785_v40, 4  ;;  %v583_v51 = vshll.u32 %v388_v28, 16  ;;  %v390_v40 = vld [vmem:[%s5566_s19 + $0x58] sm:$0xf] }
  0x7d   : > { %v570_v53 = vor.u32 %v569_v44, %v566_v42  ;;  %v579_v54 = vrot.slane %v577_v46, 4  ;;  %v1577_v55 = vshrl.u32 %v4876_v33, 16  ;;  %v1580_v56 = vshll.u32 %v4876_v33, 16  ;;  %v4879_v46 = vld [vmem:[%s5566_s19 + $0x54] sm:$0xf] }
  0x7e   : > { %879 = vrot.lane.b32.xlu0 %v4779_v48, %s5520_s20  ;;  %v1791_v57 = vsel %vm5578_vm2, %v1786_v50, %v1790_v41  ;;  %v585_v58 = vrot.slane %v583_v51, 5  ;;  %v1586_v59 = vshll.u32 %v4877_v38, 16  ;;  %v1590_v60 = vshrl.u32 %v4877_v38, 16 }
  0x7f   : > { %v4922_v61 = vcombine.low %v1781_v49, %v1791_v57  ;;  %v571_v62 = vrot.slane %v570_v53, 4  ;;  %v580_v63 = vor.u32 %v579_v54, %v575_v45  ;;  %v1579_v0 = vrot.slane %v1577_v55, 4 }
  0x80   : > { %v1582_v2 = vrot.slane %v1580_v56, 5  ;;  %v1588_v3 = vrot.slane %v1586_v59, 5  ;;  %v1592_v4 = vrot.slane %v1590_v60, 4  ;;  %v1596_v5 = vshll.u32 %v4878_v47, 16 }
  0x81   : > { %1914 = vrot.lane.b32.xlu1 %v4922_v61, %s5520_s20  ;;  %v576_v6 = vsel %vm5578_vm2, %v571_v62, %v575_v45  ;;  %v581_v7 = vrot.slane %v580_v63, 4  ;;  %v780_v8 = vshrl.u32 %v413_v52, 16  ;;  %v783_v9 = vshll.u32 %v413_v52, 16  ;;  %v391_v45 = vld [vmem:[%s5566_s19 + $0x5c] sm:$0x1] }
  0x82   : > { %v1583_v10 = vor.u32 %v1582_v2, %v1579_v0  ;;  %v1593_v11 = vor.u32 %v1592_v4, %v1588_v3  ;;  %v1598_v12 = vrot.slane %v1596_v5, 5  ;;  %v789_v14 = vshll.u32 %v414_v1, 16  ;;  %v4880_v63 = vld [vmem:[%s5566_s19 + $0x58] sm:$0xf] }
  0x83   : > { %v586_v16 = vsel %vm5578_vm2, %v581_v7, %v585_v58  ;;  %v782_v17 = vrot.slane %v780_v8, 4  ;;  %v785_v18 = vrot.slane %v783_v9, 5  ;;  %v793_v19 = vshrl.u32 %v414_v1, 16  ;;  %v4881_v7 = vld [vmem:[%s5566_s19 + $0x5c] sm:$0x1] }
  0x84   : > { %v4771_v21 = vcombine.low %v576_v6, %v586_v16  ;;  %v1584_v22 = vrot.slane %v1583_v10, 4  ;;  %v1594_v23 = vrot.slane %v1593_v11, 4  ;;  %v791_v24 = vrot.slane %v789_v14, 5 }
  0x85   : > { %v786_v27 = vor.u32 %v785_v18, %v782_v17  ;;  %v795_v28 = vrot.slane %v793_v19, 4  ;;  %v799_v29 = vshll.u32 %v415_v13, 16  ;;  %v1793_v30 = vshrl.u32 %v4903_v15, 16  ;;  %v4906_v13 = vld [vmem:[%s5566_s19 + $0xc0] sm:$0xf] }
  0x86   : > { %863 = vrot.lane.b32.xlu0 %v4771_v21, %s5520_s20  ;;  %v1589_v32 = vsel %vm5578_vm2, %v1584_v22, %v1588_v3  ;;  %v1599_v33 = vsel %vm5578_vm2, %v1594_v23, %v1598_v12  ;;  %v1796_v34 = vshll.u32 %v4903_v15, 16  ;;  %v1802_v35 = vshll.u32 %v4904_v20, 16  ;;  %v4907_v18 = vld [vmem:[%s5566_s19 + $0xc4] sm:$0xf]  ;;  %v4908_v23 = vld [vmem:[%s5566_s19 + $0xc8] sm:$0x1] }
  0x87   : > { %v4914_v36 = vcombine.low %v1589_v32, %v1599_v33  ;;  %v787_v37 = vrot.slane %v786_v27, 4  ;;  %v796_v38 = vor.u32 %v795_v28, %v791_v24  ;;  %v801_v39 = vrot.slane %v799_v29, 5  ;;  %v4882_v29 = vld [vmem:[%s5566_s19 + $0x60] sm:$0xf] }
  0x88   : > { %v1795_v41 = vrot.slane %v1793_v30, 4  ;;  %v1798_v42 = vrot.slane %v1796_v34, 5  ;;  %v1804_v43 = vrot.slane %v1802_v35, 5  ;;  %v1806_v44 = vshrl.u32 %v4904_v20, 16  ;;  %v4883_v30 = vld [vmem:[%s5566_s19 + $0x64] sm:$0xf] }
  0x89   : > { %1898 = vrot.lane.b32.xlu1 %v4914_v36, %s5520_s20  ;;  %v792_v47 = vsel %vm5578_vm2, %v787_v37, %v791_v24  ;;  %v797_v48 = vrot.slane %v796_v38, 4  ;;  %v1812_v49 = vshll.u32 %v4905_v25, 16  ;;  %v588_v50 = vshrl.u32 %v389_v31, 16 }
  0x8a   : > { %v1799_v51 = vor.u32 %v1798_v42, %v1795_v41  ;;  %v1808_v52 = vrot.slane %v1806_v44, 4  ;;  %v591_v53 = vshll.u32 %v389_v31, 16  ;;  %v597_v54 = vshll.u32 %v390_v40, 16  ;;  %v5133_v44 = vld [vmem:[%s5566_s19 + $0x18] sm:$0xf] }
  0x8b   : > { %v802_v55 = vsel %vm5578_vm2, %v797_v48, %v801_v39  ;;  %v1814_v56 = vrot.slane %v1812_v49, 5  ;;  %v590_v57 = vrot.slane %v588_v50, 4  ;;  %v601_v58 = vshrl.u32 %v390_v40, 16  ;;  %v5134_v49 = vld [vmem:[%s5566_s19 + $0x1c] sm:$0xf] }
  0x8c   : > { %v4780_v59 = vcombine.low %v792_v47, %v802_v55  ;;  %v1800_v60 = vrot.slane %v1799_v51, 4  ;;  %v1809_v61 = vor.u32 %v1808_v52, %v1804_v43  ;;  %v593_v62 = vrot.slane %v591_v53, 5 }
  0x8d   : > { %v599_v0 = vrot.slane %v597_v54, 5  ;;  %v603_v1 = vrot.slane %v601_v58, 4  ;;  %v607_v2 = vshll.u32 %v391_v45, 16  ;;  %v1601_v3 = vshrl.u32 %v4879_v46, 16 }
  0x8e   : > { %881 = vrot.lane.b32.xlu0 %v4780_v59, %s5520_s20  ;;  %v1805_v4 = vsel %vm5578_vm2, %v1800_v60, %v1804_v43  ;;  %v1810_v5 = vrot.slane %v1809_v61, 4  ;;  %v594_v6 = vor.u32 %v593_v62, %v590_v57  ;;  %v1604_v8 = vshll.u32 %v4879_v46, 16  ;;  %v4884_v43 = vld [vmem:[%s5566_s19 + $0x68] sm:$0x1] }
  0x8f   : > { %v604_v9 = vor.u32 %v603_v1, %v599_v0  ;;  %v609_v10 = vrot.slane %v607_v2, 5  ;;  %v1603_v11 = vrot.slane %v1601_v3, 4  ;;  %v1610_v12 = vshll.u32 %v4880_v63, 16 }
  0x90   : > { %v1815_v14 = vsel %vm5578_vm2, %v1810_v5, %v1814_v56  ;;  %v595_v15 = vrot.slane %v594_v6, 4  ;;  %v1606_v16 = vrot.slane %v1604_v8, 5  ;;  %v1614_v17 = vshrl.u32 %v4880_v63, 16 }
  0x91   : > { %v4923_v19 = vcombine.low %v1805_v4, %v1815_v14  ;;  %v605_v20 = vrot.slane %v604_v9, 4  ;;  %v1612_v21 = vrot.slane %v1610_v12, 5  ;;  %v1620_v22 = vshll.u32 %v4881_v7, 16  ;;  %v5135_v4 = vld [vmem:[%s5566_s19 + $0x20] sm:$0x1] }
  0x92   : > { %v600_v24 = vsel %vm5578_vm2, %v595_v15, %v599_v0  ;;  %v1607_v25 = vor.u32 %v1606_v16, %v1603_v11  ;;  %v1616_v27 = vrot.slane %v1614_v17, 4  ;;  %v1817_v28 = vshrl.u32 %v4906_v13, 16  ;;  %v5136_v11 = vld [vmem:[%s5566_s19 + $0x24] sm:$0xf]  ;;  %v5137_v17 = vld [vmem:[%s5566_s19 + $0x28] sm:$0xf] }
  0x93   : > { %1916 = vrot.lane.b32.xlu1 %v4923_v19, %s5520_s20  ;;  %v610_v31 = vsel %vm5578_vm2, %v605_v20, %v609_v10  ;;  %v1622_v32 = vrot.slane %v1620_v22, 5  ;;  %v1820_v33 = vshll.u32 %v4906_v13, 16  ;;  %v1826_v34 = vshll.u32 %v4907_v18, 16  ;;  %v5412_v16 = vld [vmem:[%s7619_s1 + $0x60] sm:$0xff]   ;;  %v5138_v22 = vld [vmem:[%s5566_s19 + $0x2c] sm:$0x1] }
  0x94   : > { %v4772_v35 = vcombine.low %v600_v24, %v610_v31  ;;  %v1608_v36 = vrot.slane %v1607_v25, 4  ;;  %v1617_v37 = vor.u32 %v1616_v27, %v1612_v21  ;;  %v1819_v38 = vrot.slane %v1817_v28, 4  ;;  %v5139_v28 = vld [vmem:[%s5566_s19 + $0x30] sm:$0xf] }
  0x95   : > { %v1822_v39 = vrot.slane %v1820_v33, 5  ;;  %v1828_v40 = vrot.slane %v1826_v34, 5  ;;  %v1830_v41 = vshrl.u32 %v4907_v18, 16  ;;  %v1836_v42 = vshll.u32 %v4908_v23, 16  ;;  %v5835_v23 = vpop.permute.xlu0 %867  ;;  %v5413_v34 = vld [vmem:[%s7619_s1 + $0x68] sm:$0xff]  }
  0x96   : > { %865 = vrot.lane.b32.xlu0 %v4772_v35, %s5520_s20  ;;  %v1613_v45 = vsel %vm5578_vm2, %v1608_v36, %v1612_v21  ;;  %v1618_v46 = vrot.slane %v1617_v37, 4  ;;  %v1625_v47 = vshrl.u32 %v4882_v29, 16  ;;  %v1628_v48 = vshll.u32 %v4882_v29, 16  ;;  %v5140_v35 = vld [vmem:[%s5566_s19 + $0x34] sm:$0xf] }
  0x97   : > { %v1823_v50 = vor.u32 %v1822_v39, %v1819_v38  ;;  %v1832_v51 = vrot.slane %v1830_v41, 4  ;;  %v1838_v52 = vrot.slane %v1836_v42, 5  ;;  %v1634_v53 = vshll.u32 %v4883_v30, 16 }
  0x98   : > { %v1623_v54 = vsel %vm5578_vm2, %v1618_v46, %v1622_v32  ;;  %v1627_v55 = vrot.slane %v1625_v47, 4  ;;  %v1630_v56 = vrot.slane %v1628_v48, 5  ;;  %v1638_v57 = vshrl.u32 %v4883_v30, 16 }
  0x99   : > { %v4915_v58 = vcombine.low %v1613_v45, %v1623_v54  ;;  %v1824_v59 = vrot.slane %v1823_v50, 4  ;;  %v1833_v60 = vor.u32 %v1832_v51, %v1828_v40  ;;  %v1636_v61 = vrot.slane %v1634_v53, 5  ;;  %v5141_v45 = vld [vmem:[%s5566_s19 + $0x38] sm:$0x1]  ;;  %v5142_v50 = vld [vmem:[%s5566_s19 + $0x3c] sm:$0xf] }
  0x9a   : > { %v1631_v62 = vor.u32 %v1630_v56, %v1627_v55  ;;  %v1640_v63 = vrot.slane %v1638_v57, 4  ;;  %v1644_v0 = vshll.u32 %v4884_v43, 16  ;;  %v3053_v1 = vshrl.u32 %v5133_v44, 16  ;;  %v5143_v55 = vld [vmem:[%s5566_s19 + $0x40] sm:$0xf]  ;;  %v5857_v56 = vpop.permute.xlu0 %851 }
  0x9b   : > { %1900 = vrot.lane.b32.xlu1 %v4915_v58, %s5520_s20  ;;  %v1829_v2 = vsel %vm5578_vm2, %v1824_v59, %v1828_v40  ;;  %v1834_v3 = vrot.slane %v1833_v60, 4  ;;  %v3056_v5 = vshll.u32 %v5133_v44, 16  ;;  %v3062_v6 = vshll.u32 %v5134_v49, 16  ;;  %v5847_v40 = vpop.permute.xlu1 %869  ;;  %v5414_v58 = vld [vmem:[%s7619_s1 + $0x70] sm:$0xff]  }
  0x9c   : > { %v1632_v7 = vrot.slane %v1631_v62, 4  ;;  %v1641_v8 = vor.u32 %v1640_v63, %v1636_v61  ;;  %v1646_v9 = vrot.slane %v1644_v0, 5  ;;  %v3055_v10 = vrot.slane %v3053_v1, 4 }
  0x9d   : > { %v1839_v12 = vsel %vm5578_vm2, %v1834_v3, %v1838_v52  ;;  %v3058_v13 = vrot.slane %v3056_v5, 5  ;;  %v3064_v14 = vrot.slane %v3062_v6, 5  ;;  %v3066_v15 = vshrl.u32 %v5134_v49, 16 }
  0x9e   : > { %v4924_v18 = vcombine.low %v1829_v2, %v1839_v12  ;;  %v1637_v19 = vsel %vm5578_vm2, %v1632_v7, %v1636_v61  ;;  %v1642_v20 = vrot.slane %v1641_v8, 4  ;;  %v3072_v21 = vshll.u32 %v5135_v4, 16  ;;  %v5144_v2 = vld [vmem:[%s5566_s19 + $0x44] sm:$0x1]  ;;  %v5870_v7 = vld [vmem:[%s5566_s19 + $0x48] sm:$0xf] }
  0x9f   : > { %v3059_v24 = vor.u32 %v3058_v13, %v3055_v10  ;;  %v3068_v25 = vrot.slane %v3066_v15, 4  ;;  %v3077_v27 = vshrl.u32 %v5136_v11, 16  ;;  %v5521_v31 = vmov 0  }
  0xa0   : > { %1918 = vrot.lane.b32.xlu0 %v4924_v18, %s5520_s20  ;;  %v1647_v29 = vsel %vm5578_vm2, %v1642_v20, %v1646_v9  ;;  %v3074_v30 = vrot.slane %v3072_v21, 5  ;;  %5360 = vmatprep.subr.bf16.mxu1 %v5521_v31  ;;  %v3080_v32 = vshll.u32 %v5136_v11, 16  ;;  %v3086_v33 = vshll.u32 %v5137_v17, 16  ;;  %v5872_v8 = vpop.permute.xlu1 %1904 }
  0xa1   : > { %v4916_v36 = vcombine.low %v1637_v19, %v1647_v29  ;;  %v3060_v37 = vrot.slane %v3059_v24, 4  ;;  %v3069_v38 = vor.u32 %v3068_v25, %v3064_v14  ;;  %5372 = vmatpush1.bf16.msra.mxu1 %v5412_v16  ;;  %v3079_v39 = vrot.slane %v3077_v27, 4  ;;  %2417 = vmatprep.subr.bf16.mxu0 %v5521_v31  ;;  %v5146_v24 = vld [vmem:[%s5566_s19 + $0x4c] sm:$0xf]  ;;  %v5896_v29 = vld [vmem:[%s7619_s1 + $0x80] sm:$0xff]  }
  0xa2   : > { %v3082_v41 = vrot.slane %v3080_v32, 5  ;;  %v3088_v42 = vrot.slane %v3086_v33, 5  ;;  %v3090_v43 = vshrl.u32 %v5137_v17, 16  ;;  %v3096_v44 = vshll.u32 %v5138_v22, 16  ;;  %2418 = vmatpush1.bf16.msra.mxu0 %v5412_v16  ;;  %5361 = vmatprep.subr.bf16.mxu1 %v5521_v31  ;;  %v5877_v13 = vpop.permute.xlu0 %853  ;;  %v5415_v17 = vld [vmem:[%s7619_s1 + $0x78] sm:$0xff]   ;;  %v5420_v33 = vld [vmem:[%s5566_s19 + $0x60] sm:$0xff]  }
  0xa3   : > { %1902 = vrot.lane.b32.xlu1 %v4916_v36, %s5520_s20  ;;  %v3065_v46 = vsel %vm5578_vm2, %v3060_v37, %v3064_v14  ;;  %v3070_v47 = vrot.slane %v3069_v38, 4  ;;  %2419 = vmatprep.subr.bf16.mxu0 %v5521_v31  ;;  %v3101_v48 = vshrl.u32 %v5139_v28, 16  ;;  %v3104_v49 = vshll.u32 %v5139_v28, 16  ;;  %v5147_v32 = vld [vmem:[%s5566_s19 + $0x50] sm:$0x1]  ;;  %v5430_v37 = vld [vmem:[%s5566_s19 + $0x78] sm:$0xff]  }
  0xa4   : > { %v3083_v51 = vor.u32 %v3082_v41, %v3079_v39  ;;  %v3092_v52 = vrot.slane %v3090_v43, 4  ;;  %v3098_v53 = vrot.slane %v3096_v44, 5  ;;  %v3110_v54 = vshll.u32 %v5140_v35, 16  ;;  %v5427_v36 = vld [vmem:[%s5566_s19 + $0xc] sm:$0xff]   ;;  %v5432_v38 = vld [vmem:[%s5566_s19 + $0x18] sm:$0xff]   ;;  %v5436_v39 = vld [vmem:[%s5566_s19 + $0x84] sm:$0xff]  }
  0xa5   : > { %v3075_v57 = vsel %vm5578_vm2, %v3070_v47, %v3074_v30  ;;  %5373 = vmatpush1.bf16.msra.mxu1 %v5413_v34  ;;  %v3103_v59 = vrot.slane %v3101_v48, 4  ;;  %v3106_v60 = vrot.slane %v3104_v49, 5  ;;  %v3114_v61 = vshrl.u32 %v5140_v35, 16  ;;  %v5423_v35 = vld [vmem:[%s5566_s19 + $0x6c] sm:$0xff]   ;;  %v5439_v41 = vld [vmem:[%s5566_s19 + $0x24] sm:$0xff]   ;;  %v5450_v48 = vld [vmem:[%s5566_s19 + $0x9c] sm:$0xff]  }
  0xa6   : > { %v5181_v62 = vcombine.low %v3065_v46, %v3075_v57  ;;  %v3084_v63 = vrot.slane %v3083_v51, 4  ;;  %v3093_v0 = vor.u32 %v3092_v52, %v3088_v42  ;;  %2420 = vmatpush1.bf16.msra.mxu0 %v5413_v34  ;;  %5362 = vmatprep.subr.bf16.mxu1 %v5521_v31  ;;  %v5865_v1 = vrot.slane %v3110_v54, 5  ;;  %v5422_v34 = vld [vmem:[%s5566_s19] sm:$0xff]   ;;  %v5446_v43 = vld [vmem:[%s5566_s19 + $0x30] sm:$0xff]   ;;  %v5460_v57 = vld [vmem:[%s5566_s19 + $0x48] sm:$0xff]   ;;  %360 = vst.msk [vmem:[#allocation2 + $0x80] sm:$0xff] %vm351_vm3, %v5420_v33 }
  0xa7   : > { %v3107_v3 = vor.u32 %v3106_v60, %v3103_v59  ;;  %v3116_v4 = vrot.slane %v3114_v61, 4  ;;  %v3120_v5 = vshll.u32 %v5141_v45, 16  ;;  %2421 = vmatprep.subr.bf16.mxu0 %v5521_v31  ;;  %v3125_v6 = vshrl.u32 %v5142_v50, 16  ;;  %v5453_v49 = vld [vmem:[%s5566_s19 + $0x3c] sm:$0xff]   ;;  %v5467_v59 = vld [vmem:[%s5566_s19 + $0x54] sm:$0xff]   ;;  %352 = vst.msk [vmem:[#allocation2] sm:$0xff] %vm351_vm3, %v5422_v34 }
  0xa8   : > { %3484 = vrot.lane.b32.xlu0 %v5181_v62, %s5520_s20  ;;  %v3089_v9 = vsel %vm5578_vm2, %v3084_v63, %v3088_v42  ;;  %v3094_v10 = vrot.slane %v3093_v0, 4  ;;  %v3128_v11 = vshll.u32 %v5142_v50, 16  ;;  %v3134_v12 = vshll.u32 %v5143_v55, 16  ;;  %v5443_v42 = vld [vmem:[%s5566_s19 + $0x90] sm:$0xff]   ;;  %v5457_v50 = vld [vmem:[%s5566_s19 + $0xa8] sm:$0xff]   ;;  %361 = vst.msk [vmem:[#allocation2 + $0x90] sm:$0xff] %vm351_vm3, %v5423_v35 }
  0xa9   : > { %5374 = vmatpush1.bf16.msra.mxu1 %v5414_v58  ;;  %v3108_v14 = vrot.slane %v3107_v3, 4  ;;  %v3117_v15 = vor.u32 %v3116_v4, %v5865_v1  ;;  %v3122_v16 = vrot.slane %v3120_v5, 5  ;;  %v3127_v18 = vrot.slane %v3125_v6, 4  ;;  %v5148_v0 = vld [vmem:[%s5566_s19 + $0x54] sm:$0xf]  ;;  %353 = vst.msk [vmem:[#allocation2 + $0x10] sm:$0xff] %vm351_vm3, %v5427_v36 }
  0xaa   : > { %v3099_v19 = vsel %vm5578_vm2, %v3094_v10, %v3098_v53  ;;  %2422 = vmatpush1.bf16.msra.mxu0 %v5414_v58  ;;  %5363 = vmatprep.subr.bf16.mxu1 %v5521_v31  ;;  %v3130_v20 = vrot.slane %v3128_v11, 5  ;;  %v5886_v21 = vrot.slane %v3134_v12, 5  ;;  %v3138_v22 = vshrl.u32 %v5143_v55, 16  ;;  %v5919_v55 = vpop.permute.xlu1 %1888  ;;  %v5464_v58 = vld [vmem:[%s5566_s19 + $0xb4] sm:$0xff]   ;;  %v5417_v11 = vld [vmem:[%s7619_s1 + $0x88] sm:$0xff]   ;;  %362 = vst.msk [vmem:[#allocation2 + $0xa0] sm:$0xff] %vm351_vm3, %v5430_v37 }
  0xab   : > { %v5182_v25 = vcombine.low %v3089_v9, %v3099_v19  ;;  %v3113_v27 = vsel %vm5578_vm2, %v3108_v14, %v5865_v1  ;;  %v3118_v28 = vrot.slane %v3117_v15, 4  ;;  %2423 = vmatprep.subr.bf16.mxu0 %v5521_v31  ;;  %v3144_v30 = vshll.u32 %v5144_v2, 16  ;;  %v5149_v1 = vld [vmem:[%s5566_s19 + $0x58] sm:$0xf]  ;;  %v5942_v12 = vld [vmem:[%s5566_s19 + $0x60] sm:$0xf] }
  0xac   : > { %v3131_v44 = vor.u32 %v3130_v20, %v3127_v18  ;;  %v3140_v45 = vrot.slane %v3138_v22, 4  ;;  %v3149_v46 = vshrl.u32 %v5870_v7, 16  ;;  %v3152_v47 = vshll.u32 %v5870_v7, 16  ;;  %v872_v2 = vpop.permute.xlu0 %871  ;;  %v5932_v7 = vld [vmem:[%s5566_s19 + $0x5c] sm:$0x1]  ;;  %354 = vst.msk [vmem:[#allocation2 + $0x20] sm:$0xff] %vm351_vm3, %v5432_v38 }
  0xad   : > { %3486 = vrot.lane.b32.xlu1 %v5182_v25, %s5520_s20  ;;  %v3123_v51 = vsel %vm5578_vm2, %v3118_v28, %v3122_v16  ;;  %5375 = vmatpush1.bf16.msra.mxu1 %v5415_v17  ;;  %v5917_v52 = vrot.slane %v3144_v30, 5  ;;  %v3158_v53 = vshll.u32 %v5146_v24, 16  ;;  %v3162_v54 = vshrl.u32 %v5146_v24, 16  ;;  %363 = vst.msk [vmem:[#allocation2 + $0xb0] sm:$0xff] %vm351_vm3, %v5436_v39  ;;  %355 = vst.msk [vmem:[#allocation2 + $0x30] sm:$0xff] %vm351_vm3, %v5439_v41  ;;  %v5428_v33 = vld [vmem:[%s5566_s19 + $0xc] sm:$0xff]  }
  0xae   : > { %v5183_v60 = vcombine.low %v3113_v27, %v3123_v51  ;;  %2424 = vmatpush1.bf16.msra.mxu0 %v5415_v17  ;;  %5364 = vmatprep.subr.bf16.mxu1 %v5521_v31  ;;  %v3132_v61 = vrot.slane %v3131_v44, 4  ;;  %v3141_v62 = vor.u32 %v3140_v45, %v5886_v21  ;;  %v3151_v63 = vrot.slane %v3149_v46, 4  ;;  %364 = vst.msk [vmem:[#allocation2 + $0xc0] sm:$0xff] %vm351_vm3, %v5443_v42  ;;  %v5152_v22 = vld [vmem:[%s5566_s19 + $0x64] sm:$0xf]  ;;  %v5431_v34 = vld [vmem:[%s5566_s19 + $0x78] sm:$0xff]  }
  0xaf   : > { %2425 = vmatprep.subr.bf16.mxu0 %v5521_v31  ;;  %v3154_v3 = vrot.slane %v3152_v47, 5  ;;  %v5929_v4 = vrot.slane %v3158_v53, 5  ;;  %v3164_v5 = vrot.slane %v3162_v54, 4  ;;  %v3168_v6 = vshll.u32 %v5147_v32, 16  ;;  %356 = vst.msk [vmem:[#allocation2 + $0x40] sm:$0xff] %vm351_vm3, %v5446_v43  ;;  %365 = vst.msk [vmem:[#allocation2 + $0xd0] sm:$0xff] %vm351_vm3, %v5450_v48 }
  0xb0   : > { %3488 = vrot.lane.b32.xlu0 %v5183_v60, %s5520_s20  ;;  %v3137_v9 = vsel %vm5578_vm2, %v3132_v61, %v5886_v21  ;;  %v3142_v10 = vrot.slane %v3141_v62, 4  ;;  %v3173_v17 = vshrl.u32 %v5148_v0, 16  ;;  %357 = vst.msk [vmem:[#allocation2 + $0x50] sm:$0xff] %vm351_vm3, %v5453_v49  ;;  %366 = vst.msk [vmem:[#allocation2 + $0xe0] sm:$0xff] %vm351_vm3, %v5457_v50  ;;  %v3176_v19 = vshll.u32 %v5148_v0, 16  ;;  %v5425_v32 = vld [vmem:[%s5566_s19 + $0x6c] sm:$0xff]  }
  0xb1   : > { %5376 = vmatpush1.bf16.msra.mxu1 %v5896_v29  ;;  %v3155_v14 = vor.u32 %v3154_v3, %v3151_v63  ;;  %v3165_v15 = vor.u32 %v3164_v5, %v5929_v4  ;;  %v3170_v16 = vrot.slane %v3168_v6, 5  ;;  %358 = vst.msk [vmem:[#allocation2 + $0x60] sm:$0xff] %vm351_vm3, %v5460_v57  ;;  %367 = vst.msk [vmem:[#allocation2 + $0xf0] sm:$0xff] %vm351_vm3, %v5464_v58  ;;  %v3182_v20 = vshll.u32 %v5149_v1, 16  ;;  %v5153_v38 = vld [vmem:[%s5566_s19 + $0x68] sm:$0x1] }
  0xb2   : > { %359 = vst.msk [vmem:[#allocation2 + $0x70] sm:$0xff] %vm351_vm3, %v5467_v59  ;;  %v3147_v18 = vsel %vm5578_vm2, %v3142_v10, %v5917_v52  ;;  %2426 = vmatpush1.bf16.msra.mxu0 %v5896_v29  ;;  %5365 = vmatprep.subr.bf16.mxu1 %v5521_v31  ;;  %v3186_v21 = vshrl.u32 %v5149_v1, 16  ;;  %v3175_v27 = vrot.slane %v3173_v17, 4  ;;  %v3178_v28 = vrot.slane %v3176_v19, 5  ;;  %v5434_v42 = vld [vmem:[%s5566_s19 + $0x18] sm:$0xff]   ;;  %v5437_v49 = vld [vmem:[%s5566_s19 + $0x84] sm:$0xff]  }
  0xb3   : > { %908 = vst.msk [vmem:[#allocation2 + $0x80] sm:$0xff] %vm899_vm4, %v5835_v23  ;;  %900 = vst.msk [vmem:[#allocation2] sm:$0xff] %vm899_vm4, %v5857_v56  ;;  %v5184_v24 = vcombine.low %v3137_v9, %v3147_v18  ;;  %2427 = vmatprep.subr.bf16.mxu0 %v5521_v31  ;;  %v5418_v23 = vld [vmem:[%s7619_s1 + $0x90] sm:$0xff]   ;;  %v3156_v56 = vrot.slane %v3155_v14, 4  ;;  %v3166_v25 = vrot.slane %v3165_v15, 4  ;;  %v5983_v29 = vrot.slane %v3182_v20, 5 }
  0xb4   : > { %909 = vst.msk [vmem:[#allocation2 + $0x90] sm:$0xff] %vm899_vm4, %v5847_v40  ;;  %901 = vst.msk [vmem:[#allocation2 + $0x10] sm:$0xff] %vm899_vm4, %v5877_v13  ;;  %v5981_v40 = vpop.permute.xlu1 %1906  ;;  %v3188_v13 = vrot.slane %v3186_v21, 4  ;;  %v3192_v30 = vshll.u32 %v5932_v7, 16  ;;  %v856_v35 = vpop.permute.xlu0 %855  ;;  %v3197_v39 = vshrl.u32 %v5942_v12, 16  ;;  %v3200_v41 = vshll.u32 %v5942_v12, 16 }
  0xb5   : > { %910 = vst.msk [vmem:[#allocation2 + $0xa0] sm:$0xff] %vm899_vm4, %v872_v2  ;;  %3490 = vrot.lane.b32.xlu1 %v5184_v24, %s5520_s20  ;;  %5377 = vmatpush1.bf16.msra.mxu1 %v5417_v11  ;;  %v3161_v36 = vsel %vm5578_vm2, %v3156_v56, %v5929_v4  ;;  %v3171_v37 = vsel %vm5578_vm2, %v3166_v25, %v3170_v16  ;;  %902 = vst.msk [vmem:[#allocation2 + $0x20] sm:$0xff] %vm899_vm4, %v856_v35  ;;  %v6003_v47 = vld [vmem:[%s5566_s19 + $0x60] sm:$0xe]  ;;  %v6006_v48 = vld [vmem:[%s5566_s19 + $0x64] sm:$0xf] }
  0xb6   : > { %2428 = vmatpush1.bf16.msra.mxu0 %v5417_v11  ;;  %5366 = vmatprep.subr.bf16.mxu1 %v5521_v31  ;;  %v5185_v43 = vcombine.low %v3161_v36, %v3171_v37  ;;  %v3179_v44 = vor.u32 %v3178_v28, %v3175_v27  ;;  %v3189_v45 = vor.u32 %v3188_v13, %v5983_v29  ;;  %v3194_v46 = vrot.slane %v3192_v30, 5  ;;  %v6013_v50 = vld [vmem:[%s7619_s1 + $0x98] sm:$0xff]   ;;  %v6016_v57 = vld [vmem:[%s5566_s19 + $0x68] sm:$0x1]  ;;  %v6019_v58 = vld [vmem:[%s5566_s19 + $0x6c] sm:$0xe] }
  0xb7   : > { %2429 = vmatprep.subr.bf16.mxu0 %v5521_v31  ;;  %v3199_v51 = vrot.slane %v3197_v39, 4  ;;  %v3202_v52 = vrot.slane %v3200_v41, 5  ;;  %v3206_v53 = vshll.u32 %v5152_v22, 16  ;;  %v3210_v54 = vshrl.u32 %v5152_v22, 16  ;;  %v6022_v59 = vld [vmem:[%s5566_s19 + $0x70] sm:$0xf] }
  0xb8   : > { %v5441_v60 = vld [vmem:[%s5566_s19 + $0x24] sm:$0xff]   ;;  %3492 = vrot.lane.b32.xlu0 %v5185_v43, %s5520_s20  ;;  %v3180_v61 = vrot.slane %v3179_v44, 4  ;;  %v3190_v62 = vrot.slane %v3189_v45, 4  ;;  %v3216_v63 = vshll.u32 %v5153_v38, 16  ;;  %v6027_v0 = vld [vmem:[%s5566_s19 + $0x74] sm:$0x1]  ;;  %v1891_v7 = vpop.permute.xlu1 %1890 }
  0xb9   : > { %5378 = vmatpush1.bf16.msra.mxu1 %v5418_v23  ;;  %v3203_v2 = vor.u32 %v3202_v52, %v3199_v51  ;;  %v3208_v3 = vrot.slane %v3206_v53, 5  ;;  %v3212_v4 = vrot.slane %v3210_v54, 4  ;;  %v4789_v14 = vrot.slane %v6003_v47, 9  ;;  %v6050_v15 = vld [vmem:[%s5566_s19 + $0x78] sm:$0xe]  ;;  %v5424_v43 = vld [vmem:[%s7619_s1 + $0xa8] sm:$0xff]  }
  0xba   : > { %v6029_v1 = vld [vmem:[#allocation2 + $0x80] sm:$0xff]  ;;  %2430 = vmatpush1.bf16.msra.mxu0 %v5418_v23  ;;  %5367 = vmatprep.subr.bf16.mxu1 %v5521_v31  ;;  %v3185_v9 = vsel %vm5578_vm2, %v3180_v61, %v5983_v29  ;;  %v3195_v10 = vsel %vm5578_vm2, %v3190_v62, %v3194_v46  ;;  %v3218_v11 = vrot.slane %v3216_v63, 5  ;;  %v1073_v21 = vrot.slane %v6006_v48, 5  ;;  %v6064_v22 = vld [vmem:[%s5566_s19 + $0x7c] sm:$0xf] }
  0xbb   : > { %v6031_v5 = vld [vmem:[#allocation2] sm:$0xff]  ;;  %v6033_v6 = vld [vmem:[#allocation2 + $0x90] sm:$0xff]  ;;  %1400 = vst.msk [vmem:[#allocation2 + $0x80] sm:$0xff] %vm351_vm3, %v5425_v32  ;;  %2431 = vmatprep.subr.bf16.mxu0 %v5521_v31  ;;  %v5186_v18 = vcombine.low %v3185_v9, %v3195_v10  ;;  %v3204_v19 = vrot.slane %v3203_v2, 4  ;;  %v3213_v20 = vor.u32 %v3212_v4, %v3208_v3  ;;  %v6069_v24 = vld [vmem:[%s5566_s19 + $0x6c] sm:$0xf] }
  0xbc   : > { %1392 = vst.msk [vmem:[#allocation2] sm:$0xff] %vm351_vm3, %v5428_v33  ;;  %1401 = vst.msk [vmem:[#allocation2 + $0x90] sm:$0xff] %vm351_vm3, %v5431_v34  ;;  %v6053_v16 = vld [vmem:[#allocation2 + $0x10] sm:$0xff]  ;;  %v6055_v17 = vld [vmem:[#allocation2 + $0xa0] sm:$0xff]  ;;  %v4981_v23 = vrot.slane %v6019_v58, 9  ;;  %v2106_v56 = vrot.slane %v6022_v59, 5  ;;  %v1074_v30 = vsel %vm6044_vm7, %v4789_v14, %v1073_v21 }
  0xbd   : > { %1944 = vst.msk [vmem:[#allocation2 + $0x80] sm:$0xff] %vm899_vm4, %v5872_v8  ;;  %1936 = vst.msk [vmem:[#allocation2] sm:$0xff] %vm899_vm4, %v5919_v55  ;;  %v5421_v8 = vld [vmem:[%s7619_s1 + $0xa0] sm:$0xff]   ;;  %v1076_v55 = vrot.slane %v6016_v57, 5  ;;  %v2109_v25 = vrot.slane %v6027_v0, 5  ;;  %5379 = vmatpush1.bf16.msra.mxu1 %v6013_v50  ;;  %3494 = vrot.lane.b32.xlu1 %v5186_v18, %s5520_s20  ;;  %v3209_v29 = vsel %vm5578_vm2, %v3204_v19, %v3208_v3  ;;  %v3214_v13 = vrot.slane %v3213_v20, 4 }
  0xbe   : > { %1945 = vst.msk [vmem:[#allocation2 + $0x90] sm:$0xff] %vm899_vm4, %v5981_v40  ;;  %v6081_v27 = vld [vmem:[%s5566_s19 + $0x80] sm:$0x1]  ;;  %v874_v40 = vpop.permute.xlu0 %873  ;;  %v1075_v32 = vrot.slane %v1073_v21, 4  ;;  %v5155_v33 = vld [vmem:[%s5566_s19 + $0x70] sm:$0xf]  ;;  %2432 = vmatpush1.bf16.msra.mxu0 %v6013_v50  ;;  %5368 = vmatprep.subr.bf16.mxu1 %v5521_v31  ;;  %v6112_v46 = vsel %vm6044_vm7, %v4981_v23, %v2106_v56 }
  0xbf   : > { %1393 = vst.msk [vmem:[#allocation2 + $0x10] sm:$0xff] %vm351_vm3, %v5434_v42  ;;  %1402 = vst.msk [vmem:[#allocation2 + $0xa0] sm:$0xff] %vm351_vm3, %v5437_v49  ;;  %v6084_v28 = vld [vmem:[#allocation2 + $0x20] sm:$0xff]  ;;  %v5156_v34 = vld [vmem:[%s5566_s19 + $0x74] sm:$0x1]  ;;  %v2108_v35 = vrot.slane %v2106_v56, 4  ;;  %2433 = vmatprep.subr.bf16.mxu0 %v5521_v31  ;;  %v3219_v37 = vsel %vm5578_vm2, %v3214_v13, %v3218_v11 }
  0xc0   : > { %1937 = vst.msk [vmem:[#allocation2 + $0x10] sm:$0xff] %vm899_vm4, %v1891_v7  ;;  %911 = vst.msk [vmem:[#allocation2 + $0xb0] sm:$0xff] %vm899_vm4, %v874_v40  ;;  %v916_v36 = vld [vmem:[%s5566_s19] sm:$0xe]  ;;  %v1077_v38 = vsel %vm6044_vm7, %v1075_v32, %v1076_v55  ;;  %v5253_v39 = vrot.slane %v6050_v15, 9  ;;  %v3221_v41 = vshrl.u32 %v6069_v24, 16  ;;  %v5187_v44 = vcombine.low %v3209_v29, %v3219_v37 }
  0xc1   : > { %1394 = vst.msk [vmem:[#allocation2 + $0x20] sm:$0xff] %vm351_vm3, %v5441_v60  ;;  %v917_v42 = vld [vmem:[%s5566_s19 + $0x4] sm:$0xf]  ;;  %v4805_v45 = vcombine.low %v1074_v30, %v1077_v38  ;;  %v3702_v47 = vrot.slane %v6064_v22, 5  ;;  %v918_v48 = vld [vmem:[%s5566_s19 + $0x8] sm:$0x1]  ;;  %5380 = vmatpush1.bf16.msra.mxu1 %v5421_v8  ;;  %v6118_v49 = vsel %vm6044_vm7, %v2108_v35, %v2109_v25  ;;  %v1909_v58 = vpop.permute.xlu1 %1908 }
  0xc2   : > { %v3705_v50 = vrot.slane %v6081_v27, 5  ;;  %v3223_v51 = vrot.slane %v3221_v41, 4  ;;  %v3224_v52 = vshll.u32 %v6069_v24, 16  ;;  %v6123_v53 = vld [vmem:[%s5566_s19 + $0xc] sm:$0xe]  ;;  %v5444_v59 = vld [vmem:[%s5566_s19 + $0x90] sm:$0xff]   ;;  %2434 = vmatpush1.bf16.msra.mxu0 %v5421_v8  ;;  %5369 = vmatprep.subr.bf16.mxu1 %v5521_v31  ;;  %v4997_v14 = vcombine.low %v6112_v46, %v6118_v49 }
  0xc3   : > { %v6126_v54 = vld [vmem:[%s5566_s19 + $0x10] sm:$0xf]  ;;  %v6129_v57 = vld [vmem:[%s5566_s19 + $0x14] sm:$0x1]  ;;  %1199 = vst.msk [vmem:[#allocation2 + $0x88] sm:$0xff] %vm351_vm3, %v4805_v45  ;;  %v3230_v60 = vshll.u32 %v5155_v33, 16  ;;  %2435 = vmatprep.subr.bf16.mxu0 %v5521_v31  ;;  %3496 = vrot.lane.b32.xlu0 %v5187_v44, %s5520_s20  ;;  %v6148_v4 = vsel %vm6044_vm7, %v5253_v39, %v3702_v47 }
  0xc4   : > { %v3234_v61 = vshrl.u32 %v5155_v33, 16  ;;  %v3240_v62 = vshll.u32 %v5156_v34, 16  ;;  %v4781_v63 = vrot.slane %v916_v36, 9  ;;  %v6135_v0 = vld [vmem:[%s5566_s19 + $0x18] sm:$0xe]  ;;  %1946 = vst.msk [vmem:[#allocation2 + $0xa0] sm:$0xff] %vm899_vm4, %v1909_v58  ;;  %v858_v21 = vpop.permute.xlu0 %857 }
  0xc5   : > { %v6138_v2 = vld [vmem:[%s5566_s19 + $0x1c] sm:$0xf]  ;;  %v5426_v3 = vld [vmem:[%s7619_s1 + $0xb0] sm:$0xff]   ;;  %v3226_v7 = vrot.slane %v3224_v52, 5  ;;  %v1017_v9 = vrot.slane %v917_v42, 5  ;;  %v1020_v10 = vrot.slane %v918_v48, 5  ;;  %5381 = vmatpush1.bf16.msra.mxu1 %v5424_v43 }
  0xc6   : > { %v6151_v11 = vld [vmem:[%s5566_s19 + $0x20] sm:$0x1]  ;;  %v3704_v15 = vrot.slane %v3702_v47, 4  ;;  %v3232_v18 = vrot.slane %v3230_v60, 5  ;;  %v3236_v19 = vrot.slane %v3234_v61, 4  ;;  %v3242_v8 = vrot.slane %v3240_v62, 5  ;;  %2436 = vmatpush1.bf16.msra.mxu0 %v5424_v43  ;;  %5370 = vmatprep.subr.bf16.mxu1 %v5521_v31 }
  0xc7   : > { %v943_v20 = vld [vmem:[%s5566_s19 + $0x6c] sm:$0xe]  ;;  %v6156_v22 = vld [vmem:[#allocation2 + $0xb0] sm:$0xff]  ;;  %v3227_v24 = vor.u32 %v3226_v7, %v3223_v51  ;;  %v1018_v55 = vsel %vm6044_vm7, %v4781_v63, %v1017_v9  ;;  %v1019_v23 = vrot.slane %v1017_v9, 4  ;;  %903 = vst.msk [vmem:[#allocation2 + $0x30] sm:$0xff] %vm899_vm4, %v858_v21  ;;  %v4973_v29 = vrot.slane %v6123_v53, 9  ;;  %2437 = vmatprep.subr.bf16.mxu0 %v5521_v31 }
  0xc8   : > { %v944_v56 = vld [vmem:[%s5566_s19 + $0x70] sm:$0xf]  ;;  %v6162_v25 = vld [vmem:[%s5566_s19 + $0x74] sm:$0x1]  ;;  %1403 = vst.msk [vmem:[#allocation2 + $0xb0] sm:$0xff] %vm351_vm3, %v5444_v59  ;;  %v3237_v40 = vor.u32 %v3236_v19, %v3232_v18  ;;  %v2050_v13 = vrot.slane %v6126_v54, 5  ;;  %v6189_v45 = vsel %vm6044_vm7, %v3704_v15, %v3705_v50 }
  0xc9   : > { %v2053_v30 = vrot.slane %v6129_v57, 5  ;;  %v3228_v32 = vrot.slane %v3227_v24, 4  ;;  %v1021_v33 = vsel %vm6044_vm7, %v1019_v23, %v1020_v10  ;;  %v5245_v34 = vrot.slane %v6135_v0, 9  ;;  %v6176_v36 = vld [vmem:[%s5566_s19 + $0x78] sm:$0xe]  ;;  %5382 = vmatpush1.bf16.msra.mxu1 %v5426_v3  ;;  %v1893_v51 = vpop.permute.xlu1 %1892  ;;  %v5448_v52 = vld [vmem:[%s5566_s19 + $0x30] sm:$0xff]  }
  0xca   : > { %v3646_v35 = vrot.slane %v6138_v2, 5  ;;  %v5429_v37 = vld [vmem:[%s7619_s1 + $0xb8] sm:$0xff]   ;;  %v3238_v38 = vrot.slane %v3237_v40, 4  ;;  %v4797_v39 = vcombine.low %v1018_v55, %v1021_v33  ;;  %v2052_v41 = vrot.slane %v2050_v13, 4  ;;  %v6183_v44 = vld [vmem:[#allocation2 + $0x88] sm:$0xff]  ;;  %2438 = vmatpush1.bf16.msra.mxu0 %v5426_v3  ;;  %5371 = vmatprep.subr.bf16.mxu1 %v5521_v31  ;;  %1938 = vst.msk [vmem:[#allocation2 + $0x20] sm:$0xff] %vm899_vm4, %v1893_v51 }
  0xcb   : > { %v3649_v42 = vrot.slane %v6151_v11, 5  ;;  %v4953_v43 = vld [vmem:[%s5566_s19 + $0x7c] sm:$0xf]  ;;  %v3233_v46 = vsel %vm5578_vm2, %v3228_v32, %v3232_v18  ;;  %v4790_v48 = vrot.slane %v943_v20, 9  ;;  %v4954_v49 = vld [vmem:[%s5566_s19 + $0x80] sm:$0x1]  ;;  %v6202_v50 = vsel %vm6044_vm7, %v4973_v29, %v2050_v13  ;;  %2439 = vmatprep.subr.bf16.mxu0 %v5521_v31 }
  0xcc   : > { %v3648_v47 = vrot.slane %v3646_v35, 4  ;;  %2232 = vst.msk [vmem:[#allocation2 + $0x88] sm:$0xff] %vm351_vm3, %v4997_v14  ;;  %v3243_v27 = vsel %vm5578_vm2, %v3238_v38, %v3242_v8  ;;  %1191 = vst.msk [vmem:[#allocation2 + $0x8] sm:$0xff] %vm351_vm3, %v4797_v39  ;;  %v1080_v53 = vrot.slane %v944_v56, 5  ;;  %v1083_v54 = vrot.slane %v6162_v25, 5  ;;  %v5478_v2 = vld [vmem:[%s5566_s19 + $0x18] sm:$0xff]  }
  0xcd   : > { %v5224_v57 = vld [vmem:[%s5566_s19 + $0x84] sm:$0xe]  ;;  %v6207_v58 = vld [vmem:[%s5566_s19 + $0x88] sm:$0xf]  ;;  %v5188_v59 = vcombine.low %v3233_v46, %v3243_v27  ;;  %v2054_v60 = vsel %vm6044_vm7, %v2052_v41, %v2053_v30  ;;  %v6215_v61 = vsel %vm6044_vm7, %v5245_v34, %v3646_v35  ;;  %v4982_v62 = vrot.slane %v6176_v36, 9  ;;  %5383 = vmatpush1.bf16.msra.mxu1 %v5429_v37 }
  0xce   : > { %v5157_v63 = vld [vmem:[%s5566_s19 + $0x78] sm:$0xf]  ;;  %v5158_v0 = vld [vmem:[%s5566_s19 + $0x7c] sm:$0xf]  ;;  %v6223_v3 = vsel %vm6044_vm7, %v3648_v47, %v3649_v42  ;;  %v6225_v7 = vld [vmem:[#allocation2] sm:$0xff]  ;;  %v1081_v9 = vsel %vm6044_vm7, %v4790_v48, %v1080_v53  ;;  %v1082_v10 = vrot.slane %v1080_v53, 4  ;;  %v5269_v19 = vcombine.low %v6148_v4, %v6189_v45  ;;  %2440 = vmatpush1.bf16.msra.mxu0 %v5429_v37  ;;  %2698 = vmatprep.subr.bf16.mxu1 %v5521_v31  ;;  %v876_v29 = vpop.permute.xlu0 %875 }
  0xcf   : > { %v2113_v11 = vrot.slane %v4953_v43, 5  ;;  %v6230_v14 = vld [vmem:[%s5566_s19 + $0x8c] sm:$0x1]  ;;  %v6233_v15 = vld [vmem:[%s5566_s19 + $0x80] sm:$0x1]  ;;  %v6235_v18 = vld [vmem:[#allocation2 + $0x30] sm:$0xff]  ;;  %3498 = vrot.lane.b32.xlu1 %v5188_v59, %s5520_s20  ;;  %v4989_v55 = vcombine.low %v6202_v50, %v2054_v60  ;;  %v5261_v30 = vcombine.low %v6215_v61, %v6223_v3  ;;  %4013 = vmatprep.subr.bf16.mxu0 %v5521_v31 }
  0xd0   : > { %v2116_v20 = vrot.slane %v4954_v49, 5  ;;  %v5254_v21 = vrot.slane %v5224_v57, 9  ;;  %v3709_v24 = vrot.slane %v6207_v58, 5  ;;  %v6242_v8 = vld [vmem:[%s5566_s19 + $0xc] sm:$0xe]  ;;  %1395 = vst.msk [vmem:[#allocation2 + $0x30] sm:$0xff] %vm351_vm3, %v5448_v52  ;;  %v1084_v4 = vsel %vm6044_vm7, %v1082_v10, %v1083_v54 }
  0xd1   : > { %2988 = vst.msk [vmem:[#allocation2] sm:$0xff] %vm351_vm3, %v5478_v2  ;;  %v2115_v23 = vrot.slane %v2113_v11, 4  ;;  %v3245_v56 = vshrl.u32 %v5157_v63, 16  ;;  %v920_v25 = vld [vmem:[%s5566_s19 + $0x10] sm:$0xf]  ;;  %v5433_v13 = vld [vmem:[%s7619_s1] sm:$0xff]   ;;  %v4806_v32 = vcombine.low %v1081_v9, %v1084_v4  ;;  %v6262_v33 = vsel %vm6044_vm7, %v4982_v62, %v2113_v11  ;;  %v1911_v50 = vpop.permute.xlu1 %1910 }
  0xd2   : > { %v6252_v40 = vld [vmem:[%s5566_s19 + $0x14] sm:$0x1]  ;;  %v3248_v34 = vshll.u32 %v5157_v63, 16  ;;  %v6265_v35 = vld [vmem:[%s5566_s19 + $0x18] sm:$0xe]  ;;  %912 = vst.msk [vmem:[#allocation2 + $0xc0] sm:$0xff] %vm899_vm4, %v876_v29  ;;  %v6283_v47 = vsel %vm6044_vm7, %v5254_v21, %v3709_v24 }
  0xd3   : > { %v6268_v36 = vld [vmem:[%s5566_s19 + $0x1c] sm:$0xf]  ;;  %v2256_v37 = vld [vmem:[#allocation2 + $0x80] sm:$0xff]  ;;  %v6273_v38 = vsel %vm6044_vm7, %v2115_v23, %v2116_v20  ;;  %v3247_v39 = vrot.slane %v3245_v56, 4  ;;  %v3254_v41 = vshll.u32 %v5158_v0, 16  ;;  %v3258_v42 = vshrl.u32 %v5158_v0, 16 }
  0xd4   : > { %v6276_v43 = vld [vmem:[%s5566_s19 + $0x20] sm:$0x1]  ;;  %v2257_v45 = vld [vmem:[#allocation2 + $0x88] sm:$0xff]  ;;  %1200 = vst.msk [vmem:[#allocation2 + $0x98] sm:$0xff] %vm351_vm3, %v4806_v32  ;;  %v3712_v48 = vrot.slane %v6230_v14, 5  ;;  %v3250_v49 = vrot.slane %v3248_v34, 5  ;;  %v4998_v62 = vcombine.low %v6262_v33, %v6273_v38 }
  0xd5   : > { %v6278_v46 = vld [vmem:[#allocation2 + $0x8] sm:$0xff]  ;;  %v3264_v51 = vshll.u32 %v6233_v15, 16  ;;  %v6288_v52 = vld [vmem:[%s5566_s19 + $0x24] sm:$0xe]  ;;  %5049 = vmatprep.mubr.msk.bf16.mxu1 %vm351_vm3, %v2257_v45  ;;  %3828 = vst.msk [vmem:[#allocation2 + $0x88] sm:$0xff] %vm351_vm3, %v5269_v19  ;;  %v3711_v53 = vrot.slane %v3709_v24, 4 }
  0xd6   : > { %v6291_v27 = vld [vmem:[%s5566_s19 + $0x28] sm:$0xf]  ;;  %2224 = vst.msk [vmem:[#allocation2 + $0x8] sm:$0xff] %vm351_vm3, %v4989_v55  ;;  %v3256_v57 = vrot.slane %v3254_v41, 5  ;;  %v3260_v58 = vrot.slane %v3258_v42, 4  ;;  %v4782_v59 = vrot.slane %v6242_v8, 9  ;;  %2514 = vmatmul.mubr.bf16.vlgmr.msra.gmra.mrb[0].mxu1 %v2256_v37  ;;  %v3251_v63 = vor.u32 %v3250_v49, %v3247_v39 }
  0xd7   : > { %v5438_v54 = vld [vmem:[%s7619_s1 + $0x8] sm:$0xff]   ;;  %1947 = vst.msk [vmem:[#allocation2 + $0xb0] sm:$0xff] %vm899_vm4, %v1911_v50  ;;  %v1024_v0 = vrot.slane %v920_v25, 5  ;;  %v1027_v2 = vrot.slane %v6252_v40, 5  ;;  %v6308_v9 = vld [vmem:[%s5566_s19 + $0x78] sm:$0xe]  ;;  %2699 = vmatpush1.bf16.msra.mxu1 %v5433_v13 }
  0xd8   : > { %v6301_v60 = vld [vmem:[%s5566_s19 + $0x2c] sm:$0x1]  ;;  %v5451_v10 = vld [vmem:[%s5566_s19 + $0x9c] sm:$0xff]   ;;  %v5481_v11 = vld [vmem:[%s5566_s19 + $0x24] sm:$0xff]   ;;  %v3261_v14 = vor.u32 %v3260_v58, %v3256_v57  ;;  %v3266_v15 = vrot.slane %v3264_v51, 5  ;;  %v4974_v19 = vrot.slane %v6265_v35, 9  ;;  %2700 = vmatprep.subr.bf16.mxu1 %v5521_v31  ;;  %v6359_v51 = vsel %vm6044_vm7, %v3711_v53, %v3712_v48 }
  0xd9   : > { %v2057_v20 = vrot.slane %v6268_v36, 5  ;;  %v6314_v21 = vld [vmem:[#allocation2 + $0x10] sm:$0xff]  ;;  %v947_v24 = vld [vmem:[%s5566_s19 + $0x7c] sm:$0xf]  ;;  %v3252_v8 = vrot.slane %v3251_v63, 4  ;;  %v1025_v55 = vsel %vm6044_vm7, %v4782_v59, %v1024_v0  ;;  %v1026_v4 = vrot.slane %v1024_v0, 4  ;;  %v860_v36 = vpop.permute.xlu0 %859  ;;  %v1895_v0 = vpop.permute.xlu1 %1894 }
  0xda   : > { %v2060_v23 = vrot.slane %v6276_v43, 5  ;;  %v6322_v56 = vld [vmem:[%s5566_s19 + $0x80] sm:$0x1]  ;;  %v6325_v25 = vld [vmem:[%s5566_s19 + $0x84] sm:$0xe]  ;;  %2989 = vst.msk [vmem:[#allocation2 + $0x10] sm:$0xff] %vm351_vm3, %v5481_v11 }
  0xdb   : > { %v6328_v40 = vld [vmem:[%s5566_s19 + $0x88] sm:$0xf]  ;;  %v5435_v29 = vld [vmem:[%s7619_s1 + $0xc0] sm:$0xff]   ;;  %v3262_v13 = vrot.slane %v3261_v14, 4  ;;  %v2059_v32 = vrot.slane %v2057_v20, 4  ;;  %v5246_v33 = vrot.slane %v6288_v52, 9  ;;  %v3257_v38 = vsel %vm5578_vm2, %v3252_v8, %v3256_v57  ;;  %2701 = vmatpush1.bf16.msra.mxu1 %v5438_v54 }
  0xdc   : > { %v3653_v34 = vrot.slane %v6291_v27, 5  ;;  %v5442_v35 = vld [vmem:[%s7619_s1 + $0x10] sm:$0xff]   ;;  %v6339_v37 = vld [vmem:[#allocation2 + $0xc0] sm:$0xff]  ;;  %v1028_v39 = vsel %vm6044_vm7, %v1026_v4, %v1027_v2  ;;  %v3656_v41 = vrot.slane %v6301_v60, 5  ;;  %v4791_v42 = vrot.slane %v6308_v9, 9  ;;  %904 = vst.msk [vmem:[#allocation2 + $0x40] sm:$0xff] %vm899_vm4, %v860_v36  ;;  %2702 = vmatprep.subr.bf16.mxu1 %v5521_v31 }
  0xdd   : > { %v6348_v43 = vld [vmem:[%s5566_s19 + $0x8c] sm:$0x1]  ;;  %v6351_v45 = vld [vmem:[%s5566_s19 + $0x90] sm:$0xe]  ;;  %1404 = vst.msk [vmem:[#allocation2 + $0xc0] sm:$0xff] %vm351_vm3, %v5451_v10  ;;  %v6355_v49 = vld [vmem:[#allocation2 + $0x98] sm:$0xff]  ;;  %v3267_v52 = vsel %vm5578_vm2, %v3262_v13, %v3266_v15  ;;  %v4798_v27 = vcombine.low %v1025_v55, %v1028_v39  ;;  %v6365_v50 = vsel %vm6044_vm7, %v4974_v19, %v2057_v20  ;;  %v6374_v48 = vsel %vm6044_vm7, %v2059_v32, %v2060_v23 }
  0xde   : > { %v6368_v57 = vld [vmem:[%s5566_s19 + $0x94] sm:$0xf]  ;;  %v5160_v58 = vld [vmem:[%s5566_s19 + $0x84] sm:$0xf]  ;;  %v2241_v59 = vld [vmem:[#allocation2 + $0x8] sm:$0xff]  ;;  %2233 = vst.msk [vmem:[#allocation2 + $0x98] sm:$0xff] %vm351_vm3, %v4998_v62  ;;  %v5189_v60 = vcombine.low %v3257_v38, %v3267_v52  ;;  %v6391_v2 = vsel %vm6044_vm7, %v5246_v33, %v3653_v34  ;;  %v4990_v8 = vcombine.low %v6365_v50, %v6374_v48 }
  0xdf   : > { %v3655_v53 = vrot.slane %v3653_v34, 4  ;;  %v1087_v54 = vrot.slane %v947_v24, 5  ;;  %v6378_v63 = vld [vmem:[%s5566_s19 + $0x98] sm:$0x1]  ;;  %5041 = vmatprep.mubr.msk.bf16.mxu0 %vm351_vm3, %v2241_v59  ;;  %3820 = vst.msk [vmem:[#allocation2 + $0x8] sm:$0xff] %vm351_vm3, %v5261_v30  ;;  %v5440_v62 = vld [vmem:[%s7619_s1 + $0xc8] sm:$0xff]   ;;  %2703 = vmatpush1.bf16.msra.mxu1 %v5442_v35 }
  0xe0   : > { %1192 = vst.msk [vmem:[#allocation2 + $0x18] sm:$0xff] %vm351_vm3, %v4798_v27  ;;  %v1090_v9 = vrot.slane %v6322_v56, 5  ;;  %v4983_v10 = vrot.slane %v6325_v25, 9  ;;  %v2120_v61 = vrot.slane %v6328_v40, 5  ;;  %v6397_v3 = vld [vmem:[%s5566_s19 + $0x88] sm:$0xf]  ;;  %2450 = vmatmul.mubr.bf16.vlgmr.msra.gmra.mrb[0].mxu0 %v6225_v7  ;;  %3500 = vrot.lane.b32.xlu0 %v5189_v60, %s5520_s20  ;;  %v5270_v7 = vcombine.low %v6283_v47, %v6359_v51 }
  0xe1   : > { %1939 = vst.msk [vmem:[#allocation2 + $0x30] sm:$0xff] %vm899_vm4, %v1895_v0  ;;  %v5455_v30 = vld [vmem:[%s5566_s19 + $0x3c] sm:$0xff]   ;;  %v6405_v11 = vsel %vm6044_vm7, %v3655_v53, %v3656_v41  ;;  %v1088_v14 = vsel %vm6044_vm7, %v4791_v42, %v1087_v54  ;;  %v1089_v15 = vrot.slane %v1087_v54, 4  ;;  %v2123_v19 = vrot.slane %v6348_v43, 5  ;;  %v6411_v20 = vld [vmem:[%s5566_s19 + $0x8c] sm:$0x1]  ;;  %4014 = vmatpush1.bf16.msra.mxu0 %v5435_v29  ;;  %2704 = vmatprep.subr.bf16.mxu1 %v5521_v31  ;;  %v878_v43 = vpop.permute.xlu0 %877 }
  0xe2   : > { %v6414_v24 = vld [vmem:[%s5566_s19 + $0x18] sm:$0xe]  ;;  %v2122_v55 = vrot.slane %v2120_v61, 4  ;;  %v5255_v4 = vrot.slane %v6351_v45, 9  ;;  %v923_v56 = vld [vmem:[%s5566_s19 + $0x1c] sm:$0xf]  ;;  %4015 = vmatprep.subr.bf16.mxu0 %v5521_v31  ;;  %v5262_v35 = vcombine.low %v6391_v2, %v6405_v11  ;;  %v6443_v38 = vsel %vm6044_vm7, %v4983_v10, %v2120_v61 }
  0xe3   : > { %v5447_v23 = vld [vmem:[%s7619_s1 + $0x18] sm:$0xff]   ;;  %v6425_v25 = vld [vmem:[#allocation2 + $0x20] sm:$0xff]  ;;  %v1091_v47 = vsel %vm6044_vm7, %v1089_v15, %v1090_v9  ;;  %v3716_v40 = vrot.slane %v6368_v57, 5  ;;  %v3269_v29 = vshrl.u32 %v5160_v58, 16  ;;  %v3272_v13 = vshll.u32 %v5160_v58, 16  ;;  %v5482_v34 = vld [vmem:[%s5566_s19 + $0x30] sm:$0xff]  }
  0xe4   : > { %v6433_v32 = vld [vmem:[%s5566_s19 + $0x20] sm:$0x1]  ;;  %v6436_v33 = vld [vmem:[%s5566_s19 + $0x24] sm:$0xe]  ;;  %v4807_v36 = vcombine.low %v1088_v14, %v1091_v47  ;;  %v3719_v39 = vrot.slane %v6378_v63, 5  ;;  %v5445_v41 = vld [vmem:[%s7619_s1 + $0xd0] sm:$0xff]   ;;  %v6459_v27 = vsel %vm6044_vm7, %v2122_v55, %v2123_v19  ;;  %2705 = vmatpush1.bf16.msra.mxu1 %v5447_v23  ;;  %v1913_v47 = vpop.permute.xlu1 %1912 }
  0xe5   : > { %v6450_v42 = vld [vmem:[%s5566_s19 + $0x28] sm:$0xf]  ;;  %v5452_v45 = vld [vmem:[%s7619_s1 + $0x20] sm:$0xff]   ;;  %v2258_v52 = vld [vmem:[#allocation2 + $0x90] sm:$0xff]  ;;  %v3271_v50 = vrot.slane %v3269_v29, 4  ;;  %v3274_v57 = vrot.slane %v3272_v13, 5  ;;  %4016 = vmatpush1.bf16.msra.mxu0 %v5440_v62  ;;  %v6471_v48 = vsel %vm6044_vm7, %v5255_v4, %v3716_v40  ;;  %v4999_v14 = vcombine.low %v6443_v38, %v6459_v27  ;;  %2706 = vmatprep.subr.bf16.mxu1 %v5521_v31 }
  0xe6   : > { %v6455_v51 = vld [vmem:[#allocation2 + $0x40] sm:$0xff]  ;;  %v3278_v58 = vshll.u32 %v6397_v3, 16  ;;  %v6463_v59 = vld [vmem:[%s5566_s19 + $0x2c] sm:$0x1]  ;;  %913 = vst.msk [vmem:[#allocation2 + $0xd0] sm:$0xff] %vm899_vm4, %v878_v43  ;;  %v2259_v60 = vld [vmem:[#allocation2 + $0x98] sm:$0xff]  ;;  %4017 = vmatprep.subr.bf16.mxu0 %v5521_v31 }
  0xe7   : > { %1396 = vst.msk [vmem:[#allocation2 + $0x40] sm:$0xff] %vm351_vm3, %v5455_v30  ;;  %2990 = vst.msk [vmem:[#allocation2 + $0x20] sm:$0xff] %vm351_vm3, %v5482_v34  ;;  %v3282_v53 = vshrl.u32 %v6397_v3, 16  ;;  %v3288_v54 = vshll.u32 %v6411_v20, 16  ;;  %v4783_v63 = vrot.slane %v6414_v24, 9  ;;  %5050 = vmatprep.mubr.msk.bf16.mxu1 %vm351_vm3, %v2259_v60  ;;  %v6481_v62 = vld [vmem:[#allocation2 + $0x18] sm:$0xff]  ;;  %v3275_v10 = vor.u32 %v3274_v57, %v3271_v50 }
  0xe8   : > { %1201 = vst.msk [vmem:[#allocation2 + $0xa8] sm:$0xff] %vm351_vm3, %v4807_v36  ;;  %v6477_v0 = vld [vmem:[%s5566_s19 + $0x30] sm:$0xe]  ;;  %3829 = vst.msk [vmem:[#allocation2 + $0x98] sm:$0xff] %vm351_vm3, %v5270_v7  ;;  %v3718_v9 = vrot.slane %v3716_v40, 4  ;;  %v6484_v61 = vrot.slane %v3278_v58, 5  ;;  %2522 = vmatmul.mubr.bf16.gmra.mrb[4].mxu1 %v2258_v52 }
  0xe9   : > { %v1031_v3 = vrot.slane %v923_v56, 5  ;;  %v6487_v30 = vld [vmem:[%s5566_s19 + $0x34] sm:$0xf]  ;;  %2225 = vst.msk [vmem:[#allocation2 + $0x18] sm:$0xff] %vm351_vm3, %v4990_v8  ;;  %v3284_v15 = vrot.slane %v3282_v53, 4  ;;  %v1034_v19 = vrot.slane %v6433_v32, 5  ;;  %4018 = vmatpush1.bf16.msra.mxu0 %v5445_v41  ;;  %2707 = vmatpush1.bf16.msra.mxu1 %v5452_v45 }
  0xea   : > { %v4975_v20 = vrot.slane %v6436_v33, 9  ;;  %v6495_v24 = vld [vmem:[%s5566_s19 + $0x38] sm:$0x1]  ;;  %v949_v55 = vld [vmem:[%s5566_s19 + $0x84] sm:$0xe]  ;;  %v3276_v8 = vrot.slane %v3275_v10, 4  ;;  %4019 = vmatprep.subr.bf16.mxu0 %v5521_v31  ;;  %2708 = vmatprep.subr.bf16.mxu1 %v5521_v31 }
  0xeb   : > { %v5449_v7 = vld [vmem:[%s7619_s1 + $0xd8] sm:$0xff]   ;;  %v1032_v4 = vsel %vm6044_vm7, %v4783_v63, %v1031_v3  ;;  %v1033_v23 = vrot.slane %v1031_v3, 4  ;;  %v2064_v56 = vrot.slane %v6450_v42, 5  ;;  %v950_v40 = vld [vmem:[%s5566_s19 + $0x88] sm:$0xf]  ;;  %v3285_v13 = vor.u32 %v3284_v15, %v6484_v61  ;;  %1948 = vst.msk [vmem:[#allocation2 + $0xc0] sm:$0xff] %vm899_vm4, %v1913_v47 }
  0xec   : > { %v5456_v29 = vld [vmem:[%s7619_s1 + $0x28] sm:$0xff]   ;;  %v3290_v32 = vrot.slane %v3288_v54, 5  ;;  %v2067_v33 = vrot.slane %v6463_v59, 5  ;;  %v3660_v34 = vrot.slane %v6487_v30, 5  ;;  %v5483_v38 = vld [vmem:[%s5566_s19 + $0x3c] sm:$0xff]   ;;  %v6517_v42 = vsel %vm6044_vm7, %v3718_v9, %v3719_v39  ;;  %v6526_v50 = vld [vmem:[#allocation2 + $0x30] sm:$0xff]  ;;  %v862_v54 = vpop.permute.xlu0 %861 }
  0xed   : > { %v951_v36 = vld [vmem:[%s5566_s19 + $0x8c] sm:$0x1]  ;;  %v1035_v41 = vsel %vm6044_vm7, %v1033_v23, %v1034_v19  ;;  %v2066_v43 = vrot.slane %v2064_v56, 4  ;;  %v5247_v52 = vrot.slane %v6477_v0, 9  ;;  %v6524_v27 = vld [vmem:[%s5566_s19 + $0x90] sm:$0xe]  ;;  %v3281_v39 = vsel %vm5578_vm2, %v3276_v8, %v6484_v61  ;;  %4020 = vmatpush1.bf16.msra.mxu0 %v5449_v7  ;;  %2709 = vmatpush1.bf16.msra.mxu1 %v5456_v29 }
  0xee   : > { %v5458_v45 = vld [vmem:[%s5566_s19 + $0xa8] sm:$0xff]   ;;  %v3286_v57 = vrot.slane %v3285_v13, 4  ;;  %v4799_v58 = vcombine.low %v1032_v4, %v1035_v41  ;;  %v3662_v59 = vrot.slane %v3660_v34, 4  ;;  %v6534_v60 = vld [vmem:[%s5566_s19 + $0x94] sm:$0xf]  ;;  %v5454_v63 = vld [vmem:[%s7619_s1 + $0xe0] sm:$0xff]   ;;  %v6550_v10 = vsel %vm6044_vm7, %v4975_v20, %v2064_v56  ;;  %4021 = vmatprep.subr.bf16.mxu0 %v5521_v31  ;;  %2710 = vmatprep.subr.bf16.mxu1 %v5521_v31 }
  0xef   : > { %v6537_v53 = vld [vmem:[%s5566_s19 + $0x98] sm:$0x1]  ;;  %v5461_v0 = vld [vmem:[%s7619_s1 + $0x30] sm:$0xff]   ;;  %2991 = vst.msk [vmem:[#allocation2 + $0x30] sm:$0xff] %vm351_vm3, %v5483_v38  ;;  %v6546_v9 = vld [vmem:[#allocation2 + $0xa8] sm:$0xff]  ;;  %v3663_v61 = vrot.slane %v6495_v24, 5  ;;  %v6564_v20 = vsel %vm6044_vm7, %v2066_v43, %v2067_v33  ;;  %v6584_v7 = vsel %vm6044_vm7, %v5247_v52, %v3660_v34  ;;  %v1897_v43 = vpop.permute.xlu1 %1896 }
  0xf0   : > { %v4792_v3 = vrot.slane %v949_v55, 9  ;;  %v1094_v30 = vrot.slane %v950_v40, 5  ;;  %v6554_v15 = vld [vmem:[%s5566_s19 + $0xa0] sm:$0xf]  ;;  %v5163_v19 = vld [vmem:[%s5566_s19 + $0x90] sm:$0xf]  ;;  %v3291_v8 = vsel %vm5578_vm2, %v3286_v57, %v3290_v32  ;;  %v4991_v34 = vcombine.low %v6550_v10, %v6564_v20 }
  0xf1   : > { %905 = vst.msk [vmem:[#allocation2 + $0x50] sm:$0xff] %vm899_vm4, %v862_v54  ;;  %v1097_v24 = vrot.slane %v951_v36, 5  ;;  %v4984_v55 = vrot.slane %v6524_v27, 9  ;;  %v6568_v4 = vld [vmem:[%s5566_s19 + $0x94] sm:$0xf]  ;;  %v2243_v23 = vld [vmem:[#allocation2 + $0x18] sm:$0xff]  ;;  %v6588_v29 = vsel %vm6044_vm7, %v3662_v59, %v3663_v61  ;;  %4022 = vmatpush1.bf16.msra.mxu0 %v5454_v63  ;;  %2711 = vmatpush1.bf16.msra.mxu1 %v5461_v0 }
  0xf2   : > { %2234 = vst.msk [vmem:[#allocation2 + $0xa8] sm:$0xff] %vm351_vm3, %v4999_v14  ;;  %1193 = vst.msk [vmem:[#allocation2 + $0x28] sm:$0xff] %vm351_vm3, %v4799_v58  ;;  %v5190_v14 = vcombine.low %v3281_v39, %v3291_v8  ;;  %v1095_v56 = vsel %vm6044_vm7, %v4792_v3, %v1094_v30  ;;  %v1096_v47 = vrot.slane %v1094_v30, 4  ;;  %v6573_v40 = vld [vmem:[%s5566_s19 + $0x98] sm:$0x1]  ;;  %5042 = vmatprep.mubr.msk.bf16.mxu0 %vm351_vm3, %v2243_v23  ;;  %v2127_v13 = vrot.slane %v6534_v60, 5 }
  0xf3   : > { %3821 = vst.msk [vmem:[#allocation2 + $0x18] sm:$0xff] %vm351_vm3, %v5262_v35  ;;  %v2130_v32 = vrot.slane %v6537_v53, 5  ;;  %v6593_v33 = vld [vmem:[%s5566_s19 + $0x9c] sm:$0xe]  ;;  %v6596_v36 = vld [vmem:[%s5566_s19 + $0xa4] sm:$0x1]  ;;  %2458 = vmatmul.mubr.bf16.gmra.mrb[4].mxu0 %v6314_v21  ;;  %v5271_v35 = vcombine.low %v6471_v48, %v6517_v42  ;;  %v5263_v60 = vcombine.low %v6584_v7, %v6588_v29  ;;  %4023 = vmatprep.subr.bf16.mxu0 %v5521_v31 }
  0xf4   : > { %v6598_v2 = vld [vmem:[#allocation2 + $0xd0] sm:$0xff]  ;;  %v5459_v11 = vld [vmem:[%s7619_s1 + $0xe8] sm:$0xff]   ;;  %3502 = vrot.lane.b32.xlu1 %v5190_v14, %s5520_s20  ;;  %v1098_v38 = vsel %vm6044_vm7, %v1096_v47, %v1097_v24  ;;  %v3293_v41 = vshrl.u32 %v5163_v19, 16  ;;  %v6612_v52 = vld [vmem:[%s5566_s19 + $0x24] sm:$0xe]  ;;  %v2129_v42 = vrot.slane %v2127_v13, 4  ;;  %v6629_v53 = vsel %vm6044_vm7, %v4984_v55, %v2127_v13  ;;  %2712 = vmatprep.subr.bf16.mxu1 %v5521_v31 }
  0xf5   : > { %1405 = vst.msk [vmem:[#allocation2 + $0xd0] sm:$0xff] %vm351_vm3, %v5458_v45  ;;  %v5462_v21 = vld [vmem:[%s5566_s19 + $0x48] sm:$0xff]   ;;  %v2260_v27 = vld [vmem:[#allocation2 + $0xa0] sm:$0xff]  ;;  %v4808_v48 = vcombine.low %v1095_v56, %v1098_v38  ;;  %v3723_v39 = vrot.slane %v6554_v15, 5  ;;  %v3296_v57 = vshll.u32 %v5163_v19, 16  ;;  %v5466_v45 = vld [vmem:[%s7619_s1 + $0x38] sm:$0xff]   ;;  %v880_v38 = vpop.permute.xlu0 %879  ;;  %4024 = vmatpush1.bf16.msra.mxu0 %v5459_v11 }
  0xf6   : > { %1940 = vst.msk [vmem:[#allocation2 + $0x40] sm:$0xff] %vm899_vm4, %v1897_v43  ;;  %v926_v58 = vld [vmem:[%s5566_s19 + $0x28] sm:$0xf]  ;;  %v6620_v59 = vld [vmem:[%s5566_s19 + $0x2c] sm:$0x1]  ;;  %v3295_v54 = vrot.slane %v3293_v41, 4  ;;  %v6643_v0 = vsel %vm6044_vm7, %v2129_v42, %v2130_v32  ;;  %4025 = vmatprep.subr.bf16.mxu0 %v5521_v31  ;;  %2713 = vmatpush1.bf16.msra.mxu1 %v5466_v45  ;;  %v1915_v45 = vpop.permute.xlu1 %1914 }
  0xf7   : > { %v3302_v63 = vshll.u32 %v6568_v4, 16  ;;  %v6633_v10 = vld [vmem:[%s5566_s19 + $0x30] sm:$0xe]  ;;  %v6636_v61 = vld [vmem:[%s5566_s19 + $0x34] sm:$0xf]  ;;  %1202 = vst.msk [vmem:[#allocation2 + $0xb8] sm:$0xff] %vm351_vm3, %v4808_v48  ;;  %v5000_v47 = vcombine.low %v6629_v53, %v6643_v0  ;;  %2714 = vmatprep.subr.bf16.mxu1 %v5521_v31 }
  0xf8   : > { %v3298_v3 = vrot.slane %v3296_v57, 5  ;;  %v3306_v30 = vshrl.u32 %v6568_v4, 16  ;;  %v3312_v15 = vshll.u32 %v6573_v40, 16  ;;  %v6648_v19 = vld [vmem:[%s5566_s19 + $0x38] sm:$0x1]  ;;  %v6650_v8 = vld [vmem:[#allocation2 + $0x50] sm:$0xff] }
  0xf9   : > { %v5463_v20 = vld [vmem:[%s7619_s1 + $0xf0] sm:$0xff]   ;;  %v2261_v24 = vld [vmem:[#allocation2 + $0xa8] sm:$0xff]  ;;  %v5256_v23 = vrot.slane %v6593_v33, 9  ;;  %v3726_v4 = vrot.slane %v6596_v36, 5  ;;  %v6659_v14 = vrot.slane %v3302_v63, 5  ;;  %v4784_v56 = vrot.slane %v6612_v52, 9 }
  0xfa   : > { %v6655_v55 = vld [vmem:[#allocation2 + $0x28] sm:$0xff]  ;;  %1397 = vst.msk [vmem:[#allocation2 + $0x50] sm:$0xff] %vm351_vm3, %v5462_v21  ;;  %5051 = vmatprep.mubr.msk.bf16.mxu1 %vm351_vm3, %v2261_v24  ;;  %3830 = vst.msk [vmem:[#allocation2 + $0xa8] sm:$0xff] %vm351_vm3, %v5271_v35  ;;  %v3725_v40 = vrot.slane %v3723_v39, 4  ;;  %v3299_v13 = vor.u32 %v3298_v3, %v3295_v54  ;;  %v3308_v32 = vrot.slane %v3306_v30, 4  ;;  %v3314_v35 = vrot.slane %v3312_v15, 5  ;;  %4026 = vmatpush1.bf16.msra.mxu0 %v5463_v20 }
  0xfb   : > { %2226 = vst.msk [vmem:[#allocation2 + $0x28] sm:$0xff] %vm351_vm3, %v4991_v34  ;;  %v6669_v33 = vld [vmem:[%s5566_s19 + $0x3c] sm:$0xe]  ;;  %v6672_v36 = vld [vmem:[%s5566_s19 + $0x40] sm:$0xf]  ;;  %2530 = vmatmul.mubr.bf16.gmra.mrb[8].mxu1 %v2260_v27  ;;  %v1038_v34 = vrot.slane %v926_v58, 5  ;;  %v6697_v54 = vsel %vm6044_vm7, %v5256_v23, %v3723_v39  ;;  %4027 = vmatprep.subr.bf16.mxu0 %v5521_v31 }
  0xfc   : > { %v6675_v41 = vld [vmem:[%s5566_s19 + $0x90] sm:$0xe]  ;;  %v1041_v43 = vrot.slane %v6620_v59, 5  ;;  %v2071_v52 = vrot.slane %v6636_v61, 5  ;;  %914 = vst.msk [vmem:[#allocation2 + $0xe0] sm:$0xff] %vm899_vm4, %v880_v38  ;;  %v5484_v21 = vld [vmem:[%s5566_s19 + $0x48] sm:$0xff]   ;;  %v3309_v42 = vor.u32 %v3308_v32, %v6659_v14  ;;  %v6705_v3 = vsel %vm6044_vm7, %v3725_v40, %v3726_v4 }
  0xfd   : > { %v3300_v48 = vrot.slane %v3299_v13, 4  ;;  %v4976_v57 = vrot.slane %v6633_v10, 9  ;;  %v2074_v11 = vrot.slane %v6648_v19, 5  ;;  %v6686_v27 = vld [vmem:[%s5566_s19 + $0x44] sm:$0x1]  ;;  %v5468_v59 = vld [vmem:[%s7619_s1 + $0xf8] sm:$0xff]   ;;  %v1039_v63 = vsel %vm6044_vm7, %v4784_v56, %v1038_v34 }
  0xfe   : > { %v953_v58 = vld [vmem:[%s5566_s19 + $0x94] sm:$0xf]  ;;  %v5470_v53 = vld [vmem:[%s7619_s1 + $0x40] sm:$0xff]   ;;  %v1040_v10 = vrot.slane %v1038_v34, 4  ;;  %v2073_v61 = vrot.slane %v2071_v52, 4  ;;  %v3310_v30 = vrot.slane %v3309_v42, 4  ;;  %4028 = vmatpush1.bf16.msra.mxu0 %v5468_v59 }
  0xff   : > { %v954_v0 = vld [vmem:[%s5566_s19 + $0x98] sm:$0x1]  ;;  %v3305_v39 = vsel %vm5578_vm2, %v3300_v48, %v6659_v14  ;;  %v3667_v15 = vrot.slane %v6672_v36, 5  ;;  %1949 = vst.msk [vmem:[#allocation2 + $0xd0] sm:$0xff] %vm899_vm4, %v1915_v45  ;;  %v6713_v19 = vld [vmem:[%s5566_s19 + $0x9c] sm:$0xe]  ;;  %2715 = vmatpush1.bf16.msra.mxu1 %v5470_v53  ;;  %v864_v45 = vpop.permute.xlu0 %863  ;;  %4029 = vmatprep.subr.bf16.mxu0 %v5521_v31 }
 0x100   : > { %v6716_v24 = vld [vmem:[%s5566_s19 + $0xa0] sm:$0xf]  ;;  %v5465_v4 = vld [vmem:[%s5566_s19 + $0xb4] sm:$0xff]   ;;  %v5473_v56 = vld [vmem:[%s7619_s1 + $0x48] sm:$0xff]   ;;  %v1042_v40 = vsel %vm6044_vm7, %v1040_v10, %v1041_v43  ;;  %v5248_v13 = vrot.slane %v6669_v33, 9  ;;  %v4793_v32 = vrot.slane %v6675_v41, 9  ;;  %v3315_v34 = vsel %vm5578_vm2, %v3310_v30, %v3314_v35  ;;  %2716 = vmatprep.subr.bf16.mxu1 %v5521_v31 }
 0x101   : > { %v6718_v23 = vld [vmem:[#allocation2 + $0x40] sm:$0xff]  ;;  %v6724_v14 = vld [vmem:[#allocation2 + $0xb8] sm:$0xff]  ;;  %v1101_v36 = vrot.slane %v953_v58, 5  ;;  %v6734_v20 = vld [vmem:[%s5566_s19 + $0xac] sm:$0xf]  ;;  %v4800_v43 = vcombine.low %v1039_v63, %v1042_v40  ;;  %v6743_v33 = vsel %vm6044_vm7, %v4976_v57, %v2071_v52  ;;  %v6747_v41 = vsel %vm6044_vm7, %v2073_v61, %v2074_v11  ;;  %906 = vst.msk [vmem:[#allocation2 + $0x60] sm:$0xff] %vm899_vm4, %v864_v45 }
 0x102   : > { %v6731_v38 = vld [vmem:[%s5566_s19 + $0xa4] sm:$0x1]  ;;  %2992 = vst.msk [vmem:[#allocation2 + $0x40] sm:$0xff] %vm351_vm3, %v5484_v21  ;;  %2235 = vst.msk [vmem:[#allocation2 + $0xb8] sm:$0xff] %vm351_vm3, %v5000_v47  ;;  %v6750_v48 = vld [vmem:[%s5566_s19 + $0xa8] sm:$0xe]  ;;  %v5191_v21 = vcombine.low %v3305_v39, %v3315_v34  ;;  %v5272_v39 = vcombine.low %v6697_v54, %v6705_v3  ;;  %v4992_v7 = vcombine.low %v6743_v33, %v6747_v41 }
 0x103   : > { %v6753_v42 = vld [vmem:[%s5566_s19 + $0x9c] sm:$0xf]  ;;  %v5472_v47 = vld [vmem:[%s7619_s1 + $0x100] sm:$0xff]   ;;  %v2245_v35 = vld [vmem:[#allocation2 + $0x28] sm:$0xff]  ;;  %v3669_v58 = vrot.slane %v3667_v15, 4  ;;  %v3670_v52 = vrot.slane %v6686_v27, 5  ;;  %v1102_v53 = vsel %vm6044_vm7, %v4793_v32, %v1101_v36  ;;  %v6790_v54 = vsel %vm6044_vm7, %v5248_v13, %v3667_v15  ;;  %2717 = vmatpush1.bf16.msra.mxu1 %v5473_v56 }
 0x104   : > { %v1103_v57 = vrot.slane %v1101_v36, 4  ;;  %v6760_v63 = vld [vmem:[%s5566_s19 + $0xb0] sm:$0x1]  ;;  %v5167_v11 = vld [vmem:[%s5566_s19 + $0xa0] sm:$0xf]  ;;  %5043 = vmatprep.mubr.msk.bf16.mxu0 %vm351_vm3, %v2245_v35  ;;  %3822 = vst.msk [vmem:[#allocation2 + $0x28] sm:$0xff] %vm351_vm3, %v5263_v60  ;;  %3504 = vrot.lane.b32.xlu0 %v5191_v21, %s5520_s20 }
 0x105   : > { %1194 = vst.msk [vmem:[#allocation2 + $0x38] sm:$0xff] %vm351_vm3, %v4800_v43  ;;  %v1104_v10 = vrot.slane %v954_v0, 5  ;;  %v2134_v27 = vrot.slane %v6716_v24, 5  ;;  %v5168_v61 = vld [vmem:[%s5566_s19 + $0xa4] sm:$0x1]  ;;  %2466 = vmatmul.mubr.bf16.gmra.mrb[8].mxu0 %v6425_v25  ;;  %v4985_v29 = vrot.slane %v6713_v19, 9  ;;  %v6803_v15 = vsel %vm6044_vm7, %v3669_v58, %v3670_v52  ;;  %2718 = vmatprep.subr.bf16.mxu1 %v5521_v31 }
 0x106   : > { %v3730_v60 = vrot.slane %v6734_v20, 5  ;;  %v6783_v0 = vld [vmem:[#allocation2 + $0xe0] sm:$0xff]  ;;  %v5476_v25 = vld [vmem:[%s7619_s1 + $0x50] sm:$0xff]   ;;  %v2137_v19 = vrot.slane %v6731_v38, 5  ;;  %v5475_v40 = vld [vmem:[%s7619_s1 + $0x108] sm:$0xff]   ;;  %v5257_v32 = vrot.slane %v6750_v48, 9  ;;  %v1899_v38 = vpop.permute.xlu1 %1898  ;;  %4030 = vmatpush1.bf16.msra.mxu0 %v5472_v47 }
 0x107   : > { %v2262_v59 = vld [vmem:[#allocation2 + $0xb0] sm:$0xff]  ;;  %v1105_v3 = vsel %vm6044_vm7, %v1103_v57, %v1104_v10  ;;  %v2136_v30 = vrot.slane %v2134_v27, 4  ;;  %1406 = vst.msk [vmem:[#allocation2 + $0xe0] sm:$0xff] %vm351_vm3, %v5465_v4  ;;  %v3317_v36 = vshrl.u32 %v6753_v42, 16  ;;  %v930_v4 = vld [vmem:[%s5566_s19 + $0x38] sm:$0x1]  ;;  %v2135_v58 = vsel %vm6044_vm7, %v4985_v29, %v2134_v27  ;;  %4031 = vmatprep.subr.bf16.mxu0 %v5521_v31  ;;  %2719 = vmatpush1.bf16.msra.mxu1 %v5476_v25 }
 0x108   : > { %v928_v24 = vld [vmem:[%s5566_s19 + $0x30] sm:$0xe]  ;;  %v4809_v13 = vcombine.low %v1102_v53, %v1105_v3  ;;  %v929_v34 = vld [vmem:[%s5566_s19 + $0x34] sm:$0xf]  ;;  %v3733_v56 = vrot.slane %v6760_v63, 5  ;;  %v3320_v43 = vshll.u32 %v6753_v42, 16  ;;  %2720 = vmatprep.subr.bf16.mxu1 %v5521_v31 }
 0x109   : > { %v3326_v33 = vshll.u32 %v5167_v11, 16  ;;  %v3330_v41 = vshrl.u32 %v5167_v11, 16  ;;  %1941 = vst.msk [vmem:[#allocation2 + $0x50] sm:$0xff] %vm899_vm4, %v1899_v38  ;;  %v6814_v35 = vld [vmem:[%s5566_s19 + $0x3c] sm:$0xe]  ;;  %v3732_v52 = vrot.slane %v3730_v60, 4  ;;  %v2138_v47 = vsel %vm6044_vm7, %v2136_v30, %v2137_v19 }
 0x10a   : > { %v2263_v21 = vld [vmem:[#allocation2 + $0xb8] sm:$0xff]  ;;  %1203 = vst.msk [vmem:[#allocation2 + $0xc8] sm:$0xff] %vm351_vm3, %v4809_v13  ;;  %v3319_v57 = vrot.slane %v3317_v36, 4  ;;  %v3336_v53 = vshll.u32 %v5168_v61, 16  ;;  %v6822_v42 = vld [vmem:[%s5566_s19 + $0x40] sm:$0xf]  ;;  %4032 = vmatpush1.bf16.msra.mxu0 %v5475_v40 }
 0x10b   : > { %5052 = vmatprep.mubr.msk.bf16.mxu1 %vm351_vm3, %v2263_v21  ;;  %3831 = vst.msk [vmem:[#allocation2 + $0xb8] sm:$0xff] %vm351_vm3, %v5272_v39  ;;  %v3322_v11 = vrot.slane %v3320_v43, 5  ;;  %v3328_v10 = vrot.slane %v3326_v33, 5  ;;  %v3332_v27 = vrot.slane %v3330_v41, 4  ;;  %v5469_v45 = vld [vmem:[%s5566_s19 + $0x54] sm:$0xff]   ;;  %v4785_v13 = vrot.slane %v928_v24, 9  ;;  %v882_v43 = vpop.permute.xlu0 %881  ;;  %4033 = vmatprep.subr.bf16.mxu0 %v5521_v31 }
 0x10c   : > { %v5479_v61 = vld [vmem:[%s7619_s1 + $0x58] sm:$0xff]   ;;  %2538 = vmatmul.mubr.bf16.gmra.mrb[12].mxu1 %v2262_v59  ;;  %v3338_v3 = vrot.slane %v3336_v53, 5  ;;  %v1045_v39 = vrot.slane %v929_v34, 5  ;;  %v1048_v36 = vrot.slane %v930_v4, 5  ;;  %v4939_v19 = vld [vmem:[%s5566_s19 + $0x44] sm:$0x1]  ;;  %v5001_v4 = vcombine.low %v2135_v58, %v2138_v47 }
 0x10d   : > { %v6833_v29 = vld [vmem:[#allocation2 + $0x38] sm:$0xff]  ;;  %v3323_v30 = vor.u32 %v3322_v11, %v3319_v57  ;;  %v3333_v25 = vor.u32 %v3332_v27, %v3328_v10  ;;  %v4977_v38 = vrot.slane %v6814_v35, 9  ;;  %v2078_v59 = vrot.slane %v6822_v42, 5  ;;  %v5477_v24 = vld [vmem:[%s7619_s1 + $0x110] sm:$0xff]   ;;  %v6847_v41 = vld [vmem:[%s5566_s19 + $0x48] sm:$0xe]  ;;  %2721 = vmatpush1.bf16.msra.mxu1 %v5479_v61 }
 0x10e   : > { %2227 = vst.msk [vmem:[#allocation2 + $0x38] sm:$0xff] %vm351_vm3, %v4992_v7  ;;  %v5485_v34 = vld [vmem:[%s5566_s19 + $0x54] sm:$0xff]   ;;  %v1046_v33 = vsel %vm6044_vm7, %v4785_v13, %v1045_v39  ;;  %v1047_v7 = vrot.slane %v1045_v39, 4  ;;  %v6850_v21 = vld [vmem:[%s5566_s19 + $0x4c] sm:$0xf]  ;;  %v6853_v35 = vld [vmem:[#allocation2 + $0x60] sm:$0xff]  ;;  %v5264_v42 = vcombine.low %v6790_v54, %v6803_v15  ;;  %4034 = vmatpush1.bf16.msra.mxu0 %v5477_v24  ;;  %v3731_v15 = vsel %vm6044_vm7, %v5257_v32, %v3730_v60 }
 0x10f   : > { %915 = vst.msk [vmem:[#allocation2 + $0xf0] sm:$0xff] %vm899_vm4, %v882_v43  ;;  %v3324_v40 = vrot.slane %v3323_v30, 4  ;;  %v3334_v57 = vrot.slane %v3333_v25, 4  ;;  %v6857_v53 = vld [vmem:[%s5566_s19 + $0x50] sm:$0x1]  ;;  %v5480_v58 = vld [vmem:[%s7619_s1 + $0x118] sm:$0xff]   ;;  %4035 = vmatprep.subr.bf16.mxu0 %v5521_v31  ;;  %v2079_v20 = vsel %vm6044_vm7, %v4977_v38, %v2078_v59 }
 0x110   : > { %1398 = vst.msk [vmem:[#allocation2 + $0x60] sm:$0xff] %vm351_vm3, %v5469_v45  ;;  %v1049_v47 = vsel %vm6044_vm7, %v1047_v7, %v1048_v36  ;;  %v2080_v11 = vrot.slane %v2078_v59, 4  ;;  %v2081_v27 = vrot.slane %v4939_v19, 5  ;;  %v5471_v13 = vld [vmem:[%s5566_s19 + $0xc0] sm:$0xff]   ;;  %v3674_v54 = vrot.slane %v6850_v21, 5  ;;  %v1917_v36 = vpop.permute.xlu1 %1916  ;;  %v6887_v19 = vld [vmem:[#allocation2 + $0x50] sm:$0xff]  ;;  %v866_v7 = vpop.permute.xlu0 %865 }
 0x111   : > { %v6868_v39 = vld [vmem:[#allocation2 + $0xc8] sm:$0xff]  ;;  %v3329_v45 = vsel %vm5578_vm2, %v3324_v40, %v3328_v10  ;;  %v3339_v61 = vsel %vm5578_vm2, %v3334_v57, %v3338_v3  ;;  %v4801_v30 = vcombine.low %v1046_v33, %v1049_v47  ;;  %v3734_v10 = vsel %vm6044_vm7, %v3732_v52, %v3733_v56  ;;  %v955_v25 = vld [vmem:[%s5566_s19 + $0x9c] sm:$0xe]  ;;  %1950 = vst.msk [vmem:[#allocation2 + $0xe0] sm:$0xff] %vm899_vm4, %v1917_v36  ;;  %v956_v63 = vld [vmem:[%s5566_s19 + $0xa0] sm:$0xf] }
 0x112   : > { %2236 = vst.msk [vmem:[#allocation2 + $0xc8] sm:$0xff] %vm351_vm3, %v5001_v4  ;;  %v5192_v3 = vcombine.low %v3329_v45, %v3339_v61  ;;  %v5249_v48 = vrot.slane %v6847_v41, 9  ;;  %v957_v60 = vld [vmem:[%s5566_s19 + $0xa4] sm:$0x1]  ;;  %v4794_v32 = vrot.slane %v955_v25, 9  ;;  %2993 = vst.msk [vmem:[#allocation2 + $0x50] sm:$0xff] %vm351_vm3, %v5485_v34  ;;  %v2082_v31 = vsel %vm6044_vm7, %v2080_v11, %v2081_v27  ;;  %4036 = vmatpush1.bf16.msra.mxu0 %v5480_v58 }
 0x113   : > { %1195 = vst.msk [vmem:[#allocation2 + $0x48] sm:$0xff] %vm351_vm3, %v4801_v30  ;;  %v3677_v52 = vrot.slane %v6857_v53, 5  ;;  %v1108_v38 = vrot.slane %v956_v63, 5  ;;  %v1111_v59 = vrot.slane %v957_v60, 5  ;;  %v4964_v43 = vld [vmem:[%s5566_s19 + $0xa8] sm:$0xe]  ;;  %v5273_v24 = vcombine.low %v3731_v15, %v3734_v10 }
 0x114   : > { %3506 = vrot.lane.b32.xlu1 %v5192_v3, %s5520_s20  ;;  %v3676_v4 = vrot.slane %v3674_v54, 4  ;;  %v4965_v34 = vld [vmem:[%s5566_s19 + $0xac] sm:$0xf]  ;;  %v4966_v33 = vld [vmem:[%s5566_s19 + $0xb0] sm:$0x1]  ;;  %v2264_v21 = vld [vmem:[#allocation2 + $0xc0] sm:$0xff]  ;;  %v4993_v11 = vcombine.low %v2079_v20, %v2082_v31 }
 0x115   : > { %v2247_v56 = vld [vmem:[#allocation2 + $0x38] sm:$0xff]  ;;  %v1109_v40 = vsel %vm6044_vm7, %v4794_v32, %v1108_v38  ;;  %v1110_v57 = vrot.slane %v1108_v38, 4  ;;  %v4986_v53 = vrot.slane %v4964_v43, 9  ;;  %907 = vst.msk [vmem:[#allocation2 + $0x70] sm:$0xff] %vm899_vm4, %v866_v7  ;;  %v6916_v27 = vld [vmem:[%s5566_s19 + $0xb4] sm:$0xe]  ;;  %v1901_v38 = vpop.permute.xlu1 %1900 }
 0x116   : > { %5044 = vmatprep.mubr.msk.bf16.mxu0 %vm351_vm3, %v2247_v56  ;;  %3823 = vst.msk [vmem:[#allocation2 + $0x38] sm:$0xff] %vm351_vm3, %v5264_v42  ;;  %v6907_v41 = vld [vmem:[#allocation2 + $0xf0] sm:$0xff]  ;;  %v2141_v42 = vrot.slane %v4965_v34, 5  ;;  %v5488_v47 = vld [vmem:[%s5566_s19 + $0x78] sm:$0xff]   ;;  %v2144_v30 = vrot.slane %v4966_v33, 5  ;;  %v5474_v15 = vld [vmem:[%s5566_s19 + $0x60] sm:$0xff]   ;;  %v3678_v63 = vsel %vm6044_vm7, %v3676_v4, %v3677_v52 }
 0x117   : > { %7627 = vst [vmem:[#allocation4_spill] sm:$0xff] %v6907_v41  ;;  %2474 = vmatmul.mubr.bf16.gmra.mrb[12].mxu0 %v6526_v50  ;;  %1407 = vst.msk [vmem:[#allocation2 + $0xf0] sm:$0xff] %vm351_vm3, %v5471_v13  ;;  %v6919_v58 = vld [vmem:[%s5566_s19 + $0xb8] sm:$0xf]  ;;  %v6922_v50 = vld [vmem:[%s5566_s19 + $0xbc] sm:$0x1]  ;;  %v1112_v45 = vsel %vm6044_vm7, %v1110_v57, %v1111_v59  ;;  %v3675_v13 = vsel %vm6044_vm7, %v5249_v48, %v3674_v54 }
 0x118   : > { %v2143_v61 = vrot.slane %v2141_v42, 4  ;;  %2996 = vst.msk [vmem:[#allocation2 + $0x80] sm:$0xff] %vm351_vm3, %v5488_v47  ;;  %v4810_v3 = vcombine.low %v1109_v40, %v1112_v45  ;;  %v5169_v36 = vld [vmem:[%s5566_s19 + $0xa8] sm:$0xf]  ;;  %v5170_v25 = vld [vmem:[%s5566_s19 + $0xac] sm:$0xf]  ;;  %v2142_v52 = vsel %vm6044_vm7, %v4986_v53, %v2141_v42  ;;  %v5265_v53 = vcombine.low %v3675_v13, %v3678_v63 }
 0x119   : > { %v2265_v10 = vld [vmem:[#allocation2 + $0xc8] sm:$0xff]  ;;  %v5258_v60 = vrot.slane %v6916_v27, 9  ;;  %v3737_v32 = vrot.slane %v6919_v58, 5  ;;  %v5171_v56 = vld [vmem:[%s5566_s19 + $0xb0] sm:$0x1]  ;;  %v3341_v31 = vshrl.u32 %v5169_v36, 16 }
 0x11a   : > { %5053 = vmatprep.mubr.msk.bf16.mxu1 %vm351_vm3, %v2265_v10  ;;  %3832 = vst.msk [vmem:[#allocation2 + $0xc8] sm:$0xff] %vm351_vm3, %v5273_v24  ;;  %v6934_v20 = vld [vmem:[#allocation2 + $0x48] sm:$0xff]  ;;  %1204 = vst.msk [vmem:[#allocation2 + $0xd8] sm:$0xff] %vm351_vm3, %v4810_v3  ;;  %v3740_v54 = vrot.slane %v6922_v50, 5  ;;  %v3344_v48 = vshll.u32 %v5169_v36, 16  ;;  %v3350_v59 = vshll.u32 %v5170_v25, 16  ;;  %v2145_v24 = vsel %vm6044_vm7, %v2143_v61, %v2144_v30  ;;  %v1919_v30 = vpop.permute.xlu0 %1918 }
 0x11b   : > { %2546 = vmatmul.mubr.bf16.gmra.mrb[16].mxu1 %v2264_v21  ;;  %2228 = vst.msk [vmem:[#allocation2 + $0x48] sm:$0xff] %vm351_vm3, %v4993_v11  ;;  %v3354_v43 = vshrl.u32 %v5170_v25, 16  ;;  %v3343_v4 = vrot.slane %v3341_v31, 4  ;;  %v3360_v34 = vshll.u32 %v5171_v56, 16  ;;  %v5486_v57 = vld [vmem:[%s5566_s19 + $0x60] sm:$0xff]   ;;  %v3739_v47 = vrot.slane %v3737_v32, 4 }
 0x11c   : > { %1942 = vst.msk [vmem:[#allocation2 + $0x60] sm:$0xff] %vm899_vm4, %v1901_v38  ;;  %v3346_v33 = vrot.slane %v3344_v48, 5  ;;  %v3352_v7 = vrot.slane %v3350_v59, 5  ;;  %v6949_v40 = vld [vmem:[#allocation2 + $0x70] sm:$0xff]  ;;  %v5002_v42 = vcombine.low %v2142_v52, %v2145_v24  ;;  %v931_v50 = vld [vmem:[%s5566_s19 + $0x3c] sm:$0xe]  ;;  %v3738_v59 = vsel %vm6044_vm7, %v5258_v60, %v3737_v32 }
 0x11d   : > { %v3356_v21 = vrot.slane %v3354_v43, 4  ;;  %v3362_v11 = vrot.slane %v3360_v34, 5  ;;  %1399 = vst.msk [vmem:[#allocation2 + $0x70] sm:$0xff] %vm351_vm3, %v5474_v15  ;;  %v932_v45 = vld [vmem:[%s5566_s19 + $0x40] sm:$0xf]  ;;  %v4786_v10 = vrot.slane %v931_v50, 9  ;;  %v3741_v60 = vsel %vm6044_vm7, %v3739_v47, %v3740_v54 }
 0x11e   : > { %v3347_v27 = vor.u32 %v3346_v33, %v3343_v4  ;;  %v933_v61 = vld [vmem:[%s5566_s19 + $0x44] sm:$0x1]  ;;  %v1052_v3 = vrot.slane %v932_v45, 5  ;;  %v4940_v25 = vld [vmem:[%s5566_s19 + $0x48] sm:$0xe]  ;;  %1951 = vst.msk [vmem:[#allocation2 + $0xf0] sm:$0xff] %vm899_vm4, %v1919_v30  ;;  %v1903_v4 = vpop.permute.xlu1 %1902 }
 0x11f   : > { %v3357_v58 = vor.u32 %v3356_v21, %v3352_v7  ;;  %v1055_v36 = vrot.slane %v933_v61, 5  ;;  %v5489_v56 = vld [vmem:[%s5566_s19 + $0x84] sm:$0xff]   ;;  %v4941_v15 = vld [vmem:[%s5566_s19 + $0x4c] sm:$0xf]  ;;  %v4942_v13 = vld [vmem:[%s5566_s19 + $0x50] sm:$0x1]  ;;  %v5274_v61 = vcombine.low %v3738_v59, %v3741_v60 }
 0x120   : > { %v3348_v31 = vrot.slane %v3347_v27, 4  ;;  %v1053_v43 = vsel %vm6044_vm7, %v4786_v10, %v1052_v3  ;;  %v1054_v52 = vrot.slane %v1052_v3, 4  ;;  %v2085_v24 = vrot.slane %v4941_v15, 5  ;;  %2997 = vst.msk [vmem:[#allocation2 + $0x90] sm:$0xff] %vm351_vm3, %v5489_v56  ;;  %v5213_v27 = vld [vmem:[%s5566_s19 + $0x58] sm:$0xf] }
 0x121   : > { %v3358_v38 = vrot.slane %v3357_v58, 4  ;;  %v6961_v48 = vld [vmem:[#allocation2 + $0xd8] sm:$0xff]  ;;  %v4978_v21 = vrot.slane %v4940_v25, 9  ;;  %1943 = vst.msk [vmem:[#allocation2 + $0x70] sm:$0xff] %vm899_vm4, %v1903_v4  ;;  %v3681_v50 = vrot.slane %v5213_v27, 5  ;;  %v5490_v45 = vld [vmem:[%s5566_s19 + $0x90] sm:$0xff]  }
 0x122   : > { %v2249_v63 = vld [vmem:[#allocation2 + $0x48] sm:$0xff]  ;;  %2237 = vst.msk [vmem:[#allocation2 + $0xd8] sm:$0xff] %vm351_vm3, %v5002_v42  ;;  %v3353_v32 = vsel %vm5578_vm2, %v3348_v31, %v3352_v7  ;;  %v1056_v54 = vsel %vm6044_vm7, %v1054_v52, %v1055_v36  ;;  %v2087_v47 = vrot.slane %v2085_v24, 4  ;;  %v2088_v7 = vrot.slane %v4942_v13, 5  ;;  %v5212_v42 = vld [vmem:[%s5566_s19 + $0x54] sm:$0xe]  ;;  %v3485_v36 = vpop.permute.xlu0 %3484 }
 0x123   : > { %v6967_v34 = vld [vmem:[#allocation2 + $0x60] sm:$0xff]  ;;  %5045 = vmatprep.mubr.msk.bf16.mxu0 %vm351_vm3, %v2249_v63  ;;  %3824 = vst.msk [vmem:[#allocation2 + $0x48] sm:$0xff] %vm351_vm3, %v5265_v53  ;;  %v3363_v33 = vsel %vm5578_vm2, %v3358_v38, %v3362_v11  ;;  %v4802_v11 = vcombine.low %v1053_v43, %v1056_v54  ;;  %v5214_v58 = vld [vmem:[%s5566_s19 + $0x5c] sm:$0x1]  ;;  %v959_v30 = vld [vmem:[%s5566_s19 + $0xac] sm:$0xf]  ;;  %v2086_v56 = vsel %vm6044_vm7, %v4978_v21, %v2085_v24 }
 0x124   : > { %2994 = vst.msk [vmem:[#allocation2 + $0x60] sm:$0xff] %vm351_vm3, %v5486_v57  ;;  %2482 = vmatmul.mubr.bf16.gmra.mrb[16].mxu0 %v6718_v23  ;;  %v5193_v53 = vcombine.low %v3353_v32, %v3363_v33  ;;  %v958_v57 = vld [vmem:[%s5566_s19 + $0xa8] sm:$0xe]  ;;  %v2266_v23 = vld [vmem:[#allocation2 + $0xd0] sm:$0xff]  ;;  %2998 = vst.msk [vmem:[#allocation2 + $0xa0] sm:$0xff] %vm351_vm3, %v5490_v45  ;;  %v2089_v31 = vsel %vm6044_vm7, %v2087_v47, %v2088_v7  ;;  %v1115_v38 = vrot.slane %v959_v30, 5 }
 0x125   : > { %1196 = vst.msk [vmem:[#allocation2 + $0x58] sm:$0xff] %vm351_vm3, %v4802_v11  ;;  %v960_v10 = vld [vmem:[%s5566_s19 + $0xb0] sm:$0x1]  ;;  %v4795_v3 = vrot.slane %v958_v57, 9  ;;  %v4967_v13 = vld [vmem:[%s5566_s19 + $0xb4] sm:$0xe]  ;;  %v3487_v57 = vpop.permute.xlu1 %3486 }
 0x126   : > { %3508 = vrot.lane.b32.xlu0 %v5193_v53, %s5520_s20  ;;  %v5487_v25 = vld [vmem:[%s5566_s19 + $0x6c] sm:$0xff]   ;;  %v1118_v15 = vrot.slane %v960_v10, 5  ;;  %v4968_v63 = vld [vmem:[%s5566_s19 + $0xb8] sm:$0xf]  ;;  %3532 = vst.msk [vmem:[#allocation2] sm:$0xff] %vm899_vm4, %v3485_v36  ;;  %v5250_v59 = vrot.slane %v5212_v42, 9  ;;  %v4994_v53 = vcombine.low %v2086_v56, %v2089_v31 }
 0x127   : > { %v3683_v43 = vrot.slane %v3681_v50, 4  ;;  %v3684_v52 = vrot.slane %v5214_v58, 5  ;;  %v4969_v4 = vld [vmem:[%s5566_s19 + $0xbc] sm:$0x1]  ;;  %v2148_v60 = vrot.slane %v4968_v63, 5  ;;  %v1116_v24 = vsel %vm6044_vm7, %v4795_v3, %v1115_v38  ;;  %3533 = vst.msk [vmem:[#allocation2 + $0x10] sm:$0xff] %vm899_vm4, %v3487_v57 }
 0x128   : > { %v1117_v33 = vrot.slane %v1115_v38, 4  ;;  %v7006_v21 = vld [vmem:[%s5566_s19 + $0xc0] sm:$0xe]  ;;  %v7009_v27 = vld [vmem:[%s5566_s19 + $0xc4] sm:$0xf]  ;;  %v4987_v54 = vrot.slane %v4967_v13, 9 }
 0x129   : > { %v2267_v32 = vld [vmem:[#allocation2 + $0xd8] sm:$0xff]  ;;  %v2150_v47 = vrot.slane %v2148_v60, 4  ;;  %v2151_v7 = vrot.slane %v4969_v4, 5  ;;  %v7014_v42 = vld [vmem:[%s5566_s19 + $0xc8] sm:$0x1]  ;;  %v7016_v11 = vld [vmem:[#allocation2 + $0x70] sm:$0xff]  ;;  %v3685_v31 = vsel %vm6044_vm7, %v3683_v43, %v3684_v52  ;;  %v3489_v52 = vpop.permute.xlu0 %3488 }
 0x12a   : > { %5054 = vmatprep.mubr.msk.bf16.mxu1 %vm351_vm3, %v2267_v32  ;;  %3833 = vst.msk [vmem:[#allocation2 + $0xd8] sm:$0xff] %vm351_vm3, %v5274_v61  ;;  %v1119_v58 = vsel %vm6044_vm7, %v1117_v33, %v1118_v15  ;;  %v7622_v45 = vrot.slane %v7009_v27, 5  ;;  %2995 = vst.msk [vmem:[#allocation2 + $0x70] sm:$0xff] %vm351_vm3, %v5487_v25  ;;  %v3682_v61 = vsel %vm6044_vm7, %v5250_v59, %v3681_v50  ;;  %v5259_v10 = vrot.slane %v7006_v21, 9  ;;  %v5172_v36 = vld [vmem:[%s5566_s19 + $0xb4] sm:$0xf] }
 0x12b   : > { %2554 = vmatmul.mubr.bf16.gmra.mrb[20].mxu1 %v2266_v23  ;;  %v4811_v30 = vcombine.low %v1116_v24, %v1119_v58  ;;  %v3747_v3 = vrot.slane %v7014_v42, 5  ;;  %v5173_v56 = vld [vmem:[%s5566_s19 + $0xb8] sm:$0xf]  ;;  %v5174_v38 = vld [vmem:[%s5566_s19 + $0xbc] sm:$0x1]  ;;  %v3365_v15 = vshrl.u32 %v5172_v36, 16  ;;  %v2149_v50 = vsel %vm6044_vm7, %v4987_v54, %v2148_v60 }
 0x12c   : > { %v7029_v23 = vld [vmem:[#allocation2 + $0x58] sm:$0xff]  ;;  %v3368_v25 = vshll.u32 %v5172_v36, 16  ;;  %v3374_v13 = vshll.u32 %v5173_v56, 16  ;;  %v2152_v63 = vsel %vm6044_vm7, %v2150_v47, %v2151_v7  ;;  %v3378_v59 = vshrl.u32 %v5173_v56, 16  ;;  %3534 = vst.msk [vmem:[#allocation2 + $0x20] sm:$0xff] %vm899_vm4, %v3489_v52 }
 0x12d   : > { %2229 = vst.msk [vmem:[#allocation2 + $0x58] sm:$0xff] %vm351_vm3, %v4994_v53  ;;  %1205 = vst.msk [vmem:[#allocation2 + $0xe8] sm:$0xff] %vm351_vm3, %v4811_v30  ;;  %v3384_v43 = vshll.u32 %v5174_v38, 16  ;;  %v3746_v4 = vrot.slane %v7622_v45, 4  ;;  %v3367_v32 = vrot.slane %v3365_v15, 4  ;;  %v5266_v54 = vcombine.low %v3682_v61, %v3685_v31  ;;  %v5491_v57 = vld [vmem:[%s5566_s19 + $0x9c] sm:$0xff]  }
 0x12e   : > { %v3370_v24 = vrot.slane %v3368_v25, 5  ;;  %v3376_v33 = vrot.slane %v3374_v13, 5  ;;  %v3380_v21 = vrot.slane %v3378_v59, 4  ;;  %v934_v53 = vld [vmem:[%s5566_s19 + $0x48] sm:$0xe]  ;;  %v5003_v30 = vcombine.low %v2149_v50, %v2152_v63  ;;  %v3491_v59 = vpop.permute.xlu1 %3490  ;;  %2999 = vst.msk [vmem:[#allocation2 + $0xb0] sm:$0xff] %vm351_vm3, %v5491_v57 }
 0x12f   : > { %v3386_v60 = vrot.slane %v3384_v43, 5  ;;  %v935_v7 = vld [vmem:[%s5566_s19 + $0x4c] sm:$0xf]  ;;  %v936_v42 = vld [vmem:[%s5566_s19 + $0x50] sm:$0x1]  ;;  %v4787_v58 = vrot.slane %v934_v53, 9 }
 0x130   : > { %v3371_v47 = vor.u32 %v3370_v24, %v3367_v32  ;;  %v3381_v36 = vor.u32 %v3380_v21, %v3376_v33  ;;  %v1059_v56 = vrot.slane %v935_v7, 5  ;;  %v1062_v38 = vrot.slane %v936_v42, 5  ;;  %v4943_v15 = vld [vmem:[%s5566_s19 + $0x54] sm:$0xe]  ;;  %v4944_v25 = vld [vmem:[%s5566_s19 + $0x58] sm:$0xf] }
 0x131   : > { %v4945_v45 = vld [vmem:[%s5566_s19 + $0x5c] sm:$0x1]  ;;  %v2092_v52 = vrot.slane %v4944_v25, 5  ;;  %v4979_v32 = vrot.slane %v4943_v15, 9  ;;  %3535 = vst.msk [vmem:[#allocation2 + $0x30] sm:$0xff] %vm899_vm4, %v3491_v59  ;;  %v7628_v7 = vrot.slane %v7009_v27, 5 }
 0x132   : > { %v3372_v13 = vrot.slane %v3371_v47, 4  ;;  %v3382_v43 = vrot.slane %v3381_v36, 4  ;;  %v1060_v61 = vsel %vm6044_vm7, %v4787_v58, %v1059_v56  ;;  %v1061_v31 = vrot.slane %v1059_v56, 4  ;;  %v7059_v47 = vld [vmem:[%s5566_s19 + $0x60] sm:$0xe]  ;;  %v3493_v36 = vpop.permute.xlu0 %3492  ;;  %v3838_v12 = vld [vmem:[#allocation2 + $0x10] sm:$0xff] }
 0x133   : > { %v2094_v21 = vrot.slane %v2092_v52, 4  ;;  %v2095_v53 = vrot.slane %v4945_v45, 5  ;;  %v3745_v42 = vsel %vm6044_vm7, %v5259_v10, %v7628_v7  ;;  %v7075_v57 = vld [vmem:[%s5566_s19 + $0x64] sm:$0xf]  ;;  %3536 = vst.msk [vmem:[#allocation2 + $0x40] sm:$0xff] %vm899_vm4, %v3493_v36 }
 0x134   : > { %v2251_v50 = vld [vmem:[#allocation2 + $0x58] sm:$0xff]  ;;  %v7054_v63 = vld [vmem:[#allocation2 + $0xe8] sm:$0xff]  ;;  %v3377_v24 = vsel %vm5578_vm2, %v3372_v13, %v3376_v33  ;;  %v3748_v33 = vsel %vm6044_vm7, %v3746_v4, %v3747_v3  ;;  %v3387_v45 = vsel %vm5578_vm2, %v3382_v43, %v3386_v60  ;;  %v1063_v58 = vsel %vm6044_vm7, %v1061_v31, %v1062_v38  ;;  %v4970_v13 = vld [vmem:[%s5566_s19 + $0xc0] sm:$0xe] }
 0x135   : > { %5046 = vmatprep.mubr.msk.bf16.mxu0 %vm351_vm3, %v2251_v50  ;;  %3825 = vst.msk [vmem:[#allocation2 + $0x58] sm:$0xff] %vm351_vm3, %v5266_v54  ;;  %2238 = vst.msk [vmem:[#allocation2 + $0xe8] sm:$0xff] %vm351_vm3, %v5003_v30  ;;  %v7078_v54 = vld [vmem:[%s5566_s19 + $0x68] sm:$0x1]  ;;  %v5194_v27 = vcombine.low %v3377_v24, %v3387_v45  ;;  %v4803_v10 = vcombine.low %v1060_v61, %v1063_v58  ;;  %v961_v30 = vld [vmem:[%s5566_s19 + $0xb4] sm:$0xe]  ;;  %v5275_v38 = vcombine.low %v3745_v42, %v3748_v33  ;;  %v3495_v58 = vpop.permute.xlu1 %3494 }
 0x136   : > { %2490 = vmatmul.mubr.bf16.gmra.mrb[20].mxu0 %v6887_v19  ;;  %v5492_v3 = vld [vmem:[%s5566_s19 + $0xa8] sm:$0xff]   ;;  %v962_v4 = vld [vmem:[%s5566_s19 + $0xb8] sm:$0xf]  ;;  %v963_v60 = vld [vmem:[%s5566_s19 + $0xbc] sm:$0x1]  ;;  %v4796_v56 = vrot.slane %v961_v30, 9  ;;  %v2093_v19 = vsel %vm6044_vm7, %v4979_v32, %v2092_v52  ;;  %v2096_v61 = vsel %vm6044_vm7, %v2094_v21, %v2095_v53 }
 0x137   : > { %3510 = vrot.lane.b32.xlu1 %v5194_v27, %s5520_s20  ;;  %1197 = vst.msk [vmem:[#allocation2 + $0x68] sm:$0xff] %vm351_vm3, %v4803_v10  ;;  %v1122_v15 = vrot.slane %v962_v4, 5  ;;  %v1125_v25 = vrot.slane %v963_v60, 5  ;;  %v4971_v59 = vld [vmem:[%s5566_s19 + $0xc4] sm:$0xf]  ;;  %3000 = vst.msk [vmem:[#allocation2 + $0xc0] sm:$0xff] %vm351_vm3, %v5492_v3  ;;  %v4995_v36 = vcombine.low %v2093_v19, %v2096_v61 }
 0x138   : > { %v2268_v43 = vld [vmem:[#allocation2 + $0xe0] sm:$0xff]  ;;  %v5251_v31 = vrot.slane %v7059_v47, 9  ;;  %v3688_v50 = vrot.slane %v7075_v57, 5  ;;  %v4972_v24 = vld [vmem:[%s5566_s19 + $0xc8] sm:$0x1]  ;;  %v2155_v7 = vrot.slane %v4971_v59, 5 }
 0x139   : > { %v3691_v52 = vrot.slane %v7078_v54, 5  ;;  %v1123_v32 = vsel %vm6044_vm7, %v4796_v56, %v1122_v15  ;;  %v1124_v42 = vrot.slane %v1122_v15, 4  ;;  %v7102_v33 = vld [vmem:[%s5566_s19 + $0xcc] sm:$0xe]  ;;  %v7105_v45 = vld [vmem:[%s5566_s19 + $0xd0] sm:$0xf] }
 0x13a   : > { %v4988_v21 = vrot.slane %v4970_v13, 9  ;;  %v2158_v53 = vrot.slane %v4972_v24, 5  ;;  %v5244_v47 = vld [vmem:[%s5566_s19 + $0xd4] sm:$0x1]  ;;  %3537 = vst.msk [vmem:[#allocation2 + $0x50] sm:$0xff] %vm899_vm4, %v3495_v58  ;;  %v2157_v27 = vrot.slane %v2155_v7, 4  ;;  %v3497_v58 = vpop.permute.xlu0 %3496 }
 0x13b   : > { %v1126_v54 = vsel %vm6044_vm7, %v1124_v42, %v1125_v25  ;;  %v5175_v10 = vld [vmem:[%s5566_s19 + $0xc0] sm:$0xf]  ;;  %v3690_v30 = vrot.slane %v3688_v50, 4  ;;  %v3751_v4 = vrot.slane %v7105_v45, 5  ;;  %v5176_v60 = vld [vmem:[%s5566_s19 + $0xc4] sm:$0xf] }
 0x13c   : > { %v2269_v57 = vld [vmem:[#allocation2 + $0xe8] sm:$0xff]  ;;  %v4812_v3 = vcombine.low %v1123_v32, %v1126_v54  ;;  %v5260_v15 = vrot.slane %v7102_v33, 9  ;;  %v3389_v19 = vshrl.u32 %v5175_v10, 16  ;;  %v3392_v13 = vshll.u32 %v5175_v10, 16  ;;  %3538 = vst.msk [vmem:[#allocation2 + $0x60] sm:$0xff] %vm899_vm4, %v3497_v58  ;;  %v3836_v26 = vld [vmem:[#allocation2] sm:$0xff] }
 0x13d   : > { %5055 = vmatprep.mubr.msk.bf16.mxu1 %vm351_vm3, %v2269_v57  ;;  %3834 = vst.msk [vmem:[#allocation2 + $0xe8] sm:$0xff] %vm351_vm3, %v5275_v38  ;;  %v5177_v56 = vld [vmem:[%s5566_s19 + $0xc8] sm:$0x1]  ;;  %v3398_v59 = vshll.u32 %v5176_v60, 16  ;;  %v2156_v38 = vsel %vm6044_vm7, %v4988_v21, %v2155_v7  ;;  %v3754_v61 = vrot.slane %v5244_v47, 5  ;;  %v3402_v24 = vshrl.u32 %v5176_v60, 16 }
 0x13e   : > { %2562 = vmatmul.mubr.bf16.gmra.mrb[24].mxu1 %v2268_v43  ;;  %v7118_v25 = vld [vmem:[#allocation2 + $0x68] sm:$0xff]  ;;  %1206 = vst.msk [vmem:[#allocation2 + $0xf8] sm:$0xff] %vm351_vm3, %v4812_v3  ;;  %v3408_v32 = vshll.u32 %v5177_v56, 16  ;;  %v2159_v43 = vsel %vm6044_vm7, %v2157_v27, %v2158_v53  ;;  %v3391_v42 = vrot.slane %v3389_v19, 4  ;;  %v3394_v33 = vrot.slane %v3392_v13, 5  ;;  %v5493_v57 = vld [vmem:[%s5566_s19 + $0xb4] sm:$0xff]  }
 0x13f   : > { %2230 = vst.msk [vmem:[#allocation2 + $0x68] sm:$0xff] %vm351_vm3, %v4995_v36  ;;  %v3400_v45 = vrot.slane %v3398_v59, 5  ;;  %v3689_v54 = vsel %vm6044_vm7, %v5251_v31, %v3688_v50  ;;  %v3692_v7 = vsel %vm6044_vm7, %v3690_v30, %v3691_v52  ;;  %v3753_v21 = vrot.slane %v3751_v4, 4  ;;  %v937_v36 = vld [vmem:[%s5566_s19 + $0x54] sm:$0xe]  ;;  %3001 = vst.msk [vmem:[#allocation2 + $0xd0] sm:$0xff] %vm351_vm3, %v5493_v57 }
 0x140   : > { %v3404_v47 = vrot.slane %v3402_v24, 4  ;;  %v3395_v53 = vor.u32 %v3394_v33, %v3391_v42  ;;  %v3410_v27 = vrot.slane %v3408_v32, 5  ;;  %v938_v10 = vld [vmem:[%s5566_s19 + $0x58] sm:$0xf]  ;;  %v939_v3 = vld [vmem:[%s5566_s19 + $0x5c] sm:$0x1]  ;;  %v5004_v31 = vcombine.low %v2156_v38, %v2159_v43 }
 0x141   : > { %v4788_v60 = vrot.slane %v937_v36, 9  ;;  %v1066_v56 = vrot.slane %v938_v10, 5  ;;  %v1069_v19 = vrot.slane %v939_v3, 5  ;;  %v4946_v52 = vld [vmem:[%s5566_s19 + $0x60] sm:$0xe]  ;;  %v5267_v13 = vcombine.low %v3689_v54, %v3692_v7 }
 0x142   : > { %v3405_v50 = vor.u32 %v3404_v47, %v3400_v45  ;;  %v4947_v30 = vld [vmem:[%s5566_s19 + $0x64] sm:$0xf]  ;;  %v3396_v59 = vrot.slane %v3395_v53, 4  ;;  %v4948_v24 = vld [vmem:[%s5566_s19 + $0x68] sm:$0x1]  ;;  %v3752_v38 = vsel %vm6044_vm7, %v5260_v15, %v3751_v4  ;;  %v3755_v43 = vsel %vm6044_vm7, %v3753_v21, %v3754_v61 }
 0x143   : > { %v2099_v58 = vrot.slane %v4947_v30, 5  ;;  %v1067_v32 = vsel %vm6044_vm7, %v4788_v60, %v1066_v56  ;;  %v1068_v33 = vrot.slane %v1066_v56, 4  ;;  %v5494_v36 = vld [vmem:[%s5566_s19 + $0xc0] sm:$0xff]   ;;  %v4980_v54 = vrot.slane %v4946_v52, 9  ;;  %v5218_v7 = vld [vmem:[%s5566_s19 + $0x6c] sm:$0xe] }
 0x144   : > { %v3406_v42 = vrot.slane %v3405_v50, 4  ;;  %v3401_v57 = vsel %vm5578_vm2, %v3396_v59, %v3400_v45  ;;  %v5219_v47 = vld [vmem:[%s5566_s19 + $0x70] sm:$0xf]  ;;  %v2102_v3 = vrot.slane %v4948_v24, 5  ;;  %3002 = vst.msk [vmem:[#allocation2 + $0xe0] sm:$0xff] %vm351_vm3, %v5494_v36  ;;  %v5252_v60 = vrot.slane %v5218_v7, 9  ;;  %v3499_v24 = vpop.permute.xlu1 %3498 }
 0x145   : > { %v7142_v41 = vld [vmem:[#allocation2 + $0xf8] sm:$0xff]  ;;  %v1070_v4 = vsel %vm6044_vm7, %v1068_v33, %v1069_v19  ;;  %v2101_v15 = vrot.slane %v2099_v58, 4  ;;  %v5220_v21 = vld [vmem:[%s5566_s19 + $0x74] sm:$0x1]  ;;  %v5276_v50 = vcombine.low %v3752_v38, %v3755_v43  ;;  %v2100_v19 = vsel %vm6044_vm7, %v4980_v54, %v2099_v58  ;;  %v5179_v52 = vld [vmem:[%s5566_s19 + $0xd0] sm:$0xf] }
 0x146   : > { %v2253_v53 = vld [vmem:[#allocation2 + $0x68] sm:$0xff]  ;;  %2239 = vst.msk [vmem:[#allocation2 + $0xf8] sm:$0xff] %vm351_vm3, %v5004_v31  ;;  %v3411_v10 = vsel %vm5578_vm2, %v3406_v42, %v3410_v27  ;;  %v4804_v45 = vcombine.low %v1067_v32, %v1070_v4  ;;  %v3695_v27 = vrot.slane %v5219_v47, 5  ;;  %v2270_v56 = vld [vmem:[#allocation2 + $0xf0] sm:$0xff]  ;;  %v3422_v42 = vshll.u32 %v5179_v52, 16 }
 0x147   : > { %5047 = vmatprep.mubr.msk.bf16.mxu0 %vm351_vm3, %v2253_v53  ;;  %3826 = vst.msk [vmem:[#allocation2 + $0x68] sm:$0xff] %vm351_vm3, %v5267_v13  ;;  %v5195_v61 = vcombine.low %v3401_v57, %v3411_v10  ;;  %v5178_v31 = vld [vmem:[%s5566_s19 + $0xcc] sm:$0xf]  ;;  %v5180_v30 = vld [vmem:[%s5566_s19 + $0xd4] sm:$0x1]  ;;  %v3426_v32 = vshrl.u32 %v5179_v52, 16 }
 0x148   : > { %2498 = vmatmul.mubr.bf16.gmra.mrb[24].mxu0 %v6967_v34  ;;  %1198 = vst.msk [vmem:[#allocation2 + $0x78] sm:$0xff] %vm351_vm3, %v4804_v45  ;;  %v3413_v13 = vshrl.u32 %v5178_v31, 16  ;;  %v3416_v59 = vshll.u32 %v5178_v31, 16  ;;  %v2103_v34 = vsel %vm6044_vm7, %v2101_v15, %v2102_v3  ;;  %v3432_v33 = vshll.u32 %v5180_v30, 16  ;;  %v5495_v36 = vld [vmem:[%s5566_s19 + $0xcc] sm:$0xff]  }
 0x149   : > { %3512 = vrot.lane.b32.xlu0 %v5195_v61, %s5520_s20  ;;  %3539 = vst.msk [vmem:[#allocation2 + $0x70] sm:$0xff] %vm899_vm4, %v3499_v24  ;;  %v3697_v57 = vrot.slane %v3695_v27, 4  ;;  %v3698_v7 = vrot.slane %v5220_v21, 5  ;;  %v3424_v47 = vrot.slane %v3422_v42, 5  ;;  %v3428_v58 = vrot.slane %v3426_v32, 4  ;;  %v3853_v24 = vld [vmem:[#allocation2 + $0x88] sm:$0xff] }
 0x14a   : > { %v3415_v38 = vrot.slane %v3413_v13, 4  ;;  %v3418_v43 = vrot.slane %v3416_v59, 5  ;;  %3003 = vst.msk [vmem:[#allocation2 + $0xf0] sm:$0xff] %vm351_vm3, %v5495_v36  ;;  %v4996_v53 = vcombine.low %v2100_v19, %v2103_v34  ;;  %v3434_v4 = vrot.slane %v3432_v33, 5  ;;  %v3837_v13 = vld [vmem:[#allocation2 + $0x8] sm:$0xff] }
 0x14b   : > { %v3429_v15 = vor.u32 %v3428_v58, %v3424_v47  ;;  %v3696_v31 = vsel %vm6044_vm7, %v5252_v60, %v3695_v27  ;;  %v3699_v19 = vsel %vm6044_vm7, %v3697_v57, %v3698_v7  ;;  %v3841_v60 = vld [vmem:[#allocation2 + $0x28] sm:$0xff] }
 0x14c   : > { %v3419_v10 = vor.u32 %v3418_v43, %v3415_v38  ;;  %v5268_v52 = vcombine.low %v3696_v31, %v3699_v19  ;;  %v3861_v36 = vld [vmem:[#allocation2 + $0xc8] sm:$0xff] }
 0x14d   : > { %v2271_v54 = vld [vmem:[#allocation2 + $0xf8] sm:$0xff]  ;;  %v3430_v45 = vrot.slane %v3429_v15, 4 }
 0x14e   : > { %5056 = vmatprep.mubr.msk.bf16.mxu1 %vm351_vm3, %v2271_v54  ;;  %3835 = vst.msk [vmem:[#allocation2 + $0xf8] sm:$0xff] %vm351_vm3, %v5276_v50  ;;  %v3420_v3 = vrot.slane %v3419_v10, 4 }
 0x14f   : > { %2570 = vmatmul.mubr.bf16.gmra.mrb[28].mxu1 %v2270_v56  ;;  %v1222_v61 = vld [vmem:[#allocation2 + $0x78] sm:$0xff]  ;;  %v3435_v50 = vsel %vm5578_vm2, %v3430_v45, %v3434_v4 }
 0x150   : > { %5069 = vmatprep.mubr.msk.bf16.mxu1 %vm351_vm3, %v6278_v46  ;;  %2231 = vst.msk [vmem:[#allocation2 + $0x78] sm:$0xff] %vm351_vm3, %v4996_v53  ;;  %v3425_v21 = vsel %vm5578_vm2, %v3420_v3, %v3424_v47  ;;  %v3863_v47 = vld [vmem:[#allocation2 + $0xd8] sm:$0xff] }
 0x151   : > { %v5196_v56 = vcombine.low %v3425_v21, %v3435_v50 }
 0x152   : > { %v3501_v46 = vpop.permute.xlu0 %3500 }
 0x153   : > { %3514 = vrot.lane.b32.xlu1 %v5196_v56, %s5520_s20  ;;  %3540 = vst.msk [vmem:[#allocation2 + $0x80] sm:$0xff] %vm899_vm4, %v3501_v46 }
 0x155   : > { %v3867_v31 = vld [vmem:[#allocation2 + $0xf8] sm:$0xff] }
 0x157   : > { %2731 = vmatmul.mubr.bf16.vlgmr.msra.gmra.mrb[32].mxu1 %v6031_v5  ;;  %v2255_v30 = vld [vmem:[#allocation2 + $0x78] sm:$0xff] }
 0x158   : > { %5070 = vmatprep.mubr.msk.bf16.mxu1 %vm351_vm3, %v6481_v62  ;;  %5048 = vmatprep.mubr.msk.bf16.mxu0 %vm351_vm3, %v2255_v30  ;;  %3827 = vst.msk [vmem:[#allocation2 + $0x78] sm:$0xff] %vm351_vm3, %v5268_v52  ;;  %v3839_v5 = vld [vmem:[#allocation2 + $0x18] sm:$0xff] }
 0x159   : > { %2506 = vmatmul.mubr.bf16.gmra.mrb[28].mxu0 %v7016_v11  ;;  %v3842_v11 = vld [vmem:[#allocation2 + $0x30] sm:$0xff] }
 0x15a   : > { %5313 = vmatprep.mubr.msk.bf16.mxu0 %vm351_vm3, %v3837_v13 }
 0x15f   : > { %2739 = vmatmul.mubr.bf16.gmra.mrb[36].mxu1 %v6053_v16  ;;  %v3840_v16 = vld [vmem:[#allocation2 + $0x20] sm:$0xff]  ;;  %v3851_v59 = vld [vmem:[#allocation2 + $0x78] sm:$0xff] }
 0x160   : > { %5071 = vmatprep.mubr.msk.bf16.mxu1 %vm351_vm3, %v6655_v55  ;;  %v3843_v55 = vld [vmem:[#allocation2 + $0x38] sm:$0xff] }
 0x161   : > { %4046 = vmatmul.mubr.bf16.vlgmr.msra.gmra.mrb[32].mxu0 %v3836_v26 }
 0x162   : > { %5314 = vmatprep.mubr.msk.bf16.mxu0 %vm351_vm3, %v3839_v5 }
 0x166   : > { %v3503_v62 = vpop.permute.xlu1 %3502 }
 0x167   : > { %2747 = vmatmul.mubr.bf16.gmra.mrb[40].mxu1 %v6084_v28  ;;  %3541 = vst.msk [vmem:[#allocation2 + $0x90] sm:$0xff] %vm899_vm4, %v3503_v62 }
 0x168   : > { %5072 = vmatprep.mubr.msk.bf16.mxu1 %vm351_vm3, %v6833_v29  ;;  %v3845_v29 = vld [vmem:[#allocation2 + $0x48] sm:$0xff] }
 0x169   : > { %4054 = vmatmul.mubr.bf16.gmra.mrb[36].mxu0 %v3838_v12 }
 0x16a   : > { %5315 = vmatprep.mubr.msk.bf16.mxu0 %vm351_vm3, %v3841_v60 }
 0x16e   : > { %v3854_v34 = vld [vmem:[#allocation2 + $0x90] sm:$0xff] }
 0x16f   : > { %2755 = vmatmul.mubr.bf16.gmra.mrb[44].mxu1 %v6235_v18  ;;  %v3844_v18 = vld [vmem:[#allocation2 + $0x40] sm:$0xff] }
 0x170   : > { %5073 = vmatprep.mubr.msk.bf16.mxu1 %vm351_vm3, %v6934_v20  ;;  %v3847_v20 = vld [vmem:[#allocation2 + $0x58] sm:$0xff] }
 0x171   : > { %4062 = vmatmul.mubr.bf16.gmra.mrb[40].mxu0 %v3840_v16 }
 0x172   : > { %5316 = vmatprep.mubr.msk.bf16.mxu0 %vm351_vm3, %v3843_v55 }
 0x176   : > { %v3505_v28 = vpop.permute.xlu0 %3504 }
 0x177   : > { %3542 = vst.msk [vmem:[#allocation2 + $0xa0] sm:$0xff] %vm899_vm4, %v3505_v28  ;;  %2763 = vmatmul.mubr.bf16.gmra.mrb[48].mxu1 %v6455_v51  ;;  %v3846_v51 = vld [vmem:[#allocation2 + $0x50] sm:$0xff] }
 0x178   : > { %5074 = vmatprep.mubr.msk.bf16.mxu1 %vm351_vm3, %v7029_v23  ;;  %v3849_v23 = vld [vmem:[#allocation2 + $0x68] sm:$0xff] }
 0x179   : > { %4070 = vmatmul.mubr.bf16.gmra.mrb[44].mxu0 %v3842_v11 }
 0x17a   : > { %5317 = vmatprep.mubr.msk.bf16.mxu0 %vm351_vm3, %v3845_v29 }
 0x17f   : > { %2771 = vmatmul.mubr.bf16.gmra.mrb[52].mxu1 %v6650_v8  ;;  %v3848_v8 = vld [vmem:[#allocation2 + $0x60] sm:$0xff] }
 0x180   : > { %5075 = vmatprep.mubr.msk.bf16.mxu1 %vm351_vm3, %v7118_v25 }
 0x181   : > { %4078 = vmatmul.mubr.bf16.gmra.mrb[48].mxu0 %v3844_v18 }
 0x182   : > { %5318 = vmatprep.mubr.msk.bf16.mxu0 %vm351_vm3, %v3847_v20 }
 0x186   : > { %v3507_v27 = vpop.permute.xlu1 %3506 }
 0x187   : > { %3543 = vst.msk [vmem:[#allocation2 + $0xb0] sm:$0xff] %vm899_vm4, %v3507_v27  ;;  %2779 = vmatmul.mubr.bf16.gmra.mrb[56].mxu1 %v6853_v35  ;;  %v3850_v35 = vld [vmem:[#allocation2 + $0x70] sm:$0xff] }
 0x188   : > { %5076 = vmatprep.mubr.msk.bf16.mxu1 %vm351_vm3, %v1222_v61 }
 0x189   : > { %4086 = vmatmul.mubr.bf16.gmra.mrb[52].mxu0 %v3846_v51 }
 0x18a   : > { %5319 = vmatprep.mubr.msk.bf16.mxu0 %vm351_vm3, %v3849_v23 }
 0x18e   : > { %v3858_v33 = vld [vmem:[#allocation2 + $0xb0] sm:$0xff] }
 0x18f   : > { %2787 = vmatmul.mubr.bf16.gmra.mrb[60].mxu1 %v6949_v40  ;;  %v3852_v40 = vld [vmem:[#allocation2 + $0x80] sm:$0xff] }
 0x190   : > { %5077 = vmatprep.mubr.msk.bf16.mxu1 %vm351_vm3, %v6183_v44  ;;  %v3855_v44 = vld [vmem:[#allocation2 + $0x98] sm:$0xff] }
 0x191   : > { %4094 = vmatmul.mubr.bf16.gmra.mrb[56].mxu0 %v3848_v8 }
 0x192   : > { %5320 = vmatprep.mubr.msk.bf16.mxu0 %vm351_vm3, %v3851_v59 }
 0x197   : > { %2795 = vmatmul.mubr.bf16.gmra.mrb[64].mxu1 %v6029_v1  ;;  %v3857_v1 = vld [vmem:[#allocation2 + $0xa8] sm:$0xff] }
 0x198   : > { %v3509_v25 = vpop.permute.xlu0 %3508  ;;  %5078 = vmatprep.mubr.msk.bf16.mxu1 %vm351_vm3, %v6355_v49 }
 0x199   : > { %3544 = vst.msk [vmem:[#allocation2 + $0xc0] sm:$0xff] %vm899_vm4, %v3509_v25  ;;  %4102 = vmatmul.mubr.bf16.gmra.mrb[60].mxu0 %v3850_v35 }
 0x19a   : > { %5321 = vmatprep.mubr.msk.bf16.mxu0 %vm351_vm3, %v3853_v24 }
 0x19f   : > { %2803 = vmatmul.mubr.bf16.gmra.mrb[68].mxu1 %v6033_v6  ;;  %v3856_v6 = vld [vmem:[#allocation2 + $0xa0] sm:$0xff] }
 0x1a0   : > { %5079 = vmatprep.mubr.msk.bf16.mxu1 %vm351_vm3, %v6546_v9  ;;  %v3859_v9 = vld [vmem:[#allocation2 + $0xb8] sm:$0xff]  ;;  %v3860_v7 = vld [vmem:[#allocation2 + $0xc0] sm:$0xff] }
 0x1a1   : > { %4110 = vmatmul.mubr.bf16.gmra.mrb[64].mxu0 %v3852_v40 }
 0x1a2   : > { %5322 = vmatprep.mubr.msk.bf16.mxu0 %vm351_vm3, %v3855_v44 }
 0x1a7   : > { %2811 = vmatmul.mubr.bf16.gmra.mrb[72].mxu1 %v6055_v17 }
 0x1a8   : > { %5080 = vmatprep.mubr.msk.bf16.mxu1 %vm351_vm3, %v6724_v14 }
 0x1a9   : > { %v3511_v49 = vpop.permute.xlu1 %3510  ;;  %4118 = vmatmul.mubr.bf16.gmra.mrb[68].mxu0 %v3854_v34  ;;  %v7243_v42 = vpop.f32.mrb[0].mxu1 }
 0x1aa   : > { %3545 = vst.msk [vmem:[#allocation2 + $0xd0] sm:$0xff] %vm899_vm4, %v3511_v49  ;;  %5323 = vmatprep.mubr.msk.bf16.mxu0 %vm351_vm3, %v3857_v1  ;;  %v2517_v17 = vpop.f32.mrb[1].mxu1 }
 0x1ab   : > { %v7245_v32 = vpop.f32.mrb[2].mxu1 }
 0x1ac   : > { %v2520_v14 = vpop.f32.mrb[3].mxu1 }
 0x1af   : > { %2819 = vmatmul.mubr.bf16.gmra.mrb[76].mxu1 %v6156_v22 }
 0x1b0   : > { %5081 = vmatprep.mubr.msk.bf16.mxu1 %vm351_vm3, %v6868_v39 }
 0x1b1   : > { %4126 = vmatmul.mubr.bf16.gmra.mrb[72].mxu0 %v3856_v6  ;;  %v3862_v53 = vld [vmem:[#allocation2 + $0xd0] sm:$0xff] }
 0x1b2   : > { %5324 = vmatprep.mubr.msk.bf16.mxu0 %vm351_vm3, %v3859_v9 }
 0x1b3   : > { %v7251_v22 = vpop.f32.mrb[0].mxu0 }
 0x1b4   : > { %v2453_v38 = vpop.f32.mrb[1].mxu0 }
 0x1b5   : > { %v7253_v39 = vpop.f32.mrb[2].mxu0 }
 0x1b6   : > { %v2456_v57 = vpop.f32.mrb[3].mxu0 }
 0x1b7   : > { %2827 = vmatmul.mubr.bf16.gmra.mrb[80].mxu1 %v6339_v37 }
 0x1b8   : > { %5082 = vmatprep.mubr.msk.bf16.mxu1 %vm351_vm3, %v6961_v48 }
 0x1b9   : > { %4134 = vmatmul.mubr.bf16.gmra.mrb[76].mxu0 %v3858_v33 }
 0x1ba   : > { %5325 = vmatprep.mubr.msk.bf16.mxu0 %vm351_vm3, %v3861_v36 }
 0x1bb   : > { %v3513_v43 = vpop.permute.xlu0 %3512  ;;  %v7258_v37 = vpop.f32.mrb[4].mxu1 }
 0x1bc   : > { %3546 = vst.msk [vmem:[#allocation2 + $0xe0] sm:$0xff] %vm899_vm4, %v3513_v43  ;;  %v2525_v48 = vpop.f32.mrb[5].mxu1 }
 0x1bd   : > { %v7262_v58 = vpop.f32.mrb[6].mxu1 }
 0x1be   : > { %v2528_v54 = vpop.f32.mrb[7].mxu1 }
 0x1bf   : > { %2835 = vmatmul.mubr.bf16.gmra.mrb[84].mxu1 %v6598_v2  ;;  %v3865_v2 = vld [vmem:[#allocation2 + $0xe8] sm:$0xff] }
 0x1c0   : > { %5083 = vmatprep.mubr.msk.bf16.mxu1 %vm351_vm3, %v7054_v63 }
 0x1c1   : > { %4142 = vmatmul.mubr.bf16.gmra.mrb[80].mxu0 %v3860_v7 }
 0x1c2   : > { %5326 = vmatprep.mubr.msk.bf16.mxu0 %vm351_vm3, %v3863_v47 }
 0x1c3   : > { %v3864_v45 = vld [vmem:[#allocation2 + $0xe0] sm:$0xff] }
 0x1c5   : > { %v3515_v10 = vpop.permute.xlu1 %3514 }
 0x1c6   : > { %3547 = vst.msk [vmem:[#allocation2 + $0xf0] sm:$0xff] %vm899_vm4, %v3515_v10  ;;  %v7269_v4 = vpop.f32.mrb[4].mxu0 }
 0x1c7   : > { %2843 = vmatmul.mubr.bf16.gmra.mrb[88].mxu1 %v6783_v0  ;;  %v2461_v63 = vpop.f32.mrb[5].mxu0  ;;  %v7629_v0 = vld [vmem:[#allocation4_spill] sm:$0xff] }
 0x1c8   : > { %5084 = vmatprep.mubr.msk.bf16.mxu1 %vm351_vm3, %v7142_v41  ;;  %v7271_v15 = vpop.f32.mrb[6].mxu0 }
 0x1c9   : > { %4150 = vmatmul.mubr.bf16.gmra.mrb[84].mxu0 %v3862_v53  ;;  %v2464_v3 = vpop.f32.mrb[7].mxu0 }
 0x1ca   : > { %5327 = vmatprep.mubr.msk.bf16.mxu0 %vm351_vm3, %v3865_v2 }
 0x1cd   : > { %v3866_v56 = vld [vmem:[#allocation2 + $0xf0] sm:$0xff] }
 0x1ce   : > { %v7274_v61 = vpop.f32.mrb[8].mxu1 }
 0x1cf   : > { %2851 = vmatmul.mubr.bf16.gmra.mrb[92].mxu1 %v7629_v0  ;;  %v2533_v21 = vpop.f32.mrb[9].mxu1 }
 0x1d0   : > { %v7277_v19 = vpop.f32.mrb[10].mxu1 }
 0x1d1   : > { %v2536_v50 = vpop.f32.mrb[11].mxu1  ;;  %4158 = vmatmul.mubr.bf16.gmra.mrb[88].mxu0 %v3864_v45 }
 0x1d2   : > { %5328 = vmatprep.mubr.msk.bf16.mxu0 %vm351_vm3, %v3867_v31 }
 0x1d8   : > { %v7280_v41 = vpop.f32.mrb[8].mxu0 }
 0x1d9   : > { %v2469_v52 = vpop.f32.mrb[9].mxu0  ;;  %4166 = vmatmul.mubr.bf16.gmra.mrb[92].mxu0 %v3866_v56 }
 0x1da   : > { %v7282_v46 = vpop.f32.mrb[10].mxu0 }
 0x1db   : > { %v2472_v30 = vpop.f32.mrb[11].mxu0 }
 0x1df   : > { %v7284_v13 = vpop.f32.mrb[12].mxu1 }
 0x1e0   : > { %v2541_v26 = vpop.f32.mrb[13].mxu1 }
 0x1e1   : > { %v7286_v5 = vpop.f32.mrb[14].mxu1 }
 0x1e2   : > { %v2544_v12 = vpop.f32.mrb[15].mxu1 }
 0x1ea   : > { %v7288_v62 = vpop.f32.mrb[12].mxu0 }
 0x1eb   : > { %v2477_v60 = vpop.f32.mrb[13].mxu0 }
 0x1ec   : > { %v7290_v16 = vpop.f32.mrb[14].mxu0 }
 0x1ed   : > { %v2480_v55 = vpop.f32.mrb[15].mxu0 }
 0x1ee   : > { %v7292_v28 = vpop.f32.mrb[16].mxu1 }
 0x1ef   : > { %v2549_v11 = vpop.f32.mrb[17].mxu1 }
 0x1f0   : > { %v7294_v29 = vpop.f32.mrb[18].mxu1 }
 0x1f1   : > { %v2552_v18 = vpop.f32.mrb[19].mxu1 }
 0x1f2   : > { %v7331_v18 = vld [vmem:[%s7620_s2] ss:$0 sm:$0xff] }
 0x1f7   : > { %v7296_v20 = vpop.f32.mrb[16].mxu0 }
 0x1f8   : > { %v2485_v27 = vpop.f32.mrb[17].mxu0 }
 0x1f9   : > { %v7298_v51 = vpop.f32.mrb[18].mxu0 }
 0x1fa   : > { %v2488_v23 = vpop.f32.mrb[19].mxu0 }
 0x1fe   : > { %v7300_v8 = vpop.f32.mrb[20].mxu1 }
 0x1ff   : > { %v2557_v59 = vpop.f32.mrb[21].mxu1 }
 0x200   : > { %v7302_v25 = vpop.f32.mrb[22].mxu1 }
 0x201   : > { %v2560_v35 = vpop.f32.mrb[23].mxu1 }
 0x209   : > { %v7304_v24 = vpop.f32.mrb[20].mxu0 }
 0x20a   : > { %v2493_v40 = vpop.f32.mrb[21].mxu0 }
 0x20b   : > { %v7306_v44 = vpop.f32.mrb[22].mxu0 }
 0x20c   : > { %v2496_v34 = vpop.f32.mrb[23].mxu0 }
 0x211   : > { %v7308_v1 = vpop.f32.mrb[24].mxu1 }
 0x212   : > { %v2565_v49 = vpop.f32.mrb[25].mxu1 }
 0x213   : > { %v7310_v6 = vpop.f32.mrb[26].mxu1 }
 0x214   : > { %v2568_v9 = vpop.f32.mrb[27].mxu1 }
 0x21b   : > { %v7312_v17 = vpop.f32.mrb[24].mxu0 }
 0x21c   : > { %v2501_v14 = vpop.f32.mrb[25].mxu0 }
 0x21d   : > { %v7314_v33 = vpop.f32.mrb[26].mxu0 }
 0x21e   : > { %v2504_v36 = vpop.f32.mrb[27].mxu0 }
 0x222   : > { %v7316_v38 = vpop.f32.mrb[28].mxu1 }
 0x223   : > { %v2573_v43 = vpop.f32.mrb[29].mxu1 }
 0x224   : > { %v7318_v57 = vpop.f32.mrb[30].mxu1 }
 0x225   : > { %v2576_v7 = vpop.f32.mrb[31].mxu1 }
 0x22a   : > { %v2732_v47 = vpop.f32.mrb[32].mxu1 }
 0x22b   : > { %v2733_v48 = vadd.f32 %v2732_v47, %v7251_v22  ;;  %v2734_v54 = vpop.f32.mrb[33].mxu1 }
 0x22c   : > { %v2735_v53 = vpop.f32.mrb[34].mxu1  ;;  %v7321_v10 = vpop.f32.mrb[28].mxu0 }
 0x22d   : > { %v2736_v2 = vadd.f32 %v2735_v53, %v7253_v39  ;;  %v2737_v63 = vpop.f32.mrb[35].mxu1  ;;  %v2509_v3 = vpop.f32.mrb[29].mxu0 }
 0x22e   : > { %v7324_v45 = vpop.f32.mrb[30].mxu0 }
 0x22f   : > { %v2512_v0 = vpop.f32.mrb[31].mxu0 }
 0x232   : > { %v2740_v21 = vpop.f32.mrb[36].mxu1 }
 0x233   : > { %v2741_v31 = vadd.f32 %v2740_v21, %v7269_v4  ;;  %v2742_v50 = vpop.f32.mrb[37].mxu1 }
 0x234   : > { %v2743_v56 = vpop.f32.mrb[38].mxu1  ;;  %v4047_v52 = vpop.f32.mrb[32].mxu0 }
 0x235   : > { %v2744_v30 = vadd.f32 %v2743_v56, %v7271_v15  ;;  %v2745_v22 = vpop.f32.mrb[39].mxu1  ;;  %v4174_v26 = vadd.f32 %v4047_v52, %v2733_v48  ;;  %v4049_v12 = vpop.f32.mrb[33].mxu0 }
 0x236   : > { %v4050_v60 = vpop.f32.mrb[34].mxu0 }
 0x237   : > { %v4175_v55 = vadd.f32 %v4050_v60, %v2736_v2  ;;  %v4052_v11 = vpop.f32.mrb[35].mxu0  ;;  %v4213_v40 = vadd.f32 %v7331_v18, %v4174_v26 }
 0x239   : > { %v4214_v14 = vadd.f32 %v7331_v18, %v4175_v55  ;;  %v4245_v47 = vmax.f32 %v4213_v40, 0.0 }
 0x23a   : > { %v2748_v39 = vpop.f32.mrb[40].mxu1 }
 0x23b   : > { %v2749_v27 = vadd.f32 %v2748_v39, %v7280_v41  ;;  %v2750_v4 = vpop.f32.mrb[41].mxu1  ;;  %v4246_v2 = vmax.f32 %v4214_v14, 0.0 }
 0x23c   : > { %v2751_v23 = vpop.f32.mrb[42].mxu1  ;;  %v4055_v59 = vpop.f32.mrb[36].mxu0 }
 0x23d   : > { %v2752_v35 = vadd.f32 %v2751_v23, %v7282_v46  ;;  %v2753_v15 = vpop.f32.mrb[43].mxu1  ;;  %v4176_v34 = vadd.f32 %v4055_v59, %v2741_v31  ;;  %v4057_v49 = vpop.f32.mrb[37].mxu0 }
 0x23e   : > { %v4058_v9 = vpop.f32.mrb[38].mxu0 }
 0x23f   : > { %v4215_v36 = vadd.f32 %v7331_v18, %v4176_v34  ;;  %v4177_v43 = vadd.f32 %v4058_v9, %v2744_v30  ;;  %v4060_v7 = vpop.f32.mrb[39].mxu0 }
 0x241   : > { %v4247_v48 = vmax.f32 %v4215_v36, 0.0  ;;  %v4216_v41 = vadd.f32 %v7331_v18, %v4177_v43 }
 0x242   : > { %v2756_v54 = vpop.f32.mrb[44].mxu1 }
 0x243   : > { %v2757_v53 = vadd.f32 %v2756_v54, %v7288_v62  ;;  %v2758_v46 = vpop.f32.mrb[45].mxu1  ;;  %v4277_v63 = vmax.f32 %v4245_v47, %v4247_v48  ;;  %v4248_v3 = vmax.f32 %v4216_v41, 0.0 }
 0x244   : > { %v2759_v0 = vpop.f32.mrb[46].mxu1  ;;  %v4063_v21 = vpop.f32.mrb[40].mxu0 }
 0x245   : > { %v2760_v31 = vadd.f32 %v2759_v0, %v7290_v16  ;;  %v2761_v50 = vpop.f32.mrb[47].mxu1  ;;  %4293 = vst.msk [vmem:[#allocation3] sm:$0xff] %vm351_vm3, %v4277_v63  ;;  %v4278_v56 = vmax.f32 %v4246_v2, %v4248_v3  ;;  %v4178_v52 = vadd.f32 %v4063_v21, %v2749_v27  ;;  %v4065_v30 = vpop.f32.mrb[41].mxu0 }
 0x246   : > { %v4066_v22 = vpop.f32.mrb[42].mxu0 }
 0x247   : > { %4294 = vst.msk [vmem:[#allocation3 + $0x8] sm:$0xff] %vm351_vm3, %v4278_v56  ;;  %v4179_v26 = vadd.f32 %v4066_v22, %v2752_v35  ;;  %v4068_v62 = vpop.f32.mrb[43].mxu0  ;;  %v4217_v23 = vadd.f32 %v7331_v18, %v4178_v52  ;;  %v4472_v22 = vld [vmem:[%s7356_s5 + $0x8] sm:$0xf] }
 0x249   : > { %v4218_v35 = vadd.f32 %v7331_v18, %v4179_v26  ;;  %v4475_v26 = vld [vmem:[%s7356_s5 + $0xc] sm:$0x1] }
 0x24a   : > { %v2764_v12 = vpop.f32.mrb[48].mxu1 }
 0x24b   : > { %v2765_v60 = vadd.f32 %v2764_v12, %v7296_v20  ;;  %v2766_v55 = vpop.f32.mrb[49].mxu1 }
 0x24c   : > { %v2767_v11 = vpop.f32.mrb[50].mxu1  ;;  %v4071_v39 = vpop.f32.mrb[44].mxu0 }
 0x24d   : > { %v2768_v16 = vadd.f32 %v2767_v11, %v7298_v51  ;;  %v2769_v4 = vpop.f32.mrb[51].mxu1  ;;  %v4180_v59 = vadd.f32 %v4071_v39, %v2757_v53  ;;  %v4073_v27 = vpop.f32.mrb[45].mxu0  ;;  %v4249_v51 = vmax.f32 %v4217_v23, 0.0  ;;  %v4250_v53 = vmax.f32 %v4218_v35, 0.0 }
 0x24e   : > { %v4309_v15 = vld [vmem:[#allocation3] ss:$2 sm:$0xff]  ;;  %v4325_v40 = vld [vmem:[#allocation3 + $0x1] ss:$2 sm:$0xff]  ;;  %v4074_v34 = vpop.f32.mrb[46].mxu0 }
 0x24f   : > { %v4340_v49 = vmax.f32 %v4309_v15, %v4325_v40  ;;  %v4219_v9 = vadd.f32 %v7331_v18, %v4180_v59  ;;  %v4181_v20 = vadd.f32 %v4074_v34, %v2760_v31  ;;  %v4076_v14 = vpop.f32.mrb[47].mxu0 }
 0x251   : > { %v7349_v36 = vpack.c.bf16 %v4340_v49, %v4340_v49  ;;  %v4251_v43 = vmax.f32 %v4219_v9, 0.0  ;;  %v4220_v7 = vadd.f32 %v7331_v18, %v4181_v20 }
 0x252   : > { %v2772_v47 = vpop.f32.mrb[52].mxu1 }
 0x253   : > { %v2773_v48 = vadd.f32 %v2772_v47, %v7304_v24  ;;  %v2774_v41 = vpop.f32.mrb[53].mxu1  ;;  %v4389_v54 = vshrl.u32 %v7349_v36, 16  ;;  %v4279_v46 = vmax.f32 %v4249_v51, %v4251_v43  ;;  %v4252_v2 = vmax.f32 %v4220_v7, 0.0 }
 0x254   : > { %v2775_v63 = vpop.f32.mrb[54].mxu1  ;;  %v4079_v3 = vpop.f32.mrb[48].mxu0  ;;  %v4392_v24 = vshll.u32 %v7349_v36, 16 }
 0x255   : > { %v2776_v0 = vadd.f32 %v2775_v63, %v7306_v44  ;;  %v2777_v21 = vpop.f32.mrb[55].mxu1  ;;  %v4391_v31 = vrot.slane %v4389_v54, 7  ;;  %4295 = vst.msk [vmem:[#allocation3 + $0x10] sm:$0xff] %vm351_vm3, %v4279_v46  ;;  %v4280_v56 = vmax.f32 %v4250_v53, %v4252_v2  ;;  %v4182_v52 = vadd.f32 %v4079_v3, %v2765_v60  ;;  %v4081_v30 = vpop.f32.mrb[49].mxu0 }
 0x256   : > { %v4082_v62 = vpop.f32.mrb[50].mxu0 }
 0x257   : > { %v4394_v12 = vor.u32 %v4392_v24, %v4391_v31  ;;  %v4395_v55 = vrot.slane %v4391_v31, 4  ;;  %4296 = vst.msk [vmem:[#allocation3 + $0x18] sm:$0xff] %vm351_vm3, %v4280_v56  ;;  %v4183_v11 = vadd.f32 %v4082_v62, %v2768_v16  ;;  %v4084_v39 = vpop.f32.mrb[51].mxu0  ;;  %v4221_v40 = vadd.f32 %v7331_v18, %v4182_v52 }
 0x259   : > { %v4473_v4 = vsel %vm7363_vm12, %v4394_v12, %v4472_v22  ;;  %v4476_v60 = vsel %vm7370_vm13, %v4395_v55, %v4475_v26  ;;  %v4222_v43 = vadd.f32 %v7331_v18, %v4183_v11  ;;  %v4253_v41 = vmax.f32 %v4221_v40, 0.0  ;;  %v4463_v12 = vld [vmem:[%s7356_s5] sm:$0xf] }
 0x25a   : > { %v2780_v23 = vpop.f32.mrb[56].mxu1  ;;  %4474 = vst [vmem:[%s7356_s5 + $0x8] sm:$0xf] %v4473_v4  ;;  %4477 = vst [vmem:[%s7356_s5 + $0xc] sm:$0x1] %v4476_v60 }
 0x25b   : > { %v2781_v59 = vadd.f32 %v2780_v23, %v7312_v17  ;;  %v2782_v27 = vpop.f32.mrb[57].mxu1  ;;  %v4254_v30 = vmax.f32 %v4222_v43, 0.0  ;;  %v4469_v60 = vld [vmem:[%s7356_s5 + $0x4] sm:$0x1] }
 0x25c   : > { %v2783_v15 = vpop.f32.mrb[58].mxu1  ;;  %v4087_v34 = vpop.f32.mrb[52].mxu0  ;;  %v4478_v27 = vld [vmem:[%s7356_s5 + $0x10] sm:$0xf] }
 0x25d   : > { %v2784_v16 = vadd.f32 %v2783_v15, %v7314_v33  ;;  %v2785_v49 = vpop.f32.mrb[59].mxu1  ;;  %v4184_v35 = vadd.f32 %v4087_v34, %v2773_v48  ;;  %v4089_v9 = vpop.f32.mrb[53].mxu0  ;;  %v5344_v48 = vrot.slane %v4392_v24, 11  ;;  %v4481_v15 = vld [vmem:[%s7356_s5 + $0x14] sm:$0x1] }
 0x25e   : > { %v4311_v20 = vld [vmem:[#allocation3 + $0x10] ss:$2 sm:$0xff]  ;;  %v4327_v14 = vld [vmem:[#allocation3 + $0x11] ss:$2 sm:$0xff]  ;;  %v4090_v36 = vpop.f32.mrb[54].mxu0 }
 0x25f   : > { %v4341_v17 = vmax.f32 %v4311_v20, %v4327_v14  ;;  %v4223_v7 = vadd.f32 %v7331_v18, %v4184_v35  ;;  %v4185_v33 = vadd.f32 %v4090_v36, %v2776_v0  ;;  %v4092_v47 = vpop.f32.mrb[55].mxu0 }
 0x261   : > { %v4553_v53 = vld [vmem:[%s7356_s5 + $0x8] sm:$0x1]  ;;  %v4608_v46 = vld [vmem:[%s7356_s5 + $0xc] sm:$0x1]  ;;  %v5352_v2 = vpack.c.bf16 %v4341_v17, %v4341_v17  ;;  %v4255_v63 = vmax.f32 %v4223_v7, 0.0  ;;  %v4224_v3 = vadd.f32 %v7331_v18, %v4185_v33 }
 0x262   : > { %v2788_v21 = vpop.f32.mrb[60].mxu1  ;;  %v4554_v31 = vsel %vm7370_vm13, %v4389_v54, %v4553_v53  ;;  %v4609_v56 = vsel %vm7388_vm14, %v5344_v48, %v4608_v46 }
 0x263   : > { %v2789_v0 = vadd.f32 %v2788_v21, %v7321_v10  ;;  %v2790_v52 = vpop.f32.mrb[61].mxu1  ;;  %4555 = vst [vmem:[%s7356_s5 + $0x8] sm:$0x1] %v4554_v31  ;;  %4610 = vst [vmem:[%s7356_s5 + $0xc] sm:$0x1] %v4609_v56  ;;  %v4381_v24 = vshrl.u32 %v5352_v2, 16  ;;  %v4281_v22 = vmax.f32 %v4253_v41, %v4255_v63 }
 0x264   : > { %v4256_v26 = vmax.f32 %v4224_v3, 0.0  ;;  %v2791_v62 = vpop.f32.mrb[62].mxu1  ;;  %v4095_v55 = vpop.f32.mrb[56].mxu0  ;;  %v4384_v4 = vshll.u32 %v5352_v2, 16 }
 0x265   : > { %v2792_v54 = vadd.f32 %v2791_v62, %v7324_v45  ;;  %v2793_v11 = vpop.f32.mrb[63].mxu1  ;;  %v4383_v39 = vrot.slane %v4381_v24, 7  ;;  %4297 = vst.msk [vmem:[#allocation3 + $0x20] sm:$0xff] %vm351_vm3, %v4281_v22  ;;  %v4097_v23 = vpop.f32.mrb[57].mxu0  ;;  %v4186_v40 = vadd.f32 %v4095_v55, %v2781_v59  ;;  %v4526_v33 = vrot.slane %v4381_v24, 4 }
 0x266   : > { %v4282_v10 = vmax.f32 %v4254_v30, %v4256_v26  ;;  %v4098_v34 = vpop.f32.mrb[58].mxu0  ;;  %v4580_v47 = vrot.slane %v4384_v4, 7 }
 0x267   : > { %v4386_v49 = vor.u32 %v4384_v4, %v4383_v39  ;;  %v4387_v35 = vrot.slane %v4383_v39, 4  ;;  %v4100_v45 = vpop.f32.mrb[59].mxu0  ;;  %v4187_v9 = vadd.f32 %v4098_v34, %v2784_v16  ;;  %v4225_v48 = vadd.f32 %v7331_v18, %v4186_v40 }
 0x268   : > { %4298 = vst.msk [vmem:[#allocation3 + $0x28] sm:$0xff] %vm351_vm3, %v4282_v10  ;;  %v4527_v22 = vrot.slane %v4526_v33, 4  ;;  %v4484_v33 = vld [vmem:[%s7356_s5 + $0x18] sm:$0xf] }
 0x269   : > { %v4464_v20 = vsel %vm7363_vm12, %v4386_v49, %v4463_v12  ;;  %v4470_v14 = vsel %vm7370_vm13, %v4387_v35, %v4469_v60  ;;  %v4479_v36 = vsel %vm7363_vm12, %v4386_v49, %v4478_v27  ;;  %v4482_v17 = vsel %vm7370_vm13, %v4387_v35, %v4481_v15 }
 0x26a   : > { %v2796_v59 = vpop.f32.mrb[64].mxu1  ;;  %4465 = vst [vmem:[%s7356_s5] sm:$0xf] %v4464_v20  ;;  %4471 = vst [vmem:[%s7356_s5 + $0x4] sm:$0x1] %v4470_v14  ;;  %v4257_v26 = vmax.f32 %v4225_v48, 0.0 }
 0x26b   : > { %4480 = vst [vmem:[%s7356_s5 + $0x10] sm:$0xf] %v4479_v36  ;;  %4483 = vst [vmem:[%s7356_s5 + $0x14] sm:$0x1] %v4482_v17  ;;  %v2797_v43 = vadd.f32 %v2796_v59, %v7243_v42  ;;  %v2798_v16 = vpop.f32.mrb[65].mxu1  ;;  %v4226_v42 = vadd.f32 %v7331_v18, %v4187_v9 }
 0x26c   : > { %v2799_v7 = vpop.f32.mrb[66].mxu1  ;;  %v4103_v41 = vpop.f32.mrb[60].mxu0 }
 0x26d   : > { %v2800_v53 = vadd.f32 %v2799_v7, %v7245_v32  ;;  %v2801_v46 = vpop.f32.mrb[67].mxu1  ;;  %v4188_v2 = vadd.f32 %v4103_v41, %v2789_v0  ;;  %v4105_v63 = vpop.f32.mrb[61].mxu0  ;;  %v4581_v32 = vrot.slane %v4580_v47, 4  ;;  %v4258_v40 = vmax.f32 %v4226_v42, 0.0  ;;  %v4487_v47 = vld [vmem:[%s7356_s5 + $0x1c] sm:$0x1] }
 0x26e   : > { %v4106_v31 = vpop.f32.mrb[62].mxu0 }
 0x26f   : > { %v4313_v3 = vld [vmem:[#allocation3 + $0x20] ss:$2 sm:$0xff]  ;;  %v4329_v21 = vld [vmem:[#allocation3 + $0x21] ss:$2 sm:$0xff]  ;;  %v4227_v52 = vadd.f32 %v7331_v18, %v4188_v2  ;;  %v4189_v24 = vadd.f32 %v4106_v31, %v2792_v54  ;;  %v4108_v30 = vpop.f32.mrb[63].mxu0 }
 0x270   : > { %v4342_v56 = vmax.f32 %v4313_v3, %v4329_v21 }
 0x271   : > { %v4550_v62 = vld [vmem:[%s7356_s5] sm:$0x1]  ;;  %v4605_v12 = vld [vmem:[%s7356_s5 + $0x4] sm:$0x1]  ;;  %v4228_v11 = vadd.f32 %v7331_v18, %v4189_v24  ;;  %v4259_v10 = vmax.f32 %v4227_v52, 0.0 }
 0x272   : > { %v4556_v0 = vld [vmem:[%s7356_s5 + $0x10] sm:$0x1]  ;;  %v7431_v55 = vpack.c.bf16 %v4342_v56, %v4342_v56  ;;  %v4551_v39 = vsel %vm7370_vm13, %v4527_v22, %v4550_v62  ;;  %v4606_v4 = vsel %vm7388_vm14, %v4581_v32, %v4605_v12  ;;  %v4611_v60 = vld [vmem:[%s7356_s5 + $0x14] sm:$0x1]  ;;  %v2804_v23 = vpop.f32.mrb[68].mxu1 }
 0x273   : > { %v4557_v54 = vsel %vm7370_vm13, %v4527_v22, %v4556_v0  ;;  %4552 = vst [vmem:[%s7356_s5] sm:$0x1] %v4551_v39  ;;  %4607 = vst [vmem:[%s7356_s5 + $0x4] sm:$0x1] %v4606_v4  ;;  %v4612_v27 = vsel %vm7388_vm14, %v4581_v32, %v4611_v60  ;;  %v4260_v34 = vmax.f32 %v4228_v11, 0.0  ;;  %v2806_v49 = vpop.f32.mrb[69].mxu1  ;;  %v4283_v35 = vmax.f32 %v4257_v26, %v4259_v10 }
 0x274   : > { %4558 = vst [vmem:[%s7356_s5 + $0x10] sm:$0x1] %v4557_v54  ;;  %v4397_v15 = vshrl.u32 %v7431_v55, 16  ;;  %4613 = vst [vmem:[%s7356_s5 + $0x14] sm:$0x1] %v4612_v27  ;;  %v4111_v45 = vpop.f32.mrb[64].mxu0  ;;  %v2805_v9 = vadd.f32 %v2804_v23, %v7258_v37 }
 0x275   : > { %v2807_v20 = vpop.f32.mrb[70].mxu1  ;;  %v4400_v36 = vshll.u32 %v7431_v55, 16  ;;  %v4284_v17 = vmax.f32 %v4258_v40, %v4260_v34  ;;  %v4190_v59 = vadd.f32 %v4111_v45, %v2797_v43  ;;  %v4113_v16 = vpop.f32.mrb[65].mxu0  ;;  %4299 = vst.msk [vmem:[#allocation3 + $0x30] sm:$0xff] %vm351_vm3, %v4283_v35 }
 0x276   : > { %v4399_v14 = vrot.slane %v4397_v15, 7  ;;  %v2809_v7 = vpop.f32.mrb[71].mxu1  ;;  %v4114_v48 = vpop.f32.mrb[66].mxu0  ;;  %v2808_v41 = vadd.f32 %v2807_v20, %v7262_v58 }
 0x277   : > { %4300 = vst.msk [vmem:[#allocation3 + $0x38] sm:$0xff] %vm351_vm3, %v4284_v17  ;;  %v4191_v37 = vadd.f32 %v4114_v48, %v2800_v53  ;;  %v4116_v63 = vpop.f32.mrb[67].mxu0  ;;  %v4229_v58 = vadd.f32 %v7331_v18, %v4190_v59  ;;  %v5345_v39 = vrot.slane %v4400_v36, 11  ;;  %v4490_v48 = vld [vmem:[%s7356_s5 + $0x20] sm:$0xf] }
 0x278   : > { %v4402_v46 = vor.u32 %v4400_v36, %v4399_v14  ;;  %v4403_v2 = vrot.slane %v4399_v14, 4 }
 0x279   : > { %v4230_v12 = vadd.f32 %v7331_v18, %v4191_v37  ;;  %v4261_v54 = vmax.f32 %v4229_v58, 0.0 }
 0x27a   : > { %v4485_v43 = vsel %vm7363_vm12, %v4402_v46, %v4484_v33  ;;  %v4488_v3 = vsel %vm7370_vm13, %v4403_v2, %v4487_v47  ;;  %v2812_v21 = vpop.f32.mrb[72].mxu1 }
 0x27b   : > { %4486 = vst [vmem:[%s7356_s5 + $0x18] sm:$0xf] %v4485_v43  ;;  %4489 = vst [vmem:[%s7356_s5 + $0x1c] sm:$0x1] %v4488_v3  ;;  %v2813_v31 = vadd.f32 %v2812_v21, %v7274_v61  ;;  %v2814_v56 = vpop.f32.mrb[73].mxu1 }
 0x27c   : > { %v2815_v42 = vpop.f32.mrb[74].mxu1  ;;  %v4119_v52 = vpop.f32.mrb[68].mxu0 }
 0x27d   : > { %v2816_v53 = vadd.f32 %v2815_v42, %v7277_v19  ;;  %v2817_v24 = vpop.f32.mrb[75].mxu1  ;;  %v4192_v30 = vadd.f32 %v4119_v52, %v2805_v9  ;;  %v4121_v22 = vpop.f32.mrb[69].mxu0  ;;  %v4262_v9 = vmax.f32 %v4230_v12, 0.0 }
 0x27e   : > { %v4315_v32 = vld [vmem:[#allocation3 + $0x30] ss:$2 sm:$0xff]  ;;  %v4331_v26 = vld [vmem:[#allocation3 + $0x31] ss:$2 sm:$0xff]  ;;  %v4122_v62 = vpop.f32.mrb[70].mxu0 }
 0x27f   : > { %v4343_v0 = vmax.f32 %v4315_v32, %v4331_v26  ;;  %v4231_v61 = vadd.f32 %v7331_v18, %v4192_v30  ;;  %v4193_v55 = vadd.f32 %v4122_v62, %v2808_v41  ;;  %v4124_v11 = vpop.f32.mrb[71].mxu0  ;;  %v4493_v41 = vld [vmem:[%s7356_s5 + $0x24] sm:$0x1] }
 0x281   : > { %v7468_v19 = vpack.c.bf16 %v4343_v0, %v4343_v0  ;;  %v4263_v10 = vmax.f32 %v4231_v61, 0.0  ;;  %v4232_v23 = vadd.f32 %v7331_v18, %v4193_v55 }
 0x282   : > { %v4559_v4 = vld [vmem:[%s7356_s5 + $0x18] sm:$0x1]  ;;  %v4614_v60 = vld [vmem:[%s7356_s5 + $0x1c] sm:$0x1]  ;;  %v2820_v27 = vpop.f32.mrb[76].mxu1 }
 0x283   : > { %v4560_v40 = vsel %vm7370_vm13, %v4397_v15, %v4559_v4  ;;  %v4615_v34 = vsel %vm7388_vm14, %v5345_v39, %v4614_v60  ;;  %v2821_v49 = vadd.f32 %v2820_v27, %v7284_v13  ;;  %v2822_v35 = vpop.f32.mrb[77].mxu1  ;;  %v4405_v45 = vshrl.u32 %v7468_v19, 16 }
 0x284   : > { %4561 = vst [vmem:[%s7356_s5 + $0x18] sm:$0x1] %v4560_v40  ;;  %4616 = vst [vmem:[%s7356_s5 + $0x1c] sm:$0x1] %v4615_v34  ;;  %v4285_v20 = vmax.f32 %v4261_v54, %v4263_v10  ;;  %v4264_v14 = vmax.f32 %v4232_v23, 0.0  ;;  %v2823_v36 = vpop.f32.mrb[78].mxu1 }
 0x285   : > { %v4127_v17 = vpop.f32.mrb[72].mxu0  ;;  %v2824_v59 = vadd.f32 %v2823_v36, %v7286_v5  ;;  %v2825_v15 = vpop.f32.mrb[79].mxu1  ;;  %v4407_v16 = vrot.slane %v4405_v45, 7  ;;  %v4408_v7 = vshll.u32 %v7468_v19, 16 }
 0x286   : > { %4301 = vst.msk [vmem:[#allocation3 + $0x40] sm:$0xff] %vm351_vm3, %v4285_v20  ;;  %v4286_v13 = vmax.f32 %v4262_v9, %v4264_v14  ;;  %v4194_v33 = vadd.f32 %v4127_v17, %v2813_v31  ;;  %v4129_v47 = vpop.f32.mrb[73].mxu0 }
 0x287   : > { %v4130_v46 = vpop.f32.mrb[74].mxu0  ;;  %v4410_v2 = vor.u32 %v4408_v7, %v4407_v16  ;;  %v4411_v37 = vrot.slane %v4407_v16, 4  ;;  %v5346_v11 = vrot.slane %v4408_v7, 11 }
 0x288   : > { %4302 = vst.msk [vmem:[#allocation3 + $0x48] sm:$0xff] %vm351_vm3, %v4286_v13  ;;  %v4195_v63 = vadd.f32 %v4130_v46, %v2816_v53  ;;  %v4132_v5 = vpop.f32.mrb[75].mxu0  ;;  %v4233_v58 = vadd.f32 %v7331_v18, %v4194_v33  ;;  %v4496_v13 = vld [vmem:[%s7356_s5 + $0x28] sm:$0xf]  ;;  %v4499_v33 = vld [vmem:[%s7356_s5 + $0x2c] sm:$0x1] }
 0x289   : > { %v4491_v43 = vsel %vm7363_vm12, %v4410_v2, %v4490_v48  ;;  %v4494_v3 = vsel %vm7370_vm13, %v4411_v37, %v4493_v41 }
 0x28a   : > { %v2828_v21 = vpop.f32.mrb[80].mxu1  ;;  %4492 = vst [vmem:[%s7356_s5 + $0x20] sm:$0xf] %v4491_v43  ;;  %4495 = vst [vmem:[%s7356_s5 + $0x24] sm:$0x1] %v4494_v3  ;;  %v4234_v12 = vadd.f32 %v7331_v18, %v4195_v63  ;;  %v4265_v39 = vmax.f32 %v4233_v58, 0.0 }
 0x28b   : > { %v2829_v31 = vadd.f32 %v2828_v21, %v7292_v28  ;;  %v2830_v56 = vpop.f32.mrb[81].mxu1 }
 0x28c   : > { %v2831_v42 = vpop.f32.mrb[82].mxu1  ;;  %v4135_v52 = vpop.f32.mrb[76].mxu0  ;;  %v4266_v35 = vmax.f32 %v4234_v12, 0.0 }
 0x28d   : > { %v2832_v53 = vadd.f32 %v2831_v42, %v7294_v29  ;;  %v2833_v24 = vpop.f32.mrb[83].mxu1  ;;  %v4196_v30 = vadd.f32 %v4135_v52, %v2821_v49  ;;  %v4137_v22 = vpop.f32.mrb[77].mxu0 }
 0x28e   : > { %v4138_v62 = vpop.f32.mrb[78].mxu0 }
 0x28f   : > { %v4317_v32 = vld [vmem:[#allocation3 + $0x40] ss:$2 sm:$0xff]  ;;  %v4333_v26 = vld [vmem:[#allocation3 + $0x41] ss:$2 sm:$0xff]  ;;  %v4235_v28 = vadd.f32 %v7331_v18, %v4196_v30  ;;  %v4197_v61 = vadd.f32 %v4138_v62, %v2824_v59  ;;  %v4140_v55 = vpop.f32.mrb[79].mxu0 }
 0x290   : > { %v4344_v0 = vmax.f32 %v4317_v32, %v4333_v26 }
 0x291   : > { %v4562_v54 = vld [vmem:[%s7356_s5 + $0x20] sm:$0x1]  ;;  %v4617_v4 = vld [vmem:[%s7356_s5 + $0x24] sm:$0x1]  ;;  %v4267_v60 = vmax.f32 %v4235_v28, 0.0  ;;  %v4236_v19 = vadd.f32 %v7331_v18, %v4197_v61 }
 0x292   : > { %v7498_v29 = vpack.c.bf16 %v4344_v0, %v4344_v0  ;;  %v2836_v10 = vpop.f32.mrb[84].mxu1  ;;  %v4563_v23 = vsel %vm7370_vm13, %v4405_v45, %v4562_v54  ;;  %v4618_v27 = vsel %vm7388_vm14, %v5346_v11, %v4617_v4 }
 0x293   : > { %v2837_v40 = vadd.f32 %v2836_v10, %v7300_v8  ;;  %v2838_v34 = vpop.f32.mrb[85].mxu1  ;;  %4564 = vst [vmem:[%s7356_s5 + $0x20] sm:$0x1] %v4563_v23  ;;  %4619 = vst [vmem:[%s7356_s5 + $0x24] sm:$0x1] %v4618_v27  ;;  %v4287_v9 = vmax.f32 %v4265_v39, %v4267_v60  ;;  %v4268_v20 = vmax.f32 %v4236_v19, 0.0 }
 0x294   : > { %v4413_v49 = vshrl.u32 %v7498_v29, 16  ;;  %v2839_v14 = vpop.f32.mrb[86].mxu1  ;;  %v4143_v36 = vpop.f32.mrb[80].mxu0  ;;  %v4416_v15 = vshll.u32 %v7498_v29, 16 }
 0x295   : > { %v2840_v17 = vadd.f32 %v2839_v14, %v7302_v25  ;;  %v2841_v45 = vpop.f32.mrb[87].mxu1  ;;  %4303 = vst.msk [vmem:[#allocation3 + $0x50] sm:$0xff] %vm351_vm3, %v4287_v9  ;;  %v4288_v8 = vmax.f32 %v4266_v35, %v4268_v20  ;;  %v4198_v16 = vadd.f32 %v4143_v36, %v2829_v31  ;;  %v4145_v7 = vpop.f32.mrb[81].mxu0 }
 0x296   : > { %v4415_v59 = vrot.slane %v4413_v49, 7  ;;  %v4146_v47 = vpop.f32.mrb[82].mxu0  ;;  %v5347_v0 = vrot.slane %v4416_v15, 11  ;;  %v4505_v45 = vld [vmem:[%s7356_s5 + $0x34] sm:$0x1] }
 0x297   : > { %4304 = vst.msk [vmem:[#allocation3 + $0x58] sm:$0xff] %vm351_vm3, %v4288_v8  ;;  %v4199_v46 = vadd.f32 %v4146_v47, %v2832_v53  ;;  %v4148_v25 = vpop.f32.mrb[83].mxu0  ;;  %v4237_v21 = vadd.f32 %v7331_v18, %v4198_v16 }
 0x298   : > { %v4418_v48 = vor.u32 %v4416_v15, %v4415_v59  ;;  %v4419_v41 = vrot.slane %v4415_v59, 4 }
 0x299   : > { %v4238_v32 = vadd.f32 %v7331_v18, %v4199_v46  ;;  %v4269_v12 = vmax.f32 %v4237_v21, 0.0 }
 0x29a   : > { %v4497_v2 = vsel %vm7363_vm12, %v4418_v48, %v4496_v13  ;;  %v4500_v37 = vsel %vm7370_vm13, %v4419_v41, %v4499_v33  ;;  %v2844_v63 = vpop.f32.mrb[88].mxu1 }
 0x29b   : > { %4498 = vst [vmem:[%s7356_s5 + $0x28] sm:$0xf] %v4497_v2  ;;  %4501 = vst [vmem:[%s7356_s5 + $0x2c] sm:$0x1] %v4500_v37  ;;  %v2845_v5 = vadd.f32 %v2844_v63, %v7308_v1  ;;  %v2846_v43 = vpop.f32.mrb[89].mxu1  ;;  %v4270_v10 = vmax.f32 %v4238_v32, 0.0 }
 0x29c   : > { %v2847_v3 = vpop.f32.mrb[90].mxu1  ;;  %v4151_v31 = vpop.f32.mrb[84].mxu0 }
 0x29d   : > { %v2848_v56 = vadd.f32 %v2847_v3, %v7310_v6  ;;  %v2849_v42 = vpop.f32.mrb[91].mxu1  ;;  %v4200_v58 = vadd.f32 %v4151_v31, %v2837_v40  ;;  %v4153_v52 = vpop.f32.mrb[85].mxu0 }
 0x29e   : > { %v4319_v53 = vld [vmem:[#allocation3 + $0x50] ss:$2 sm:$0xff]  ;;  %v4335_v24 = vld [vmem:[#allocation3 + $0x51] ss:$2 sm:$0xff]  ;;  %v4154_v30 = vpop.f32.mrb[86].mxu0 }
 0x29f   : > { %v4345_v22 = vmax.f32 %v4319_v53, %v4335_v24  ;;  %v4239_v1 = vadd.f32 %v7331_v18, %v4200_v58  ;;  %v4201_v26 = vadd.f32 %v4154_v30, %v2840_v17  ;;  %v4156_v62 = vpop.f32.mrb[87].mxu0  ;;  %v4502_v17 = vld [vmem:[%s7356_s5 + $0x30] sm:$0xf] }
 0x2a1   : > { %v5357_v6 = vpack.c.bf16 %v4345_v22, %v4345_v22  ;;  %v4271_v55 = vmax.f32 %v4239_v1, 0.0  ;;  %v4240_v11 = vadd.f32 %v7331_v18, %v4201_v26 }
 0x2a2   : > { %v4565_v28 = vld [vmem:[%s7356_s5 + $0x28] sm:$0x1]  ;;  %v4620_v61 = vld [vmem:[%s7356_s5 + $0x2c] sm:$0x1]  ;;  %v2852_v39 = vpop.f32.mrb[92].mxu1 }
 0x2a3   : > { %v4566_v54 = vsel %vm7370_vm13, %v4413_v49, %v4565_v28  ;;  %v4621_v4 = vsel %vm7388_vm14, %v5347_v0, %v4620_v61  ;;  %v2853_v29 = vadd.f32 %v2852_v39, %v7316_v38  ;;  %v2854_v60 = vpop.f32.mrb[93].mxu1  ;;  %v4421_v19 = vshrl.u32 %v5357_v6, 16  ;;  %v4511_v28 = vld [vmem:[%s7356_s5 + $0x3c] sm:$0x1]  ;;  %v4520_v61 = vld [vmem:[%s7356_s5 + $0x48] sm:$0xf] }
 0x2a4   : > { %4567 = vst [vmem:[%s7356_s5 + $0x28] sm:$0x1] %v4566_v54  ;;  %4622 = vst [vmem:[%s7356_s5 + $0x2c] sm:$0x1] %v4621_v4  ;;  %v4289_v23 = vmax.f32 %v4269_v12, %v4271_v55  ;;  %v4272_v27 = vmax.f32 %v4240_v11, 0.0  ;;  %v2855_v40 = vpop.f32.mrb[94].mxu1 }
 0x2a5   : > { %v4159_v34 = vpop.f32.mrb[88].mxu0  ;;  %v2856_v35 = vadd.f32 %v2855_v40, %v7318_v57  ;;  %v2857_v9 = vpop.f32.mrb[95].mxu1  ;;  %v4423_v49 = vrot.slane %v4421_v19, 7  ;;  %v4424_v20 = vshll.u32 %v5357_v6, 16  ;;  %v4508_v12 = vld [vmem:[%s7356_s5 + $0x38] sm:$0xf] }
 0x2a6   : > { %4305 = vst.msk [vmem:[#allocation3 + $0x60] sm:$0xff] %vm351_vm3, %v4289_v23  ;;  %v4290_v38 = vmax.f32 %v4270_v10, %v4272_v27  ;;  %v4202_v14 = vadd.f32 %v4159_v34, %v2845_v5  ;;  %v4161_v36 = vpop.f32.mrb[89].mxu0  ;;  %v4523_v6 = vld [vmem:[%s7356_s5 + $0x4c] sm:$0x1] }
 0x2a7   : > { %v4162_v59 = vpop.f32.mrb[90].mxu0  ;;  %v4426_v15 = vor.u32 %v4424_v20, %v4423_v49  ;;  %v4427_v8 = vrot.slane %v4423_v49, 4  ;;  %v5348_v21 = vrot.slane %v4424_v20, 11 }
 0x2a8   : > { %4306 = vst.msk [vmem:[#allocation3 + $0x68] sm:$0xff] %vm351_vm3, %v4290_v38  ;;  %v4203_v16 = vadd.f32 %v4162_v59, %v2848_v56  ;;  %v4164_v7 = vpop.f32.mrb[91].mxu0  ;;  %v4241_v47 = vadd.f32 %v7331_v18, %v4202_v14 }
 0x2a9   : > { %v4503_v57 = vsel %vm7363_vm12, %v4426_v15, %v4502_v17  ;;  %v4506_v13 = vsel %vm7370_vm13, %v4427_v8, %v4505_v45  ;;  %v4517_v7 = vld [vmem:[%s7356_s5 + $0x44] sm:$0x1] }
 0x2aa   : > { %4504 = vst [vmem:[%s7356_s5 + $0x30] sm:$0xf] %v4503_v57  ;;  %4507 = vst [vmem:[%s7356_s5 + $0x34] sm:$0x1] %v4506_v13  ;;  %v4242_v63 = vadd.f32 %v7331_v18, %v4203_v16  ;;  %v4273_v58 = vmax.f32 %v4241_v47, 0.0 }
 0x2ab   : > { %v4514_v16 = vld [vmem:[%s7356_s5 + $0x40] sm:$0xf] }
 0x2ac   : > { %v4167_v33 = vpop.f32.mrb[92].mxu0  ;;  %v4274_v32 = vmax.f32 %v4242_v63, 0.0 }
 0x2ad   : > { %v4204_v48 = vadd.f32 %v4167_v33, %v2853_v29  ;;  %v4169_v41 = vpop.f32.mrb[93].mxu0 }
 0x2ae   : > { %v4170_v2 = vpop.f32.mrb[94].mxu0 }
 0x2af   : > { %v4321_v46 = vld [vmem:[#allocation3 + $0x60] ss:$2 sm:$0xff]  ;;  %v4337_v25 = vld [vmem:[#allocation3 + $0x61] ss:$2 sm:$0xff]  ;;  %v4243_v5 = vadd.f32 %v7331_v18, %v4204_v48  ;;  %v4205_v43 = vadd.f32 %v4170_v2, %v2856_v35  ;;  %v4172_v3 = vpop.f32.mrb[95].mxu0 }
 0x2b0   : > { %v4346_v37 = vmax.f32 %v4321_v46, %v4337_v25 }
 0x2b1   : > { %v4568_v31 = vld [vmem:[%s7356_s5 + $0x30] sm:$0x1]  ;;  %v4623_v56 = vld [vmem:[%s7356_s5 + $0x34] sm:$0x1]  ;;  %v4275_v52 = vmax.f32 %v4243_v5, 0.0  ;;  %v4244_v53 = vadd.f32 %v7331_v18, %v4205_v43 }
 0x2b2   : > { %v5358_v42 = vpack.c.bf16 %v4346_v37, %v4346_v37  ;;  %v4569_v24 = vsel %vm7370_vm13, %v4421_v19, %v4568_v31  ;;  %v4624_v30 = vsel %vm7388_vm14, %v5348_v21, %v4623_v56 }
 0x2b3   : > { %4570 = vst [vmem:[%s7356_s5 + $0x30] sm:$0x1] %v4569_v24  ;;  %4625 = vst [vmem:[%s7356_s5 + $0x34] sm:$0x1] %v4624_v30  ;;  %v4291_v1 = vmax.f32 %v4273_v58, %v4275_v52  ;;  %v4276_v26 = vmax.f32 %v4244_v53, 0.0 }
 0x2b4   : > { %v4429_v22 = vshrl.u32 %v5358_v42, 16  ;;  %v4432_v0 = vshll.u32 %v5358_v42, 16 }
 0x2b5   : > { %4307 = vst.msk [vmem:[#allocation3 + $0x70] sm:$0xff] %vm351_vm3, %v4291_v1  ;;  %v4292_v18 = vmax.f32 %v4274_v32, %v4276_v26 }
 0x2b6   : > { %v4431_v62 = vrot.slane %v4429_v22, 7  ;;  %v4538_v60 = vrot.slane %v4429_v22, 4  ;;  %v4592_v19 = vrot.slane %v4432_v0, 7 }
 0x2b7   : > { %4308 = vst.msk [vmem:[#allocation3 + $0x78] sm:$0xff] %vm351_vm3, %v4292_v18 }
 0x2b8   : > { %v4434_v55 = vor.u32 %v4432_v0, %v4431_v62  ;;  %v4435_v11 = vrot.slane %v4431_v62, 4  ;;  %v4539_v40 = vrot.slane %v4538_v60, 4  ;;  %v4593_v34 = vrot.slane %v4592_v19, 4 }
 0x2ba   : > { %v4509_v39 = vsel %vm7363_vm12, %v4434_v55, %v4508_v12  ;;  %v4512_v54 = vsel %vm7370_vm13, %v4435_v11, %v4511_v28  ;;  %v4521_v4 = vsel %vm7363_vm12, %v4434_v55, %v4520_v61  ;;  %v4524_v29 = vsel %vm7370_vm13, %v4435_v11, %v4523_v6 }
 0x2bb   : > { %4510 = vst [vmem:[%s7356_s5 + $0x38] sm:$0xf] %v4509_v39  ;;  %4513 = vst [vmem:[%s7356_s5 + $0x3c] sm:$0x1] %v4512_v54 }
 0x2bc   : > { %4522 = vst [vmem:[%s7356_s5 + $0x48] sm:$0xf] %v4521_v4  ;;  %4525 = vst [vmem:[%s7356_s5 + $0x4c] sm:$0x1] %v4524_v29 }
 0x2be   : > { %v4323_v10 = vld [vmem:[#allocation3 + $0x70] ss:$2 sm:$0xff]  ;;  %v4339_v23 = vld [vmem:[#allocation3 + $0x71] ss:$2 sm:$0xff] }
 0x2bf   : > { %v4347_v27 = vmax.f32 %v4323_v10, %v4339_v23 }
 0x2c1   : > { %v5359_v20 = vpack.c.bf16 %v4347_v27, %v4347_v27 }
 0x2c2   : > { %v4571_v35 = vld [vmem:[%s7356_s5 + $0x38] sm:$0x1]  ;;  %v4626_v49 = vld [vmem:[%s7356_s5 + $0x3c] sm:$0x1] }
 0x2c3   : > { %v4577_v9 = vld [vmem:[%s7356_s5 + $0x48] sm:$0x1]  ;;  %v4572_v38 = vsel %vm7370_vm13, %v4539_v40, %v4571_v35  ;;  %v4627_v36 = vsel %vm7388_vm14, %v4593_v34, %v4626_v49  ;;  %v4632_v17 = vld [vmem:[%s7356_s5 + $0x4c] sm:$0x1]  ;;  %v4437_v59 = vshrl.u32 %v5359_v20, 16  ;;  %v4440_v8 = vshll.u32 %v5359_v20, 16 }
 0x2c4   : > { %v4578_v14 = vsel %vm7370_vm13, %v4539_v40, %v4577_v9  ;;  %4573 = vst [vmem:[%s7356_s5 + $0x38] sm:$0x1] %v4572_v38  ;;  %4628 = vst [vmem:[%s7356_s5 + $0x3c] sm:$0x1] %v4627_v36  ;;  %v4633_v45 = vsel %vm7388_vm14, %v4593_v34, %v4632_v17 }
 0x2c5   : > { %4579 = vst [vmem:[%s7356_s5 + $0x48] sm:$0x1] %v4578_v14  ;;  %4634 = vst [vmem:[%s7356_s5 + $0x4c] sm:$0x1] %v4633_v45  ;;  %v4439_v15 = vrot.slane %v4437_v59, 7  ;;  %v5349_v48 = vrot.slane %v4440_v8, 11 }
 0x2c7   : > { %v4442_v57 = vor.u32 %v4440_v8, %v4439_v15  ;;  %v4443_v13 = vrot.slane %v4439_v15, 4 }
 0x2c9   : > { %v4515_v33 = vsel %vm7363_vm12, %v4442_v57, %v4514_v16  ;;  %v4518_v47 = vsel %vm7370_vm13, %v4443_v13, %v4517_v7 }
 0x2ca   : > { %4516 = vst [vmem:[%s7356_s5 + $0x40] sm:$0xf] %v4515_v33  ;;  %4519 = vst [vmem:[%s7356_s5 + $0x44] sm:$0x1] %v4518_v47 }
 0x2d1   : > { %v4574_v41 = vld [vmem:[%s7356_s5 + $0x40] sm:$0x1]  ;;  %v4629_v46 = vld [vmem:[%s7356_s5 + $0x44] sm:$0x1] }
 0x2d2   : > { %v4575_v25 = vsel %vm7370_vm13, %v4437_v59, %v4574_v41  ;;  %v4630_v2 = vsel %vm7388_vm14, %v5349_v48, %v4629_v46 }
 0x2d3   : > { %4576 = vst [vmem:[%s7356_s5 + $0x40] sm:$0x1] %v4575_v25  ;;  %4631 = vst [vmem:[%s7356_s5 + $0x44] sm:$0x1] %v4630_v2 }
 0x2d4 PF: > { %s13_s14 = sadd.s32 1, %s5518_s14   ;;  %s7636_s12 = smov %s5514_s13 }
 0x2d5   : > { %p10_p5 = scmp.ge.s32.totalorder %s13_s14, 4   ;;  %s7637_s13 = smov %s7639_s15 }
 0x2d7   :  { %12 = sbr.rel (!%p10_p5) target bundleno = 2 (0x2), region = 87 }

</bundles_post_ra>
